<compile_context>
chip_gen: v5e
topology: v5e:2x2
jax: 0.10.0
libtpu: 0.0.40
codegen_flags: <defaults>
</compile_context>

<pallas_src>
import functools

import jax
import jax.numpy as jnp
from jax.experimental import pallas as pl
from jax.experimental.pallas import tpu as pltpu

nc = 3
ndf = 16


def _round_up(x, m):
    return (x + m - 1) // m * m


# ---------------------------------------------------------------------------
# Fused  matmul + bias + activation  Pallas kernel (BN scale folded into W)
# ---------------------------------------------------------------------------
def _fused_kernel(act, p_ref, w_ref, b_ref, o_ref):
    y = jnp.dot(p_ref[...], w_ref[...], preferred_element_type=jnp.float32)
    y = y + b_ref[...]
    if act == "leaky":
        y = jnp.where(y > 0, y, 0.2 * y)
    elif act == "sigmoid":
        y = 1.0 / (1.0 + jnp.exp(-y))
    o_ref[...] = y.astype(o_ref.dtype)


def fused_matmul_bias_act(P, W, bias, act, out_dtype=jnp.bfloat16):
    """Y = act(P @ W + bias), single-shot K, tiled over (M, Cout)."""
    M, K = P.shape
    _, Cout = W.shape

    # Output-channel tiling: NO padding.  Cout <= 128 -> one full-width block
    # (block last dim == full array dim is legal); Cout > 128 -> 128-lane
    # tiles (always an exact multiple here).
    if Cout <= 128:
        tn = Cout
    else:
        tn = 128
    Np = _round_up(Cout, tn)

    # Row tiling: big tiles for the M-large early layers (fewer grid steps)...
    tm = min(2048, _round_up(M, 8))
    Mp = _round_up(M, tm)
    # ... but keep >= 2 grid programs when possible so both v7x TensorCores
    # get work (near-zero cost on single-TC v5e/v6e).
    if (Mp // tm) * (Np // tn) < 2 and M >= 16:
        tm = max(8, _round_up(M, 16) // 2)
        Mp = _round_up(M, tm)

    Pp = P if Mp == M else jnp.pad(P, ((0, Mp - M), (0, 0)))
    Wp = W if Np == Cout else jnp.pad(W, ((0, 0), (0, Np - Cout)))
    bp = bias.reshape(1, -1)
    if Np != Cout:
        bp = jnp.pad(bp, ((0, 0), (0, Np - Cout)))

    # bf16 MXU inputs (no-op for the bf16 activation path); f32 epilogue.
    Pp = Pp.astype(jnp.bfloat16)
    Wp = Wp.astype(jnp.bfloat16)

    grid = (Mp // tm, Np // tn)
    out = pl.pallas_call(
        functools.partial(_fused_kernel, act),
        out_shape=jax.ShapeDtypeStruct((Mp, Np), out_dtype),
        grid_spec=pltpu.PrefetchScalarGridSpec(
            num_scalar_prefetch=0,
            grid=grid,
            in_specs=[
                pl.BlockSpec((tm, K), lambda i, j: (i, 0)),   # full-K block
                pl.BlockSpec((K, tn), lambda i, j: (0, j)),
                pl.BlockSpec((1, tn), lambda i, j: (0, j)),
            ],
            out_specs=pl.BlockSpec((tm, tn), lambda i, j: (i, j)),
        ),
        compiler_params=pltpu.CompilerParams(
            dimension_semantics=("parallel", "parallel"),
            vmem_limit_bytes=32 * 1024 * 1024),
    )(Pp, Wp, bp)
    if Mp != M or Np != Cout:
        out = out[:M, :Cout]
    return out


# ---------------------------------------------------------------------------
# Conv layer = NHWC im2col (bf16 glue, no transposes) + fused Pallas matmul
# ---------------------------------------------------------------------------
def _im2col_nhwc(x, k, stride, pad):
    # x: (N, H, W, C) -> patches (N*Ho*Wo, k*k*C), column order (ky, kx, c).
    N, H, W, C = x.shape
    xp = jnp.pad(x, ((0, 0), (pad, pad), (pad, pad), (0, 0)))
    Ho = (H + 2 * pad - k) // stride + 1
    Wo = (W + 2 * pad - k) // stride + 1
    cols = []
    for ky in range(k):
        for kx in range(k):
            cols.append(
                xp[:,
                   ky:ky + stride * (Ho - 1) + 1:stride,
                   kx:kx + stride * (Wo - 1) + 1:stride,
                   :])
    pat = jnp.concatenate(cols, axis=-1)              # (N, Ho, Wo, k*k*C)
    return pat.reshape(N * Ho * Wo, k * k * C), Ho, Wo


def _weight_to_matrix(weight, scale):
    # weight: (Cout, Cin, k, k)  (PyTorch) -> (k*k*Cin, Cout), BN scale folded.
    Cout, Cin, k, _ = weight.shape
    Wmat = jnp.transpose(weight, (2, 3, 1, 0)).reshape(k * k * Cin, Cout)
    return Wmat * scale[None, :]


def conv_bn_act(x_nhwc, weight, scale, bias, stride, pad, act):
    Cout, Cin, k, _ = weight.shape
    N = x_nhwc.shape[0]
    P, Ho, Wo = _im2col_nhwc(x_nhwc, k, stride, pad)
    Wmat = _weight_to_matrix(weight, scale)
    y = fused_matmul_bias_act(P, Wmat, bias, act)     # bf16 out
    return y.reshape(N, Ho, Wo, Cout)                 # stay NHWC / bf16


def final_conv_sigmoid(x_nhwc, weight, scale, bias):
    # Last layer: 4x4 input, 4x4 conv, stride 1, no pad -> (N, 1, 1, 1).
    # M = batch, K = 4096, Cout = 1: a Pallas launch is pure overhead here,
    # so use plain XLA (computed in f32).
    N = x_nhwc.shape[0]
    Cout = weight.shape[0]
    Wmat = _weight_to_matrix(weight, scale)           # (4096, 1), f32
    x_flat = x_nhwc.reshape(N, -1).astype(jnp.float32)
    y = x_flat @ Wmat + bias[None, :]                 # (ky,kx,c) order matches
    y = 1.0 / (1.0 + jnp.exp(-y))
    return y.reshape(N, 1, 1, Cout)


# ---------------------------------------------------------------------------
# Discriminator
# ---------------------------------------------------------------------------
def init_params(key):
    specs = [(nc, ndf), (ndf, ndf * 2), (ndf * 2, ndf * 4),
             (ndf * 4, ndf * 8), (ndf * 8, ndf * 16), (ndf * 16, 1)]
    params = []
    eps = 1e-5
    for i, (cin, cout) in enumerate(specs):
        key, wk, gk, bk = jax.random.split(key, 4)
        w = 0.02 * jax.random.normal(wk, (cout, cin, 4, 4), jnp.float32)
        if 0 < i < 5:  # layers 2..5 have BatchNorm2d
            gamma = 1.0 + 0.02 * jax.random.normal(gk, (cout,), jnp.float32)
            beta = 0.02 * jax.random.normal(bk, (cout,), jnp.float32)
            r_mean = jnp.zeros((cout,), jnp.float32)
            r_var = jnp.ones((cout,), jnp.float32)
            scale = gamma / jnp.sqrt(r_var + eps)
            bias = beta - r_mean * scale
        else:
            scale = jnp.ones((cout,), jnp.float32)
            bias = jnp.zeros((cout,), jnp.float32)
        params.append((w, scale, bias))
    return params


def discriminator_forward(x_nchw, params):
    # Single layout change + single bf16 cast at the entry; everything stays
    # bf16 NHWC until the final (f32) sigmoid head.
    x = jnp.transpose(x_nchw, (0, 2, 3, 1)).astype(jnp.bfloat16)    # 128x128x3
    x = conv_bn_act(x, *params[0], stride=2, pad=1, act="leaky")    # 64x64x16
    x = conv_bn_act(x, *params[1], stride=2, pad=1, act="leaky")    # 32x32x32
    x = conv_bn_act(x, *params[2], stride=2, pad=1, act="leaky")    # 16x16x64
    x = conv_bn_act(x, *params[3], stride=2, pad=1, act="leaky")    # 8x8x128
    x = conv_bn_act(x, *params[4], stride=2, pad=1, act="leaky")    # 4x4x256
    x = final_conv_sigmoid(x, *params[5])                           # (N,1,1,1)
    return jnp.transpose(x, (0, 3, 1, 2))                           # NCHW


if __name__ == "__main__":
    key = jax.random.PRNGKey(0)
    pkey, xkey = jax.random.split(key)
    params = init_params(pkey)
    # 128x128 input is required by the architecture (final 4x4 conv -> 1x1).
    x = jax.random.normal(xkey, (2, nc, 128, 128), jnp.float32)

    fwd = jax.jit(discriminator_forward)
    out = fwd(x, params)
    jax.block_until_ready(out)

    assert out.shape == (2, 1, 1, 1), out.shape
    assert bool(jnp.all((out >= 0.0) & (out <= 1.0)))
    print("KERNEL_OK")
</pallas_src>

<mosaic_0001>
module attributes {stable_mosaic.version = 11 : i64} {
  func.func @_fused_kernel(%arg0: i32, %arg1: i32, %arg2: memref<2048x48xbf16, #tpu.memory_space<vmem>>, %arg3: memref<48x16xbf16, #tpu.memory_space<vmem>>, %arg4: memref<1x16xf32, #tpu.memory_space<vmem>>, %arg5: memref<2048x16xbf16, #tpu.memory_space<vmem>>) attributes {dimension_semantics = [#tpu.dimension_semantics<parallel>, #tpu.dimension_semantics<parallel>], iteration_bounds = array<i64: 4, 1>, scalar_prefetch = 0 : i64, scratch_operands = 0 : i64, tpu.core_type = #tpu.core_type<tc>, window_params = [{transform_indices = @transform_0, window_bounds = array<i64: 2048, 48>}, {transform_indices = @transform_1, window_bounds = array<i64: 48, 16>}, {transform_indices = @transform_2, window_bounds = array<i64: 1, 16>}, {transform_indices = @transform_3, window_bounds = array<i64: 2048, 16>}]} {
    %c0 = arith.constant 0 : index
    %c0_0 = arith.constant 0 : index
    %0 = vector.load %arg2[%c0, %c0_0] : memref<2048x48xbf16, #tpu.memory_space<vmem>>, vector<2048x48xbf16>
    %c0_1 = arith.constant 0 : index
    %c0_2 = arith.constant 0 : index
    %1 = vector.load %arg3[%c0_1, %c0_2] : memref<48x16xbf16, #tpu.memory_space<vmem>>, vector<48x16xbf16>
    %cst = arith.constant dense<0.000000e+00> : vector<2048x16xf32>
    %2 = tpu.matmul %0, %1, %cst {dimension_numbers = #tpu.dot_dimension_numbers<[1], [0], [0], [1], [0, 0, 1, 1], [], []>} : vector<2048x48xbf16>, vector<48x16xbf16>, vector<2048x16xf32> -> vector<2048x16xf32>
    %c0_3 = arith.constant 0 : index
    %c0_4 = arith.constant 0 : index
    %3 = vector.load %arg4[%c0_3, %c0_4] : memref<1x16xf32, #tpu.memory_space<vmem>>, vector<1x16xf32>
    %4 = vector.broadcast %3 : vector<1x16xf32> to vector<2048x16xf32>
    %5 = arith.addf %2, %4 : vector<2048x16xf32>
    %cst_5 = arith.constant 0.000000e+00 : f32
    %6 = vector.broadcast %cst_5 : f32 to vector<2048x16xf32>
    %7 = arith.cmpf ogt, %5, %6 : vector<2048x16xf32>
    %cst_6 = arith.constant 2.000000e-01 : f32
    %8 = vector.broadcast %cst_6 : f32 to vector<2048x16xf32>
    %9 = arith.mulf %8, %5 : vector<2048x16xf32>
    %10 = arith.select %7, %5, %9 : vector<2048x16xi1>, vector<2048x16xf32>
    %11 = arith.truncf %10 : vector<2048x16xf32> to vector<2048x16xbf16>
    %c0_7 = arith.constant 0 : index
    %c0_8 = arith.constant 0 : index
    %12 = vector.load %arg5[%c0_7, %c0_8] : memref<2048x16xbf16, #tpu.memory_space<vmem>>, vector<2048x16xbf16>
    tpu.vector_store %arg5[%c0_7, %c0_8], %11 {strides = array<i32>} : memref<2048x16xbf16, #tpu.memory_space<vmem>>, vector<2048x16xbf16>,
    return
  }
  func.func @transform_0(%arg0: i32, %arg1: i32) -> (i32, i32) {
    %c0_i32 = arith.constant 0 : i32
    %c0_i32_0 = arith.constant 0 : i32
    return %arg0, %c0_i32 : i32, i32
  }
  func.func @transform_1(%arg0: i32, %arg1: i32) -> (i32, i32) {
    %c0_i32 = arith.constant 0 : i32
    %c0_i32_0 = arith.constant 0 : i32
    return %c0_i32, %arg1 : i32, i32
  }
  func.func @transform_2(%arg0: i32, %arg1: i32) -> (i32, i32) {
    %c0_i32 = arith.constant 0 : i32
    %c0_i32_0 = arith.constant 0 : i32
    return %c0_i32, %arg1 : i32, i32
  }
  func.func @transform_3(%arg0: i32, %arg1: i32) -> (i32, i32) {
    %c0_i32 = arith.constant 0 : i32
    return %arg0, %arg1 : i32, i32
  }
}

module attributes {stable_mosaic.version = 11 : i64} {
  func.func @_fused_kernel(%arg0: i32, %arg1: i32, %arg2: memref<1024x256xbf16, #tpu.memory_space<vmem>>, %arg3: memref<256x32xbf16, #tpu.memory_space<vmem>>, %arg4: memref<1x32xf32, #tpu.memory_space<vmem>>, %arg5: memref<1024x32xbf16, #tpu.memory_space<vmem>>) attributes {dimension_semantics = [#tpu.dimension_semantics<parallel>, #tpu.dimension_semantics<parallel>], iteration_bounds = array<i64: 2, 1>, scalar_prefetch = 0 : i64, scratch_operands = 0 : i64, tpu.core_type = #tpu.core_type<tc>, window_params = [{transform_indices = @transform_0, window_bounds = array<i64: 1024, 256>}, {transform_indices = @transform_1, window_bounds = array<i64: 256, 32>}, {transform_indices = @transform_2, window_bounds = array<i64: 1, 32>}, {transform_indices = @transform_3, window_bounds = array<i64: 1024, 32>}]} {
    %c0 = arith.constant 0 : index
    %c0_0 = arith.constant 0 : index
    %0 = vector.load %arg2[%c0, %c0_0] : memref<1024x256xbf16, #tpu.memory_space<vmem>>, vector<1024x256xbf16>
    %c0_1 = arith.constant 0 : index
    %c0_2 = arith.constant 0 : index
    %1 = vector.load %arg3[%c0_1, %c0_2] : memref<256x32xbf16, #tpu.memory_space<vmem>>, vector<256x32xbf16>
    %cst = arith.constant dense<0.000000e+00> : vector<1024x32xf32>
    %2 = tpu.matmul %0, %1, %cst {dimension_numbers = #tpu.dot_dimension_numbers<[1], [0], [0], [1], [0, 0, 1, 1], [], []>} : vector<1024x256xbf16>, vector<256x32xbf16>, vector<1024x32xf32> -> vector<1024x32xf32>
    %c0_3 = arith.constant 0 : index
    %c0_4 = arith.constant 0 : index
    %3 = vector.load %arg4[%c0_3, %c0_4] : memref<1x32xf32, #tpu.memory_space<vmem>>, vector<1x32xf32>
    %4 = vector.broadcast %3 : vector<1x32xf32> to vector<1024x32xf32>
    %5 = arith.addf %2, %4 : vector<1024x32xf32>
    %cst_5 = arith.constant 0.000000e+00 : f32
    %6 = vector.broadcast %cst_5 : f32 to vector<1024x32xf32>
    %7 = arith.cmpf ogt, %5, %6 : vector<1024x32xf32>
    %cst_6 = arith.constant 2.000000e-01 : f32
    %8 = vector.broadcast %cst_6 : f32 to vector<1024x32xf32>
    %9 = arith.mulf %8, %5 : vector<1024x32xf32>
    %10 = arith.select %7, %5, %9 : vector<1024x32xi1>, vector<1024x32xf32>
    %11 = arith.truncf %10 : vector<1024x32xf32> to vector<1024x32xbf16>
    %c0_7 = arith.constant 0 : index
    %c0_8 = arith.constant 0 : index
    %12 = vector.load %arg5[%c0_7, %c0_8] : memref<1024x32xbf16, #tpu.memory_space<vmem>>, vector<1024x32xbf16>
    tpu.vector_store %arg5[%c0_7, %c0_8], %11 {strides = array<i32>} : memref<1024x32xbf16, #tpu.memory_space<vmem>>, vector<1024x32xbf16>,
    return
  }
  func.func @transform_0(%arg0: i32, %arg1: i32) -> (i32, i32) {
    %c0_i32 = arith.constant 0 : i32
    %c0_i32_0 = arith.constant 0 : i32
    return %arg0, %c0_i32 : i32, i32
  }
  func.func @transform_1(%arg0: i32, %arg1: i32) -> (i32, i32) {
    %c0_i32 = arith.constant 0 : i32
    %c0_i32_0 = arith.constant 0 : i32
    return %c0_i32, %arg1 : i32, i32
  }
  func.func @transform_2(%arg0: i32, %arg1: i32) -> (i32, i32) {
    %c0_i32 = arith.constant 0 : i32
    %c0_i32_0 = arith.constant 0 : i32
    return %c0_i32, %arg1 : i32, i32
  }
  func.func @transform_3(%arg0: i32, %arg1: i32) -> (i32, i32) {
    %c0_i32 = arith.constant 0 : i32
    return %arg0, %arg1 : i32, i32
  }
}

module attributes {stable_mosaic.version = 11 : i64} {
  func.func @_fused_kernel(%arg0: i32, %arg1: i32, %arg2: memref<256x512xbf16, #tpu.memory_space<vmem>>, %arg3: memref<512x64xbf16, #tpu.memory_space<vmem>>, %arg4: memref<1x64xf32, #tpu.memory_space<vmem>>, %arg5: memref<256x64xbf16, #tpu.memory_space<vmem>>) attributes {dimension_semantics = [#tpu.dimension_semantics<parallel>, #tpu.dimension_semantics<parallel>], iteration_bounds = array<i64: 2, 1>, scalar_prefetch = 0 : i64, scratch_operands = 0 : i64, tpu.core_type = #tpu.core_type<tc>, window_params = [{transform_indices = @transform_0, window_bounds = array<i64: 256, 512>}, {transform_indices = @transform_1, window_bounds = array<i64: 512, 64>}, {transform_indices = @transform_2, window_bounds = array<i64: 1, 64>}, {transform_indices = @transform_3, window_bounds = array<i64: 256, 64>}]} {
    %c0 = arith.constant 0 : index
    %c0_0 = arith.constant 0 : index
    %0 = vector.load %arg2[%c0, %c0_0] : memref<256x512xbf16, #tpu.memory_space<vmem>>, vector<256x512xbf16>
    %c0_1 = arith.constant 0 : index
    %c0_2 = arith.constant 0 : index
    %1 = vector.load %arg3[%c0_1, %c0_2] : memref<512x64xbf16, #tpu.memory_space<vmem>>, vector<512x64xbf16>
    %cst = arith.constant dense<0.000000e+00> : vector<256x64xf32>
    %2 = tpu.matmul %0, %1, %cst {dimension_numbers = #tpu.dot_dimension_numbers<[1], [0], [0], [1], [0, 0, 1, 1], [], []>} : vector<256x512xbf16>, vector<512x64xbf16>, vector<256x64xf32> -> vector<256x64xf32>
    %c0_3 = arith.constant 0 : index
    %c0_4 = arith.constant 0 : index
    %3 = vector.load %arg4[%c0_3, %c0_4] : memref<1x64xf32, #tpu.memory_space<vmem>>, vector<1x64xf32>
    %4 = vector.broadcast %3 : vector<1x64xf32> to vector<256x64xf32>
    %5 = arith.addf %2, %4 : vector<256x64xf32>
    %cst_5 = arith.constant 0.000000e+00 : f32
    %6 = vector.broadcast %cst_5 : f32 to vector<256x64xf32>
    %7 = arith.cmpf ogt, %5, %6 : vector<256x64xf32>
    %cst_6 = arith.constant 2.000000e-01 : f32
    %8 = vector.broadcast %cst_6 : f32 to vector<256x64xf32>
    %9 = arith.mulf %8, %5 : vector<256x64xf32>
    %10 = arith.select %7, %5, %9 : vector<256x64xi1>, vector<256x64xf32>
    %11 = arith.truncf %10 : vector<256x64xf32> to vector<256x64xbf16>
    %c0_7 = arith.constant 0 : index
    %c0_8 = arith.constant 0 : index
    %12 = vector.load %arg5[%c0_7, %c0_8] : memref<256x64xbf16, #tpu.memory_space<vmem>>, vector<256x64xbf16>
    tpu.vector_store %arg5[%c0_7, %c0_8], %11 {strides = array<i32>} : memref<256x64xbf16, #tpu.memory_space<vmem>>, vector<256x64xbf16>,
    return
  }
  func.func @transform_0(%arg0: i32, %arg1: i32) -> (i32, i32) {
    %c0_i32 = arith.constant 0 : i32
    %c0_i32_0 = arith.constant 0 : i32
    return %arg0, %c0_i32 : i32, i32
  }
  func.func @transform_1(%arg0: i32, %arg1: i32) -> (i32, i32) {
    %c0_i32 = arith.constant 0 : i32
    %c0_i32_0 = arith.constant 0 : i32
    return %c0_i32, %arg1 : i32, i32
  }
  func.func @transform_2(%arg0: i32, %arg1: i32) -> (i32, i32) {
    %c0_i32 = arith.constant 0 : i32
    %c0_i32_0 = arith.constant 0 : i32
    return %c0_i32, %arg1 : i32, i32
  }
  func.func @transform_3(%arg0: i32, %arg1: i32) -> (i32, i32) {
    %c0_i32 = arith.constant 0 : i32
    return %arg0, %arg1 : i32, i32
  }
}

module attributes {stable_mosaic.version = 11 : i64} {
  func.func @_fused_kernel(%arg0: i32, %arg1: i32, %arg2: memref<64x1024xbf16, #tpu.memory_space<vmem>>, %arg3: memref<1024x128xbf16, #tpu.memory_space<vmem>>, %arg4: memref<1x128xf32, #tpu.memory_space<vmem>>, %arg5: memref<64x128xbf16, #tpu.memory_space<vmem>>) attributes {dimension_semantics = [#tpu.dimension_semantics<parallel>, #tpu.dimension_semantics<parallel>], iteration_bounds = array<i64: 2, 1>, scalar_prefetch = 0 : i64, scratch_operands = 0 : i64, tpu.core_type = #tpu.core_type<tc>, window_params = [{transform_indices = @transform_0, window_bounds = array<i64: 64, 1024>}, {transform_indices = @transform_1, window_bounds = array<i64: 1024, 128>}, {transform_indices = @transform_2, window_bounds = array<i64: 1, 128>}, {transform_indices = @transform_3, window_bounds = array<i64: 64, 128>}]} {
    %c0 = arith.constant 0 : index
    %c0_0 = arith.constant 0 : index
    %0 = vector.load %arg2[%c0, %c0_0] : memref<64x1024xbf16, #tpu.memory_space<vmem>>, vector<64x1024xbf16>
    %c0_1 = arith.constant 0 : index
    %c0_2 = arith.constant 0 : index
    %1 = vector.load %arg3[%c0_1, %c0_2] : memref<1024x128xbf16, #tpu.memory_space<vmem>>, vector<1024x128xbf16>
    %cst = arith.constant dense<0.000000e+00> : vector<64x128xf32>
    %2 = tpu.matmul %0, %1, %cst {dimension_numbers = #tpu.dot_dimension_numbers<[1], [0], [0], [1], [0, 0, 1, 1], [], []>} : vector<64x1024xbf16>, vector<1024x128xbf16>, vector<64x128xf32> -> vector<64x128xf32>
    %c0_3 = arith.constant 0 : index
    %c0_4 = arith.constant 0 : index
    %3 = vector.load %arg4[%c0_3, %c0_4] : memref<1x128xf32, #tpu.memory_space<vmem>>, vector<1x128xf32>
    %4 = vector.broadcast %3 : vector<1x128xf32> to vector<64x128xf32>
    %5 = arith.addf %2, %4 : vector<64x128xf32>
    %cst_5 = arith.constant 0.000000e+00 : f32
    %6 = vector.broadcast %cst_5 : f32 to vector<64x128xf32>
    %7 = arith.cmpf ogt, %5, %6 : vector<64x128xf32>
    %cst_6 = arith.constant 2.000000e-01 : f32
    %8 = vector.broadcast %cst_6 : f32 to vector<64x128xf32>
    %9 = arith.mulf %8, %5 : vector<64x128xf32>
    %10 = arith.select %7, %5, %9 : vector<64x128xi1>, vector<64x128xf32>
    %11 = arith.truncf %10 : vector<64x128xf32> to vector<64x128xbf16>
    %c0_7 = arith.constant 0 : index
    %c0_8 = arith.constant 0 : index
    %12 = vector.load %arg5[%c0_7, %c0_8] : memref<64x128xbf16, #tpu.memory_space<vmem>>, vector<64x128xbf16>
    tpu.vector_store %arg5[%c0_7, %c0_8], %11 {strides = array<i32>} : memref<64x128xbf16, #tpu.memory_space<vmem>>, vector<64x128xbf16>,
    return
  }
  func.func @transform_0(%arg0: i32, %arg1: i32) -> (i32, i32) {
    %c0_i32 = arith.constant 0 : i32
    %c0_i32_0 = arith.constant 0 : i32
    return %arg0, %c0_i32 : i32, i32
  }
  func.func @transform_1(%arg0: i32, %arg1: i32) -> (i32, i32) {
    %c0_i32 = arith.constant 0 : i32
    %c0_i32_0 = arith.constant 0 : i32
    return %c0_i32, %arg1 : i32, i32
  }
  func.func @transform_2(%arg0: i32, %arg1: i32) -> (i32, i32) {
    %c0_i32 = arith.constant 0 : i32
    %c0_i32_0 = arith.constant 0 : i32
    return %c0_i32, %arg1 : i32, i32
  }
  func.func @transform_3(%arg0: i32, %arg1: i32) -> (i32, i32) {
    %c0_i32 = arith.constant 0 : i32
    return %arg0, %arg1 : i32, i32
  }
}

module attributes {stable_mosaic.version = 11 : i64} {
  func.func @_fused_kernel(%arg0: i32, %arg1: i32, %arg2: memref<32x2048xbf16, #tpu.memory_space<vmem>>, %arg3: memref<2048x128xbf16, #tpu.memory_space<vmem>>, %arg4: memref<1x128xf32, #tpu.memory_space<vmem>>, %arg5: memref<32x128xbf16, #tpu.memory_space<vmem>>) attributes {dimension_semantics = [#tpu.dimension_semantics<parallel>, #tpu.dimension_semantics<parallel>], iteration_bounds = array<i64: 1, 2>, scalar_prefetch = 0 : i64, scratch_operands = 0 : i64, tpu.core_type = #tpu.core_type<tc>, window_params = [{transform_indices = @transform_0, window_bounds = array<i64: 32, 2048>}, {transform_indices = @transform_1, window_bounds = array<i64: 2048, 128>}, {transform_indices = @transform_2, window_bounds = array<i64: 1, 128>}, {transform_indices = @transform_3, window_bounds = array<i64: 32, 128>}]} {
    %c0 = arith.constant 0 : index
    %c0_0 = arith.constant 0 : index
    %0 = vector.load %arg2[%c0, %c0_0] : memref<32x2048xbf16, #tpu.memory_space<vmem>>, vector<32x2048xbf16>
    %c0_1 = arith.constant 0 : index
    %c0_2 = arith.constant 0 : index
    %1 = vector.load %arg3[%c0_1, %c0_2] : memref<2048x128xbf16, #tpu.memory_space<vmem>>, vector<2048x128xbf16>
    %cst = arith.constant dense<0.000000e+00> : vector<32x128xf32>
    %2 = tpu.matmul %0, %1, %cst {dimension_numbers = #tpu.dot_dimension_numbers<[1], [0], [0], [1], [0, 0, 1, 1], [], []>} : vector<32x2048xbf16>, vector<2048x128xbf16>, vector<32x128xf32> -> vector<32x128xf32>
    %c0_3 = arith.constant 0 : index
    %c0_4 = arith.constant 0 : index
    %3 = vector.load %arg4[%c0_3, %c0_4] : memref<1x128xf32, #tpu.memory_space<vmem>>, vector<1x128xf32>
    %4 = vector.broadcast %3 : vector<1x128xf32> to vector<32x128xf32>
    %5 = arith.addf %2, %4 : vector<32x128xf32>
    %cst_5 = arith.constant 0.000000e+00 : f32
    %6 = vector.broadcast %cst_5 : f32 to vector<32x128xf32>
    %7 = arith.cmpf ogt, %5, %6 : vector<32x128xf32>
    %cst_6 = arith.constant 2.000000e-01 : f32
    %8 = vector.broadcast %cst_6 : f32 to vector<32x128xf32>
    %9 = arith.mulf %8, %5 : vector<32x128xf32>
    %10 = arith.select %7, %5, %9 : vector<32x128xi1>, vector<32x128xf32>
    %11 = arith.truncf %10 : vector<32x128xf32> to vector<32x128xbf16>
    %c0_7 = arith.constant 0 : index
    %c0_8 = arith.constant 0 : index
    %12 = vector.load %arg5[%c0_7, %c0_8] : memref<32x128xbf16, #tpu.memory_space<vmem>>, vector<32x128xbf16>
    tpu.vector_store %arg5[%c0_7, %c0_8], %11 {strides = array<i32>} : memref<32x128xbf16, #tpu.memory_space<vmem>>, vector<32x128xbf16>,
    return
  }
  func.func @transform_0(%arg0: i32, %arg1: i32) -> (i32, i32) {
    %c0_i32 = arith.constant 0 : i32
    %c0_i32_0 = arith.constant 0 : i32
    return %arg0, %c0_i32 : i32, i32
  }
  func.func @transform_1(%arg0: i32, %arg1: i32) -> (i32, i32) {
    %c0_i32 = arith.constant 0 : i32
    %c0_i32_0 = arith.constant 0 : i32
    return %c0_i32, %arg1 : i32, i32
  }
  func.func @transform_2(%arg0: i32, %arg1: i32) -> (i32, i32) {
    %c0_i32 = arith.constant 0 : i32
    %c0_i32_0 = arith.constant 0 : i32
    return %c0_i32, %arg1 : i32, i32
  }
  func.func @transform_3(%arg0: i32, %arg1: i32) -> (i32, i32) {
    %c0_i32 = arith.constant 0 : i32
    return %arg0, %arg1 : i32, i32
  }
}

</mosaic_0001>

<bundles_post_ra>
// kernel: discriminator_forward.5
= control target key start
LH: loop header
LB: loop body
LE: loop exit
PB: predicated region body
PF: predicated region fallthrough
CT: control target
= control target key end

     0   :  { %s4444_s12 = smov 0   ;;  %s4446_s13 = smov 0   ;;  %s5541_s0 = inlined_call_operand.vmem [shape: bf16[8192,48], index: 0, kind: input, shape index: {}]   ;;  %s5542_s1 = inlined_call_operand.vmem [shape: bf16[48,16], index: 1, kind: input, shape index: {}]   ;;  %s5543_s2 = inlined_call_operand.vmem [shape: f32[1,16], index: 2, kind: input, shape index: {}]   ;;  %s5544_s3 = inlined_call_operand.vmem [shape: bf16[8192,16], index: 3, kind: output, shape index: {}]  }
   0x1   :  { %s4448_s14 = smov 0  }
   0x2 LB: > { %s25_s15 = sadd.s32 1, %s4418_s13  ;;  %p3573_p0 = scmp.ge.s32.totalorder %s4422_s14, 1  ;;  %s4422_s14 = sphi %s4448_s14, %s13_s14   ;;  %s4418_s13 = sphi %s4446_s13, %s5546_s13   ;;  %s4414_s12 = sphi %s4444_s12, %s5545_s12  }
   0x3   : > { %p27_p1 = scmp.ge.s32.totalorder %s25_s15, 4  ;;  %p169_p2 = scmp.lt.s32.totalorder %s4422_s14, 5 }
   0x5   : > { %s5548_s15 = smov (%p27_p1, %s25_s15), 0  ;;  %p170_p3 = pnand %p3573_p0, %p169_p2 }
   0x6   : > { %s3574_s18 = sshll.u32 (!%p170_p3), %s4414_s12, 8 }
   0x7   : > { %173 = sbr.rel (%p170_p3) target bundleno = 670 (0x29e), region = 32  ;;  %p204_p4 = scmp.lt.s32.totalorder (!%p170_p3), %s3574_s18, 1023 }
   0xc   : > { %v4362_v0 = vld [vmem:[%s5542_s1 + $0x10] sm:$0xff]  ;;  %v4361_v1 = vld [vmem:[%s5542_s1 + $0x8] sm:$0xff]  ;;  %s5550_s18 = smov (!%p204_p4, %s3574_s18), 1023  ;;  %v4360_v2 = vld [vmem:[%s5542_s1] sm:$0xff]  ;;  %vm1150_vm0 = vcmask 392192   ;;  %vm3208_vm3 = vcmask 125952  }
   0xd   : > { %1540 = vmatpush.bf16.msra.mxu0 %v4362_v0  ;;  %4363 = vmatpush.bf16.msra.mxu1 %v4362_v0  ;;  %s3575_s21 = sshll.u32 %s5550_s18, 2  ;;  %v4548_v35 = vld [vmem:[%s5543_s2] ss:$0 sm:$0xff] }
   0xe   : > { %4364 = vmatpush.bf16.msra.mxu2 %v4362_v0  ;;  %4365 = vmatpush.bf16.msra.mxu3 %v4362_v0  ;;  %s4479_s26 = scalar_lea.vmem %s5541_s0, %s3575_s21  ;;  %s4565_s4 = scalar_lea.vmem %s5544_s3, %s3575_s21 }
   0xf   : > { %v4232_v3 = vld [vmem:[%s4479_s26] sm:$0xff]  ;;  %v4233_v7 = vld [vmem:[%s4479_s26 + $0x8] sm:$0xff]  ;;  %v4234_v11 = vld [vmem:[%s4479_s26 + $0x10] sm:$0xff] }
  0x10   : > { %v4264_v4 = vld [vmem:[%s4479_s26 + $0x100] sm:$0xff]  ;;  %v4265_v8 = vld [vmem:[%s4479_s26 + $0x108] sm:$0xff]  ;;  %v4266_v12 = vld [vmem:[%s4479_s26 + $0x110] sm:$0xff] }
  0x11   : > { %1541 = vmatpush.bf16.msra.mxu0 %v4361_v1  ;;  %4366 = vmatpush.bf16.msra.mxu1 %v4361_v1  ;;  %v4296_v5 = vld [vmem:[%s4479_s26 + $0x200] sm:$0xff]  ;;  %v4297_v9 = vld [vmem:[%s4479_s26 + $0x208] sm:$0xff]  ;;  %v4298_v13 = vld [vmem:[%s4479_s26 + $0x210] sm:$0xff] }
  0x12   : > { %4367 = vmatpush.bf16.msra.mxu2 %v4361_v1  ;;  %4368 = vmatpush.bf16.msra.mxu3 %v4361_v1  ;;  %v4328_v6 = vld [vmem:[%s4479_s26 + $0x300] sm:$0xff]  ;;  %v4329_v10 = vld [vmem:[%s4479_s26 + $0x308] sm:$0xff]  ;;  %v4330_v14 = vld [vmem:[%s4479_s26 + $0x310] sm:$0xff] }
  0x13   : > { %v4235_v15 = vld [vmem:[%s4479_s26 + $0x18] sm:$0xff]  ;;  %v4236_v19 = vld [vmem:[%s4479_s26 + $0x20] sm:$0xff]  ;;  %v4237_v23 = vld [vmem:[%s4479_s26 + $0x28] sm:$0xff] }
  0x14   : > { %v4267_v16 = vld [vmem:[%s4479_s26 + $0x118] sm:$0xff]  ;;  %v4268_v20 = vld [vmem:[%s4479_s26 + $0x120] sm:$0xff]  ;;  %v4269_v24 = vld [vmem:[%s4479_s26 + $0x128] sm:$0xff] }
  0x15   : > { %1542 = vmatpush.bf16.msra.mxu0 %v4360_v2  ;;  %4369 = vmatpush.bf16.msra.mxu1 %v4360_v2  ;;  %v4299_v17 = vld [vmem:[%s4479_s26 + $0x218] sm:$0xff]  ;;  %v4300_v21 = vld [vmem:[%s4479_s26 + $0x220] sm:$0xff]  ;;  %v4301_v25 = vld [vmem:[%s4479_s26 + $0x228] sm:$0xff] }
  0x16   : > { %4370 = vmatpush.bf16.msra.mxu2 %v4360_v2  ;;  %4371 = vmatpush.bf16.msra.mxu3 %v4360_v2  ;;  %v4331_v18 = vld [vmem:[%s4479_s26 + $0x318] sm:$0xff]  ;;  %v4332_v22 = vld [vmem:[%s4479_s26 + $0x320] sm:$0xff]  ;;  %v4333_v26 = vld [vmem:[%s4479_s26 + $0x328] sm:$0xff] }
  0x17   : > { %v4238_v27 = vld [vmem:[%s4479_s26 + $0x30] sm:$0xff]  ;;  %v4239_v31 = vld [vmem:[%s4479_s26 + $0x38] sm:$0xff]  ;;  %v4240_v36 = vld [vmem:[%s4479_s26 + $0x40] sm:$0xff] }
  0x18   : > { %4102 = vmatmul.msk.bf16.vlgmr.msra.gmra.mxu0 %vm1150_vm0, %v4232_v3  ;;  %4134 = vmatmul.msk.bf16.vlgmr.msra.gmra.mxu1 %vm1150_vm0, %v4264_v4  ;;  %v4270_v28 = vld [vmem:[%s4479_s26 + $0x130] sm:$0xff]  ;;  %v4271_v32 = vld [vmem:[%s4479_s26 + $0x138] sm:$0xff]  ;;  %v4272_v37 = vld [vmem:[%s4479_s26 + $0x140] sm:$0xff] }
  0x19   : > { %4166 = vmatmul.msk.bf16.vlgmr.msra.gmra.mxu2 %vm1150_vm0, %v4296_v5  ;;  %4198 = vmatmul.msk.bf16.vlgmr.msra.gmra.mxu3 %vm1150_vm0, %v4328_v6  ;;  %v4302_v29 = vld [vmem:[%s4479_s26 + $0x230] sm:$0xff]  ;;  %v4303_v33 = vld [vmem:[%s4479_s26 + $0x238] sm:$0xff]  ;;  %v4304_v40 = vld [vmem:[%s4479_s26 + $0x240] sm:$0xff] }
  0x1a   : > { %v4334_v30 = vld [vmem:[%s4479_s26 + $0x330] sm:$0xff]  ;;  %v4335_v34 = vld [vmem:[%s4479_s26 + $0x338] sm:$0xff]  ;;  %v4336_v41 = vld [vmem:[%s4479_s26 + $0x340] sm:$0xff] }
  0x28   : > { %4103 = vmatmul.msk.bf16.gmra.mxu0 %vm1150_vm0, %v4233_v7  ;;  %4135 = vmatmul.msk.bf16.gmra.mxu1 %vm1150_vm0, %v4265_v8  ;;  %v4241_v8 = vld [vmem:[%s4479_s26 + $0x48] sm:$0xff] }
  0x29   : > { %4167 = vmatmul.msk.bf16.gmra.mxu2 %vm1150_vm0, %v4297_v9  ;;  %4199 = vmatmul.msk.bf16.gmra.mxu3 %vm1150_vm0, %v4329_v10  ;;  %v4273_v9 = vld [vmem:[%s4479_s26 + $0x148] sm:$0xff] }
  0x38   : > { %4104 = vmatmul.msk.bf16.gmra.mxu0 %vm1150_vm0, %v4234_v11  ;;  %4136 = vmatmul.msk.bf16.gmra.mxu1 %vm1150_vm0, %v4266_v12 }
  0x39   : > { %4168 = vmatmul.msk.bf16.gmra.mxu2 %vm1150_vm0, %v4298_v13  ;;  %4200 = vmatmul.msk.bf16.gmra.mxu3 %vm1150_vm0, %v4330_v14  ;;  %v4305_v14 = vld [vmem:[%s4479_s26 + $0x248] sm:$0xff] }
  0x48   : > { %4105 = vmatmul.msk.bf16.gmra.mxu0 %vm1150_vm0, %v4235_v15  ;;  %4137 = vmatmul.msk.bf16.gmra.mxu1 %vm1150_vm0, %v4267_v16  ;;  %v4337_v15 = vld [vmem:[%s4479_s26 + $0x348] sm:$0xff] }
  0x49   : > { %4169 = vmatmul.msk.bf16.gmra.mxu2 %vm1150_vm0, %v4299_v17  ;;  %4201 = vmatmul.msk.bf16.gmra.mxu3 %vm1150_vm0, %v4331_v18 }
  0x58   : > { %4106 = vmatmul.msk.bf16.gmra.mxu0 %vm1150_vm0, %v4236_v19  ;;  %4138 = vmatmul.msk.bf16.gmra.mxu1 %vm1150_vm0, %v4268_v20 }
  0x59   : > { %4170 = vmatmul.msk.bf16.gmra.mxu2 %vm1150_vm0, %v4300_v21  ;;  %4202 = vmatmul.msk.bf16.gmra.mxu3 %vm1150_vm0, %v4332_v22 }
  0x68   : > { %4107 = vmatmul.msk.bf16.gmra.mxu0 %vm1150_vm0, %v4237_v23  ;;  %4139 = vmatmul.msk.bf16.gmra.mxu1 %vm1150_vm0, %v4269_v24 }
  0x69   : > { %4171 = vmatmul.msk.bf16.gmra.mxu2 %vm1150_vm0, %v4301_v25  ;;  %4203 = vmatmul.msk.bf16.gmra.mxu3 %vm1150_vm0, %v4333_v26 }
  0x78   : > { %4108 = vmatmul.msk.bf16.gmra.mxu0 %vm1150_vm0, %v4238_v27  ;;  %4140 = vmatmul.msk.bf16.gmra.mxu1 %vm1150_vm0, %v4270_v28 }
  0x79   : > { %4172 = vmatmul.msk.bf16.gmra.mxu2 %vm1150_vm0, %v4302_v29  ;;  %4204 = vmatmul.msk.bf16.gmra.mxu3 %vm1150_vm0, %v4334_v30 }
  0x88   : > { %4109 = vmatmul.msk.bf16.gmra.mxu0 %vm1150_vm0, %v4239_v31  ;;  %4141 = vmatmul.msk.bf16.gmra.mxu1 %vm1150_vm0, %v4271_v32 }
  0x89   : > { %4173 = vmatmul.msk.bf16.gmra.mxu2 %vm1150_vm0, %v4303_v33  ;;  %4205 = vmatmul.msk.bf16.gmra.mxu3 %vm1150_vm0, %v4335_v34 }
  0x95   : > { %v1544_v38 = vpop.f32.mrf.mxu0  ;;  %v1704_v39 = vpop.f32.mrf.mxu1 }
  0x96   : > { %v1545_v42 = vadd.f32 %v4548_v35, %v1544_v38  ;;  %v1705_v43 = vadd.f32 %v4548_v35, %v1704_v39 }
  0x98   : > { %vm2184_vm1 = vcmp.gt.f32.partialorder %v1545_v42, 0.0  ;;  %v2440_v44 = vmul.f32 0.2, %v1545_v42  ;;  %vm2248_vm2 = vcmp.gt.f32.partialorder %v1705_v43, 0.0  ;;  %v2504_v45 = vmul.f32 0.2, %v1705_v43  ;;  %4110 = vmatmul.msk.bf16.gmra.mxu0 %vm1150_vm0, %v4240_v36  ;;  %4142 = vmatmul.msk.bf16.gmra.mxu1 %vm1150_vm0, %v4272_v37 }
  0x99   : > { %4174 = vmatmul.msk.bf16.gmra.mxu2 %vm1150_vm0, %v4304_v40  ;;  %4206 = vmatmul.msk.bf16.gmra.mxu3 %vm1150_vm0, %v4336_v41 }
  0x9a   : > { %v2696_v46 = vsel %vm2184_vm1, %v1545_v42, %v2440_v44  ;;  %v2760_v47 = vsel %vm2248_vm2, %v1705_v43, %v2504_v45 }
  0x9b   : > { %v2952_v48 = vpack.c.bf16 %v2696_v46, %v2696_v46  ;;  %v3016_v49 = vpack.c.bf16 %v2760_v47, %v2760_v47 }
  0x9c   : > { %v1864_v50 = vpop.f32.mrf.mxu2  ;;  %v2024_v51 = vpop.f32.mrf.mxu3 }
  0x9d   : > { %3209 = vst.msk [vmem:[%s4565_s4] sm:$0xf] %vm3208_vm3, %v2952_v48  ;;  %v1865_v52 = vadd.f32 %v4548_v35, %v1864_v50  ;;  %v2025_v53 = vadd.f32 %v4548_v35, %v2024_v51  ;;  %v1546_v54 = vpop.f32.mrf.mxu0  ;;  %v1706_v55 = vpop.f32.mrf.mxu1 }
  0x9e   : > { %3273 = vst.msk [vmem:[%s4565_s4 + $0x100] sm:$0xf] %vm3208_vm3, %v3016_v49  ;;  %v1547_v56 = vadd.f32 %v4548_v35, %v1546_v54  ;;  %v1707_v57 = vadd.f32 %v4548_v35, %v1706_v55  ;;  %v4274_v54 = vld [vmem:[%s4479_s26 + $0x150] sm:$0xff] }
  0x9f   : > { %vm2312_vm4 = vcmp.gt.f32.partialorder %v1865_v52, 0.0  ;;  %v2568_v58 = vmul.f32 0.2, %v1865_v52  ;;  %vm2376_vm5 = vcmp.gt.f32.partialorder %v2025_v53, 0.0  ;;  %v2632_v59 = vmul.f32 0.2, %v2025_v53 }
  0xa0   : > { %vm2185_vm6 = vcmp.gt.f32.partialorder %v1547_v56, 0.0  ;;  %v2441_v60 = vmul.f32 0.2, %v1547_v56  ;;  %vm2249_vm7 = vcmp.gt.f32.partialorder %v1707_v57, 0.0  ;;  %v2505_v61 = vmul.f32 0.2, %v1707_v57 }
  0xa1   : > { %v2824_v62 = vsel %vm2312_vm4, %v1865_v52, %v2568_v58  ;;  %v2888_v63 = vsel %vm2376_vm5, %v2025_v53, %v2632_v59  ;;  %v4242_v53 = vld [vmem:[%s4479_s26 + $0x50] sm:$0xff] }
  0xa2   : > { %v3080_v0 = vpack.c.bf16 %v2824_v62, %v2824_v62  ;;  %v3144_v1 = vpack.c.bf16 %v2888_v63, %v2888_v63  ;;  %v2697_v2 = vsel %vm2185_vm6, %v1547_v56, %v2441_v60  ;;  %v2761_v3 = vsel %vm2249_vm7, %v1707_v57, %v2505_v61  ;;  %v4306_v59 = vld [vmem:[%s4479_s26 + $0x250] sm:$0xff] }
  0xa3   : > { %v2953_v4 = vpack.c.bf16 %v2697_v2, %v2697_v2  ;;  %v3017_v5 = vpack.c.bf16 %v2761_v3, %v2761_v3  ;;  %v4338_v60 = vld [vmem:[%s4479_s26 + $0x350] sm:$0xff] }
  0xa4   : > { %3337 = vst.msk [vmem:[%s4565_s4 + $0x200] sm:$0xf] %vm3208_vm3, %v3080_v0  ;;  %v1866_v6 = vpop.f32.mrf.mxu2  ;;  %v2026_v7 = vpop.f32.mrf.mxu3 }
  0xa5   : > { %3401 = vst.msk [vmem:[%s4565_s4 + $0x300] sm:$0xf] %vm3208_vm3, %v3144_v1  ;;  %v1867_v10 = vadd.f32 %v4548_v35, %v1866_v6  ;;  %v2027_v11 = vadd.f32 %v4548_v35, %v2026_v7  ;;  %v1549_v12 = vpop.f32.mrf.mxu0  ;;  %v1709_v13 = vpop.f32.mrf.mxu1 }
  0xa6   : > { %3210 = vst.msk [vmem:[%s4565_s4 + $0x4] sm:$0xf] %vm3208_vm3, %v2953_v4  ;;  %v1550_v16 = vadd.f32 %v4548_v35, %v1549_v12  ;;  %v1710_v17 = vadd.f32 %v4548_v35, %v1709_v13 }
  0xa7   : > { %3274 = vst.msk [vmem:[%s4565_s4 + $0x104] sm:$0xf] %vm3208_vm3, %v3017_v5  ;;  %vm2313_vm8 = vcmp.gt.f32.partialorder %v1867_v10, 0.0  ;;  %v2569_v18 = vmul.f32 0.2, %v1867_v10  ;;  %vm2377_vm9 = vcmp.gt.f32.partialorder %v2027_v11, 0.0 }
  0xa8   : > { %v2633_v19 = vmul.f32 0.2, %v2027_v11  ;;  %vm2186_vm10 = vcmp.gt.f32.partialorder %v1550_v16, 0.0  ;;  %v2442_v20 = vmul.f32 0.2, %v1550_v16  ;;  %vm2250_vm11 = vcmp.gt.f32.partialorder %v1710_v17, 0.0  ;;  %4111 = vmatmul.msk.bf16.gmra.mxu0 %vm1150_vm0, %v4241_v8  ;;  %4143 = vmatmul.msk.bf16.gmra.mxu1 %vm1150_vm0, %v4273_v9 }
  0xa9   : > { %v2825_v21 = vsel %vm2313_vm8, %v1867_v10, %v2569_v18  ;;  %v2506_v22 = vmul.f32 0.2, %v1710_v17  ;;  %4175 = vmatmul.msk.bf16.gmra.mxu2 %vm1150_vm0, %v4305_v14  ;;  %4207 = vmatmul.msk.bf16.gmra.mxu3 %vm1150_vm0, %v4337_v15 }
  0xaa   : > { %v3081_v23 = vpack.c.bf16 %v2825_v21, %v2825_v21  ;;  %v2889_v24 = vsel %vm2377_vm9, %v2027_v11, %v2633_v19  ;;  %v2698_v25 = vsel %vm2186_vm10, %v1550_v16, %v2442_v20 }
  0xab   : > { %v3145_v26 = vpack.c.bf16 %v2889_v24, %v2889_v24  ;;  %v2954_v27 = vpack.c.bf16 %v2698_v25, %v2698_v25  ;;  %v2762_v28 = vsel %vm2250_vm11, %v1710_v17, %v2506_v22 }
  0xac   : > { %3338 = vst.msk [vmem:[%s4565_s4 + $0x204] sm:$0xf] %vm3208_vm3, %v3081_v23  ;;  %v3018_v29 = vpack.c.bf16 %v2762_v28, %v2762_v28  ;;  %v1869_v30 = vpop.f32.mrf.mxu2  ;;  %v2029_v31 = vpop.f32.mrf.mxu3 }
  0xad   : > { %3402 = vst.msk [vmem:[%s4565_s4 + $0x304] sm:$0xf] %vm3208_vm3, %v3145_v26  ;;  %v1870_v32 = vadd.f32 %v4548_v35, %v1869_v30  ;;  %v2030_v33 = vadd.f32 %v4548_v35, %v2029_v31  ;;  %v1551_v34 = vpop.f32.mrf.mxu0  ;;  %v1711_v36 = vpop.f32.mrf.mxu1 }
  0xae   : > { %3211 = vst.msk [vmem:[%s4565_s4 + $0x8] sm:$0xf] %vm3208_vm3, %v2954_v27  ;;  %v1552_v37 = vadd.f32 %v4548_v35, %v1551_v34  ;;  %v1712_v38 = vadd.f32 %v4548_v35, %v1711_v36  ;;  %v4275_v34 = vld [vmem:[%s4479_s26 + $0x158] sm:$0xff] }
  0xaf   : > { %3275 = vst.msk [vmem:[%s4565_s4 + $0x108] sm:$0xf] %vm3208_vm3, %v3018_v29  ;;  %vm2314_vm12 = vcmp.gt.f32.partialorder %v1870_v32, 0.0  ;;  %v2570_v39 = vmul.f32 0.2, %v1870_v32  ;;  %vm2378_vm13 = vcmp.gt.f32.partialorder %v2030_v33, 0.0 }
  0xb0   : > { %v2634_v40 = vmul.f32 0.2, %v2030_v33  ;;  %vm2187_vm14 = vcmp.gt.f32.partialorder %v1552_v37, 0.0  ;;  %v2443_v41 = vmul.f32 0.2, %v1552_v37  ;;  %vm2251_vm15 = vcmp.gt.f32.partialorder %v1712_v38, 0.0 }
  0xb1   : > { %v2826_v42 = vsel %vm2314_vm12, %v1870_v32, %v2570_v39  ;;  %v2507_v43 = vmul.f32 0.2, %v1712_v38 }
  0xb2   : > { %v3082_v44 = vpack.c.bf16 %v2826_v42, %v2826_v42  ;;  %v2890_v45 = vsel %vm2378_vm13, %v2030_v33, %v2634_v40  ;;  %v2699_v46 = vsel %vm2187_vm14, %v1552_v37, %v2443_v41  ;;  %v4243_v33 = vld [vmem:[%s4479_s26 + $0x58] sm:$0xff] }
  0xb3   : > { %v3146_v47 = vpack.c.bf16 %v2890_v45, %v2890_v45  ;;  %v2955_v48 = vpack.c.bf16 %v2699_v46, %v2699_v46  ;;  %v2763_v49 = vsel %vm2251_vm15, %v1712_v38, %v2507_v43  ;;  %v4307_v40 = vld [vmem:[%s4479_s26 + $0x258] sm:$0xff] }
  0xb4   : > { %3339 = vst.msk [vmem:[%s4565_s4 + $0x208] sm:$0xf] %vm3208_vm3, %v3082_v44  ;;  %v3019_v50 = vpack.c.bf16 %v2763_v49, %v2763_v49  ;;  %v1871_v51 = vpop.f32.mrf.mxu2  ;;  %v2031_v52 = vpop.f32.mrf.mxu3  ;;  %v4339_v41 = vld [vmem:[%s4479_s26 + $0x358] sm:$0xff] }
  0xb5   : > { %3403 = vst.msk [vmem:[%s4565_s4 + $0x308] sm:$0xf] %vm3208_vm3, %v3146_v47  ;;  %v1872_v55 = vadd.f32 %v4548_v35, %v1871_v51  ;;  %v2032_v56 = vadd.f32 %v4548_v35, %v2031_v52  ;;  %v1554_v57 = vpop.f32.mrf.mxu0  ;;  %v1714_v58 = vpop.f32.mrf.mxu1 }
  0xb6   : > { %3212 = vst.msk [vmem:[%s4565_s4 + $0xc] sm:$0xf] %vm3208_vm3, %v2955_v48  ;;  %v1555_v61 = vadd.f32 %v4548_v35, %v1554_v57  ;;  %v1715_v62 = vadd.f32 %v4548_v35, %v1714_v58 }
  0xb7   : > { %3276 = vst.msk [vmem:[%s4565_s4 + $0x10c] sm:$0xf] %vm3208_vm3, %v3019_v50  ;;  %vm2315_vm1 = vcmp.gt.f32.partialorder %v1872_v55, 0.0  ;;  %v2571_v63 = vmul.f32 0.2, %v1872_v55  ;;  %vm2379_vm2 = vcmp.gt.f32.partialorder %v2032_v56, 0.0 }
  0xb8   : > { %v2635_v0 = vmul.f32 0.2, %v2032_v56  ;;  %vm2188_vm4 = vcmp.gt.f32.partialorder %v1555_v61, 0.0  ;;  %v2444_v1 = vmul.f32 0.2, %v1555_v61  ;;  %vm2252_vm5 = vcmp.gt.f32.partialorder %v1715_v62, 0.0  ;;  %4112 = vmatmul.msk.bf16.gmra.mxu0 %vm1150_vm0, %v4242_v53  ;;  %4144 = vmatmul.msk.bf16.gmra.mxu1 %vm1150_vm0, %v4274_v54 }
  0xb9   : > { %v2827_v2 = vsel %vm2315_vm1, %v1872_v55, %v2571_v63  ;;  %v2508_v3 = vmul.f32 0.2, %v1715_v62  ;;  %4176 = vmatmul.msk.bf16.gmra.mxu2 %vm1150_vm0, %v4306_v59  ;;  %4208 = vmatmul.msk.bf16.gmra.mxu3 %vm1150_vm0, %v4338_v60 }
  0xba   : > { %v3083_v4 = vpack.c.bf16 %v2827_v2, %v2827_v2  ;;  %v2891_v5 = vsel %vm2379_vm2, %v2032_v56, %v2635_v0  ;;  %v2700_v6 = vsel %vm2188_vm4, %v1555_v61, %v2444_v1 }
  0xbb   : > { %v3147_v7 = vpack.c.bf16 %v2891_v5, %v2891_v5  ;;  %v2956_v8 = vpack.c.bf16 %v2700_v6, %v2700_v6  ;;  %v2764_v9 = vsel %vm2252_vm5, %v1715_v62, %v2508_v3 }
  0xbc   : > { %3340 = vst.msk [vmem:[%s4565_s4 + $0x20c] sm:$0xf] %vm3208_vm3, %v3083_v4  ;;  %v3020_v10 = vpack.c.bf16 %v2764_v9, %v2764_v9  ;;  %v1874_v11 = vpop.f32.mrf.mxu2  ;;  %v2034_v12 = vpop.f32.mrf.mxu3 }
  0xbd   : > { %3404 = vst.msk [vmem:[%s4565_s4 + $0x30c] sm:$0xf] %vm3208_vm3, %v3147_v7  ;;  %v1875_v13 = vadd.f32 %v4548_v35, %v1874_v11  ;;  %v2035_v14 = vadd.f32 %v4548_v35, %v2034_v12  ;;  %v1556_v15 = vpop.f32.mrf.mxu0  ;;  %v1716_v16 = vpop.f32.mrf.mxu1 }
  0xbe   : > { %3213 = vst.msk [vmem:[%s4565_s4 + $0x10] sm:$0xf] %vm3208_vm3, %v2956_v8  ;;  %v1557_v17 = vadd.f32 %v4548_v35, %v1556_v15  ;;  %v1717_v18 = vadd.f32 %v4548_v35, %v1716_v16  ;;  %v4276_v15 = vld [vmem:[%s4479_s26 + $0x160] sm:$0xff] }
  0xbf   : > { %3277 = vst.msk [vmem:[%s4565_s4 + $0x110] sm:$0xf] %vm3208_vm3, %v3020_v10  ;;  %vm2316_vm6 = vcmp.gt.f32.partialorder %v1875_v13, 0.0  ;;  %v2572_v19 = vmul.f32 0.2, %v1875_v13  ;;  %vm2380_vm7 = vcmp.gt.f32.partialorder %v2035_v14, 0.0 }
  0xc0   : > { %v2636_v20 = vmul.f32 0.2, %v2035_v14  ;;  %vm2189_vm8 = vcmp.gt.f32.partialorder %v1557_v17, 0.0  ;;  %v2445_v21 = vmul.f32 0.2, %v1557_v17  ;;  %vm2253_vm9 = vcmp.gt.f32.partialorder %v1717_v18, 0.0 }
  0xc1   : > { %v2828_v22 = vsel %vm2316_vm6, %v1875_v13, %v2572_v19  ;;  %v2509_v23 = vmul.f32 0.2, %v1717_v18 }
  0xc2   : > { %v3084_v24 = vpack.c.bf16 %v2828_v22, %v2828_v22  ;;  %v2892_v25 = vsel %vm2380_vm7, %v2035_v14, %v2636_v20  ;;  %v2701_v26 = vsel %vm2189_vm8, %v1557_v17, %v2445_v21  ;;  %v4244_v14 = vld [vmem:[%s4479_s26 + $0x60] sm:$0xff] }
  0xc3   : > { %v3148_v27 = vpack.c.bf16 %v2892_v25, %v2892_v25  ;;  %v2957_v28 = vpack.c.bf16 %v2701_v26, %v2701_v26  ;;  %v2765_v29 = vsel %vm2253_vm9, %v1717_v18, %v2509_v23  ;;  %v4308_v20 = vld [vmem:[%s4479_s26 + $0x260] sm:$0xff] }
  0xc4   : > { %3341 = vst.msk [vmem:[%s4565_s4 + $0x210] sm:$0xf] %vm3208_vm3, %v3084_v24  ;;  %v3021_v30 = vpack.c.bf16 %v2765_v29, %v2765_v29  ;;  %v1876_v31 = vpop.f32.mrf.mxu2  ;;  %v2036_v32 = vpop.f32.mrf.mxu3  ;;  %v4340_v21 = vld [vmem:[%s4479_s26 + $0x360] sm:$0xff] }
  0xc5   : > { %3405 = vst.msk [vmem:[%s4565_s4 + $0x310] sm:$0xf] %vm3208_vm3, %v3148_v27  ;;  %v1877_v36 = vadd.f32 %v4548_v35, %v1876_v31  ;;  %v2037_v37 = vadd.f32 %v4548_v35, %v2036_v32  ;;  %v1559_v38 = vpop.f32.mrf.mxu0  ;;  %v1719_v39 = vpop.f32.mrf.mxu1 }
  0xc6   : > { %3214 = vst.msk [vmem:[%s4565_s4 + $0x14] sm:$0xf] %vm3208_vm3, %v2957_v28  ;;  %v1560_v42 = vadd.f32 %v4548_v35, %v1559_v38  ;;  %v1720_v43 = vadd.f32 %v4548_v35, %v1719_v39 }
  0xc7   : > { %3278 = vst.msk [vmem:[%s4565_s4 + $0x114] sm:$0xf] %vm3208_vm3, %v3021_v30  ;;  %vm2317_vm10 = vcmp.gt.f32.partialorder %v1877_v36, 0.0  ;;  %v2573_v44 = vmul.f32 0.2, %v1877_v36  ;;  %vm2381_vm11 = vcmp.gt.f32.partialorder %v2037_v37, 0.0 }
  0xc8   : > { %v2637_v45 = vmul.f32 0.2, %v2037_v37  ;;  %vm2190_vm12 = vcmp.gt.f32.partialorder %v1560_v42, 0.0  ;;  %v2446_v46 = vmul.f32 0.2, %v1560_v42  ;;  %vm2254_vm13 = vcmp.gt.f32.partialorder %v1720_v43, 0.0  ;;  %4113 = vmatmul.msk.bf16.gmra.mxu0 %vm1150_vm0, %v4243_v33  ;;  %4145 = vmatmul.msk.bf16.gmra.mxu1 %vm1150_vm0, %v4275_v34 }
  0xc9   : > { %v2829_v47 = vsel %vm2317_vm10, %v1877_v36, %v2573_v44  ;;  %v2510_v48 = vmul.f32 0.2, %v1720_v43  ;;  %4177 = vmatmul.msk.bf16.gmra.mxu2 %vm1150_vm0, %v4307_v40  ;;  %4209 = vmatmul.msk.bf16.gmra.mxu3 %vm1150_vm0, %v4339_v41 }
  0xca   : > { %v3085_v49 = vpack.c.bf16 %v2829_v47, %v2829_v47  ;;  %v2893_v50 = vsel %vm2381_vm11, %v2037_v37, %v2637_v45  ;;  %v2702_v51 = vsel %vm2190_vm12, %v1560_v42, %v2446_v46 }
  0xcb   : > { %v3149_v52 = vpack.c.bf16 %v2893_v50, %v2893_v50  ;;  %v2958_v53 = vpack.c.bf16 %v2702_v51, %v2702_v51  ;;  %v2766_v54 = vsel %vm2254_vm13, %v1720_v43, %v2510_v48 }
  0xcc   : > { %3342 = vst.msk [vmem:[%s4565_s4 + $0x214] sm:$0xf] %vm3208_vm3, %v3085_v49  ;;  %v3022_v55 = vpack.c.bf16 %v2766_v54, %v2766_v54  ;;  %v1879_v56 = vpop.f32.mrf.mxu2  ;;  %v2039_v57 = vpop.f32.mrf.mxu3 }
  0xcd   : > { %3406 = vst.msk [vmem:[%s4565_s4 + $0x314] sm:$0xf] %vm3208_vm3, %v3149_v52  ;;  %v1880_v58 = vadd.f32 %v4548_v35, %v1879_v56  ;;  %v2040_v59 = vadd.f32 %v4548_v35, %v2039_v57  ;;  %v1561_v60 = vpop.f32.mrf.mxu0  ;;  %v1721_v61 = vpop.f32.mrf.mxu1 }
  0xce   : > { %3215 = vst.msk [vmem:[%s4565_s4 + $0x18] sm:$0xf] %vm3208_vm3, %v2958_v53  ;;  %v1562_v62 = vadd.f32 %v4548_v35, %v1561_v60  ;;  %v1722_v63 = vadd.f32 %v4548_v35, %v1721_v61  ;;  %v4277_v60 = vld [vmem:[%s4479_s26 + $0x168] sm:$0xff] }
  0xcf   : > { %3279 = vst.msk [vmem:[%s4565_s4 + $0x118] sm:$0xf] %vm3208_vm3, %v3022_v55  ;;  %vm2318_vm14 = vcmp.gt.f32.partialorder %v1880_v58, 0.0  ;;  %v2574_v0 = vmul.f32 0.2, %v1880_v58  ;;  %vm2382_vm15 = vcmp.gt.f32.partialorder %v2040_v59, 0.0 }
  0xd0   : > { %v2638_v1 = vmul.f32 0.2, %v2040_v59  ;;  %vm2191_vm1 = vcmp.gt.f32.partialorder %v1562_v62, 0.0  ;;  %v2447_v2 = vmul.f32 0.2, %v1562_v62  ;;  %vm2255_vm2 = vcmp.gt.f32.partialorder %v1722_v63, 0.0 }
  0xd1   : > { %v2830_v3 = vsel %vm2318_vm14, %v1880_v58, %v2574_v0  ;;  %v2511_v4 = vmul.f32 0.2, %v1722_v63 }
  0xd2   : > { %v3086_v5 = vpack.c.bf16 %v2830_v3, %v2830_v3  ;;  %v2894_v6 = vsel %vm2382_vm15, %v2040_v59, %v2638_v1  ;;  %v2703_v7 = vsel %vm2191_vm1, %v1562_v62, %v2447_v2  ;;  %v4245_v59 = vld [vmem:[%s4479_s26 + $0x68] sm:$0xff] }
  0xd3   : > { %v3150_v8 = vpack.c.bf16 %v2894_v6, %v2894_v6  ;;  %v2959_v9 = vpack.c.bf16 %v2703_v7, %v2703_v7  ;;  %v2767_v10 = vsel %vm2255_vm2, %v1722_v63, %v2511_v4  ;;  %v4309_v1 = vld [vmem:[%s4479_s26 + $0x268] sm:$0xff] }
  0xd4   : > { %3343 = vst.msk [vmem:[%s4565_s4 + $0x218] sm:$0xf] %vm3208_vm3, %v3086_v5  ;;  %v3023_v11 = vpack.c.bf16 %v2767_v10, %v2767_v10  ;;  %v1881_v12 = vpop.f32.mrf.mxu2  ;;  %v2041_v13 = vpop.f32.mrf.mxu3  ;;  %v4341_v2 = vld [vmem:[%s4479_s26 + $0x368] sm:$0xff] }
  0xd5   : > { %3407 = vst.msk [vmem:[%s4565_s4 + $0x318] sm:$0xf] %vm3208_vm3, %v3150_v8  ;;  %v1882_v16 = vadd.f32 %v4548_v35, %v1881_v12  ;;  %v2042_v17 = vadd.f32 %v4548_v35, %v2041_v13  ;;  %v1564_v18 = vpop.f32.mrf.mxu0  ;;  %v1724_v19 = vpop.f32.mrf.mxu1 }
  0xd6   : > { %3216 = vst.msk [vmem:[%s4565_s4 + $0x1c] sm:$0xf] %vm3208_vm3, %v2959_v9  ;;  %v1565_v22 = vadd.f32 %v4548_v35, %v1564_v18  ;;  %v1725_v23 = vadd.f32 %v4548_v35, %v1724_v19 }
  0xd7   : > { %3280 = vst.msk [vmem:[%s4565_s4 + $0x11c] sm:$0xf] %vm3208_vm3, %v3023_v11  ;;  %vm2319_vm4 = vcmp.gt.f32.partialorder %v1882_v16, 0.0  ;;  %v2575_v24 = vmul.f32 0.2, %v1882_v16  ;;  %vm2383_vm5 = vcmp.gt.f32.partialorder %v2042_v17, 0.0 }
  0xd8   : > { %v2639_v25 = vmul.f32 0.2, %v2042_v17  ;;  %vm2192_vm6 = vcmp.gt.f32.partialorder %v1565_v22, 0.0  ;;  %v2448_v26 = vmul.f32 0.2, %v1565_v22  ;;  %vm2256_vm7 = vcmp.gt.f32.partialorder %v1725_v23, 0.0  ;;  %4114 = vmatmul.msk.bf16.gmra.mxu0 %vm1150_vm0, %v4244_v14  ;;  %4146 = vmatmul.msk.bf16.gmra.mxu1 %vm1150_vm0, %v4276_v15 }
  0xd9   : > { %v2831_v27 = vsel %vm2319_vm4, %v1882_v16, %v2575_v24  ;;  %v2512_v28 = vmul.f32 0.2, %v1725_v23  ;;  %4178 = vmatmul.msk.bf16.gmra.mxu2 %vm1150_vm0, %v4308_v20  ;;  %4210 = vmatmul.msk.bf16.gmra.mxu3 %vm1150_vm0, %v4340_v21 }
  0xda   : > { %v3087_v29 = vpack.c.bf16 %v2831_v27, %v2831_v27  ;;  %v2895_v30 = vsel %vm2383_vm5, %v2042_v17, %v2639_v25  ;;  %v2704_v31 = vsel %vm2192_vm6, %v1565_v22, %v2448_v26 }
  0xdb   : > { %v3151_v32 = vpack.c.bf16 %v2895_v30, %v2895_v30  ;;  %v2960_v33 = vpack.c.bf16 %v2704_v31, %v2704_v31  ;;  %v2768_v34 = vsel %vm2256_vm7, %v1725_v23, %v2512_v28 }
  0xdc   : > { %3344 = vst.msk [vmem:[%s4565_s4 + $0x21c] sm:$0xf] %vm3208_vm3, %v3087_v29  ;;  %v3024_v36 = vpack.c.bf16 %v2768_v34, %v2768_v34  ;;  %v1884_v37 = vpop.f32.mrf.mxu2  ;;  %v2044_v38 = vpop.f32.mrf.mxu3 }
  0xdd   : > { %3408 = vst.msk [vmem:[%s4565_s4 + $0x31c] sm:$0xf] %vm3208_vm3, %v3151_v32  ;;  %v1885_v39 = vadd.f32 %v4548_v35, %v1884_v37  ;;  %v2045_v40 = vadd.f32 %v4548_v35, %v2044_v38  ;;  %v1566_v41 = vpop.f32.mrf.mxu0  ;;  %v1726_v42 = vpop.f32.mrf.mxu1 }
  0xde   : > { %3217 = vst.msk [vmem:[%s4565_s4 + $0x20] sm:$0xf] %vm3208_vm3, %v2960_v33  ;;  %v1567_v43 = vadd.f32 %v4548_v35, %v1566_v41  ;;  %v1727_v44 = vadd.f32 %v4548_v35, %v1726_v42  ;;  %v4278_v41 = vld [vmem:[%s4479_s26 + $0x170] sm:$0xff] }
  0xdf   : > { %3281 = vst.msk [vmem:[%s4565_s4 + $0x120] sm:$0xf] %vm3208_vm3, %v3024_v36  ;;  %vm2320_vm8 = vcmp.gt.f32.partialorder %v1885_v39, 0.0  ;;  %v2576_v45 = vmul.f32 0.2, %v1885_v39  ;;  %vm2384_vm9 = vcmp.gt.f32.partialorder %v2045_v40, 0.0 }
  0xe0   : > { %v2640_v46 = vmul.f32 0.2, %v2045_v40  ;;  %vm2193_vm10 = vcmp.gt.f32.partialorder %v1567_v43, 0.0  ;;  %v2449_v47 = vmul.f32 0.2, %v1567_v43  ;;  %vm2257_vm11 = vcmp.gt.f32.partialorder %v1727_v44, 0.0 }
  0xe1   : > { %v2832_v48 = vsel %vm2320_vm8, %v1885_v39, %v2576_v45  ;;  %v2513_v49 = vmul.f32 0.2, %v1727_v44 }
  0xe2   : > { %v3088_v50 = vpack.c.bf16 %v2832_v48, %v2832_v48  ;;  %v2896_v51 = vsel %vm2384_vm9, %v2045_v40, %v2640_v46  ;;  %v2705_v52 = vsel %vm2193_vm10, %v1567_v43, %v2449_v47  ;;  %v4246_v40 = vld [vmem:[%s4479_s26 + $0x70] sm:$0xff] }
  0xe3   : > { %v3152_v53 = vpack.c.bf16 %v2896_v51, %v2896_v51  ;;  %v2961_v54 = vpack.c.bf16 %v2705_v52, %v2705_v52  ;;  %v2769_v55 = vsel %vm2257_vm11, %v1727_v44, %v2513_v49  ;;  %v4310_v46 = vld [vmem:[%s4479_s26 + $0x270] sm:$0xff] }
  0xe4   : > { %3345 = vst.msk [vmem:[%s4565_s4 + $0x220] sm:$0xf] %vm3208_vm3, %v3088_v50  ;;  %v3025_v56 = vpack.c.bf16 %v2769_v55, %v2769_v55  ;;  %v1886_v57 = vpop.f32.mrf.mxu2  ;;  %v2046_v58 = vpop.f32.mrf.mxu3  ;;  %v4342_v47 = vld [vmem:[%s4479_s26 + $0x370] sm:$0xff] }
  0xe5   : > { %3409 = vst.msk [vmem:[%s4565_s4 + $0x320] sm:$0xf] %vm3208_vm3, %v3152_v53  ;;  %v1887_v61 = vadd.f32 %v4548_v35, %v1886_v57  ;;  %v2047_v62 = vadd.f32 %v4548_v35, %v2046_v58  ;;  %v1569_v63 = vpop.f32.mrf.mxu0  ;;  %v1729_v0 = vpop.f32.mrf.mxu1 }
  0xe6   : > { %3218 = vst.msk [vmem:[%s4565_s4 + $0x24] sm:$0xf] %vm3208_vm3, %v2961_v54  ;;  %v1570_v3 = vadd.f32 %v4548_v35, %v1569_v63  ;;  %v1730_v4 = vadd.f32 %v4548_v35, %v1729_v0 }
  0xe7   : > { %3282 = vst.msk [vmem:[%s4565_s4 + $0x124] sm:$0xf] %vm3208_vm3, %v3025_v56  ;;  %vm2321_vm12 = vcmp.gt.f32.partialorder %v1887_v61, 0.0  ;;  %v2577_v5 = vmul.f32 0.2, %v1887_v61  ;;  %vm2385_vm13 = vcmp.gt.f32.partialorder %v2047_v62, 0.0 }
  0xe8   : > { %v2641_v6 = vmul.f32 0.2, %v2047_v62  ;;  %vm2194_vm14 = vcmp.gt.f32.partialorder %v1570_v3, 0.0  ;;  %v2450_v7 = vmul.f32 0.2, %v1570_v3  ;;  %vm2258_vm15 = vcmp.gt.f32.partialorder %v1730_v4, 0.0  ;;  %4115 = vmatmul.msk.bf16.gmra.mxu0 %vm1150_vm0, %v4245_v59  ;;  %4147 = vmatmul.msk.bf16.gmra.mxu1 %vm1150_vm0, %v4277_v60 }
  0xe9   : > { %v2833_v8 = vsel %vm2321_vm12, %v1887_v61, %v2577_v5  ;;  %v2514_v9 = vmul.f32 0.2, %v1730_v4  ;;  %4179 = vmatmul.msk.bf16.gmra.mxu2 %vm1150_vm0, %v4309_v1  ;;  %4211 = vmatmul.msk.bf16.gmra.mxu3 %vm1150_vm0, %v4341_v2 }
  0xea   : > { %v3089_v10 = vpack.c.bf16 %v2833_v8, %v2833_v8  ;;  %v2897_v11 = vsel %vm2385_vm13, %v2047_v62, %v2641_v6  ;;  %v2706_v12 = vsel %vm2194_vm14, %v1570_v3, %v2450_v7 }
  0xeb   : > { %v3153_v13 = vpack.c.bf16 %v2897_v11, %v2897_v11  ;;  %v2962_v14 = vpack.c.bf16 %v2706_v12, %v2706_v12  ;;  %v2770_v15 = vsel %vm2258_vm15, %v1730_v4, %v2514_v9 }
  0xec   : > { %3346 = vst.msk [vmem:[%s4565_s4 + $0x224] sm:$0xf] %vm3208_vm3, %v3089_v10  ;;  %v3026_v16 = vpack.c.bf16 %v2770_v15, %v2770_v15  ;;  %v1889_v17 = vpop.f32.mrf.mxu2  ;;  %v2049_v18 = vpop.f32.mrf.mxu3 }
  0xed   : > { %3410 = vst.msk [vmem:[%s4565_s4 + $0x324] sm:$0xf] %vm3208_vm3, %v3153_v13  ;;  %v1890_v19 = vadd.f32 %v4548_v35, %v1889_v17  ;;  %v2050_v20 = vadd.f32 %v4548_v35, %v2049_v18  ;;  %v1571_v21 = vpop.f32.mrf.mxu0  ;;  %v1731_v22 = vpop.f32.mrf.mxu1 }
  0xee   : > { %3219 = vst.msk [vmem:[%s4565_s4 + $0x28] sm:$0xf] %vm3208_vm3, %v2962_v14  ;;  %v1572_v23 = vadd.f32 %v4548_v35, %v1571_v21  ;;  %v1732_v24 = vadd.f32 %v4548_v35, %v1731_v22  ;;  %v4279_v21 = vld [vmem:[%s4479_s26 + $0x178] sm:$0xff] }
  0xef   : > { %3283 = vst.msk [vmem:[%s4565_s4 + $0x128] sm:$0xf] %vm3208_vm3, %v3026_v16  ;;  %vm2322_vm1 = vcmp.gt.f32.partialorder %v1890_v19, 0.0  ;;  %v2578_v25 = vmul.f32 0.2, %v1890_v19  ;;  %vm2386_vm2 = vcmp.gt.f32.partialorder %v2050_v20, 0.0 }
  0xf0   : > { %v2642_v26 = vmul.f32 0.2, %v2050_v20  ;;  %vm2195_vm4 = vcmp.gt.f32.partialorder %v1572_v23, 0.0  ;;  %v2451_v27 = vmul.f32 0.2, %v1572_v23  ;;  %vm2259_vm5 = vcmp.gt.f32.partialorder %v1732_v24, 0.0 }
  0xf1   : > { %v2834_v28 = vsel %vm2322_vm1, %v1890_v19, %v2578_v25  ;;  %v2515_v29 = vmul.f32 0.2, %v1732_v24 }
  0xf2   : > { %v3090_v30 = vpack.c.bf16 %v2834_v28, %v2834_v28  ;;  %v2898_v31 = vsel %vm2386_vm2, %v2050_v20, %v2642_v26  ;;  %v2707_v32 = vsel %vm2195_vm4, %v1572_v23, %v2451_v27  ;;  %v4247_v20 = vld [vmem:[%s4479_s26 + $0x78] sm:$0xff] }
  0xf3   : > { %v3154_v33 = vpack.c.bf16 %v2898_v31, %v2898_v31  ;;  %v2963_v34 = vpack.c.bf16 %v2707_v32, %v2707_v32  ;;  %v2771_v36 = vsel %vm2259_vm5, %v1732_v24, %v2515_v29  ;;  %v4311_v26 = vld [vmem:[%s4479_s26 + $0x278] sm:$0xff] }
  0xf4   : > { %3347 = vst.msk [vmem:[%s4565_s4 + $0x228] sm:$0xf] %vm3208_vm3, %v3090_v30  ;;  %v3027_v37 = vpack.c.bf16 %v2771_v36, %v2771_v36  ;;  %v1891_v38 = vpop.f32.mrf.mxu2  ;;  %v2051_v39 = vpop.f32.mrf.mxu3  ;;  %v4343_v27 = vld [vmem:[%s4479_s26 + $0x378] sm:$0xff] }
  0xf5   : > { %3411 = vst.msk [vmem:[%s4565_s4 + $0x328] sm:$0xf] %vm3208_vm3, %v3154_v33  ;;  %v1892_v42 = vadd.f32 %v4548_v35, %v1891_v38  ;;  %v2052_v43 = vadd.f32 %v4548_v35, %v2051_v39  ;;  %v1574_v44 = vpop.f32.mrf.mxu0  ;;  %v1734_v45 = vpop.f32.mrf.mxu1 }
  0xf6   : > { %3220 = vst.msk [vmem:[%s4565_s4 + $0x2c] sm:$0xf] %vm3208_vm3, %v2963_v34  ;;  %v1575_v48 = vadd.f32 %v4548_v35, %v1574_v44  ;;  %v1735_v49 = vadd.f32 %v4548_v35, %v1734_v45 }
  0xf7   : > { %3284 = vst.msk [vmem:[%s4565_s4 + $0x12c] sm:$0xf] %vm3208_vm3, %v3027_v37  ;;  %vm2323_vm6 = vcmp.gt.f32.partialorder %v1892_v42, 0.0  ;;  %v2579_v50 = vmul.f32 0.2, %v1892_v42  ;;  %vm2387_vm7 = vcmp.gt.f32.partialorder %v2052_v43, 0.0 }
  0xf8   : > { %v2643_v51 = vmul.f32 0.2, %v2052_v43  ;;  %vm2196_vm8 = vcmp.gt.f32.partialorder %v1575_v48, 0.0  ;;  %v2452_v52 = vmul.f32 0.2, %v1575_v48  ;;  %vm2260_vm9 = vcmp.gt.f32.partialorder %v1735_v49, 0.0  ;;  %4116 = vmatmul.msk.bf16.gmra.mxu0 %vm1150_vm0, %v4246_v40  ;;  %4148 = vmatmul.msk.bf16.gmra.mxu1 %vm1150_vm0, %v4278_v41 }
  0xf9   : > { %v2835_v53 = vsel %vm2323_vm6, %v1892_v42, %v2579_v50  ;;  %v2516_v54 = vmul.f32 0.2, %v1735_v49  ;;  %4180 = vmatmul.msk.bf16.gmra.mxu2 %vm1150_vm0, %v4310_v46  ;;  %4212 = vmatmul.msk.bf16.gmra.mxu3 %vm1150_vm0, %v4342_v47 }
  0xfa   : > { %v3091_v55 = vpack.c.bf16 %v2835_v53, %v2835_v53  ;;  %v2899_v56 = vsel %vm2387_vm7, %v2052_v43, %v2643_v51  ;;  %v2708_v57 = vsel %vm2196_vm8, %v1575_v48, %v2452_v52 }
  0xfb   : > { %v3155_v58 = vpack.c.bf16 %v2899_v56, %v2899_v56  ;;  %v2964_v59 = vpack.c.bf16 %v2708_v57, %v2708_v57  ;;  %v2772_v60 = vsel %vm2260_vm9, %v1735_v49, %v2516_v54 }
  0xfc   : > { %3348 = vst.msk [vmem:[%s4565_s4 + $0x22c] sm:$0xf] %vm3208_vm3, %v3091_v55  ;;  %v3028_v61 = vpack.c.bf16 %v2772_v60, %v2772_v60  ;;  %v1894_v62 = vpop.f32.mrf.mxu2  ;;  %v2054_v63 = vpop.f32.mrf.mxu3 }
  0xfd   : > { %3412 = vst.msk [vmem:[%s4565_s4 + $0x32c] sm:$0xf] %vm3208_vm3, %v3155_v58  ;;  %v1895_v0 = vadd.f32 %v4548_v35, %v1894_v62  ;;  %v2055_v1 = vadd.f32 %v4548_v35, %v2054_v63  ;;  %v1576_v2 = vpop.f32.mrf.mxu0  ;;  %v1736_v3 = vpop.f32.mrf.mxu1 }
  0xfe   : > { %3221 = vst.msk [vmem:[%s4565_s4 + $0x30] sm:$0xf] %vm3208_vm3, %v2964_v59  ;;  %v1577_v4 = vadd.f32 %v4548_v35, %v1576_v2  ;;  %v1737_v5 = vadd.f32 %v4548_v35, %v1736_v3  ;;  %v4280_v2 = vld [vmem:[%s4479_s26 + $0x180] sm:$0xff] }
  0xff   : > { %3285 = vst.msk [vmem:[%s4565_s4 + $0x130] sm:$0xf] %vm3208_vm3, %v3028_v61  ;;  %vm2324_vm10 = vcmp.gt.f32.partialorder %v1895_v0, 0.0  ;;  %v2580_v6 = vmul.f32 0.2, %v1895_v0  ;;  %vm2388_vm11 = vcmp.gt.f32.partialorder %v2055_v1, 0.0 }
 0x100   : > { %v2644_v7 = vmul.f32 0.2, %v2055_v1  ;;  %vm2197_vm12 = vcmp.gt.f32.partialorder %v1577_v4, 0.0  ;;  %v2453_v8 = vmul.f32 0.2, %v1577_v4  ;;  %vm2261_vm13 = vcmp.gt.f32.partialorder %v1737_v5, 0.0 }
 0x101   : > { %v2836_v9 = vsel %vm2324_vm10, %v1895_v0, %v2580_v6  ;;  %v2517_v10 = vmul.f32 0.2, %v1737_v5 }
 0x102   : > { %v3092_v11 = vpack.c.bf16 %v2836_v9, %v2836_v9  ;;  %v2900_v12 = vsel %vm2388_vm11, %v2055_v1, %v2644_v7  ;;  %v2709_v13 = vsel %vm2197_vm12, %v1577_v4, %v2453_v8  ;;  %v4248_v1 = vld [vmem:[%s4479_s26 + $0x80] sm:$0xff] }
 0x103   : > { %v3156_v14 = vpack.c.bf16 %v2900_v12, %v2900_v12  ;;  %v2965_v15 = vpack.c.bf16 %v2709_v13, %v2709_v13  ;;  %v2773_v16 = vsel %vm2261_vm13, %v1737_v5, %v2517_v10  ;;  %v4312_v7 = vld [vmem:[%s4479_s26 + $0x280] sm:$0xff] }
 0x104   : > { %3349 = vst.msk [vmem:[%s4565_s4 + $0x230] sm:$0xf] %vm3208_vm3, %v3092_v11  ;;  %v3029_v17 = vpack.c.bf16 %v2773_v16, %v2773_v16  ;;  %v1896_v18 = vpop.f32.mrf.mxu2  ;;  %v2056_v19 = vpop.f32.mrf.mxu3  ;;  %v4344_v8 = vld [vmem:[%s4479_s26 + $0x380] sm:$0xff] }
 0x105   : > { %3413 = vst.msk [vmem:[%s4565_s4 + $0x330] sm:$0xf] %vm3208_vm3, %v3156_v14  ;;  %v1897_v22 = vadd.f32 %v4548_v35, %v1896_v18  ;;  %v2057_v23 = vadd.f32 %v4548_v35, %v2056_v19  ;;  %v1579_v24 = vpop.f32.mrf.mxu0  ;;  %v1739_v25 = vpop.f32.mrf.mxu1 }
 0x106   : > { %3222 = vst.msk [vmem:[%s4565_s4 + $0x34] sm:$0xf] %vm3208_vm3, %v2965_v15  ;;  %v1580_v28 = vadd.f32 %v4548_v35, %v1579_v24  ;;  %v1740_v29 = vadd.f32 %v4548_v35, %v1739_v25  ;;  %v4826_v24 = vld [vmem:[%s5543_s2] ss:$0 sm:$0xff] }
 0x107   : > { %3286 = vst.msk [vmem:[%s4565_s4 + $0x134] sm:$0xf] %vm3208_vm3, %v3029_v17  ;;  %vm2325_vm14 = vcmp.gt.f32.partialorder %v1897_v22, 0.0  ;;  %v2581_v30 = vmul.f32 0.2, %v1897_v22  ;;  %vm2389_vm15 = vcmp.gt.f32.partialorder %v2057_v23, 0.0 }
 0x108   : > { %v2645_v31 = vmul.f32 0.2, %v2057_v23  ;;  %vm2198_vm1 = vcmp.gt.f32.partialorder %v1580_v28, 0.0  ;;  %v2454_v32 = vmul.f32 0.2, %v1580_v28  ;;  %vm2262_vm2 = vcmp.gt.f32.partialorder %v1740_v29, 0.0  ;;  %4117 = vmatmul.msk.bf16.gmra.mxu0 %vm1150_vm0, %v4247_v20  ;;  %4149 = vmatmul.msk.bf16.gmra.mxu1 %vm1150_vm0, %v4279_v21 }
 0x109   : > { %v2837_v33 = vsel %vm2325_vm14, %v1897_v22, %v2581_v30  ;;  %v2518_v34 = vmul.f32 0.2, %v1740_v29  ;;  %4181 = vmatmul.msk.bf16.gmra.mxu2 %vm1150_vm0, %v4311_v26  ;;  %4213 = vmatmul.msk.bf16.gmra.mxu3 %vm1150_vm0, %v4343_v27 }
 0x10a   : > { %v3093_v36 = vpack.c.bf16 %v2837_v33, %v2837_v33  ;;  %v2901_v37 = vsel %vm2389_vm15, %v2057_v23, %v2645_v31  ;;  %v2710_v38 = vsel %vm2198_vm1, %v1580_v28, %v2454_v32 }
 0x10b   : > { %v3157_v39 = vpack.c.bf16 %v2901_v37, %v2901_v37  ;;  %v2966_v40 = vpack.c.bf16 %v2710_v38, %v2710_v38  ;;  %v2774_v41 = vsel %vm2262_vm2, %v1740_v29, %v2518_v34 }
 0x10c   : > { %3350 = vst.msk [vmem:[%s4565_s4 + $0x234] sm:$0xf] %vm3208_vm3, %v3093_v36  ;;  %v3030_v42 = vpack.c.bf16 %v2774_v41, %v2774_v41  ;;  %v1899_v43 = vpop.f32.mrf.mxu2  ;;  %v2059_v44 = vpop.f32.mrf.mxu3 }
 0x10d   : > { %3414 = vst.msk [vmem:[%s4565_s4 + $0x334] sm:$0xf] %vm3208_vm3, %v3157_v39  ;;  %v1900_v45 = vadd.f32 %v4548_v35, %v1899_v43  ;;  %v2060_v46 = vadd.f32 %v4548_v35, %v2059_v44  ;;  %v1581_v47 = vpop.f32.mrf.mxu0  ;;  %v1741_v48 = vpop.f32.mrf.mxu1 }
 0x10e   : > { %3223 = vst.msk [vmem:[%s4565_s4 + $0x38] sm:$0xf] %vm3208_vm3, %v2966_v40  ;;  %v1582_v49 = vadd.f32 %v4548_v35, %v1581_v47  ;;  %v1742_v50 = vadd.f32 %v4548_v35, %v1741_v48  ;;  %v4281_v47 = vld [vmem:[%s4479_s26 + $0x188] sm:$0xff] }
 0x10f   : > { %3287 = vst.msk [vmem:[%s4565_s4 + $0x138] sm:$0xf] %vm3208_vm3, %v3030_v42  ;;  %vm2326_vm4 = vcmp.gt.f32.partialorder %v1900_v45, 0.0  ;;  %v2582_v51 = vmul.f32 0.2, %v1900_v45  ;;  %vm2390_vm5 = vcmp.gt.f32.partialorder %v2060_v46, 0.0 }
 0x110   : > { %v2646_v52 = vmul.f32 0.2, %v2060_v46  ;;  %vm2199_vm6 = vcmp.gt.f32.partialorder %v1582_v49, 0.0  ;;  %v2455_v53 = vmul.f32 0.2, %v1582_v49  ;;  %vm2263_vm7 = vcmp.gt.f32.partialorder %v1742_v50, 0.0 }
 0x111   : > { %v2838_v54 = vsel %vm2326_vm4, %v1900_v45, %v2582_v51  ;;  %v2519_v55 = vmul.f32 0.2, %v1742_v50 }
 0x112   : > { %v3094_v56 = vpack.c.bf16 %v2838_v54, %v2838_v54  ;;  %v2902_v57 = vsel %vm2390_vm5, %v2060_v46, %v2646_v52  ;;  %v2711_v58 = vsel %vm2199_vm6, %v1582_v49, %v2455_v53  ;;  %v4249_v46 = vld [vmem:[%s4479_s26 + $0x88] sm:$0xff] }
 0x113   : > { %v3158_v59 = vpack.c.bf16 %v2902_v57, %v2902_v57  ;;  %v2967_v60 = vpack.c.bf16 %v2711_v58, %v2711_v58  ;;  %v2775_v61 = vsel %vm2263_vm7, %v1742_v50, %v2519_v55  ;;  %v4313_v52 = vld [vmem:[%s4479_s26 + $0x288] sm:$0xff] }
 0x114   : > { %3351 = vst.msk [vmem:[%s4565_s4 + $0x238] sm:$0xf] %vm3208_vm3, %v3094_v56  ;;  %v3031_v62 = vpack.c.bf16 %v2775_v61, %v2775_v61  ;;  %v1901_v63 = vpop.f32.mrf.mxu2  ;;  %v2061_v0 = vpop.f32.mrf.mxu3  ;;  %v4345_v53 = vld [vmem:[%s4479_s26 + $0x388] sm:$0xff] }
 0x115   : > { %3415 = vst.msk [vmem:[%s4565_s4 + $0x338] sm:$0xf] %vm3208_vm3, %v3158_v59  ;;  %v1902_v3 = vadd.f32 %v4548_v35, %v1901_v63  ;;  %v2062_v4 = vadd.f32 %v4548_v35, %v2061_v0  ;;  %v1584_v5 = vpop.f32.mrf.mxu0  ;;  %v1744_v6 = vpop.f32.mrf.mxu1 }
 0x116   : > { %3224 = vst.msk [vmem:[%s4565_s4 + $0x3c] sm:$0xf] %vm3208_vm3, %v2967_v60  ;;  %v1585_v9 = vadd.f32 %v4548_v35, %v1584_v5  ;;  %v1745_v10 = vadd.f32 %v4548_v35, %v1744_v6 }
 0x117   : > { %3288 = vst.msk [vmem:[%s4565_s4 + $0x13c] sm:$0xf] %vm3208_vm3, %v3031_v62  ;;  %vm2327_vm8 = vcmp.gt.f32.partialorder %v1902_v3, 0.0  ;;  %v2583_v11 = vmul.f32 0.2, %v1902_v3  ;;  %vm2391_vm9 = vcmp.gt.f32.partialorder %v2062_v4, 0.0 }
 0x118   : > { %v2647_v12 = vmul.f32 0.2, %v2062_v4  ;;  %vm2200_vm10 = vcmp.gt.f32.partialorder %v1585_v9, 0.0  ;;  %v2456_v13 = vmul.f32 0.2, %v1585_v9  ;;  %vm2264_vm11 = vcmp.gt.f32.partialorder %v1745_v10, 0.0  ;;  %4118 = vmatmul.msk.bf16.gmra.mxu0 %vm1150_vm0, %v4248_v1  ;;  %4150 = vmatmul.msk.bf16.gmra.mxu1 %vm1150_vm0, %v4280_v2 }
 0x119   : > { %v2839_v14 = vsel %vm2327_vm8, %v1902_v3, %v2583_v11  ;;  %v2520_v15 = vmul.f32 0.2, %v1745_v10  ;;  %4182 = vmatmul.msk.bf16.gmra.mxu2 %vm1150_vm0, %v4312_v7  ;;  %4214 = vmatmul.msk.bf16.gmra.mxu3 %vm1150_vm0, %v4344_v8 }
 0x11a   : > { %v3095_v35 = vpack.c.bf16 %v2839_v14, %v2839_v14  ;;  %v2903_v16 = vsel %vm2391_vm9, %v2062_v4, %v2647_v12  ;;  %v2712_v17 = vsel %vm2200_vm10, %v1585_v9, %v2456_v13 }
 0x11b   : > { %v3159_v18 = vpack.c.bf16 %v2903_v16, %v2903_v16  ;;  %v2968_v19 = vpack.c.bf16 %v2712_v17, %v2712_v17  ;;  %v2776_v20 = vsel %vm2264_vm11, %v1745_v10, %v2520_v15 }
 0x11c   : > { %3352 = vst.msk [vmem:[%s4565_s4 + $0x23c] sm:$0xf] %vm3208_vm3, %v3095_v35  ;;  %v3032_v21 = vpack.c.bf16 %v2776_v20, %v2776_v20  ;;  %v1904_v22 = vpop.f32.mrf.mxu2  ;;  %v2064_v23 = vpop.f32.mrf.mxu3 }
 0x11d   : > { %3416 = vst.msk [vmem:[%s4565_s4 + $0x33c] sm:$0xf] %vm3208_vm3, %v3159_v18  ;;  %v1905_v25 = vadd.f32 %v4826_v24, %v1904_v22  ;;  %v2065_v26 = vadd.f32 %v4826_v24, %v2064_v23  ;;  %v1586_v27 = vpop.f32.mrf.mxu0  ;;  %v1746_v28 = vpop.f32.mrf.mxu1 }
 0x11e   : > { %3225 = vst.msk [vmem:[%s4565_s4 + $0x40] sm:$0xf] %vm3208_vm3, %v2968_v19  ;;  %v1587_v29 = vadd.f32 %v4826_v24, %v1586_v27  ;;  %v1747_v30 = vadd.f32 %v4826_v24, %v1746_v28  ;;  %v4282_v27 = vld [vmem:[%s4479_s26 + $0x190] sm:$0xff] }
 0x11f   : > { %3289 = vst.msk [vmem:[%s4565_s4 + $0x140] sm:$0xf] %vm3208_vm3, %v3032_v21  ;;  %vm2328_vm12 = vcmp.gt.f32.partialorder %v1905_v25, 0.0  ;;  %v2584_v31 = vmul.f32 0.2, %v1905_v25  ;;  %vm2392_vm13 = vcmp.gt.f32.partialorder %v2065_v26, 0.0 }
 0x120   : > { %v2648_v32 = vmul.f32 0.2, %v2065_v26  ;;  %vm2201_vm14 = vcmp.gt.f32.partialorder %v1587_v29, 0.0  ;;  %v2457_v33 = vmul.f32 0.2, %v1587_v29  ;;  %vm2265_vm15 = vcmp.gt.f32.partialorder %v1747_v30, 0.0 }
 0x121   : > { %v2840_v34 = vsel %vm2328_vm12, %v1905_v25, %v2584_v31  ;;  %v2521_v36 = vmul.f32 0.2, %v1747_v30 }
 0x122   : > { %v3096_v37 = vpack.c.bf16 %v2840_v34, %v2840_v34  ;;  %v2904_v38 = vsel %vm2392_vm13, %v2065_v26, %v2648_v32  ;;  %v2713_v39 = vsel %vm2201_vm14, %v1587_v29, %v2457_v33  ;;  %v4250_v26 = vld [vmem:[%s4479_s26 + $0x90] sm:$0xff] }
 0x123   : > { %v3160_v40 = vpack.c.bf16 %v2904_v38, %v2904_v38  ;;  %v2969_v41 = vpack.c.bf16 %v2713_v39, %v2713_v39  ;;  %v2777_v42 = vsel %vm2265_vm15, %v1747_v30, %v2521_v36  ;;  %v4314_v32 = vld [vmem:[%s4479_s26 + $0x290] sm:$0xff] }
 0x124   : > { %3353 = vst.msk [vmem:[%s4565_s4 + $0x240] sm:$0xf] %vm3208_vm3, %v3096_v37  ;;  %v3033_v43 = vpack.c.bf16 %v2777_v42, %v2777_v42  ;;  %v1906_v44 = vpop.f32.mrf.mxu2  ;;  %v2066_v45 = vpop.f32.mrf.mxu3  ;;  %v4346_v33 = vld [vmem:[%s4479_s26 + $0x390] sm:$0xff] }
 0x125   : > { %3417 = vst.msk [vmem:[%s4565_s4 + $0x340] sm:$0xf] %vm3208_vm3, %v3160_v40  ;;  %v1907_v48 = vadd.f32 %v4826_v24, %v1906_v44  ;;  %v2067_v49 = vadd.f32 %v4826_v24, %v2066_v45  ;;  %v1589_v50 = vpop.f32.mrf.mxu0  ;;  %v1749_v51 = vpop.f32.mrf.mxu1 }
 0x126   : > { %3226 = vst.msk [vmem:[%s4565_s4 + $0x44] sm:$0xf] %vm3208_vm3, %v2969_v41  ;;  %v1590_v54 = vadd.f32 %v4826_v24, %v1589_v50  ;;  %v1750_v55 = vadd.f32 %v4826_v24, %v1749_v51 }
 0x127   : > { %3290 = vst.msk [vmem:[%s4565_s4 + $0x144] sm:$0xf] %vm3208_vm3, %v3033_v43  ;;  %vm2329_vm1 = vcmp.gt.f32.partialorder %v1907_v48, 0.0  ;;  %v2585_v56 = vmul.f32 0.2, %v1907_v48  ;;  %vm2393_vm2 = vcmp.gt.f32.partialorder %v2067_v49, 0.0 }
 0x128   : > { %v2649_v57 = vmul.f32 0.2, %v2067_v49  ;;  %vm2202_vm4 = vcmp.gt.f32.partialorder %v1590_v54, 0.0  ;;  %v2458_v58 = vmul.f32 0.2, %v1590_v54  ;;  %vm2266_vm5 = vcmp.gt.f32.partialorder %v1750_v55, 0.0  ;;  %4119 = vmatmul.msk.bf16.gmra.mxu0 %vm1150_vm0, %v4249_v46  ;;  %4151 = vmatmul.msk.bf16.gmra.mxu1 %vm1150_vm0, %v4281_v47 }
 0x129   : > { %v2841_v59 = vsel %vm2329_vm1, %v1907_v48, %v2585_v56  ;;  %v2522_v60 = vmul.f32 0.2, %v1750_v55  ;;  %4183 = vmatmul.msk.bf16.gmra.mxu2 %vm1150_vm0, %v4313_v52  ;;  %4215 = vmatmul.msk.bf16.gmra.mxu3 %vm1150_vm0, %v4345_v53 }
 0x12a   : > { %v3097_v61 = vpack.c.bf16 %v2841_v59, %v2841_v59  ;;  %v2905_v62 = vsel %vm2393_vm2, %v2067_v49, %v2649_v57  ;;  %v2714_v63 = vsel %vm2202_vm4, %v1590_v54, %v2458_v58 }
 0x12b   : > { %v3161_v0 = vpack.c.bf16 %v2905_v62, %v2905_v62  ;;  %v2970_v1 = vpack.c.bf16 %v2714_v63, %v2714_v63  ;;  %v2778_v2 = vsel %vm2266_vm5, %v1750_v55, %v2522_v60 }
 0x12c   : > { %3354 = vst.msk [vmem:[%s4565_s4 + $0x244] sm:$0xf] %vm3208_vm3, %v3097_v61  ;;  %v3034_v3 = vpack.c.bf16 %v2778_v2, %v2778_v2  ;;  %v1909_v4 = vpop.f32.mrf.mxu2  ;;  %v2069_v5 = vpop.f32.mrf.mxu3 }
 0x12d   : > { %3418 = vst.msk [vmem:[%s4565_s4 + $0x344] sm:$0xf] %vm3208_vm3, %v3161_v0  ;;  %v1910_v6 = vadd.f32 %v4826_v24, %v1909_v4  ;;  %v2070_v7 = vadd.f32 %v4826_v24, %v2069_v5  ;;  %v1591_v8 = vpop.f32.mrf.mxu0  ;;  %v1751_v9 = vpop.f32.mrf.mxu1 }
 0x12e   : > { %3227 = vst.msk [vmem:[%s4565_s4 + $0x48] sm:$0xf] %vm3208_vm3, %v2970_v1  ;;  %v1592_v10 = vadd.f32 %v4826_v24, %v1591_v8  ;;  %v1752_v11 = vadd.f32 %v4826_v24, %v1751_v9  ;;  %v4283_v8 = vld [vmem:[%s4479_s26 + $0x198] sm:$0xff] }
 0x12f   : > { %3291 = vst.msk [vmem:[%s4565_s4 + $0x148] sm:$0xf] %vm3208_vm3, %v3034_v3  ;;  %vm2330_vm6 = vcmp.gt.f32.partialorder %v1910_v6, 0.0  ;;  %v2586_v12 = vmul.f32 0.2, %v1910_v6  ;;  %vm2394_vm7 = vcmp.gt.f32.partialorder %v2070_v7, 0.0 }
 0x130   : > { %v2650_v13 = vmul.f32 0.2, %v2070_v7  ;;  %vm2203_vm8 = vcmp.gt.f32.partialorder %v1592_v10, 0.0  ;;  %v2459_v14 = vmul.f32 0.2, %v1592_v10  ;;  %vm2267_vm9 = vcmp.gt.f32.partialorder %v1752_v11, 0.0 }
 0x131   : > { %v2842_v15 = vsel %vm2330_vm6, %v1910_v6, %v2586_v12  ;;  %v2523_v35 = vmul.f32 0.2, %v1752_v11 }
 0x132   : > { %v3098_v16 = vpack.c.bf16 %v2842_v15, %v2842_v15  ;;  %v2906_v17 = vsel %vm2394_vm7, %v2070_v7, %v2650_v13  ;;  %v2715_v18 = vsel %vm2203_vm8, %v1592_v10, %v2459_v14  ;;  %v4251_v7 = vld [vmem:[%s4479_s26 + $0x98] sm:$0xff] }
 0x133   : > { %v3162_v19 = vpack.c.bf16 %v2906_v17, %v2906_v17  ;;  %v2971_v20 = vpack.c.bf16 %v2715_v18, %v2715_v18  ;;  %v2779_v21 = vsel %vm2267_vm9, %v1752_v11, %v2523_v35  ;;  %v4315_v13 = vld [vmem:[%s4479_s26 + $0x298] sm:$0xff] }
 0x134   : > { %3355 = vst.msk [vmem:[%s4565_s4 + $0x248] sm:$0xf] %vm3208_vm3, %v3098_v16  ;;  %v3035_v22 = vpack.c.bf16 %v2779_v21, %v2779_v21  ;;  %v1911_v23 = vpop.f32.mrf.mxu2  ;;  %v2071_v25 = vpop.f32.mrf.mxu3  ;;  %v4347_v14 = vld [vmem:[%s4479_s26 + $0x398] sm:$0xff] }
 0x135   : > { %3419 = vst.msk [vmem:[%s4565_s4 + $0x348] sm:$0xf] %vm3208_vm3, %v3162_v19  ;;  %v1912_v28 = vadd.f32 %v4826_v24, %v1911_v23  ;;  %v2072_v29 = vadd.f32 %v4826_v24, %v2071_v25  ;;  %v1594_v30 = vpop.f32.mrf.mxu0  ;;  %v1754_v31 = vpop.f32.mrf.mxu1 }
 0x136   : > { %3228 = vst.msk [vmem:[%s4565_s4 + $0x4c] sm:$0xf] %vm3208_vm3, %v2971_v20  ;;  %v1595_v34 = vadd.f32 %v4826_v24, %v1594_v30  ;;  %v1755_v36 = vadd.f32 %v4826_v24, %v1754_v31 }
 0x137   : > { %3292 = vst.msk [vmem:[%s4565_s4 + $0x14c] sm:$0xf] %vm3208_vm3, %v3035_v22  ;;  %vm2331_vm10 = vcmp.gt.f32.partialorder %v1912_v28, 0.0  ;;  %v2587_v37 = vmul.f32 0.2, %v1912_v28  ;;  %vm2395_vm11 = vcmp.gt.f32.partialorder %v2072_v29, 0.0 }
 0x138   : > { %v2651_v38 = vmul.f32 0.2, %v2072_v29  ;;  %vm2204_vm12 = vcmp.gt.f32.partialorder %v1595_v34, 0.0  ;;  %v2460_v39 = vmul.f32 0.2, %v1595_v34  ;;  %vm2268_vm13 = vcmp.gt.f32.partialorder %v1755_v36, 0.0  ;;  %4120 = vmatmul.msk.bf16.gmra.mxu0 %vm1150_vm0, %v4250_v26  ;;  %4152 = vmatmul.msk.bf16.gmra.mxu1 %vm1150_vm0, %v4282_v27 }
 0x139   : > { %v2843_v40 = vsel %vm2331_vm10, %v1912_v28, %v2587_v37  ;;  %v2524_v41 = vmul.f32 0.2, %v1755_v36  ;;  %4184 = vmatmul.msk.bf16.gmra.mxu2 %vm1150_vm0, %v4314_v32  ;;  %4216 = vmatmul.msk.bf16.gmra.mxu3 %vm1150_vm0, %v4346_v33 }
 0x13a   : > { %v3099_v42 = vpack.c.bf16 %v2843_v40, %v2843_v40  ;;  %v2907_v43 = vsel %vm2395_vm11, %v2072_v29, %v2651_v38  ;;  %v2716_v44 = vsel %vm2204_vm12, %v1595_v34, %v2460_v39 }
 0x13b   : > { %v3163_v45 = vpack.c.bf16 %v2907_v43, %v2907_v43  ;;  %v2972_v46 = vpack.c.bf16 %v2716_v44, %v2716_v44  ;;  %v2780_v47 = vsel %vm2268_vm13, %v1755_v36, %v2524_v41 }
 0x13c   : > { %3356 = vst.msk [vmem:[%s4565_s4 + $0x24c] sm:$0xf] %vm3208_vm3, %v3099_v42  ;;  %v3036_v48 = vpack.c.bf16 %v2780_v47, %v2780_v47  ;;  %v1914_v49 = vpop.f32.mrf.mxu2  ;;  %v2074_v50 = vpop.f32.mrf.mxu3 }
 0x13d   : > { %3420 = vst.msk [vmem:[%s4565_s4 + $0x34c] sm:$0xf] %vm3208_vm3, %v3163_v45  ;;  %v1915_v51 = vadd.f32 %v4826_v24, %v1914_v49  ;;  %v2075_v52 = vadd.f32 %v4826_v24, %v2074_v50  ;;  %v1596_v53 = vpop.f32.mrf.mxu0  ;;  %v1756_v54 = vpop.f32.mrf.mxu1 }
 0x13e   : > { %3229 = vst.msk [vmem:[%s4565_s4 + $0x50] sm:$0xf] %vm3208_vm3, %v2972_v46  ;;  %v1597_v55 = vadd.f32 %v4826_v24, %v1596_v53  ;;  %v1757_v56 = vadd.f32 %v4826_v24, %v1756_v54  ;;  %v4284_v53 = vld [vmem:[%s4479_s26 + $0x1a0] sm:$0xff] }
 0x13f   : > { %3293 = vst.msk [vmem:[%s4565_s4 + $0x150] sm:$0xf] %vm3208_vm3, %v3036_v48  ;;  %vm2332_vm14 = vcmp.gt.f32.partialorder %v1915_v51, 0.0  ;;  %v2588_v57 = vmul.f32 0.2, %v1915_v51  ;;  %vm2396_vm15 = vcmp.gt.f32.partialorder %v2075_v52, 0.0 }
 0x140   : > { %v2652_v58 = vmul.f32 0.2, %v2075_v52  ;;  %vm2205_vm1 = vcmp.gt.f32.partialorder %v1597_v55, 0.0  ;;  %v2461_v59 = vmul.f32 0.2, %v1597_v55  ;;  %vm2269_vm2 = vcmp.gt.f32.partialorder %v1757_v56, 0.0 }
 0x141   : > { %v2844_v60 = vsel %vm2332_vm14, %v1915_v51, %v2588_v57  ;;  %v2525_v61 = vmul.f32 0.2, %v1757_v56 }
 0x142   : > { %v3100_v62 = vpack.c.bf16 %v2844_v60, %v2844_v60  ;;  %v2908_v63 = vsel %vm2396_vm15, %v2075_v52, %v2652_v58  ;;  %v2717_v0 = vsel %vm2205_vm1, %v1597_v55, %v2461_v59  ;;  %v4252_v52 = vld [vmem:[%s4479_s26 + $0xa0] sm:$0xff] }
 0x143   : > { %v3164_v1 = vpack.c.bf16 %v2908_v63, %v2908_v63  ;;  %v2973_v2 = vpack.c.bf16 %v2717_v0, %v2717_v0  ;;  %v2781_v3 = vsel %vm2269_vm2, %v1757_v56, %v2525_v61  ;;  %v4316_v58 = vld [vmem:[%s4479_s26 + $0x2a0] sm:$0xff] }
 0x144   : > { %3357 = vst.msk [vmem:[%s4565_s4 + $0x250] sm:$0xf] %vm3208_vm3, %v3100_v62  ;;  %v3037_v4 = vpack.c.bf16 %v2781_v3, %v2781_v3  ;;  %v1916_v5 = vpop.f32.mrf.mxu2  ;;  %v2076_v6 = vpop.f32.mrf.mxu3  ;;  %v4348_v59 = vld [vmem:[%s4479_s26 + $0x3a0] sm:$0xff] }
 0x145   : > { %3421 = vst.msk [vmem:[%s4565_s4 + $0x350] sm:$0xf] %vm3208_vm3, %v3164_v1  ;;  %v1917_v9 = vadd.f32 %v4826_v24, %v1916_v5  ;;  %v2077_v10 = vadd.f32 %v4826_v24, %v2076_v6  ;;  %v1599_v11 = vpop.f32.mrf.mxu0  ;;  %v1759_v12 = vpop.f32.mrf.mxu1 }
 0x146   : > { %3230 = vst.msk [vmem:[%s4565_s4 + $0x54] sm:$0xf] %vm3208_vm3, %v2973_v2  ;;  %v1600_v15 = vadd.f32 %v4826_v24, %v1599_v11  ;;  %v1760_v35 = vadd.f32 %v4826_v24, %v1759_v12 }
 0x147   : > { %3294 = vst.msk [vmem:[%s4565_s4 + $0x154] sm:$0xf] %vm3208_vm3, %v3037_v4  ;;  %vm2333_vm4 = vcmp.gt.f32.partialorder %v1917_v9, 0.0  ;;  %v2589_v16 = vmul.f32 0.2, %v1917_v9  ;;  %vm2397_vm5 = vcmp.gt.f32.partialorder %v2077_v10, 0.0 }
 0x148   : > { %v2653_v17 = vmul.f32 0.2, %v2077_v10  ;;  %vm2206_vm6 = vcmp.gt.f32.partialorder %v1600_v15, 0.0  ;;  %v2462_v18 = vmul.f32 0.2, %v1600_v15  ;;  %vm2270_vm7 = vcmp.gt.f32.partialorder %v1760_v35, 0.0  ;;  %4121 = vmatmul.msk.bf16.gmra.mxu0 %vm1150_vm0, %v4251_v7  ;;  %4153 = vmatmul.msk.bf16.gmra.mxu1 %vm1150_vm0, %v4283_v8 }
 0x149   : > { %v2845_v19 = vsel %vm2333_vm4, %v1917_v9, %v2589_v16  ;;  %v2526_v20 = vmul.f32 0.2, %v1760_v35  ;;  %4185 = vmatmul.msk.bf16.gmra.mxu2 %vm1150_vm0, %v4315_v13  ;;  %4217 = vmatmul.msk.bf16.gmra.mxu3 %vm1150_vm0, %v4347_v14 }
 0x14a   : > { %v3101_v21 = vpack.c.bf16 %v2845_v19, %v2845_v19  ;;  %v2909_v22 = vsel %vm2397_vm5, %v2077_v10, %v2653_v17  ;;  %v2718_v23 = vsel %vm2206_vm6, %v1600_v15, %v2462_v18 }
 0x14b   : > { %v3165_v25 = vpack.c.bf16 %v2909_v22, %v2909_v22  ;;  %v2974_v26 = vpack.c.bf16 %v2718_v23, %v2718_v23  ;;  %v2782_v27 = vsel %vm2270_vm7, %v1760_v35, %v2526_v20 }
 0x14c   : > { %3358 = vst.msk [vmem:[%s4565_s4 + $0x254] sm:$0xf] %vm3208_vm3, %v3101_v21  ;;  %v3038_v28 = vpack.c.bf16 %v2782_v27, %v2782_v27  ;;  %v1919_v29 = vpop.f32.mrf.mxu2  ;;  %v2079_v30 = vpop.f32.mrf.mxu3 }
 0x14d   : > { %3422 = vst.msk [vmem:[%s4565_s4 + $0x354] sm:$0xf] %vm3208_vm3, %v3165_v25  ;;  %v1920_v31 = vadd.f32 %v4826_v24, %v1919_v29  ;;  %v2080_v32 = vadd.f32 %v4826_v24, %v2079_v30  ;;  %v1601_v33 = vpop.f32.mrf.mxu0  ;;  %v1761_v34 = vpop.f32.mrf.mxu1 }
 0x14e   : > { %3231 = vst.msk [vmem:[%s4565_s4 + $0x58] sm:$0xf] %vm3208_vm3, %v2974_v26  ;;  %v1602_v36 = vadd.f32 %v4826_v24, %v1601_v33  ;;  %v1762_v37 = vadd.f32 %v4826_v24, %v1761_v34  ;;  %v4285_v33 = vld [vmem:[%s4479_s26 + $0x1a8] sm:$0xff] }
 0x14f   : > { %3295 = vst.msk [vmem:[%s4565_s4 + $0x158] sm:$0xf] %vm3208_vm3, %v3038_v28  ;;  %vm2334_vm8 = vcmp.gt.f32.partialorder %v1920_v31, 0.0  ;;  %v2590_v38 = vmul.f32 0.2, %v1920_v31  ;;  %vm2398_vm9 = vcmp.gt.f32.partialorder %v2080_v32, 0.0 }
 0x150   : > { %v2654_v39 = vmul.f32 0.2, %v2080_v32  ;;  %vm2207_vm10 = vcmp.gt.f32.partialorder %v1602_v36, 0.0  ;;  %v2463_v40 = vmul.f32 0.2, %v1602_v36  ;;  %vm2271_vm11 = vcmp.gt.f32.partialorder %v1762_v37, 0.0 }
 0x151   : > { %v2846_v41 = vsel %vm2334_vm8, %v1920_v31, %v2590_v38  ;;  %v2527_v42 = vmul.f32 0.2, %v1762_v37 }
 0x152   : > { %v3102_v43 = vpack.c.bf16 %v2846_v41, %v2846_v41  ;;  %v2910_v44 = vsel %vm2398_vm9, %v2080_v32, %v2654_v39  ;;  %v2719_v45 = vsel %vm2207_vm10, %v1602_v36, %v2463_v40  ;;  %v4253_v32 = vld [vmem:[%s4479_s26 + $0xa8] sm:$0xff] }
 0x153   : > { %v3166_v46 = vpack.c.bf16 %v2910_v44, %v2910_v44  ;;  %v2975_v47 = vpack.c.bf16 %v2719_v45, %v2719_v45  ;;  %v2783_v48 = vsel %vm2271_vm11, %v1762_v37, %v2527_v42  ;;  %v4317_v39 = vld [vmem:[%s4479_s26 + $0x2a8] sm:$0xff] }
 0x154   : > { %3359 = vst.msk [vmem:[%s4565_s4 + $0x258] sm:$0xf] %vm3208_vm3, %v3102_v43  ;;  %v3039_v49 = vpack.c.bf16 %v2783_v48, %v2783_v48  ;;  %v1921_v50 = vpop.f32.mrf.mxu2  ;;  %v2081_v51 = vpop.f32.mrf.mxu3  ;;  %v4349_v40 = vld [vmem:[%s4479_s26 + $0x3a8] sm:$0xff] }
 0x155   : > { %3423 = vst.msk [vmem:[%s4565_s4 + $0x358] sm:$0xf] %vm3208_vm3, %v3166_v46  ;;  %v1922_v54 = vadd.f32 %v4826_v24, %v1921_v50  ;;  %v2082_v55 = vadd.f32 %v4826_v24, %v2081_v51  ;;  %v1604_v56 = vpop.f32.mrf.mxu0  ;;  %v1764_v57 = vpop.f32.mrf.mxu1 }
 0x156   : > { %3232 = vst.msk [vmem:[%s4565_s4 + $0x5c] sm:$0xf] %vm3208_vm3, %v2975_v47  ;;  %v1605_v60 = vadd.f32 %v4826_v24, %v1604_v56  ;;  %v1765_v61 = vadd.f32 %v4826_v24, %v1764_v57 }
 0x157   : > { %3296 = vst.msk [vmem:[%s4565_s4 + $0x15c] sm:$0xf] %vm3208_vm3, %v3039_v49  ;;  %vm2335_vm12 = vcmp.gt.f32.partialorder %v1922_v54, 0.0  ;;  %v2591_v62 = vmul.f32 0.2, %v1922_v54  ;;  %vm2399_vm13 = vcmp.gt.f32.partialorder %v2082_v55, 0.0 }
 0x158   : > { %v2655_v63 = vmul.f32 0.2, %v2082_v55  ;;  %vm2208_vm14 = vcmp.gt.f32.partialorder %v1605_v60, 0.0  ;;  %v2464_v0 = vmul.f32 0.2, %v1605_v60  ;;  %vm2272_vm15 = vcmp.gt.f32.partialorder %v1765_v61, 0.0  ;;  %4122 = vmatmul.msk.bf16.gmra.mxu0 %vm1150_vm0, %v4252_v52  ;;  %4154 = vmatmul.msk.bf16.gmra.mxu1 %vm1150_vm0, %v4284_v53 }
 0x159   : > { %v2847_v1 = vsel %vm2335_vm12, %v1922_v54, %v2591_v62  ;;  %v2528_v2 = vmul.f32 0.2, %v1765_v61  ;;  %4186 = vmatmul.msk.bf16.gmra.mxu2 %vm1150_vm0, %v4316_v58  ;;  %4218 = vmatmul.msk.bf16.gmra.mxu3 %vm1150_vm0, %v4348_v59 }
 0x15a   : > { %v3103_v3 = vpack.c.bf16 %v2847_v1, %v2847_v1  ;;  %v2911_v4 = vsel %vm2399_vm13, %v2082_v55, %v2655_v63  ;;  %v2720_v5 = vsel %vm2208_vm14, %v1605_v60, %v2464_v0 }
 0x15b   : > { %v3167_v6 = vpack.c.bf16 %v2911_v4, %v2911_v4  ;;  %v2976_v7 = vpack.c.bf16 %v2720_v5, %v2720_v5  ;;  %v2784_v8 = vsel %vm2272_vm15, %v1765_v61, %v2528_v2 }
 0x15c   : > { %3360 = vst.msk [vmem:[%s4565_s4 + $0x25c] sm:$0xf] %vm3208_vm3, %v3103_v3  ;;  %v3040_v9 = vpack.c.bf16 %v2784_v8, %v2784_v8  ;;  %v1924_v10 = vpop.f32.mrf.mxu2  ;;  %v2084_v11 = vpop.f32.mrf.mxu3 }
 0x15d   : > { %3424 = vst.msk [vmem:[%s4565_s4 + $0x35c] sm:$0xf] %vm3208_vm3, %v3167_v6  ;;  %v1925_v12 = vadd.f32 %v4826_v24, %v1924_v10  ;;  %v2085_v13 = vadd.f32 %v4826_v24, %v2084_v11  ;;  %v1606_v14 = vpop.f32.mrf.mxu0  ;;  %v1766_v15 = vpop.f32.mrf.mxu1 }
 0x15e   : > { %3233 = vst.msk [vmem:[%s4565_s4 + $0x60] sm:$0xf] %vm3208_vm3, %v2976_v7  ;;  %v1607_v35 = vadd.f32 %v4826_v24, %v1606_v14  ;;  %v1767_v16 = vadd.f32 %v4826_v24, %v1766_v15  ;;  %v4286_v14 = vld [vmem:[%s4479_s26 + $0x1b0] sm:$0xff] }
 0x15f   : > { %3297 = vst.msk [vmem:[%s4565_s4 + $0x160] sm:$0xf] %vm3208_vm3, %v3040_v9  ;;  %vm2336_vm1 = vcmp.gt.f32.partialorder %v1925_v12, 0.0  ;;  %v2592_v17 = vmul.f32 0.2, %v1925_v12  ;;  %vm2400_vm2 = vcmp.gt.f32.partialorder %v2085_v13, 0.0 }
 0x160   : > { %v2656_v18 = vmul.f32 0.2, %v2085_v13  ;;  %vm2209_vm4 = vcmp.gt.f32.partialorder %v1607_v35, 0.0  ;;  %v2465_v19 = vmul.f32 0.2, %v1607_v35  ;;  %vm2273_vm5 = vcmp.gt.f32.partialorder %v1767_v16, 0.0 }
 0x161   : > { %v2848_v20 = vsel %vm2336_vm1, %v1925_v12, %v2592_v17  ;;  %v2529_v21 = vmul.f32 0.2, %v1767_v16 }
 0x162   : > { %v3104_v22 = vpack.c.bf16 %v2848_v20, %v2848_v20  ;;  %v2912_v23 = vsel %vm2400_vm2, %v2085_v13, %v2656_v18  ;;  %v2721_v25 = vsel %vm2209_vm4, %v1607_v35, %v2465_v19  ;;  %v4254_v13 = vld [vmem:[%s4479_s26 + $0xb0] sm:$0xff] }
 0x163   : > { %v3168_v26 = vpack.c.bf16 %v2912_v23, %v2912_v23  ;;  %v2977_v27 = vpack.c.bf16 %v2721_v25, %v2721_v25  ;;  %v2785_v28 = vsel %vm2273_vm5, %v1767_v16, %v2529_v21  ;;  %v4318_v18 = vld [vmem:[%s4479_s26 + $0x2b0] sm:$0xff] }
 0x164   : > { %3361 = vst.msk [vmem:[%s4565_s4 + $0x260] sm:$0xf] %vm3208_vm3, %v3104_v22  ;;  %v3041_v29 = vpack.c.bf16 %v2785_v28, %v2785_v28  ;;  %v1926_v30 = vpop.f32.mrf.mxu2  ;;  %v2086_v31 = vpop.f32.mrf.mxu3  ;;  %v4350_v19 = vld [vmem:[%s4479_s26 + $0x3b0] sm:$0xff] }
 0x165   : > { %3425 = vst.msk [vmem:[%s4565_s4 + $0x360] sm:$0xf] %vm3208_vm3, %v3168_v26  ;;  %v1927_v34 = vadd.f32 %v4826_v24, %v1926_v30  ;;  %v2087_v36 = vadd.f32 %v4826_v24, %v2086_v31  ;;  %v1609_v37 = vpop.f32.mrf.mxu0  ;;  %v1769_v38 = vpop.f32.mrf.mxu1 }
 0x166   : > { %3234 = vst.msk [vmem:[%s4565_s4 + $0x64] sm:$0xf] %vm3208_vm3, %v2977_v27  ;;  %v1610_v41 = vadd.f32 %v4826_v24, %v1609_v37  ;;  %v1770_v42 = vadd.f32 %v4826_v24, %v1769_v38 }
 0x167   : > { %3298 = vst.msk [vmem:[%s4565_s4 + $0x164] sm:$0xf] %vm3208_vm3, %v3041_v29  ;;  %vm2337_vm6 = vcmp.gt.f32.partialorder %v1927_v34, 0.0  ;;  %v2593_v43 = vmul.f32 0.2, %v1927_v34  ;;  %vm2401_vm7 = vcmp.gt.f32.partialorder %v2087_v36, 0.0 }
 0x168   : > { %v2657_v44 = vmul.f32 0.2, %v2087_v36  ;;  %vm2210_vm8 = vcmp.gt.f32.partialorder %v1610_v41, 0.0  ;;  %v2466_v45 = vmul.f32 0.2, %v1610_v41  ;;  %vm2274_vm9 = vcmp.gt.f32.partialorder %v1770_v42, 0.0  ;;  %4123 = vmatmul.msk.bf16.gmra.mxu0 %vm1150_vm0, %v4253_v32  ;;  %4155 = vmatmul.msk.bf16.gmra.mxu1 %vm1150_vm0, %v4285_v33 }
 0x169   : > { %v2849_v46 = vsel %vm2337_vm6, %v1927_v34, %v2593_v43  ;;  %v2530_v47 = vmul.f32 0.2, %v1770_v42  ;;  %4187 = vmatmul.msk.bf16.gmra.mxu2 %vm1150_vm0, %v4317_v39  ;;  %4219 = vmatmul.msk.bf16.gmra.mxu3 %vm1150_vm0, %v4349_v40 }
 0x16a   : > { %v3105_v48 = vpack.c.bf16 %v2849_v46, %v2849_v46  ;;  %v2913_v49 = vsel %vm2401_vm7, %v2087_v36, %v2657_v44  ;;  %v2722_v50 = vsel %vm2210_vm8, %v1610_v41, %v2466_v45 }
 0x16b   : > { %v3169_v51 = vpack.c.bf16 %v2913_v49, %v2913_v49  ;;  %v2978_v52 = vpack.c.bf16 %v2722_v50, %v2722_v50  ;;  %v2786_v53 = vsel %vm2274_vm9, %v1770_v42, %v2530_v47 }
 0x16c   : > { %3362 = vst.msk [vmem:[%s4565_s4 + $0x264] sm:$0xf] %vm3208_vm3, %v3105_v48  ;;  %v3042_v54 = vpack.c.bf16 %v2786_v53, %v2786_v53  ;;  %v1929_v55 = vpop.f32.mrf.mxu2  ;;  %v2089_v56 = vpop.f32.mrf.mxu3 }
 0x16d   : > { %3426 = vst.msk [vmem:[%s4565_s4 + $0x364] sm:$0xf] %vm3208_vm3, %v3169_v51  ;;  %v1930_v57 = vadd.f32 %v4826_v24, %v1929_v55  ;;  %v2090_v58 = vadd.f32 %v4826_v24, %v2089_v56  ;;  %v1611_v59 = vpop.f32.mrf.mxu0  ;;  %v1771_v60 = vpop.f32.mrf.mxu1 }
 0x16e   : > { %3235 = vst.msk [vmem:[%s4565_s4 + $0x68] sm:$0xf] %vm3208_vm3, %v2978_v52  ;;  %v1612_v61 = vadd.f32 %v4826_v24, %v1611_v59  ;;  %v1772_v62 = vadd.f32 %v4826_v24, %v1771_v60  ;;  %v4287_v59 = vld [vmem:[%s4479_s26 + $0x1b8] sm:$0xff] }
 0x16f   : > { %3299 = vst.msk [vmem:[%s4565_s4 + $0x168] sm:$0xf] %vm3208_vm3, %v3042_v54  ;;  %vm2338_vm10 = vcmp.gt.f32.partialorder %v1930_v57, 0.0  ;;  %v2594_v63 = vmul.f32 0.2, %v1930_v57  ;;  %vm2402_vm11 = vcmp.gt.f32.partialorder %v2090_v58, 0.0 }
 0x170   : > { %v2658_v0 = vmul.f32 0.2, %v2090_v58  ;;  %vm2211_vm12 = vcmp.gt.f32.partialorder %v1612_v61, 0.0  ;;  %v2467_v1 = vmul.f32 0.2, %v1612_v61  ;;  %vm2275_vm13 = vcmp.gt.f32.partialorder %v1772_v62, 0.0 }
 0x171   : > { %v2850_v2 = vsel %vm2338_vm10, %v1930_v57, %v2594_v63  ;;  %v2531_v3 = vmul.f32 0.2, %v1772_v62 }
 0x172   : > { %v3106_v4 = vpack.c.bf16 %v2850_v2, %v2850_v2  ;;  %v2914_v5 = vsel %vm2402_vm11, %v2090_v58, %v2658_v0  ;;  %v2723_v6 = vsel %vm2211_vm12, %v1612_v61, %v2467_v1  ;;  %v4255_v58 = vld [vmem:[%s4479_s26 + $0xb8] sm:$0xff] }
 0x173   : > { %v3170_v7 = vpack.c.bf16 %v2914_v5, %v2914_v5  ;;  %v2979_v8 = vpack.c.bf16 %v2723_v6, %v2723_v6  ;;  %v2787_v9 = vsel %vm2275_vm13, %v1772_v62, %v2531_v3  ;;  %v4319_v0 = vld [vmem:[%s4479_s26 + $0x2b8] sm:$0xff] }
 0x174   : > { %3363 = vst.msk [vmem:[%s4565_s4 + $0x268] sm:$0xf] %vm3208_vm3, %v3106_v4  ;;  %v3043_v10 = vpack.c.bf16 %v2787_v9, %v2787_v9  ;;  %v1931_v11 = vpop.f32.mrf.mxu2  ;;  %v2091_v12 = vpop.f32.mrf.mxu3  ;;  %v4351_v1 = vld [vmem:[%s4479_s26 + $0x3b8] sm:$0xff] }
 0x175   : > { %3427 = vst.msk [vmem:[%s4565_s4 + $0x368] sm:$0xf] %vm3208_vm3, %v3170_v7  ;;  %v1932_v15 = vadd.f32 %v4826_v24, %v1931_v11  ;;  %v2092_v35 = vadd.f32 %v4826_v24, %v2091_v12  ;;  %v1614_v16 = vpop.f32.mrf.mxu0  ;;  %v1774_v17 = vpop.f32.mrf.mxu1 }
 0x176   : > { %3236 = vst.msk [vmem:[%s4565_s4 + $0x6c] sm:$0xf] %vm3208_vm3, %v2979_v8  ;;  %v1615_v20 = vadd.f32 %v4826_v24, %v1614_v16  ;;  %v1775_v21 = vadd.f32 %v4826_v24, %v1774_v17 }
 0x177   : > { %3300 = vst.msk [vmem:[%s4565_s4 + $0x16c] sm:$0xf] %vm3208_vm3, %v3043_v10  ;;  %vm2339_vm14 = vcmp.gt.f32.partialorder %v1932_v15, 0.0  ;;  %v2595_v22 = vmul.f32 0.2, %v1932_v15  ;;  %vm2403_vm15 = vcmp.gt.f32.partialorder %v2092_v35, 0.0 }
 0x178   : > { %v2659_v23 = vmul.f32 0.2, %v2092_v35  ;;  %vm2212_vm1 = vcmp.gt.f32.partialorder %v1615_v20, 0.0  ;;  %v2468_v25 = vmul.f32 0.2, %v1615_v20  ;;  %vm2276_vm2 = vcmp.gt.f32.partialorder %v1775_v21, 0.0  ;;  %4124 = vmatmul.msk.bf16.gmra.mxu0 %vm1150_vm0, %v4254_v13  ;;  %4156 = vmatmul.msk.bf16.gmra.mxu1 %vm1150_vm0, %v4286_v14 }
 0x179   : > { %v2851_v26 = vsel %vm2339_vm14, %v1932_v15, %v2595_v22  ;;  %v2532_v27 = vmul.f32 0.2, %v1775_v21  ;;  %4188 = vmatmul.msk.bf16.gmra.mxu2 %vm1150_vm0, %v4318_v18  ;;  %4220 = vmatmul.msk.bf16.gmra.mxu3 %vm1150_vm0, %v4350_v19 }
 0x17a   : > { %v3107_v28 = vpack.c.bf16 %v2851_v26, %v2851_v26  ;;  %v2915_v29 = vsel %vm2403_vm15, %v2092_v35, %v2659_v23  ;;  %v2724_v30 = vsel %vm2212_vm1, %v1615_v20, %v2468_v25 }
 0x17b   : > { %v3171_v31 = vpack.c.bf16 %v2915_v29, %v2915_v29  ;;  %v2980_v32 = vpack.c.bf16 %v2724_v30, %v2724_v30  ;;  %v2788_v33 = vsel %vm2276_vm2, %v1775_v21, %v2532_v27 }
 0x17c   : > { %3364 = vst.msk [vmem:[%s4565_s4 + $0x26c] sm:$0xf] %vm3208_vm3, %v3107_v28  ;;  %v3044_v34 = vpack.c.bf16 %v2788_v33, %v2788_v33  ;;  %v1934_v36 = vpop.f32.mrf.mxu2  ;;  %v2094_v37 = vpop.f32.mrf.mxu3 }
 0x17d   : > { %3428 = vst.msk [vmem:[%s4565_s4 + $0x36c] sm:$0xf] %vm3208_vm3, %v3171_v31  ;;  %v1935_v38 = vadd.f32 %v4826_v24, %v1934_v36  ;;  %v2095_v39 = vadd.f32 %v4826_v24, %v2094_v37  ;;  %v1616_v40 = vpop.f32.mrf.mxu0  ;;  %v1776_v41 = vpop.f32.mrf.mxu1 }
 0x17e   : > { %3237 = vst.msk [vmem:[%s4565_s4 + $0x70] sm:$0xf] %vm3208_vm3, %v2980_v32  ;;  %v1617_v42 = vadd.f32 %v4826_v24, %v1616_v40  ;;  %v1777_v43 = vadd.f32 %v4826_v24, %v1776_v41  ;;  %v4288_v40 = vld [vmem:[%s4479_s26 + $0x1c0] sm:$0xff] }
 0x17f   : > { %3301 = vst.msk [vmem:[%s4565_s4 + $0x170] sm:$0xf] %vm3208_vm3, %v3044_v34  ;;  %vm2340_vm4 = vcmp.gt.f32.partialorder %v1935_v38, 0.0  ;;  %v2596_v44 = vmul.f32 0.2, %v1935_v38  ;;  %vm2404_vm5 = vcmp.gt.f32.partialorder %v2095_v39, 0.0 }
 0x180   : > { %v2660_v45 = vmul.f32 0.2, %v2095_v39  ;;  %vm2213_vm6 = vcmp.gt.f32.partialorder %v1617_v42, 0.0  ;;  %v2469_v46 = vmul.f32 0.2, %v1617_v42  ;;  %vm2277_vm7 = vcmp.gt.f32.partialorder %v1777_v43, 0.0 }
 0x181   : > { %v2852_v47 = vsel %vm2340_vm4, %v1935_v38, %v2596_v44  ;;  %v2533_v48 = vmul.f32 0.2, %v1777_v43 }
 0x182   : > { %v3108_v49 = vpack.c.bf16 %v2852_v47, %v2852_v47  ;;  %v2916_v50 = vsel %vm2404_vm5, %v2095_v39, %v2660_v45  ;;  %v2725_v51 = vsel %vm2213_vm6, %v1617_v42, %v2469_v46  ;;  %v4256_v39 = vld [vmem:[%s4479_s26 + $0xc0] sm:$0xff] }
 0x183   : > { %v3172_v52 = vpack.c.bf16 %v2916_v50, %v2916_v50  ;;  %v2981_v53 = vpack.c.bf16 %v2725_v51, %v2725_v51  ;;  %v2789_v54 = vsel %vm2277_vm7, %v1777_v43, %v2533_v48  ;;  %v4320_v45 = vld [vmem:[%s4479_s26 + $0x2c0] sm:$0xff] }
 0x184   : > { %3365 = vst.msk [vmem:[%s4565_s4 + $0x270] sm:$0xf] %vm3208_vm3, %v3108_v49  ;;  %v3045_v55 = vpack.c.bf16 %v2789_v54, %v2789_v54  ;;  %v1936_v56 = vpop.f32.mrf.mxu2  ;;  %v2096_v57 = vpop.f32.mrf.mxu3  ;;  %v4352_v46 = vld [vmem:[%s4479_s26 + $0x3c0] sm:$0xff] }
 0x185   : > { %3429 = vst.msk [vmem:[%s4565_s4 + $0x370] sm:$0xf] %vm3208_vm3, %v3172_v52  ;;  %v1937_v60 = vadd.f32 %v4826_v24, %v1936_v56  ;;  %v2097_v61 = vadd.f32 %v4826_v24, %v2096_v57  ;;  %v1619_v62 = vpop.f32.mrf.mxu0  ;;  %v1779_v63 = vpop.f32.mrf.mxu1 }
 0x186   : > { %3238 = vst.msk [vmem:[%s4565_s4 + $0x74] sm:$0xf] %vm3208_vm3, %v2981_v53  ;;  %v1620_v2 = vadd.f32 %v4826_v24, %v1619_v62  ;;  %v1780_v3 = vadd.f32 %v4826_v24, %v1779_v63  ;;  %v5087_v62 = vld [vmem:[%s5543_s2] ss:$0 sm:$0xff] }
 0x187   : > { %3302 = vst.msk [vmem:[%s4565_s4 + $0x174] sm:$0xf] %vm3208_vm3, %v3045_v55  ;;  %vm2341_vm8 = vcmp.gt.f32.partialorder %v1937_v60, 0.0  ;;  %v2597_v4 = vmul.f32 0.2, %v1937_v60  ;;  %vm2405_vm9 = vcmp.gt.f32.partialorder %v2097_v61, 0.0 }
 0x188   : > { %v2661_v5 = vmul.f32 0.2, %v2097_v61  ;;  %vm2214_vm10 = vcmp.gt.f32.partialorder %v1620_v2, 0.0  ;;  %v2470_v6 = vmul.f32 0.2, %v1620_v2  ;;  %vm2278_vm11 = vcmp.gt.f32.partialorder %v1780_v3, 0.0  ;;  %4125 = vmatmul.msk.bf16.gmra.mxu0 %vm1150_vm0, %v4255_v58  ;;  %4157 = vmatmul.msk.bf16.gmra.mxu1 %vm1150_vm0, %v4287_v59 }
 0x189   : > { %v2853_v7 = vsel %vm2341_vm8, %v1937_v60, %v2597_v4  ;;  %v2534_v8 = vmul.f32 0.2, %v1780_v3  ;;  %4189 = vmatmul.msk.bf16.gmra.mxu2 %vm1150_vm0, %v4319_v0  ;;  %4221 = vmatmul.msk.bf16.gmra.mxu3 %vm1150_vm0, %v4351_v1 }
 0x18a   : > { %v3109_v9 = vpack.c.bf16 %v2853_v7, %v2853_v7  ;;  %v2917_v10 = vsel %vm2405_vm9, %v2097_v61, %v2661_v5  ;;  %v2726_v11 = vsel %vm2214_vm10, %v1620_v2, %v2470_v6 }
 0x18b   : > { %v3173_v12 = vpack.c.bf16 %v2917_v10, %v2917_v10  ;;  %v2982_v13 = vpack.c.bf16 %v2726_v11, %v2726_v11  ;;  %v2790_v14 = vsel %vm2278_vm11, %v1780_v3, %v2534_v8 }
 0x18c   : > { %3366 = vst.msk [vmem:[%s4565_s4 + $0x274] sm:$0xf] %vm3208_vm3, %v3109_v9  ;;  %v3046_v15 = vpack.c.bf16 %v2790_v14, %v2790_v14  ;;  %v1939_v35 = vpop.f32.mrf.mxu2  ;;  %v2099_v16 = vpop.f32.mrf.mxu3 }
 0x18d   : > { %3430 = vst.msk [vmem:[%s4565_s4 + $0x374] sm:$0xf] %vm3208_vm3, %v3173_v12  ;;  %v1940_v17 = vadd.f32 %v4826_v24, %v1939_v35  ;;  %v2100_v18 = vadd.f32 %v4826_v24, %v2099_v16  ;;  %v1621_v19 = vpop.f32.mrf.mxu0  ;;  %v1781_v20 = vpop.f32.mrf.mxu1 }
 0x18e   : > { %3239 = vst.msk [vmem:[%s4565_s4 + $0x78] sm:$0xf] %vm3208_vm3, %v2982_v13  ;;  %v1622_v21 = vadd.f32 %v4826_v24, %v1621_v19  ;;  %v1782_v22 = vadd.f32 %v4826_v24, %v1781_v20  ;;  %v4289_v19 = vld [vmem:[%s4479_s26 + $0x1c8] sm:$0xff] }
 0x18f   : > { %3303 = vst.msk [vmem:[%s4565_s4 + $0x178] sm:$0xf] %vm3208_vm3, %v3046_v15  ;;  %vm2342_vm12 = vcmp.gt.f32.partialorder %v1940_v17, 0.0  ;;  %v2598_v23 = vmul.f32 0.2, %v1940_v17  ;;  %vm2406_vm13 = vcmp.gt.f32.partialorder %v2100_v18, 0.0 }
 0x190   : > { %v2662_v25 = vmul.f32 0.2, %v2100_v18  ;;  %vm2215_vm14 = vcmp.gt.f32.partialorder %v1622_v21, 0.0  ;;  %v2471_v26 = vmul.f32 0.2, %v1622_v21  ;;  %vm2279_vm15 = vcmp.gt.f32.partialorder %v1782_v22, 0.0 }
 0x191   : > { %v2854_v27 = vsel %vm2342_vm12, %v1940_v17, %v2598_v23  ;;  %v2535_v28 = vmul.f32 0.2, %v1782_v22 }
 0x192   : > { %v3110_v29 = vpack.c.bf16 %v2854_v27, %v2854_v27  ;;  %v2918_v30 = vsel %vm2406_vm13, %v2100_v18, %v2662_v25  ;;  %v2727_v31 = vsel %vm2215_vm14, %v1622_v21, %v2471_v26  ;;  %v4257_v18 = vld [vmem:[%s4479_s26 + $0xc8] sm:$0xff] }
 0x193   : > { %v3174_v32 = vpack.c.bf16 %v2918_v30, %v2918_v30  ;;  %v2983_v33 = vpack.c.bf16 %v2727_v31, %v2727_v31  ;;  %v2791_v34 = vsel %vm2279_vm15, %v1782_v22, %v2535_v28  ;;  %v4321_v25 = vld [vmem:[%s4479_s26 + $0x2c8] sm:$0xff] }
 0x194   : > { %3367 = vst.msk [vmem:[%s4565_s4 + $0x278] sm:$0xf] %vm3208_vm3, %v3110_v29  ;;  %v3047_v36 = vpack.c.bf16 %v2791_v34, %v2791_v34  ;;  %v1941_v37 = vpop.f32.mrf.mxu2  ;;  %v2101_v38 = vpop.f32.mrf.mxu3  ;;  %v4353_v26 = vld [vmem:[%s4479_s26 + $0x3c8] sm:$0xff] }
 0x195   : > { %3431 = vst.msk [vmem:[%s4565_s4 + $0x378] sm:$0xf] %vm3208_vm3, %v3174_v32  ;;  %v1942_v41 = vadd.f32 %v4826_v24, %v1941_v37  ;;  %v2102_v42 = vadd.f32 %v4826_v24, %v2101_v38  ;;  %v1624_v43 = vpop.f32.mrf.mxu0  ;;  %v1784_v44 = vpop.f32.mrf.mxu1 }
 0x196   : > { %3240 = vst.msk [vmem:[%s4565_s4 + $0x7c] sm:$0xf] %vm3208_vm3, %v2983_v33  ;;  %v1625_v47 = vadd.f32 %v4826_v24, %v1624_v43  ;;  %v1785_v48 = vadd.f32 %v4826_v24, %v1784_v44 }
 0x197   : > { %3304 = vst.msk [vmem:[%s4565_s4 + $0x17c] sm:$0xf] %vm3208_vm3, %v3047_v36  ;;  %vm2343_vm1 = vcmp.gt.f32.partialorder %v1942_v41, 0.0  ;;  %v2599_v49 = vmul.f32 0.2, %v1942_v41  ;;  %vm2407_vm2 = vcmp.gt.f32.partialorder %v2102_v42, 0.0 }
 0x198   : > { %v2663_v50 = vmul.f32 0.2, %v2102_v42  ;;  %vm2216_vm4 = vcmp.gt.f32.partialorder %v1625_v47, 0.0  ;;  %v2472_v51 = vmul.f32 0.2, %v1625_v47  ;;  %vm2280_vm5 = vcmp.gt.f32.partialorder %v1785_v48, 0.0  ;;  %4126 = vmatmul.msk.bf16.gmra.mxu0 %vm1150_vm0, %v4256_v39  ;;  %4158 = vmatmul.msk.bf16.gmra.mxu1 %vm1150_vm0, %v4288_v40 }
 0x199   : > { %v2855_v52 = vsel %vm2343_vm1, %v1942_v41, %v2599_v49  ;;  %v2536_v53 = vmul.f32 0.2, %v1785_v48  ;;  %4190 = vmatmul.msk.bf16.gmra.mxu2 %vm1150_vm0, %v4320_v45  ;;  %4222 = vmatmul.msk.bf16.gmra.mxu3 %vm1150_vm0, %v4352_v46 }
 0x19a   : > { %v3111_v24 = vpack.c.bf16 %v2855_v52, %v2855_v52  ;;  %v2919_v54 = vsel %vm2407_vm2, %v2102_v42, %v2663_v50  ;;  %v2728_v55 = vsel %vm2216_vm4, %v1625_v47, %v2472_v51 }
 0x19b   : > { %v3175_v56 = vpack.c.bf16 %v2919_v54, %v2919_v54  ;;  %v2984_v57 = vpack.c.bf16 %v2728_v55, %v2728_v55  ;;  %v2792_v58 = vsel %vm2280_vm5, %v1785_v48, %v2536_v53 }
 0x19c   : > { %3368 = vst.msk [vmem:[%s4565_s4 + $0x27c] sm:$0xf] %vm3208_vm3, %v3111_v24  ;;  %v3048_v59 = vpack.c.bf16 %v2792_v58, %v2792_v58  ;;  %v1944_v60 = vpop.f32.mrf.mxu2  ;;  %v2104_v61 = vpop.f32.mrf.mxu3 }
 0x19d   : > { %3432 = vst.msk [vmem:[%s4565_s4 + $0x37c] sm:$0xf] %vm3208_vm3, %v3175_v56  ;;  %v1945_v63 = vadd.f32 %v5087_v62, %v1944_v60  ;;  %v2105_v0 = vadd.f32 %v5087_v62, %v2104_v61  ;;  %v1626_v1 = vpop.f32.mrf.mxu0  ;;  %v1786_v2 = vpop.f32.mrf.mxu1 }
 0x19e   : > { %3241 = vst.msk [vmem:[%s4565_s4 + $0x80] sm:$0xf] %vm3208_vm3, %v2984_v57  ;;  %v1627_v3 = vadd.f32 %v5087_v62, %v1626_v1  ;;  %v1787_v4 = vadd.f32 %v5087_v62, %v1786_v2  ;;  %v4290_v1 = vld [vmem:[%s4479_s26 + $0x1d0] sm:$0xff] }
 0x19f   : > { %3305 = vst.msk [vmem:[%s4565_s4 + $0x180] sm:$0xf] %vm3208_vm3, %v3048_v59  ;;  %vm2344_vm6 = vcmp.gt.f32.partialorder %v1945_v63, 0.0  ;;  %v2600_v5 = vmul.f32 0.2, %v1945_v63  ;;  %vm2408_vm7 = vcmp.gt.f32.partialorder %v2105_v0, 0.0 }
 0x1a0   : > { %v2664_v6 = vmul.f32 0.2, %v2105_v0  ;;  %vm2217_vm8 = vcmp.gt.f32.partialorder %v1627_v3, 0.0  ;;  %v2473_v7 = vmul.f32 0.2, %v1627_v3  ;;  %vm2281_vm9 = vcmp.gt.f32.partialorder %v1787_v4, 0.0 }
 0x1a1   : > { %v2856_v8 = vsel %vm2344_vm6, %v1945_v63, %v2600_v5  ;;  %v2537_v9 = vmul.f32 0.2, %v1787_v4 }
 0x1a2   : > { %v3112_v10 = vpack.c.bf16 %v2856_v8, %v2856_v8  ;;  %v2920_v11 = vsel %vm2408_vm7, %v2105_v0, %v2664_v6  ;;  %v2729_v12 = vsel %vm2217_vm8, %v1627_v3, %v2473_v7  ;;  %v4258_v0 = vld [vmem:[%s4479_s26 + $0xd0] sm:$0xff] }
 0x1a3   : > { %v3176_v13 = vpack.c.bf16 %v2920_v11, %v2920_v11  ;;  %v2985_v14 = vpack.c.bf16 %v2729_v12, %v2729_v12  ;;  %v2793_v15 = vsel %vm2281_vm9, %v1787_v4, %v2537_v9  ;;  %v4322_v6 = vld [vmem:[%s4479_s26 + $0x2d0] sm:$0xff] }
 0x1a4   : > { %3369 = vst.msk [vmem:[%s4565_s4 + $0x280] sm:$0xf] %vm3208_vm3, %v3112_v10  ;;  %v3049_v35 = vpack.c.bf16 %v2793_v15, %v2793_v15  ;;  %v1946_v16 = vpop.f32.mrf.mxu2  ;;  %v2106_v17 = vpop.f32.mrf.mxu3  ;;  %v4354_v7 = vld [vmem:[%s4479_s26 + $0x3d0] sm:$0xff] }
 0x1a5   : > { %3433 = vst.msk [vmem:[%s4565_s4 + $0x380] sm:$0xf] %vm3208_vm3, %v3176_v13  ;;  %v1947_v20 = vadd.f32 %v5087_v62, %v1946_v16  ;;  %v2107_v21 = vadd.f32 %v5087_v62, %v2106_v17  ;;  %v1629_v22 = vpop.f32.mrf.mxu0  ;;  %v1789_v23 = vpop.f32.mrf.mxu1 }
 0x1a6   : > { %3242 = vst.msk [vmem:[%s4565_s4 + $0x84] sm:$0xf] %vm3208_vm3, %v2985_v14  ;;  %v1630_v27 = vadd.f32 %v5087_v62, %v1629_v22  ;;  %v1790_v28 = vadd.f32 %v5087_v62, %v1789_v23 }
 0x1a7   : > { %3306 = vst.msk [vmem:[%s4565_s4 + $0x184] sm:$0xf] %vm3208_vm3, %v3049_v35  ;;  %vm2345_vm10 = vcmp.gt.f32.partialorder %v1947_v20, 0.0  ;;  %v2601_v29 = vmul.f32 0.2, %v1947_v20  ;;  %vm2409_vm11 = vcmp.gt.f32.partialorder %v2107_v21, 0.0 }
 0x1a8   : > { %v2665_v30 = vmul.f32 0.2, %v2107_v21  ;;  %vm2218_vm12 = vcmp.gt.f32.partialorder %v1630_v27, 0.0  ;;  %v2474_v31 = vmul.f32 0.2, %v1630_v27  ;;  %vm2282_vm13 = vcmp.gt.f32.partialorder %v1790_v28, 0.0  ;;  %4127 = vmatmul.msk.bf16.gmra.mxu0 %vm1150_vm0, %v4257_v18  ;;  %4159 = vmatmul.msk.bf16.gmra.mxu1 %vm1150_vm0, %v4289_v19 }
 0x1a9   : > { %v2857_v32 = vsel %vm2345_vm10, %v1947_v20, %v2601_v29  ;;  %v2538_v33 = vmul.f32 0.2, %v1790_v28  ;;  %4191 = vmatmul.msk.bf16.gmra.mxu2 %vm1150_vm0, %v4321_v25  ;;  %4223 = vmatmul.msk.bf16.gmra.mxu3 %vm1150_vm0, %v4353_v26 }
 0x1aa   : > { %v3113_v34 = vpack.c.bf16 %v2857_v32, %v2857_v32  ;;  %v2921_v36 = vsel %vm2409_vm11, %v2107_v21, %v2665_v30  ;;  %v2730_v37 = vsel %vm2218_vm12, %v1630_v27, %v2474_v31 }
 0x1ab   : > { %v3177_v38 = vpack.c.bf16 %v2921_v36, %v2921_v36  ;;  %v2986_v39 = vpack.c.bf16 %v2730_v37, %v2730_v37  ;;  %v2794_v40 = vsel %vm2282_vm13, %v1790_v28, %v2538_v33 }
 0x1ac   : > { %3370 = vst.msk [vmem:[%s4565_s4 + $0x284] sm:$0xf] %vm3208_vm3, %v3113_v34  ;;  %v3050_v41 = vpack.c.bf16 %v2794_v40, %v2794_v40  ;;  %v1949_v42 = vpop.f32.mrf.mxu2  ;;  %v2109_v43 = vpop.f32.mrf.mxu3 }
 0x1ad   : > { %3434 = vst.msk [vmem:[%s4565_s4 + $0x384] sm:$0xf] %vm3208_vm3, %v3177_v38  ;;  %v1950_v44 = vadd.f32 %v5087_v62, %v1949_v42  ;;  %v2110_v45 = vadd.f32 %v5087_v62, %v2109_v43  ;;  %v1631_v46 = vpop.f32.mrf.mxu0  ;;  %v1791_v47 = vpop.f32.mrf.mxu1 }
 0x1ae   : > { %3243 = vst.msk [vmem:[%s4565_s4 + $0x88] sm:$0xf] %vm3208_vm3, %v2986_v39  ;;  %v1632_v48 = vadd.f32 %v5087_v62, %v1631_v46  ;;  %v1792_v49 = vadd.f32 %v5087_v62, %v1791_v47  ;;  %v4291_v46 = vld [vmem:[%s4479_s26 + $0x1d8] sm:$0xff] }
 0x1af   : > { %3307 = vst.msk [vmem:[%s4565_s4 + $0x188] sm:$0xf] %vm3208_vm3, %v3050_v41  ;;  %vm2346_vm14 = vcmp.gt.f32.partialorder %v1950_v44, 0.0  ;;  %v2602_v50 = vmul.f32 0.2, %v1950_v44  ;;  %vm2410_vm15 = vcmp.gt.f32.partialorder %v2110_v45, 0.0 }
 0x1b0   : > { %v2666_v51 = vmul.f32 0.2, %v2110_v45  ;;  %vm2219_vm1 = vcmp.gt.f32.partialorder %v1632_v48, 0.0  ;;  %v2475_v52 = vmul.f32 0.2, %v1632_v48  ;;  %vm2283_vm2 = vcmp.gt.f32.partialorder %v1792_v49, 0.0 }
 0x1b1   : > { %v2858_v53 = vsel %vm2346_vm14, %v1950_v44, %v2602_v50  ;;  %v2539_v24 = vmul.f32 0.2, %v1792_v49 }
 0x1b2   : > { %v3114_v54 = vpack.c.bf16 %v2858_v53, %v2858_v53  ;;  %v2922_v55 = vsel %vm2410_vm15, %v2110_v45, %v2666_v51  ;;  %v2731_v56 = vsel %vm2219_vm1, %v1632_v48, %v2475_v52  ;;  %v4259_v45 = vld [vmem:[%s4479_s26 + $0xd8] sm:$0xff] }
 0x1b3   : > { %v3178_v57 = vpack.c.bf16 %v2922_v55, %v2922_v55  ;;  %v2987_v58 = vpack.c.bf16 %v2731_v56, %v2731_v56  ;;  %v2795_v59 = vsel %vm2283_vm2, %v1792_v49, %v2539_v24  ;;  %v4323_v51 = vld [vmem:[%s4479_s26 + $0x2d8] sm:$0xff] }
 0x1b4   : > { %3371 = vst.msk [vmem:[%s4565_s4 + $0x288] sm:$0xf] %vm3208_vm3, %v3114_v54  ;;  %v3051_v60 = vpack.c.bf16 %v2795_v59, %v2795_v59  ;;  %v1951_v61 = vpop.f32.mrf.mxu2  ;;  %v2111_v63 = vpop.f32.mrf.mxu3  ;;  %v4355_v52 = vld [vmem:[%s4479_s26 + $0x3d8] sm:$0xff] }
 0x1b5   : > { %3435 = vst.msk [vmem:[%s4565_s4 + $0x388] sm:$0xf] %vm3208_vm3, %v3178_v57  ;;  %v1952_v2 = vadd.f32 %v5087_v62, %v1951_v61  ;;  %v2112_v3 = vadd.f32 %v5087_v62, %v2111_v63  ;;  %v1634_v4 = vpop.f32.mrf.mxu0  ;;  %v1794_v5 = vpop.f32.mrf.mxu1 }
 0x1b6   : > { %3244 = vst.msk [vmem:[%s4565_s4 + $0x8c] sm:$0xf] %vm3208_vm3, %v2987_v58  ;;  %v1635_v8 = vadd.f32 %v5087_v62, %v1634_v4  ;;  %v1795_v9 = vadd.f32 %v5087_v62, %v1794_v5 }
 0x1b7   : > { %3308 = vst.msk [vmem:[%s4565_s4 + $0x18c] sm:$0xf] %vm3208_vm3, %v3051_v60  ;;  %vm2347_vm4 = vcmp.gt.f32.partialorder %v1952_v2, 0.0  ;;  %v2603_v10 = vmul.f32 0.2, %v1952_v2  ;;  %vm2411_vm5 = vcmp.gt.f32.partialorder %v2112_v3, 0.0 }
 0x1b8   : > { %v2667_v11 = vmul.f32 0.2, %v2112_v3  ;;  %vm2220_vm6 = vcmp.gt.f32.partialorder %v1635_v8, 0.0  ;;  %v2476_v12 = vmul.f32 0.2, %v1635_v8  ;;  %vm2284_vm7 = vcmp.gt.f32.partialorder %v1795_v9, 0.0  ;;  %4128 = vmatmul.msk.bf16.gmra.mxu0 %vm1150_vm0, %v4258_v0  ;;  %4160 = vmatmul.msk.bf16.gmra.mxu1 %vm1150_vm0, %v4290_v1 }
 0x1b9   : > { %v2859_v13 = vsel %vm2347_vm4, %v1952_v2, %v2603_v10  ;;  %v2540_v14 = vmul.f32 0.2, %v1795_v9  ;;  %4192 = vmatmul.msk.bf16.gmra.mxu2 %vm1150_vm0, %v4322_v6  ;;  %4224 = vmatmul.msk.bf16.gmra.mxu3 %vm1150_vm0, %v4354_v7 }
 0x1ba   : > { %v3115_v15 = vpack.c.bf16 %v2859_v13, %v2859_v13  ;;  %v2923_v35 = vsel %vm2411_vm5, %v2112_v3, %v2667_v11  ;;  %v2732_v16 = vsel %vm2220_vm6, %v1635_v8, %v2476_v12 }
 0x1bb   : > { %v3179_v17 = vpack.c.bf16 %v2923_v35, %v2923_v35  ;;  %v2988_v18 = vpack.c.bf16 %v2732_v16, %v2732_v16  ;;  %v2796_v19 = vsel %vm2284_vm7, %v1795_v9, %v2540_v14 }
 0x1bc   : > { %3372 = vst.msk [vmem:[%s4565_s4 + $0x28c] sm:$0xf] %vm3208_vm3, %v3115_v15  ;;  %v3052_v20 = vpack.c.bf16 %v2796_v19, %v2796_v19  ;;  %v1954_v21 = vpop.f32.mrf.mxu2  ;;  %v2114_v22 = vpop.f32.mrf.mxu3 }
 0x1bd   : > { %3436 = vst.msk [vmem:[%s4565_s4 + $0x38c] sm:$0xf] %vm3208_vm3, %v3179_v17  ;;  %v1955_v23 = vadd.f32 %v5087_v62, %v1954_v21  ;;  %v2115_v25 = vadd.f32 %v5087_v62, %v2114_v22  ;;  %v1636_v26 = vpop.f32.mrf.mxu0  ;;  %v1796_v27 = vpop.f32.mrf.mxu1 }
 0x1be   : > { %3245 = vst.msk [vmem:[%s4565_s4 + $0x90] sm:$0xf] %vm3208_vm3, %v2988_v18  ;;  %v1637_v28 = vadd.f32 %v5087_v62, %v1636_v26  ;;  %v1797_v29 = vadd.f32 %v5087_v62, %v1796_v27  ;;  %v4292_v26 = vld [vmem:[%s4479_s26 + $0x1e0] sm:$0xff] }
 0x1bf   : > { %3309 = vst.msk [vmem:[%s4565_s4 + $0x190] sm:$0xf] %vm3208_vm3, %v3052_v20  ;;  %vm2348_vm8 = vcmp.gt.f32.partialorder %v1955_v23, 0.0  ;;  %v2604_v30 = vmul.f32 0.2, %v1955_v23  ;;  %vm2412_vm9 = vcmp.gt.f32.partialorder %v2115_v25, 0.0 }
 0x1c0   : > { %v2668_v31 = vmul.f32 0.2, %v2115_v25  ;;  %vm2221_vm10 = vcmp.gt.f32.partialorder %v1637_v28, 0.0  ;;  %v2477_v32 = vmul.f32 0.2, %v1637_v28  ;;  %vm2285_vm11 = vcmp.gt.f32.partialorder %v1797_v29, 0.0 }
 0x1c1   : > { %v2860_v33 = vsel %vm2348_vm8, %v1955_v23, %v2604_v30  ;;  %v2541_v34 = vmul.f32 0.2, %v1797_v29 }
 0x1c2   : > { %v3116_v36 = vpack.c.bf16 %v2860_v33, %v2860_v33  ;;  %v2924_v37 = vsel %vm2412_vm9, %v2115_v25, %v2668_v31  ;;  %v2733_v38 = vsel %vm2221_vm10, %v1637_v28, %v2477_v32  ;;  %v4260_v25 = vld [vmem:[%s4479_s26 + $0xe0] sm:$0xff] }
 0x1c3   : > { %v3180_v39 = vpack.c.bf16 %v2924_v37, %v2924_v37  ;;  %v2989_v40 = vpack.c.bf16 %v2733_v38, %v2733_v38  ;;  %v2797_v41 = vsel %vm2285_vm11, %v1797_v29, %v2541_v34  ;;  %v4324_v31 = vld [vmem:[%s4479_s26 + $0x2e0] sm:$0xff] }
 0x1c4   : > { %3373 = vst.msk [vmem:[%s4565_s4 + $0x290] sm:$0xf] %vm3208_vm3, %v3116_v36  ;;  %v3053_v42 = vpack.c.bf16 %v2797_v41, %v2797_v41  ;;  %v1956_v43 = vpop.f32.mrf.mxu2  ;;  %v2116_v44 = vpop.f32.mrf.mxu3  ;;  %v4356_v32 = vld [vmem:[%s4479_s26 + $0x3e0] sm:$0xff] }
 0x1c5   : > { %3437 = vst.msk [vmem:[%s4565_s4 + $0x390] sm:$0xf] %vm3208_vm3, %v3180_v39  ;;  %v1957_v47 = vadd.f32 %v5087_v62, %v1956_v43  ;;  %v2117_v48 = vadd.f32 %v5087_v62, %v2116_v44  ;;  %v1639_v49 = vpop.f32.mrf.mxu0  ;;  %v1799_v50 = vpop.f32.mrf.mxu1 }
 0x1c6   : > { %3246 = vst.msk [vmem:[%s4565_s4 + $0x94] sm:$0xf] %vm3208_vm3, %v2989_v40  ;;  %v1640_v53 = vadd.f32 %v5087_v62, %v1639_v49  ;;  %v1800_v24 = vadd.f32 %v5087_v62, %v1799_v50 }
 0x1c7   : > { %3310 = vst.msk [vmem:[%s4565_s4 + $0x194] sm:$0xf] %vm3208_vm3, %v3053_v42  ;;  %vm2349_vm12 = vcmp.gt.f32.partialorder %v1957_v47, 0.0  ;;  %v2605_v54 = vmul.f32 0.2, %v1957_v47  ;;  %vm2413_vm13 = vcmp.gt.f32.partialorder %v2117_v48, 0.0 }
 0x1c8   : > { %v2669_v55 = vmul.f32 0.2, %v2117_v48  ;;  %vm2222_vm14 = vcmp.gt.f32.partialorder %v1640_v53, 0.0  ;;  %v2478_v56 = vmul.f32 0.2, %v1640_v53  ;;  %vm2286_vm15 = vcmp.gt.f32.partialorder %v1800_v24, 0.0  ;;  %4129 = vmatmul.msk.bf16.gmra.mxu0 %vm1150_vm0, %v4259_v45  ;;  %4161 = vmatmul.msk.bf16.gmra.mxu1 %vm1150_vm0, %v4291_v46 }
 0x1c9   : > { %v2861_v57 = vsel %vm2349_vm12, %v1957_v47, %v2605_v54  ;;  %v2542_v58 = vmul.f32 0.2, %v1800_v24  ;;  %4193 = vmatmul.msk.bf16.gmra.mxu2 %vm1150_vm0, %v4323_v51  ;;  %4225 = vmatmul.msk.bf16.gmra.mxu3 %vm1150_vm0, %v4355_v52 }
 0x1ca   : > { %v3117_v59 = vpack.c.bf16 %v2861_v57, %v2861_v57  ;;  %v2925_v60 = vsel %vm2413_vm13, %v2117_v48, %v2669_v55  ;;  %v2734_v61 = vsel %vm2222_vm14, %v1640_v53, %v2478_v56 }
 0x1cb   : > { %v3181_v63 = vpack.c.bf16 %v2925_v60, %v2925_v60  ;;  %v2990_v0 = vpack.c.bf16 %v2734_v61, %v2734_v61  ;;  %v2798_v1 = vsel %vm2286_vm15, %v1800_v24, %v2542_v58 }
 0x1cc   : > { %3374 = vst.msk [vmem:[%s4565_s4 + $0x294] sm:$0xf] %vm3208_vm3, %v3117_v59  ;;  %v3054_v2 = vpack.c.bf16 %v2798_v1, %v2798_v1  ;;  %v1959_v3 = vpop.f32.mrf.mxu2  ;;  %v2119_v4 = vpop.f32.mrf.mxu3 }
 0x1cd   : > { %3438 = vst.msk [vmem:[%s4565_s4 + $0x394] sm:$0xf] %vm3208_vm3, %v3181_v63  ;;  %v1960_v5 = vadd.f32 %v5087_v62, %v1959_v3  ;;  %v2120_v6 = vadd.f32 %v5087_v62, %v2119_v4  ;;  %v1641_v7 = vpop.f32.mrf.mxu0  ;;  %v1801_v8 = vpop.f32.mrf.mxu1 }
 0x1ce   : > { %3247 = vst.msk [vmem:[%s4565_s4 + $0x98] sm:$0xf] %vm3208_vm3, %v2990_v0  ;;  %v1642_v9 = vadd.f32 %v5087_v62, %v1641_v7  ;;  %v1802_v10 = vadd.f32 %v5087_v62, %v1801_v8  ;;  %v4293_v7 = vld [vmem:[%s4479_s26 + $0x1e8] sm:$0xff] }
 0x1cf   : > { %3311 = vst.msk [vmem:[%s4565_s4 + $0x198] sm:$0xf] %vm3208_vm3, %v3054_v2  ;;  %vm2350_vm1 = vcmp.gt.f32.partialorder %v1960_v5, 0.0  ;;  %v2606_v11 = vmul.f32 0.2, %v1960_v5  ;;  %vm2414_vm2 = vcmp.gt.f32.partialorder %v2120_v6, 0.0 }
 0x1d0   : > { %v2670_v12 = vmul.f32 0.2, %v2120_v6  ;;  %vm2223_vm4 = vcmp.gt.f32.partialorder %v1642_v9, 0.0  ;;  %v2479_v13 = vmul.f32 0.2, %v1642_v9  ;;  %vm2287_vm5 = vcmp.gt.f32.partialorder %v1802_v10, 0.0 }
 0x1d1   : > { %v2862_v14 = vsel %vm2350_vm1, %v1960_v5, %v2606_v11  ;;  %v2543_v15 = vmul.f32 0.2, %v1802_v10 }
 0x1d2   : > { %v3118_v35 = vpack.c.bf16 %v2862_v14, %v2862_v14  ;;  %v2926_v16 = vsel %vm2414_vm2, %v2120_v6, %v2670_v12  ;;  %v2735_v17 = vsel %vm2223_vm4, %v1642_v9, %v2479_v13  ;;  %v4261_v6 = vld [vmem:[%s4479_s26 + $0xe8] sm:$0xff] }
 0x1d3   : > { %v3182_v18 = vpack.c.bf16 %v2926_v16, %v2926_v16  ;;  %v2991_v19 = vpack.c.bf16 %v2735_v17, %v2735_v17  ;;  %v2799_v20 = vsel %vm2287_vm5, %v1802_v10, %v2543_v15  ;;  %v4325_v12 = vld [vmem:[%s4479_s26 + $0x2e8] sm:$0xff] }
 0x1d4   : > { %3375 = vst.msk [vmem:[%s4565_s4 + $0x298] sm:$0xf] %vm3208_vm3, %v3118_v35  ;;  %v3055_v21 = vpack.c.bf16 %v2799_v20, %v2799_v20  ;;  %v1961_v22 = vpop.f32.mrf.mxu2  ;;  %v2121_v23 = vpop.f32.mrf.mxu3  ;;  %v4357_v13 = vld [vmem:[%s4479_s26 + $0x3e8] sm:$0xff] }
 0x1d5   : > { %3439 = vst.msk [vmem:[%s4565_s4 + $0x398] sm:$0xf] %vm3208_vm3, %v3182_v18  ;;  %v1962_v27 = vadd.f32 %v5087_v62, %v1961_v22  ;;  %v2122_v28 = vadd.f32 %v5087_v62, %v2121_v23  ;;  %v1644_v29 = vpop.f32.mrf.mxu0  ;;  %v1804_v30 = vpop.f32.mrf.mxu1 }
 0x1d6   : > { %3248 = vst.msk [vmem:[%s4565_s4 + $0x9c] sm:$0xf] %vm3208_vm3, %v2991_v19  ;;  %v1645_v33 = vadd.f32 %v5087_v62, %v1644_v29  ;;  %v1805_v34 = vadd.f32 %v5087_v62, %v1804_v30 }
 0x1d7   : > { %3312 = vst.msk [vmem:[%s4565_s4 + $0x19c] sm:$0xf] %vm3208_vm3, %v3055_v21  ;;  %vm2351_vm6 = vcmp.gt.f32.partialorder %v1962_v27, 0.0  ;;  %v2607_v36 = vmul.f32 0.2, %v1962_v27  ;;  %vm2415_vm7 = vcmp.gt.f32.partialorder %v2122_v28, 0.0 }
 0x1d8   : > { %v2671_v37 = vmul.f32 0.2, %v2122_v28  ;;  %vm2224_vm8 = vcmp.gt.f32.partialorder %v1645_v33, 0.0  ;;  %v2480_v38 = vmul.f32 0.2, %v1645_v33  ;;  %vm2288_vm9 = vcmp.gt.f32.partialorder %v1805_v34, 0.0  ;;  %4130 = vmatmul.msk.bf16.gmra.mxu0 %vm1150_vm0, %v4260_v25  ;;  %4162 = vmatmul.msk.bf16.gmra.mxu1 %vm1150_vm0, %v4292_v26 }
 0x1d9   : > { %v2863_v39 = vsel %vm2351_vm6, %v1962_v27, %v2607_v36  ;;  %v2544_v40 = vmul.f32 0.2, %v1805_v34  ;;  %4194 = vmatmul.msk.bf16.gmra.mxu2 %vm1150_vm0, %v4324_v31  ;;  %4226 = vmatmul.msk.bf16.gmra.mxu3 %vm1150_vm0, %v4356_v32 }
 0x1da   : > { %v3119_v41 = vpack.c.bf16 %v2863_v39, %v2863_v39  ;;  %v2927_v42 = vsel %vm2415_vm7, %v2122_v28, %v2671_v37  ;;  %v2736_v43 = vsel %vm2224_vm8, %v1645_v33, %v2480_v38 }
 0x1db   : > { %v3183_v44 = vpack.c.bf16 %v2927_v42, %v2927_v42  ;;  %v2992_v45 = vpack.c.bf16 %v2736_v43, %v2736_v43  ;;  %v2800_v46 = vsel %vm2288_vm9, %v1805_v34, %v2544_v40 }
 0x1dc   : > { %3376 = vst.msk [vmem:[%s4565_s4 + $0x29c] sm:$0xf] %vm3208_vm3, %v3119_v41  ;;  %v3056_v47 = vpack.c.bf16 %v2800_v46, %v2800_v46  ;;  %v1964_v48 = vpop.f32.mrf.mxu2  ;;  %v2124_v49 = vpop.f32.mrf.mxu3 }
 0x1dd   : > { %3440 = vst.msk [vmem:[%s4565_s4 + $0x39c] sm:$0xf] %vm3208_vm3, %v3183_v44  ;;  %v1965_v50 = vadd.f32 %v5087_v62, %v1964_v48  ;;  %v2125_v51 = vadd.f32 %v5087_v62, %v2124_v49  ;;  %v1646_v52 = vpop.f32.mrf.mxu0  ;;  %v1806_v53 = vpop.f32.mrf.mxu1 }
 0x1de   : > { %3249 = vst.msk [vmem:[%s4565_s4 + $0xa0] sm:$0xf] %vm3208_vm3, %v2992_v45  ;;  %v1647_v24 = vadd.f32 %v5087_v62, %v1646_v52  ;;  %v1807_v54 = vadd.f32 %v5087_v62, %v1806_v53  ;;  %v4294_v52 = vld [vmem:[%s4479_s26 + $0x1f0] sm:$0xff] }
 0x1df   : > { %3313 = vst.msk [vmem:[%s4565_s4 + $0x1a0] sm:$0xf] %vm3208_vm3, %v3056_v47  ;;  %vm2352_vm10 = vcmp.gt.f32.partialorder %v1965_v50, 0.0  ;;  %v2608_v55 = vmul.f32 0.2, %v1965_v50  ;;  %vm2416_vm11 = vcmp.gt.f32.partialorder %v2125_v51, 0.0 }
 0x1e0   : > { %v2672_v56 = vmul.f32 0.2, %v2125_v51  ;;  %vm2225_vm12 = vcmp.gt.f32.partialorder %v1647_v24, 0.0  ;;  %v2481_v57 = vmul.f32 0.2, %v1647_v24  ;;  %vm2289_vm13 = vcmp.gt.f32.partialorder %v1807_v54, 0.0 }
 0x1e1   : > { %v2864_v58 = vsel %vm2352_vm10, %v1965_v50, %v2608_v55  ;;  %v2545_v59 = vmul.f32 0.2, %v1807_v54 }
 0x1e2   : > { %v3120_v60 = vpack.c.bf16 %v2864_v58, %v2864_v58  ;;  %v2928_v61 = vsel %vm2416_vm11, %v2125_v51, %v2672_v56  ;;  %v2737_v63 = vsel %vm2225_vm12, %v1647_v24, %v2481_v57  ;;  %v4262_v51 = vld [vmem:[%s4479_s26 + $0xf0] sm:$0xff] }
 0x1e3   : > { %v3184_v0 = vpack.c.bf16 %v2928_v61, %v2928_v61  ;;  %v2993_v1 = vpack.c.bf16 %v2737_v63, %v2737_v63  ;;  %v2801_v2 = vsel %vm2289_vm13, %v1807_v54, %v2545_v59  ;;  %v4326_v56 = vld [vmem:[%s4479_s26 + $0x2f0] sm:$0xff] }
 0x1e4   : > { %3377 = vst.msk [vmem:[%s4565_s4 + $0x2a0] sm:$0xf] %vm3208_vm3, %v3120_v60  ;;  %v3057_v3 = vpack.c.bf16 %v2801_v2, %v2801_v2  ;;  %v1966_v4 = vpop.f32.mrf.mxu2  ;;  %v2126_v5 = vpop.f32.mrf.mxu3  ;;  %v4358_v57 = vld [vmem:[%s4479_s26 + $0x3f0] sm:$0xff] }
 0x1e5   : > { %3441 = vst.msk [vmem:[%s4565_s4 + $0x3a0] sm:$0xf] %vm3208_vm3, %v3184_v0  ;;  %v1967_v8 = vadd.f32 %v5087_v62, %v1966_v4  ;;  %v2127_v9 = vadd.f32 %v5087_v62, %v2126_v5  ;;  %v1649_v10 = vpop.f32.mrf.mxu0  ;;  %v1809_v11 = vpop.f32.mrf.mxu1 }
 0x1e6   : > { %3250 = vst.msk [vmem:[%s4565_s4 + $0xa4] sm:$0xf] %vm3208_vm3, %v2993_v1  ;;  %v1650_v14 = vadd.f32 %v5087_v62, %v1649_v10  ;;  %v1810_v15 = vadd.f32 %v5087_v62, %v1809_v11 }
 0x1e7   : > { %3314 = vst.msk [vmem:[%s4565_s4 + $0x1a4] sm:$0xf] %vm3208_vm3, %v3057_v3  ;;  %vm2353_vm14 = vcmp.gt.f32.partialorder %v1967_v8, 0.0  ;;  %v2609_v35 = vmul.f32 0.2, %v1967_v8  ;;  %vm2417_vm15 = vcmp.gt.f32.partialorder %v2127_v9, 0.0 }
 0x1e8   : > { %v2673_v16 = vmul.f32 0.2, %v2127_v9  ;;  %vm2226_vm1 = vcmp.gt.f32.partialorder %v1650_v14, 0.0  ;;  %v2482_v17 = vmul.f32 0.2, %v1650_v14  ;;  %vm2290_vm2 = vcmp.gt.f32.partialorder %v1810_v15, 0.0  ;;  %4131 = vmatmul.msk.bf16.gmra.mxu0 %vm1150_vm0, %v4261_v6  ;;  %4163 = vmatmul.msk.bf16.gmra.mxu1 %vm1150_vm0, %v4293_v7 }
 0x1e9   : > { %v2865_v18 = vsel %vm2353_vm14, %v1967_v8, %v2609_v35  ;;  %v2546_v19 = vmul.f32 0.2, %v1810_v15  ;;  %4195 = vmatmul.msk.bf16.gmra.mxu2 %vm1150_vm0, %v4325_v12  ;;  %4227 = vmatmul.msk.bf16.gmra.mxu3 %vm1150_vm0, %v4357_v13 }
 0x1ea   : > { %v3121_v20 = vpack.c.bf16 %v2865_v18, %v2865_v18  ;;  %v2929_v21 = vsel %vm2417_vm15, %v2127_v9, %v2673_v16  ;;  %v2738_v22 = vsel %vm2226_vm1, %v1650_v14, %v2482_v17 }
 0x1eb   : > { %v3185_v23 = vpack.c.bf16 %v2929_v21, %v2929_v21  ;;  %v2994_v25 = vpack.c.bf16 %v2738_v22, %v2738_v22  ;;  %v2802_v26 = vsel %vm2290_vm2, %v1810_v15, %v2546_v19 }
 0x1ec   : > { %3378 = vst.msk [vmem:[%s4565_s4 + $0x2a4] sm:$0xf] %vm3208_vm3, %v3121_v20  ;;  %v3058_v27 = vpack.c.bf16 %v2802_v26, %v2802_v26  ;;  %v1969_v28 = vpop.f32.mrf.mxu2  ;;  %v2129_v29 = vpop.f32.mrf.mxu3 }
 0x1ed   : > { %3442 = vst.msk [vmem:[%s4565_s4 + $0x3a4] sm:$0xf] %vm3208_vm3, %v3185_v23  ;;  %v1970_v30 = vadd.f32 %v5087_v62, %v1969_v28  ;;  %v2130_v31 = vadd.f32 %v5087_v62, %v2129_v29  ;;  %v1651_v32 = vpop.f32.mrf.mxu0  ;;  %v1811_v33 = vpop.f32.mrf.mxu1 }
 0x1ee   : > { %3251 = vst.msk [vmem:[%s4565_s4 + $0xa8] sm:$0xf] %vm3208_vm3, %v2994_v25  ;;  %v1652_v34 = vadd.f32 %v5087_v62, %v1651_v32  ;;  %v1812_v36 = vadd.f32 %v5087_v62, %v1811_v33  ;;  %v4295_v32 = vld [vmem:[%s4479_s26 + $0x1f8] sm:$0xff] }
 0x1ef   : > { %3315 = vst.msk [vmem:[%s4565_s4 + $0x1a8] sm:$0xf] %vm3208_vm3, %v3058_v27  ;;  %vm2354_vm4 = vcmp.gt.f32.partialorder %v1970_v30, 0.0  ;;  %v2610_v37 = vmul.f32 0.2, %v1970_v30  ;;  %vm2418_vm5 = vcmp.gt.f32.partialorder %v2130_v31, 0.0 }
 0x1f0   : > { %v2674_v38 = vmul.f32 0.2, %v2130_v31  ;;  %vm2227_vm6 = vcmp.gt.f32.partialorder %v1652_v34, 0.0  ;;  %v2483_v39 = vmul.f32 0.2, %v1652_v34  ;;  %vm2291_vm7 = vcmp.gt.f32.partialorder %v1812_v36, 0.0 }
 0x1f1   : > { %v2866_v40 = vsel %vm2354_vm4, %v1970_v30, %v2610_v37  ;;  %v2547_v41 = vmul.f32 0.2, %v1812_v36 }
 0x1f2   : > { %v3122_v42 = vpack.c.bf16 %v2866_v40, %v2866_v40  ;;  %v2930_v43 = vsel %vm2418_vm5, %v2130_v31, %v2674_v38  ;;  %v2739_v44 = vsel %vm2227_vm6, %v1652_v34, %v2483_v39  ;;  %v4263_v31 = vld [vmem:[%s4479_s26 + $0xf8] sm:$0xff] }
 0x1f3   : > { %v3186_v45 = vpack.c.bf16 %v2930_v43, %v2930_v43  ;;  %v2995_v46 = vpack.c.bf16 %v2739_v44, %v2739_v44  ;;  %v2803_v47 = vsel %vm2291_vm7, %v1812_v36, %v2547_v41  ;;  %v4327_v38 = vld [vmem:[%s4479_s26 + $0x2f8] sm:$0xff] }
 0x1f4   : > { %3379 = vst.msk [vmem:[%s4565_s4 + $0x2a8] sm:$0xf] %vm3208_vm3, %v3122_v42  ;;  %v3059_v48 = vpack.c.bf16 %v2803_v47, %v2803_v47  ;;  %v1971_v49 = vpop.f32.mrf.mxu2  ;;  %v2131_v50 = vpop.f32.mrf.mxu3  ;;  %v4359_v39 = vld [vmem:[%s4479_s26 + $0x3f8] sm:$0xff] }
 0x1f5   : > { %3443 = vst.msk [vmem:[%s4565_s4 + $0x3a8] sm:$0xf] %vm3208_vm3, %v3186_v45  ;;  %v1972_v53 = vadd.f32 %v5087_v62, %v1971_v49  ;;  %v2132_v24 = vadd.f32 %v5087_v62, %v2131_v50  ;;  %v1654_v54 = vpop.f32.mrf.mxu0  ;;  %v1814_v55 = vpop.f32.mrf.mxu1 }
 0x1f6   : > { %3252 = vst.msk [vmem:[%s4565_s4 + $0xac] sm:$0xf] %vm3208_vm3, %v2995_v46  ;;  %v1655_v58 = vadd.f32 %v5087_v62, %v1654_v54  ;;  %v1815_v59 = vadd.f32 %v5087_v62, %v1814_v55 }
 0x1f7   : > { %3316 = vst.msk [vmem:[%s4565_s4 + $0x1ac] sm:$0xf] %vm3208_vm3, %v3059_v48  ;;  %vm2355_vm8 = vcmp.gt.f32.partialorder %v1972_v53, 0.0  ;;  %v2611_v60 = vmul.f32 0.2, %v1972_v53  ;;  %vm2419_vm9 = vcmp.gt.f32.partialorder %v2132_v24, 0.0 }
 0x1f8   : > { %v2675_v61 = vmul.f32 0.2, %v2132_v24  ;;  %vm2228_vm10 = vcmp.gt.f32.partialorder %v1655_v58, 0.0  ;;  %v2484_v63 = vmul.f32 0.2, %v1655_v58  ;;  %vm2292_vm11 = vcmp.gt.f32.partialorder %v1815_v59, 0.0  ;;  %4132 = vmatmul.msk.bf16.gmra.mxu0 %vm1150_vm0, %v4262_v51  ;;  %4164 = vmatmul.msk.bf16.gmra.mxu1 %vm1150_vm0, %v4294_v52 }
 0x1f9   : > { %v2867_v0 = vsel %vm2355_vm8, %v1972_v53, %v2611_v60  ;;  %v2548_v1 = vmul.f32 0.2, %v1815_v59  ;;  %4196 = vmatmul.msk.bf16.gmra.mxu2 %vm1150_vm0, %v4326_v56  ;;  %4228 = vmatmul.msk.bf16.gmra.mxu3 %vm1150_vm0, %v4358_v57 }
 0x1fa   : > { %v3123_v2 = vpack.c.bf16 %v2867_v0, %v2867_v0  ;;  %v2931_v3 = vsel %vm2419_vm9, %v2132_v24, %v2675_v61  ;;  %v2740_v4 = vsel %vm2228_vm10, %v1655_v58, %v2484_v63 }
 0x1fb   : > { %v3187_v5 = vpack.c.bf16 %v2931_v3, %v2931_v3  ;;  %v2996_v6 = vpack.c.bf16 %v2740_v4, %v2740_v4  ;;  %v2804_v7 = vsel %vm2292_vm11, %v1815_v59, %v2548_v1 }
 0x1fc   : > { %3380 = vst.msk [vmem:[%s4565_s4 + $0x2ac] sm:$0xf] %vm3208_vm3, %v3123_v2  ;;  %v3060_v8 = vpack.c.bf16 %v2804_v7, %v2804_v7  ;;  %v1974_v9 = vpop.f32.mrf.mxu2  ;;  %v2134_v10 = vpop.f32.mrf.mxu3 }
 0x1fd   : > { %3444 = vst.msk [vmem:[%s4565_s4 + $0x3ac] sm:$0xf] %vm3208_vm3, %v3187_v5  ;;  %v1975_v11 = vadd.f32 %v5087_v62, %v1974_v9  ;;  %v2135_v12 = vadd.f32 %v5087_v62, %v2134_v10  ;;  %v1656_v13 = vpop.f32.mrf.mxu0  ;;  %v1816_v14 = vpop.f32.mrf.mxu1 }
 0x1fe   : > { %3253 = vst.msk [vmem:[%s4565_s4 + $0xb0] sm:$0xf] %vm3208_vm3, %v2996_v6  ;;  %v1657_v15 = vadd.f32 %v5087_v62, %v1656_v13  ;;  %v1817_v35 = vadd.f32 %v5087_v62, %v1816_v14 }
 0x1ff   : > { %3317 = vst.msk [vmem:[%s4565_s4 + $0x1b0] sm:$0xf] %vm3208_vm3, %v3060_v8  ;;  %vm2356_vm12 = vcmp.gt.f32.partialorder %v1975_v11, 0.0  ;;  %v2612_v16 = vmul.f32 0.2, %v1975_v11  ;;  %vm2420_vm13 = vcmp.gt.f32.partialorder %v2135_v12, 0.0 }
 0x200   : > { %v2676_v17 = vmul.f32 0.2, %v2135_v12  ;;  %vm2229_vm14 = vcmp.gt.f32.partialorder %v1657_v15, 0.0  ;;  %v2485_v18 = vmul.f32 0.2, %v1657_v15  ;;  %vm2293_vm15 = vcmp.gt.f32.partialorder %v1817_v35, 0.0 }
 0x201   : > { %v2868_v19 = vsel %vm2356_vm12, %v1975_v11, %v2612_v16  ;;  %v2549_v20 = vmul.f32 0.2, %v1817_v35 }
 0x202   : > { %v3124_v21 = vpack.c.bf16 %v2868_v19, %v2868_v19  ;;  %v2932_v22 = vsel %vm2420_vm13, %v2135_v12, %v2676_v17  ;;  %v2741_v23 = vsel %vm2229_vm14, %v1657_v15, %v2485_v18 }
 0x203   : > { %v3188_v25 = vpack.c.bf16 %v2932_v22, %v2932_v22  ;;  %v2997_v26 = vpack.c.bf16 %v2741_v23, %v2741_v23  ;;  %v2805_v27 = vsel %vm2293_vm15, %v1817_v35, %v2549_v20 }
 0x204   : > { %3381 = vst.msk [vmem:[%s4565_s4 + $0x2b0] sm:$0xf] %vm3208_vm3, %v3124_v21  ;;  %v3061_v28 = vpack.c.bf16 %v2805_v27, %v2805_v27  ;;  %v1976_v29 = vpop.f32.mrf.mxu2  ;;  %v2136_v30 = vpop.f32.mrf.mxu3 }
 0x205   : > { %3445 = vst.msk [vmem:[%s4565_s4 + $0x3b0] sm:$0xf] %vm3208_vm3, %v3188_v25  ;;  %v1977_v33 = vadd.f32 %v5087_v62, %v1976_v29  ;;  %v2137_v34 = vadd.f32 %v5087_v62, %v2136_v30  ;;  %v1659_v36 = vpop.f32.mrf.mxu0  ;;  %v1819_v37 = vpop.f32.mrf.mxu1 }
 0x206   : > { %3254 = vst.msk [vmem:[%s4565_s4 + $0xb4] sm:$0xf] %vm3208_vm3, %v2997_v26  ;;  %v1660_v40 = vadd.f32 %v5087_v62, %v1659_v36  ;;  %v1820_v41 = vadd.f32 %v5087_v62, %v1819_v37 }
 0x207   : > { %3318 = vst.msk [vmem:[%s4565_s4 + $0x1b4] sm:$0xf] %vm3208_vm3, %v3061_v28  ;;  %vm2357_vm1 = vcmp.gt.f32.partialorder %v1977_v33, 0.0  ;;  %v2613_v42 = vmul.f32 0.2, %v1977_v33  ;;  %vm2421_vm2 = vcmp.gt.f32.partialorder %v2137_v34, 0.0 }
 0x208   : > { %v2677_v43 = vmul.f32 0.2, %v2137_v34  ;;  %vm2230_vm4 = vcmp.gt.f32.partialorder %v1660_v40, 0.0  ;;  %v2486_v44 = vmul.f32 0.2, %v1660_v40  ;;  %vm2294_vm5 = vcmp.gt.f32.partialorder %v1820_v41, 0.0  ;;  %4133 = vmatmul.msk.bf16.gmra.mxu0 %vm1150_vm0, %v4263_v31  ;;  %4165 = vmatmul.msk.bf16.gmra.mxu1 %vm1150_vm0, %v4295_v32 }
 0x209   : > { %v2869_v45 = vsel %vm2357_vm1, %v1977_v33, %v2613_v42  ;;  %v2550_v46 = vmul.f32 0.2, %v1820_v41  ;;  %4197 = vmatmul.msk.bf16.gmra.mxu2 %vm1150_vm0, %v4327_v38  ;;  %4229 = vmatmul.msk.bf16.gmra.mxu3 %vm1150_vm0, %v4359_v39 }
 0x20a   : > { %v3125_v47 = vpack.c.bf16 %v2869_v45, %v2869_v45  ;;  %v2933_v48 = vsel %vm2421_vm2, %v2137_v34, %v2677_v43  ;;  %v2742_v49 = vsel %vm2230_vm4, %v1660_v40, %v2486_v44 }
 0x20b   : > { %v3189_v50 = vpack.c.bf16 %v2933_v48, %v2933_v48  ;;  %v2998_v51 = vpack.c.bf16 %v2742_v49, %v2742_v49  ;;  %v2806_v52 = vsel %vm2294_vm5, %v1820_v41, %v2550_v46 }
 0x20c   : > { %3382 = vst.msk [vmem:[%s4565_s4 + $0x2b4] sm:$0xf] %vm3208_vm3, %v3125_v47  ;;  %v3062_v53 = vpack.c.bf16 %v2806_v52, %v2806_v52  ;;  %v1979_v24 = vpop.f32.mrf.mxu2  ;;  %v2139_v54 = vpop.f32.mrf.mxu3  ;;  %v5352_v52 = vld [vmem:[%s5543_s2] ss:$0 sm:$0xff] }
 0x20d   : > { %3446 = vst.msk [vmem:[%s4565_s4 + $0x3b4] sm:$0xf] %vm3208_vm3, %v3189_v50  ;;  %v1980_v55 = vadd.f32 %v5087_v62, %v1979_v24  ;;  %v2140_v56 = vadd.f32 %v5087_v62, %v2139_v54  ;;  %v1661_v57 = vpop.f32.mrf.mxu0  ;;  %v1821_v58 = vpop.f32.mrf.mxu1 }
 0x20e   : > { %3255 = vst.msk [vmem:[%s4565_s4 + $0xb8] sm:$0xf] %vm3208_vm3, %v2998_v51  ;;  %v1662_v59 = vadd.f32 %v5087_v62, %v1661_v57  ;;  %v1822_v60 = vadd.f32 %v5087_v62, %v1821_v58 }
 0x20f   : > { %3319 = vst.msk [vmem:[%s4565_s4 + $0x1b8] sm:$0xf] %vm3208_vm3, %v3062_v53  ;;  %vm2358_vm0 = vcmp.gt.f32.partialorder %v1980_v55, 0.0  ;;  %v2614_v61 = vmul.f32 0.2, %v1980_v55  ;;  %vm2422_vm6 = vcmp.gt.f32.partialorder %v2140_v56, 0.0 }
 0x210   : > { %v2678_v63 = vmul.f32 0.2, %v2140_v56  ;;  %vm2231_vm7 = vcmp.gt.f32.partialorder %v1662_v59, 0.0  ;;  %v2487_v0 = vmul.f32 0.2, %v1662_v59  ;;  %vm2295_vm8 = vcmp.gt.f32.partialorder %v1822_v60, 0.0 }
 0x211   : > { %v2870_v1 = vsel %vm2358_vm0, %v1980_v55, %v2614_v61  ;;  %v2551_v2 = vmul.f32 0.2, %v1822_v60 }
 0x212   : > { %v3126_v3 = vpack.c.bf16 %v2870_v1, %v2870_v1  ;;  %v2934_v4 = vsel %vm2422_vm6, %v2140_v56, %v2678_v63  ;;  %v2743_v5 = vsel %vm2231_vm7, %v1662_v59, %v2487_v0 }
 0x213   : > { %v3190_v6 = vpack.c.bf16 %v2934_v4, %v2934_v4  ;;  %v2999_v7 = vpack.c.bf16 %v2743_v5, %v2743_v5  ;;  %v2807_v8 = vsel %vm2295_vm8, %v1822_v60, %v2551_v2 }
 0x214   : > { %3383 = vst.msk [vmem:[%s4565_s4 + $0x2b8] sm:$0xf] %vm3208_vm3, %v3126_v3  ;;  %v3063_v9 = vpack.c.bf16 %v2807_v8, %v2807_v8  ;;  %v1981_v10 = vpop.f32.mrf.mxu2  ;;  %v2141_v11 = vpop.f32.mrf.mxu3 }
 0x215   : > { %3447 = vst.msk [vmem:[%s4565_s4 + $0x3b8] sm:$0xf] %vm3208_vm3, %v3190_v6  ;;  %v1982_v12 = vadd.f32 %v5087_v62, %v1981_v10  ;;  %v2142_v13 = vadd.f32 %v5087_v62, %v2141_v11  ;;  %v1664_v14 = vpop.f32.mrf.mxu0  ;;  %v1824_v15 = vpop.f32.mrf.mxu1 }
 0x216   : > { %3256 = vst.msk [vmem:[%s4565_s4 + $0xbc] sm:$0xf] %vm3208_vm3, %v2999_v7  ;;  %v1665_v35 = vadd.f32 %v5087_v62, %v1664_v14  ;;  %v1825_v16 = vadd.f32 %v5087_v62, %v1824_v15 }
 0x217   : > { %3320 = vst.msk [vmem:[%s4565_s4 + $0x1bc] sm:$0xf] %vm3208_vm3, %v3063_v9  ;;  %vm2359_vm9 = vcmp.gt.f32.partialorder %v1982_v12, 0.0  ;;  %v2615_v17 = vmul.f32 0.2, %v1982_v12  ;;  %vm2423_vm10 = vcmp.gt.f32.partialorder %v2142_v13, 0.0 }
 0x218   : > { %v2679_v18 = vmul.f32 0.2, %v2142_v13  ;;  %vm2232_vm11 = vcmp.gt.f32.partialorder %v1665_v35, 0.0  ;;  %v2488_v19 = vmul.f32 0.2, %v1665_v35  ;;  %vm2296_vm12 = vcmp.gt.f32.partialorder %v1825_v16, 0.0 }
 0x219   : > { %v2871_v20 = vsel %vm2359_vm9, %v1982_v12, %v2615_v17  ;;  %v2552_v21 = vmul.f32 0.2, %v1825_v16 }
 0x21a   : > { %v3127_v22 = vpack.c.bf16 %v2871_v20, %v2871_v20  ;;  %v2935_v23 = vsel %vm2423_vm10, %v2142_v13, %v2679_v18  ;;  %v2744_v25 = vsel %vm2232_vm11, %v1665_v35, %v2488_v19 }
 0x21b   : > { %v3191_v26 = vpack.c.bf16 %v2935_v23, %v2935_v23  ;;  %v3000_v27 = vpack.c.bf16 %v2744_v25, %v2744_v25  ;;  %v2808_v28 = vsel %vm2296_vm12, %v1825_v16, %v2552_v21 }
 0x21c   : > { %3384 = vst.msk [vmem:[%s4565_s4 + $0x2bc] sm:$0xf] %vm3208_vm3, %v3127_v22  ;;  %v3064_v29 = vpack.c.bf16 %v2808_v28, %v2808_v28  ;;  %v1984_v30 = vpop.f32.mrf.mxu2  ;;  %v2144_v31 = vpop.f32.mrf.mxu3 }
 0x21d   : > { %3448 = vst.msk [vmem:[%s4565_s4 + $0x3bc] sm:$0xf] %vm3208_vm3, %v3191_v26  ;;  %v1985_v32 = vadd.f32 %v5087_v62, %v1984_v30  ;;  %v2145_v33 = vadd.f32 %v5087_v62, %v2144_v31  ;;  %v1666_v34 = vpop.f32.mrf.mxu0  ;;  %v1826_v36 = vpop.f32.mrf.mxu1 }
 0x21e   : > { %3257 = vst.msk [vmem:[%s4565_s4 + $0xc0] sm:$0xf] %vm3208_vm3, %v3000_v27  ;;  %v1667_v37 = vadd.f32 %v5087_v62, %v1666_v34  ;;  %v1827_v38 = vadd.f32 %v5087_v62, %v1826_v36 }
 0x21f   : > { %3321 = vst.msk [vmem:[%s4565_s4 + $0x1c0] sm:$0xf] %vm3208_vm3, %v3064_v29  ;;  %vm2360_vm13 = vcmp.gt.f32.partialorder %v1985_v32, 0.0  ;;  %v2616_v39 = vmul.f32 0.2, %v1985_v32  ;;  %vm2424_vm14 = vcmp.gt.f32.partialorder %v2145_v33, 0.0 }
 0x220   : > { %v2680_v40 = vmul.f32 0.2, %v2145_v33  ;;  %vm2233_vm15 = vcmp.gt.f32.partialorder %v1667_v37, 0.0  ;;  %v2489_v41 = vmul.f32 0.2, %v1667_v37  ;;  %vm2297_vm1 = vcmp.gt.f32.partialorder %v1827_v38, 0.0 }
 0x221   : > { %v2872_v42 = vsel %vm2360_vm13, %v1985_v32, %v2616_v39  ;;  %v2553_v43 = vmul.f32 0.2, %v1827_v38 }
 0x222   : > { %v3128_v44 = vpack.c.bf16 %v2872_v42, %v2872_v42  ;;  %v2936_v45 = vsel %vm2424_vm14, %v2145_v33, %v2680_v40  ;;  %v2745_v46 = vsel %vm2233_vm15, %v1667_v37, %v2489_v41 }
 0x223   : > { %v3192_v47 = vpack.c.bf16 %v2936_v45, %v2936_v45  ;;  %v3001_v62 = vpack.c.bf16 %v2745_v46, %v2745_v46  ;;  %v2809_v48 = vsel %vm2297_vm1, %v1827_v38, %v2553_v43 }
 0x224   : > { %3385 = vst.msk [vmem:[%s4565_s4 + $0x2c0] sm:$0xf] %vm3208_vm3, %v3128_v44  ;;  %v3065_v49 = vpack.c.bf16 %v2809_v48, %v2809_v48  ;;  %v1986_v50 = vpop.f32.mrf.mxu2  ;;  %v2146_v51 = vpop.f32.mrf.mxu3 }
 0x225   : > { %3449 = vst.msk [vmem:[%s4565_s4 + $0x3c0] sm:$0xf] %vm3208_vm3, %v3192_v47  ;;  %v1987_v53 = vadd.f32 %v5352_v52, %v1986_v50  ;;  %v2147_v24 = vadd.f32 %v5352_v52, %v2146_v51  ;;  %v1669_v54 = vpop.f32.mrf.mxu0  ;;  %v1829_v55 = vpop.f32.mrf.mxu1 }
 0x226   : > { %3258 = vst.msk [vmem:[%s4565_s4 + $0xc4] sm:$0xf] %vm3208_vm3, %v3001_v62  ;;  %v1670_v56 = vadd.f32 %v5352_v52, %v1669_v54  ;;  %v1830_v57 = vadd.f32 %v5352_v52, %v1829_v55 }
 0x227   : > { %3322 = vst.msk [vmem:[%s4565_s4 + $0x1c4] sm:$0xf] %vm3208_vm3, %v3065_v49  ;;  %vm2361_vm2 = vcmp.gt.f32.partialorder %v1987_v53, 0.0  ;;  %v2617_v58 = vmul.f32 0.2, %v1987_v53  ;;  %vm2425_vm4 = vcmp.gt.f32.partialorder %v2147_v24, 0.0 }
 0x228   : > { %v2681_v59 = vmul.f32 0.2, %v2147_v24  ;;  %vm2234_vm5 = vcmp.gt.f32.partialorder %v1670_v56, 0.0  ;;  %v2490_v60 = vmul.f32 0.2, %v1670_v56  ;;  %vm2298_vm0 = vcmp.gt.f32.partialorder %v1830_v57, 0.0 }
 0x229   : > { %v2873_v61 = vsel %vm2361_vm2, %v1987_v53, %v2617_v58  ;;  %v2554_v63 = vmul.f32 0.2, %v1830_v57 }
 0x22a   : > { %v3129_v0 = vpack.c.bf16 %v2873_v61, %v2873_v61  ;;  %v2937_v1 = vsel %vm2425_vm4, %v2147_v24, %v2681_v59  ;;  %v2746_v2 = vsel %vm2234_vm5, %v1670_v56, %v2490_v60 }
 0x22b   : > { %v3193_v3 = vpack.c.bf16 %v2937_v1, %v2937_v1  ;;  %v3002_v4 = vpack.c.bf16 %v2746_v2, %v2746_v2  ;;  %v2810_v5 = vsel %vm2298_vm0, %v1830_v57, %v2554_v63 }
 0x22c   : > { %3386 = vst.msk [vmem:[%s4565_s4 + $0x2c4] sm:$0xf] %vm3208_vm3, %v3129_v0  ;;  %v3066_v6 = vpack.c.bf16 %v2810_v5, %v2810_v5  ;;  %v1989_v7 = vpop.f32.mrf.mxu2  ;;  %v2149_v8 = vpop.f32.mrf.mxu3 }
 0x22d   : > { %3450 = vst.msk [vmem:[%s4565_s4 + $0x3c4] sm:$0xf] %vm3208_vm3, %v3193_v3  ;;  %v1990_v9 = vadd.f32 %v5352_v52, %v1989_v7  ;;  %v2150_v10 = vadd.f32 %v5352_v52, %v2149_v8  ;;  %v1671_v11 = vpop.f32.mrf.mxu0  ;;  %v1831_v12 = vpop.f32.mrf.mxu1 }
 0x22e   : > { %3259 = vst.msk [vmem:[%s4565_s4 + $0xc8] sm:$0xf] %vm3208_vm3, %v3002_v4  ;;  %v1672_v13 = vadd.f32 %v5352_v52, %v1671_v11  ;;  %v1832_v14 = vadd.f32 %v5352_v52, %v1831_v12 }
 0x22f   : > { %3323 = vst.msk [vmem:[%s4565_s4 + $0x1c8] sm:$0xf] %vm3208_vm3, %v3066_v6  ;;  %vm2362_vm6 = vcmp.gt.f32.partialorder %v1990_v9, 0.0  ;;  %v2618_v15 = vmul.f32 0.2, %v1990_v9  ;;  %vm2426_vm7 = vcmp.gt.f32.partialorder %v2150_v10, 0.0 }
 0x230   : > { %v2682_v35 = vmul.f32 0.2, %v2150_v10  ;;  %vm2235_vm8 = vcmp.gt.f32.partialorder %v1672_v13, 0.0  ;;  %v2491_v16 = vmul.f32 0.2, %v1672_v13  ;;  %vm2299_vm9 = vcmp.gt.f32.partialorder %v1832_v14, 0.0 }
 0x231   : > { %v2874_v17 = vsel %vm2362_vm6, %v1990_v9, %v2618_v15  ;;  %v2555_v18 = vmul.f32 0.2, %v1832_v14 }
 0x232   : > { %v3130_v19 = vpack.c.bf16 %v2874_v17, %v2874_v17  ;;  %v2938_v20 = vsel %vm2426_vm7, %v2150_v10, %v2682_v35  ;;  %v2747_v21 = vsel %vm2235_vm8, %v1672_v13, %v2491_v16 }
 0x233   : > { %v3194_v22 = vpack.c.bf16 %v2938_v20, %v2938_v20  ;;  %v3003_v23 = vpack.c.bf16 %v2747_v21, %v2747_v21  ;;  %v2811_v25 = vsel %vm2299_vm9, %v1832_v14, %v2555_v18 }
 0x234   : > { %3387 = vst.msk [vmem:[%s4565_s4 + $0x2c8] sm:$0xf] %vm3208_vm3, %v3130_v19  ;;  %v3067_v26 = vpack.c.bf16 %v2811_v25, %v2811_v25  ;;  %v1991_v27 = vpop.f32.mrf.mxu2  ;;  %v2151_v28 = vpop.f32.mrf.mxu3 }
 0x235   : > { %3451 = vst.msk [vmem:[%s4565_s4 + $0x3c8] sm:$0xf] %vm3208_vm3, %v3194_v22  ;;  %v1992_v29 = vadd.f32 %v5352_v52, %v1991_v27  ;;  %v2152_v30 = vadd.f32 %v5352_v52, %v2151_v28  ;;  %v1674_v31 = vpop.f32.mrf.mxu0  ;;  %v1834_v32 = vpop.f32.mrf.mxu1 }
 0x236   : > { %3260 = vst.msk [vmem:[%s4565_s4 + $0xcc] sm:$0xf] %vm3208_vm3, %v3003_v23  ;;  %v1675_v33 = vadd.f32 %v5352_v52, %v1674_v31  ;;  %v1835_v34 = vadd.f32 %v5352_v52, %v1834_v32 }
 0x237   : > { %3324 = vst.msk [vmem:[%s4565_s4 + $0x1cc] sm:$0xf] %vm3208_vm3, %v3067_v26  ;;  %vm2363_vm10 = vcmp.gt.f32.partialorder %v1992_v29, 0.0  ;;  %v2619_v36 = vmul.f32 0.2, %v1992_v29  ;;  %vm2427_vm11 = vcmp.gt.f32.partialorder %v2152_v30, 0.0 }
 0x238   : > { %v2683_v37 = vmul.f32 0.2, %v2152_v30  ;;  %vm2236_vm12 = vcmp.gt.f32.partialorder %v1675_v33, 0.0  ;;  %v2492_v38 = vmul.f32 0.2, %v1675_v33  ;;  %vm2300_vm13 = vcmp.gt.f32.partialorder %v1835_v34, 0.0 }
 0x239   : > { %v2875_v39 = vsel %vm2363_vm10, %v1992_v29, %v2619_v36  ;;  %v2556_v40 = vmul.f32 0.2, %v1835_v34 }
 0x23a   : > { %v3131_v41 = vpack.c.bf16 %v2875_v39, %v2875_v39  ;;  %v2939_v42 = vsel %vm2427_vm11, %v2152_v30, %v2683_v37  ;;  %v2748_v43 = vsel %vm2236_vm12, %v1675_v33, %v2492_v38 }
 0x23b   : > { %v3195_v44 = vpack.c.bf16 %v2939_v42, %v2939_v42  ;;  %v3004_v45 = vpack.c.bf16 %v2748_v43, %v2748_v43  ;;  %v2812_v46 = vsel %vm2300_vm13, %v1835_v34, %v2556_v40 }
 0x23c   : > { %3388 = vst.msk [vmem:[%s4565_s4 + $0x2cc] sm:$0xf] %vm3208_vm3, %v3131_v41  ;;  %v3068_v47 = vpack.c.bf16 %v2812_v46, %v2812_v46  ;;  %v1994_v62 = vpop.f32.mrf.mxu2  ;;  %v2154_v48 = vpop.f32.mrf.mxu3 }
 0x23d   : > { %3452 = vst.msk [vmem:[%s4565_s4 + $0x3cc] sm:$0xf] %vm3208_vm3, %v3195_v44  ;;  %v1995_v49 = vadd.f32 %v5352_v52, %v1994_v62  ;;  %v2155_v50 = vadd.f32 %v5352_v52, %v2154_v48  ;;  %v1676_v51 = vpop.f32.mrf.mxu0  ;;  %v1836_v53 = vpop.f32.mrf.mxu1 }
 0x23e   : > { %3261 = vst.msk [vmem:[%s4565_s4 + $0xd0] sm:$0xf] %vm3208_vm3, %v3004_v45  ;;  %v1677_v24 = vadd.f32 %v5352_v52, %v1676_v51  ;;  %v1837_v54 = vadd.f32 %v5352_v52, %v1836_v53 }
 0x23f   : > { %3325 = vst.msk [vmem:[%s4565_s4 + $0x1d0] sm:$0xf] %vm3208_vm3, %v3068_v47  ;;  %vm2364_vm14 = vcmp.gt.f32.partialorder %v1995_v49, 0.0  ;;  %v2620_v55 = vmul.f32 0.2, %v1995_v49  ;;  %vm2428_vm15 = vcmp.gt.f32.partialorder %v2155_v50, 0.0 }
 0x240   : > { %v2684_v56 = vmul.f32 0.2, %v2155_v50  ;;  %vm2237_vm1 = vcmp.gt.f32.partialorder %v1677_v24, 0.0  ;;  %v2493_v57 = vmul.f32 0.2, %v1677_v24  ;;  %vm2301_vm2 = vcmp.gt.f32.partialorder %v1837_v54, 0.0 }
 0x241   : > { %v2876_v58 = vsel %vm2364_vm14, %v1995_v49, %v2620_v55  ;;  %v2557_v59 = vmul.f32 0.2, %v1837_v54 }
 0x242   : > { %v3132_v60 = vpack.c.bf16 %v2876_v58, %v2876_v58  ;;  %v2940_v61 = vsel %vm2428_vm15, %v2155_v50, %v2684_v56  ;;  %v2749_v63 = vsel %vm2237_vm1, %v1677_v24, %v2493_v57 }
 0x243   : > { %v3196_v0 = vpack.c.bf16 %v2940_v61, %v2940_v61  ;;  %v3005_v1 = vpack.c.bf16 %v2749_v63, %v2749_v63  ;;  %v2813_v2 = vsel %vm2301_vm2, %v1837_v54, %v2557_v59 }
 0x244   : > { %3389 = vst.msk [vmem:[%s4565_s4 + $0x2d0] sm:$0xf] %vm3208_vm3, %v3132_v60  ;;  %v3069_v3 = vpack.c.bf16 %v2813_v2, %v2813_v2  ;;  %v1996_v4 = vpop.f32.mrf.mxu2  ;;  %v2156_v5 = vpop.f32.mrf.mxu3 }
 0x245   : > { %3453 = vst.msk [vmem:[%s4565_s4 + $0x3d0] sm:$0xf] %vm3208_vm3, %v3196_v0  ;;  %v1997_v6 = vadd.f32 %v5352_v52, %v1996_v4  ;;  %v2157_v7 = vadd.f32 %v5352_v52, %v2156_v5  ;;  %v1679_v8 = vpop.f32.mrf.mxu0  ;;  %v1839_v9 = vpop.f32.mrf.mxu1 }
 0x246   : > { %3262 = vst.msk [vmem:[%s4565_s4 + $0xd4] sm:$0xf] %vm3208_vm3, %v3005_v1  ;;  %v1680_v10 = vadd.f32 %v5352_v52, %v1679_v8  ;;  %v1840_v11 = vadd.f32 %v5352_v52, %v1839_v9 }
 0x247   : > { %3326 = vst.msk [vmem:[%s4565_s4 + $0x1d4] sm:$0xf] %vm3208_vm3, %v3069_v3  ;;  %vm2365_vm4 = vcmp.gt.f32.partialorder %v1997_v6, 0.0  ;;  %v2621_v12 = vmul.f32 0.2, %v1997_v6  ;;  %vm2429_vm5 = vcmp.gt.f32.partialorder %v2157_v7, 0.0 }
 0x248   : > { %v2685_v13 = vmul.f32 0.2, %v2157_v7  ;;  %vm2238_vm0 = vcmp.gt.f32.partialorder %v1680_v10, 0.0  ;;  %v2494_v14 = vmul.f32 0.2, %v1680_v10  ;;  %vm2302_vm6 = vcmp.gt.f32.partialorder %v1840_v11, 0.0 }
 0x249   : > { %v2877_v15 = vsel %vm2365_vm4, %v1997_v6, %v2621_v12  ;;  %v2558_v35 = vmul.f32 0.2, %v1840_v11 }
 0x24a   : > { %v3133_v16 = vpack.c.bf16 %v2877_v15, %v2877_v15  ;;  %v2941_v17 = vsel %vm2429_vm5, %v2157_v7, %v2685_v13  ;;  %v2750_v18 = vsel %vm2238_vm0, %v1680_v10, %v2494_v14 }
 0x24b   : > { %v3197_v19 = vpack.c.bf16 %v2941_v17, %v2941_v17  ;;  %v3006_v20 = vpack.c.bf16 %v2750_v18, %v2750_v18  ;;  %v2814_v21 = vsel %vm2302_vm6, %v1840_v11, %v2558_v35 }
 0x24c   : > { %3390 = vst.msk [vmem:[%s4565_s4 + $0x2d4] sm:$0xf] %vm3208_vm3, %v3133_v16  ;;  %v3070_v22 = vpack.c.bf16 %v2814_v21, %v2814_v21  ;;  %v1999_v23 = vpop.f32.mrf.mxu2  ;;  %v2159_v25 = vpop.f32.mrf.mxu3 }
 0x24d   : > { %3454 = vst.msk [vmem:[%s4565_s4 + $0x3d4] sm:$0xf] %vm3208_vm3, %v3197_v19  ;;  %v2000_v26 = vadd.f32 %v5352_v52, %v1999_v23  ;;  %v2160_v27 = vadd.f32 %v5352_v52, %v2159_v25  ;;  %v1681_v28 = vpop.f32.mrf.mxu0  ;;  %v1841_v29 = vpop.f32.mrf.mxu1 }
 0x24e   : > { %3263 = vst.msk [vmem:[%s4565_s4 + $0xd8] sm:$0xf] %vm3208_vm3, %v3006_v20  ;;  %v1682_v30 = vadd.f32 %v5352_v52, %v1681_v28  ;;  %v1842_v31 = vadd.f32 %v5352_v52, %v1841_v29 }
 0x24f   : > { %3327 = vst.msk [vmem:[%s4565_s4 + $0x1d8] sm:$0xf] %vm3208_vm3, %v3070_v22  ;;  %vm2366_vm7 = vcmp.gt.f32.partialorder %v2000_v26, 0.0  ;;  %v2622_v32 = vmul.f32 0.2, %v2000_v26  ;;  %vm2430_vm8 = vcmp.gt.f32.partialorder %v2160_v27, 0.0 }
 0x250   : > { %v2686_v33 = vmul.f32 0.2, %v2160_v27  ;;  %vm2239_vm9 = vcmp.gt.f32.partialorder %v1682_v30, 0.0  ;;  %v2495_v34 = vmul.f32 0.2, %v1682_v30  ;;  %vm2303_vm10 = vcmp.gt.f32.partialorder %v1842_v31, 0.0 }
 0x251   : > { %v2878_v36 = vsel %vm2366_vm7, %v2000_v26, %v2622_v32  ;;  %v2559_v37 = vmul.f32 0.2, %v1842_v31 }
 0x252   : > { %v3134_v38 = vpack.c.bf16 %v2878_v36, %v2878_v36  ;;  %v2942_v39 = vsel %vm2430_vm8, %v2160_v27, %v2686_v33  ;;  %v2751_v40 = vsel %vm2239_vm9, %v1682_v30, %v2495_v34 }
 0x253   : > { %v3198_v41 = vpack.c.bf16 %v2942_v39, %v2942_v39  ;;  %v3007_v42 = vpack.c.bf16 %v2751_v40, %v2751_v40  ;;  %v2815_v43 = vsel %vm2303_vm10, %v1842_v31, %v2559_v37 }
 0x254   : > { %3391 = vst.msk [vmem:[%s4565_s4 + $0x2d8] sm:$0xf] %vm3208_vm3, %v3134_v38  ;;  %v3071_v44 = vpack.c.bf16 %v2815_v43, %v2815_v43  ;;  %v2001_v45 = vpop.f32.mrf.mxu2  ;;  %v2161_v46 = vpop.f32.mrf.mxu3 }
 0x255   : > { %3455 = vst.msk [vmem:[%s4565_s4 + $0x3d8] sm:$0xf] %vm3208_vm3, %v3198_v41  ;;  %v2002_v47 = vadd.f32 %v5352_v52, %v2001_v45  ;;  %v2162_v62 = vadd.f32 %v5352_v52, %v2161_v46  ;;  %v1684_v48 = vpop.f32.mrf.mxu0  ;;  %v1844_v49 = vpop.f32.mrf.mxu1 }
 0x256   : > { %3264 = vst.msk [vmem:[%s4565_s4 + $0xdc] sm:$0xf] %vm3208_vm3, %v3007_v42  ;;  %v1685_v50 = vadd.f32 %v5352_v52, %v1684_v48  ;;  %v1845_v51 = vadd.f32 %v5352_v52, %v1844_v49 }
 0x257   : > { %3328 = vst.msk [vmem:[%s4565_s4 + $0x1dc] sm:$0xf] %vm3208_vm3, %v3071_v44  ;;  %vm2367_vm11 = vcmp.gt.f32.partialorder %v2002_v47, 0.0  ;;  %v2623_v53 = vmul.f32 0.2, %v2002_v47  ;;  %vm2431_vm12 = vcmp.gt.f32.partialorder %v2162_v62, 0.0 }
 0x258   : > { %v2687_v24 = vmul.f32 0.2, %v2162_v62  ;;  %vm2240_vm13 = vcmp.gt.f32.partialorder %v1685_v50, 0.0  ;;  %v2496_v54 = vmul.f32 0.2, %v1685_v50  ;;  %vm2304_vm14 = vcmp.gt.f32.partialorder %v1845_v51, 0.0 }
 0x259   : > { %v2879_v55 = vsel %vm2367_vm11, %v2002_v47, %v2623_v53  ;;  %v2560_v56 = vmul.f32 0.2, %v1845_v51 }
 0x25a   : > { %v3135_v57 = vpack.c.bf16 %v2879_v55, %v2879_v55  ;;  %v2943_v58 = vsel %vm2431_vm12, %v2162_v62, %v2687_v24  ;;  %v2752_v59 = vsel %vm2240_vm13, %v1685_v50, %v2496_v54 }
 0x25b   : > { %v3199_v60 = vpack.c.bf16 %v2943_v58, %v2943_v58  ;;  %v3008_v61 = vpack.c.bf16 %v2752_v59, %v2752_v59  ;;  %v2816_v63 = vsel %vm2304_vm14, %v1845_v51, %v2560_v56 }
 0x25c   : > { %3392 = vst.msk [vmem:[%s4565_s4 + $0x2dc] sm:$0xf] %vm3208_vm3, %v3135_v57  ;;  %v3072_v0 = vpack.c.bf16 %v2816_v63, %v2816_v63  ;;  %v2004_v1 = vpop.f32.mrf.mxu2  ;;  %v2164_v2 = vpop.f32.mrf.mxu3 }
 0x25d   : > { %3456 = vst.msk [vmem:[%s4565_s4 + $0x3dc] sm:$0xf] %vm3208_vm3, %v3199_v60  ;;  %v2005_v3 = vadd.f32 %v5352_v52, %v2004_v1  ;;  %v2165_v4 = vadd.f32 %v5352_v52, %v2164_v2  ;;  %v1686_v5 = vpop.f32.mrf.mxu0  ;;  %v1846_v6 = vpop.f32.mrf.mxu1 }
 0x25e   : > { %3265 = vst.msk [vmem:[%s4565_s4 + $0xe0] sm:$0xf] %vm3208_vm3, %v3008_v61  ;;  %v1687_v7 = vadd.f32 %v5352_v52, %v1686_v5  ;;  %v1847_v8 = vadd.f32 %v5352_v52, %v1846_v6 }
 0x25f   : > { %3329 = vst.msk [vmem:[%s4565_s4 + $0x1e0] sm:$0xf] %vm3208_vm3, %v3072_v0  ;;  %vm2368_vm15 = vcmp.gt.f32.partialorder %v2005_v3, 0.0  ;;  %v2624_v9 = vmul.f32 0.2, %v2005_v3  ;;  %vm2432_vm1 = vcmp.gt.f32.partialorder %v2165_v4, 0.0 }
 0x260   : > { %v2688_v10 = vmul.f32 0.2, %v2165_v4  ;;  %vm2241_vm2 = vcmp.gt.f32.partialorder %v1687_v7, 0.0  ;;  %v2497_v11 = vmul.f32 0.2, %v1687_v7  ;;  %vm2305_vm4 = vcmp.gt.f32.partialorder %v1847_v8, 0.0 }
 0x261   : > { %v2880_v12 = vsel %vm2368_vm15, %v2005_v3, %v2624_v9  ;;  %v2561_v13 = vmul.f32 0.2, %v1847_v8 }
 0x262   : > { %v3136_v14 = vpack.c.bf16 %v2880_v12, %v2880_v12  ;;  %v2944_v15 = vsel %vm2432_vm1, %v2165_v4, %v2688_v10  ;;  %v2753_v35 = vsel %vm2241_vm2, %v1687_v7, %v2497_v11 }
 0x263   : > { %v3200_v16 = vpack.c.bf16 %v2944_v15, %v2944_v15  ;;  %v3009_v17 = vpack.c.bf16 %v2753_v35, %v2753_v35  ;;  %v2817_v18 = vsel %vm2305_vm4, %v1847_v8, %v2561_v13 }
 0x264   : > { %3393 = vst.msk [vmem:[%s4565_s4 + $0x2e0] sm:$0xf] %vm3208_vm3, %v3136_v14  ;;  %v3073_v19 = vpack.c.bf16 %v2817_v18, %v2817_v18  ;;  %v2006_v20 = vpop.f32.mrf.mxu2  ;;  %v2166_v21 = vpop.f32.mrf.mxu3 }
 0x265   : > { %3457 = vst.msk [vmem:[%s4565_s4 + $0x3e0] sm:$0xf] %vm3208_vm3, %v3200_v16  ;;  %v2007_v22 = vadd.f32 %v5352_v52, %v2006_v20  ;;  %v2167_v23 = vadd.f32 %v5352_v52, %v2166_v21  ;;  %v1689_v25 = vpop.f32.mrf.mxu0  ;;  %v1849_v26 = vpop.f32.mrf.mxu1 }
 0x266   : > { %3266 = vst.msk [vmem:[%s4565_s4 + $0xe4] sm:$0xf] %vm3208_vm3, %v3009_v17  ;;  %v1690_v27 = vadd.f32 %v5352_v52, %v1689_v25  ;;  %v1850_v28 = vadd.f32 %v5352_v52, %v1849_v26 }
 0x267   : > { %3330 = vst.msk [vmem:[%s4565_s4 + $0x1e4] sm:$0xf] %vm3208_vm3, %v3073_v19  ;;  %vm2369_vm5 = vcmp.gt.f32.partialorder %v2007_v22, 0.0  ;;  %v2625_v29 = vmul.f32 0.2, %v2007_v22  ;;  %vm2433_vm0 = vcmp.gt.f32.partialorder %v2167_v23, 0.0 }
 0x268   : > { %v2689_v30 = vmul.f32 0.2, %v2167_v23  ;;  %vm2242_vm6 = vcmp.gt.f32.partialorder %v1690_v27, 0.0  ;;  %v2498_v31 = vmul.f32 0.2, %v1690_v27  ;;  %vm2306_vm7 = vcmp.gt.f32.partialorder %v1850_v28, 0.0 }
 0x269   : > { %v2881_v32 = vsel %vm2369_vm5, %v2007_v22, %v2625_v29  ;;  %v2562_v33 = vmul.f32 0.2, %v1850_v28 }
 0x26a   : > { %v3137_v34 = vpack.c.bf16 %v2881_v32, %v2881_v32  ;;  %v2945_v36 = vsel %vm2433_vm0, %v2167_v23, %v2689_v30  ;;  %v2754_v37 = vsel %vm2242_vm6, %v1690_v27, %v2498_v31 }
 0x26b   : > { %v3201_v38 = vpack.c.bf16 %v2945_v36, %v2945_v36  ;;  %v3010_v39 = vpack.c.bf16 %v2754_v37, %v2754_v37  ;;  %v2818_v40 = vsel %vm2306_vm7, %v1850_v28, %v2562_v33 }
 0x26c   : > { %3394 = vst.msk [vmem:[%s4565_s4 + $0x2e4] sm:$0xf] %vm3208_vm3, %v3137_v34  ;;  %v3074_v41 = vpack.c.bf16 %v2818_v40, %v2818_v40  ;;  %v2009_v42 = vpop.f32.mrf.mxu2  ;;  %v2169_v43 = vpop.f32.mrf.mxu3 }
 0x26d   : > { %3458 = vst.msk [vmem:[%s4565_s4 + $0x3e4] sm:$0xf] %vm3208_vm3, %v3201_v38  ;;  %v2010_v44 = vadd.f32 %v5352_v52, %v2009_v42  ;;  %v2170_v45 = vadd.f32 %v5352_v52, %v2169_v43  ;;  %v1691_v46 = vpop.f32.mrf.mxu0  ;;  %v1851_v47 = vpop.f32.mrf.mxu1 }
 0x26e   : > { %3267 = vst.msk [vmem:[%s4565_s4 + $0xe8] sm:$0xf] %vm3208_vm3, %v3010_v39  ;;  %v1692_v62 = vadd.f32 %v5352_v52, %v1691_v46  ;;  %v1852_v48 = vadd.f32 %v5352_v52, %v1851_v47 }
 0x26f   : > { %3331 = vst.msk [vmem:[%s4565_s4 + $0x1e8] sm:$0xf] %vm3208_vm3, %v3074_v41  ;;  %vm2370_vm8 = vcmp.gt.f32.partialorder %v2010_v44, 0.0  ;;  %v2626_v49 = vmul.f32 0.2, %v2010_v44  ;;  %vm2434_vm9 = vcmp.gt.f32.partialorder %v2170_v45, 0.0 }
 0x270   : > { %v2690_v50 = vmul.f32 0.2, %v2170_v45  ;;  %vm2243_vm10 = vcmp.gt.f32.partialorder %v1692_v62, 0.0  ;;  %v2499_v51 = vmul.f32 0.2, %v1692_v62  ;;  %vm2307_vm11 = vcmp.gt.f32.partialorder %v1852_v48, 0.0 }
 0x271   : > { %v2882_v53 = vsel %vm2370_vm8, %v2010_v44, %v2626_v49  ;;  %v2563_v24 = vmul.f32 0.2, %v1852_v48 }
 0x272   : > { %v3138_v54 = vpack.c.bf16 %v2882_v53, %v2882_v53  ;;  %v2946_v55 = vsel %vm2434_vm9, %v2170_v45, %v2690_v50  ;;  %v2755_v56 = vsel %vm2243_vm10, %v1692_v62, %v2499_v51 }
 0x273   : > { %v3202_v57 = vpack.c.bf16 %v2946_v55, %v2946_v55  ;;  %v3011_v58 = vpack.c.bf16 %v2755_v56, %v2755_v56  ;;  %v2819_v59 = vsel %vm2307_vm11, %v1852_v48, %v2563_v24 }
 0x274   : > { %3395 = vst.msk [vmem:[%s4565_s4 + $0x2e8] sm:$0xf] %vm3208_vm3, %v3138_v54  ;;  %v3075_v60 = vpack.c.bf16 %v2819_v59, %v2819_v59  ;;  %v2011_v61 = vpop.f32.mrf.mxu2  ;;  %v2171_v63 = vpop.f32.mrf.mxu3 }
 0x275   : > { %3459 = vst.msk [vmem:[%s4565_s4 + $0x3e8] sm:$0xf] %vm3208_vm3, %v3202_v57  ;;  %v2012_v0 = vadd.f32 %v5352_v52, %v2011_v61  ;;  %v2172_v1 = vadd.f32 %v5352_v52, %v2171_v63  ;;  %v1694_v2 = vpop.f32.mrf.mxu0  ;;  %v1854_v3 = vpop.f32.mrf.mxu1 }
 0x276   : > { %3268 = vst.msk [vmem:[%s4565_s4 + $0xec] sm:$0xf] %vm3208_vm3, %v3011_v58  ;;  %v1695_v4 = vadd.f32 %v5352_v52, %v1694_v2  ;;  %v1855_v5 = vadd.f32 %v5352_v52, %v1854_v3 }
 0x277   : > { %3332 = vst.msk [vmem:[%s4565_s4 + $0x1ec] sm:$0xf] %vm3208_vm3, %v3075_v60  ;;  %vm2371_vm12 = vcmp.gt.f32.partialorder %v2012_v0, 0.0  ;;  %v2627_v6 = vmul.f32 0.2, %v2012_v0  ;;  %vm2435_vm13 = vcmp.gt.f32.partialorder %v2172_v1, 0.0 }
 0x278   : > { %v2691_v7 = vmul.f32 0.2, %v2172_v1  ;;  %vm2244_vm14 = vcmp.gt.f32.partialorder %v1695_v4, 0.0  ;;  %v2500_v8 = vmul.f32 0.2, %v1695_v4  ;;  %vm2308_vm15 = vcmp.gt.f32.partialorder %v1855_v5, 0.0 }
 0x279   : > { %v2883_v9 = vsel %vm2371_vm12, %v2012_v0, %v2627_v6  ;;  %v2564_v10 = vmul.f32 0.2, %v1855_v5 }
 0x27a   : > { %v3139_v11 = vpack.c.bf16 %v2883_v9, %v2883_v9  ;;  %v2947_v12 = vsel %vm2435_vm13, %v2172_v1, %v2691_v7  ;;  %v2756_v13 = vsel %vm2244_vm14, %v1695_v4, %v2500_v8 }
 0x27b   : > { %v3203_v14 = vpack.c.bf16 %v2947_v12, %v2947_v12  ;;  %v3012_v15 = vpack.c.bf16 %v2756_v13, %v2756_v13  ;;  %v2820_v35 = vsel %vm2308_vm15, %v1855_v5, %v2564_v10 }
 0x27c   : > { %3396 = vst.msk [vmem:[%s4565_s4 + $0x2ec] sm:$0xf] %vm3208_vm3, %v3139_v11  ;;  %v3076_v16 = vpack.c.bf16 %v2820_v35, %v2820_v35  ;;  %v2014_v17 = vpop.f32.mrf.mxu2  ;;  %v2174_v18 = vpop.f32.mrf.mxu3 }
 0x27d   : > { %3460 = vst.msk [vmem:[%s4565_s4 + $0x3ec] sm:$0xf] %vm3208_vm3, %v3203_v14  ;;  %v2015_v19 = vadd.f32 %v5352_v52, %v2014_v17  ;;  %v2175_v20 = vadd.f32 %v5352_v52, %v2174_v18  ;;  %v1696_v21 = vpop.f32.mrf.mxu0  ;;  %v1856_v22 = vpop.f32.mrf.mxu1 }
 0x27e   : > { %3269 = vst.msk [vmem:[%s4565_s4 + $0xf0] sm:$0xf] %vm3208_vm3, %v3012_v15  ;;  %v1697_v23 = vadd.f32 %v5352_v52, %v1696_v21  ;;  %v1857_v25 = vadd.f32 %v5352_v52, %v1856_v22 }
 0x27f   : > { %3333 = vst.msk [vmem:[%s4565_s4 + $0x1f0] sm:$0xf] %vm3208_vm3, %v3076_v16  ;;  %vm2372_vm1 = vcmp.gt.f32.partialorder %v2015_v19, 0.0  ;;  %v2628_v26 = vmul.f32 0.2, %v2015_v19  ;;  %vm2436_vm2 = vcmp.gt.f32.partialorder %v2175_v20, 0.0 }
 0x280   : > { %v2692_v27 = vmul.f32 0.2, %v2175_v20  ;;  %vm2245_vm4 = vcmp.gt.f32.partialorder %v1697_v23, 0.0  ;;  %v2501_v28 = vmul.f32 0.2, %v1697_v23  ;;  %vm2309_vm5 = vcmp.gt.f32.partialorder %v1857_v25, 0.0 }
 0x281   : > { %v2884_v29 = vsel %vm2372_vm1, %v2015_v19, %v2628_v26  ;;  %v2565_v30 = vmul.f32 0.2, %v1857_v25 }
 0x282   : > { %v3140_v31 = vpack.c.bf16 %v2884_v29, %v2884_v29  ;;  %v2948_v32 = vsel %vm2436_vm2, %v2175_v20, %v2692_v27  ;;  %v2757_v33 = vsel %vm2245_vm4, %v1697_v23, %v2501_v28 }
 0x283   : > { %v3204_v34 = vpack.c.bf16 %v2948_v32, %v2948_v32  ;;  %v3013_v36 = vpack.c.bf16 %v2757_v33, %v2757_v33  ;;  %v2821_v37 = vsel %vm2309_vm5, %v1857_v25, %v2565_v30 }
 0x284   : > { %3397 = vst.msk [vmem:[%s4565_s4 + $0x2f0] sm:$0xf] %vm3208_vm3, %v3140_v31  ;;  %v3077_v38 = vpack.c.bf16 %v2821_v37, %v2821_v37  ;;  %v2016_v39 = vpop.f32.mrf.mxu2  ;;  %v2176_v40 = vpop.f32.mrf.mxu3 }
 0x285   : > { %3461 = vst.msk [vmem:[%s4565_s4 + $0x3f0] sm:$0xf] %vm3208_vm3, %v3204_v34  ;;  %v2017_v41 = vadd.f32 %v5352_v52, %v2016_v39  ;;  %v2177_v42 = vadd.f32 %v5352_v52, %v2176_v40  ;;  %v1699_v43 = vpop.f32.mrf.mxu0  ;;  %v1859_v44 = vpop.f32.mrf.mxu1 }
 0x286   : > { %3270 = vst.msk [vmem:[%s4565_s4 + $0xf4] sm:$0xf] %vm3208_vm3, %v3013_v36  ;;  %v1700_v45 = vadd.f32 %v5352_v52, %v1699_v43  ;;  %v1860_v46 = vadd.f32 %v5352_v52, %v1859_v44 }
 0x287   : > { %3334 = vst.msk [vmem:[%s4565_s4 + $0x1f4] sm:$0xf] %vm3208_vm3, %v3077_v38  ;;  %vm2373_vm0 = vcmp.gt.f32.partialorder %v2017_v41, 0.0  ;;  %v2629_v47 = vmul.f32 0.2, %v2017_v41  ;;  %vm2437_vm6 = vcmp.gt.f32.partialorder %v2177_v42, 0.0 }
 0x288   : > { %v2693_v62 = vmul.f32 0.2, %v2177_v42  ;;  %vm2246_vm7 = vcmp.gt.f32.partialorder %v1700_v45, 0.0  ;;  %v2502_v48 = vmul.f32 0.2, %v1700_v45  ;;  %vm2310_vm8 = vcmp.gt.f32.partialorder %v1860_v46, 0.0 }
 0x289   : > { %v2885_v49 = vsel %vm2373_vm0, %v2017_v41, %v2629_v47  ;;  %v2566_v50 = vmul.f32 0.2, %v1860_v46 }
 0x28a   : > { %v3141_v51 = vpack.c.bf16 %v2885_v49, %v2885_v49  ;;  %v2949_v53 = vsel %vm2437_vm6, %v2177_v42, %v2693_v62  ;;  %v2758_v24 = vsel %vm2246_vm7, %v1700_v45, %v2502_v48 }
 0x28b   : > { %v3205_v54 = vpack.c.bf16 %v2949_v53, %v2949_v53  ;;  %v3014_v55 = vpack.c.bf16 %v2758_v24, %v2758_v24  ;;  %v2822_v56 = vsel %vm2310_vm8, %v1860_v46, %v2566_v50 }
 0x28c   : > { %3398 = vst.msk [vmem:[%s4565_s4 + $0x2f4] sm:$0xf] %vm3208_vm3, %v3141_v51  ;;  %v3078_v57 = vpack.c.bf16 %v2822_v56, %v2822_v56  ;;  %v2019_v58 = vpop.f32.mrf.mxu2  ;;  %v2179_v59 = vpop.f32.mrf.mxu3 }
 0x28d   : > { %3462 = vst.msk [vmem:[%s4565_s4 + $0x3f4] sm:$0xf] %vm3208_vm3, %v3205_v54  ;;  %v2020_v60 = vadd.f32 %v5352_v52, %v2019_v58  ;;  %v2180_v61 = vadd.f32 %v5352_v52, %v2179_v59  ;;  %v1701_v63 = vpop.f32.mrf.mxu0  ;;  %v1861_v0 = vpop.f32.mrf.mxu1 }
 0x28e   : > { %3271 = vst.msk [vmem:[%s4565_s4 + $0xf8] sm:$0xf] %vm3208_vm3, %v3014_v55  ;;  %v1702_v1 = vadd.f32 %v5352_v52, %v1701_v63  ;;  %v1862_v2 = vadd.f32 %v5352_v52, %v1861_v0 }
 0x28f   : > { %3335 = vst.msk [vmem:[%s4565_s4 + $0x1f8] sm:$0xf] %vm3208_vm3, %v3078_v57  ;;  %vm2374_vm9 = vcmp.gt.f32.partialorder %v2020_v60, 0.0  ;;  %v2630_v3 = vmul.f32 0.2, %v2020_v60  ;;  %vm2438_vm10 = vcmp.gt.f32.partialorder %v2180_v61, 0.0 }
 0x290   : > { %v2694_v4 = vmul.f32 0.2, %v2180_v61  ;;  %vm2247_vm11 = vcmp.gt.f32.partialorder %v1702_v1, 0.0  ;;  %v2503_v5 = vmul.f32 0.2, %v1702_v1  ;;  %vm2311_vm12 = vcmp.gt.f32.partialorder %v1862_v2, 0.0 }
 0x291   : > { %v2886_v6 = vsel %vm2374_vm9, %v2020_v60, %v2630_v3  ;;  %v2567_v7 = vmul.f32 0.2, %v1862_v2 }
 0x292   : > { %v3142_v8 = vpack.c.bf16 %v2886_v6, %v2886_v6  ;;  %v2950_v9 = vsel %vm2438_vm10, %v2180_v61, %v2694_v4  ;;  %v2759_v10 = vsel %vm2247_vm11, %v1702_v1, %v2503_v5 }
 0x293   : > { %v3206_v11 = vpack.c.bf16 %v2950_v9, %v2950_v9  ;;  %v3015_v12 = vpack.c.bf16 %v2759_v10, %v2759_v10  ;;  %v2823_v13 = vsel %vm2311_vm12, %v1862_v2, %v2567_v7 }
 0x294   : > { %3399 = vst.msk [vmem:[%s4565_s4 + $0x2f8] sm:$0xf] %vm3208_vm3, %v3142_v8  ;;  %v3079_v14 = vpack.c.bf16 %v2823_v13, %v2823_v13  ;;  %v2021_v15 = vpop.f32.mrf.mxu2  ;;  %v2181_v35 = vpop.f32.mrf.mxu3 }
 0x295   : > { %3463 = vst.msk [vmem:[%s4565_s4 + $0x3f8] sm:$0xf] %vm3208_vm3, %v3206_v11  ;;  %v2022_v16 = vadd.f32 %v5352_v52, %v2021_v15  ;;  %v2182_v17 = vadd.f32 %v5352_v52, %v2181_v35 }
 0x296   : > { %3272 = vst.msk [vmem:[%s4565_s4 + $0xfc] sm:$0xf] %vm3208_vm3, %v3015_v12 }
 0x297   : > { %3336 = vst.msk [vmem:[%s4565_s4 + $0x1fc] sm:$0xf] %vm3208_vm3, %v3079_v14  ;;  %vm2375_vm13 = vcmp.gt.f32.partialorder %v2022_v16, 0.0  ;;  %v2631_v18 = vmul.f32 0.2, %v2022_v16  ;;  %vm2439_vm14 = vcmp.gt.f32.partialorder %v2182_v17, 0.0 }
 0x298   : > { %v2695_v19 = vmul.f32 0.2, %v2182_v17 }
 0x299   : > { %v2887_v20 = vsel %vm2375_vm13, %v2022_v16, %v2631_v18 }
 0x29a   : > { %v3143_v21 = vpack.c.bf16 %v2887_v20, %v2887_v20  ;;  %v2951_v22 = vsel %vm2439_vm14, %v2182_v17, %v2695_v19 }
 0x29b   : > { %v3207_v23 = vpack.c.bf16 %v2951_v22, %v2951_v22 }
 0x29c   : > { %3400 = vst.msk [vmem:[%s4565_s4 + $0x2fc] sm:$0xf] %vm3208_vm3, %v3143_v21 }
 0x29d   : > { %3464 = vst.msk [vmem:[%s4565_s4 + $0x3fc] sm:$0xf] %vm3208_vm3, %v3207_v23 }
 0x29e PF: > { %s13_s14 = sadd.s32 1, %s4422_s14   ;;  %s5545_s12 = smov %s4418_s13 }
 0x29f   : > { %p10_p5 = scmp.ge.s32.totalorder %s13_s14, 6   ;;  %s5546_s13 = smov %s5548_s15 }
 0x2a1   :  { %12 = sbr.rel (!%p10_p5) target bundleno = 2 (0x2), region = 68 }

// kernel: discriminator_forward.6
= control target key start
LH: loop header
LB: loop body
LE: loop exit
PB: predicated region body
PF: predicated region fallthrough
CT: control target
= control target key end

     0   :  { %s3351_s12 = smov 0   ;;  %s3353_s13 = smov 0   ;;  %s4098_s0 = inlined_call_operand.vmem [shape: bf16[2048,256], index: 0, kind: input, shape index: {}]   ;;  %s4099_s1 = inlined_call_operand.vmem [shape: bf16[256,32], index: 1, kind: input, shape index: {}]   ;;  %s4100_s2 = inlined_call_operand.vmem [shape: f32[1,32], index: 2, kind: input, shape index: {}]   ;;  %s4101_s3 = inlined_call_operand.vmem [shape: bf16[2048,32], index: 3, kind: output, shape index: {}]  }
   0x1   :  { %s3355_s14 = smov 0  }
   0x2 LB: > { %s25_s15 = sadd.s32 1, %s3325_s13  ;;  %p2535_p0 = scmp.ge.s32.totalorder %s3329_s14, 1  ;;  %s3329_s14 = sphi %s3355_s14, %s13_s14   ;;  %s3325_s13 = sphi %s3353_s13, %s4103_s13   ;;  %s3321_s12 = sphi %s3351_s12, %s4102_s12  }
   0x3   : > { %p27_p1 = scmp.ge.s32.totalorder %s25_s15, 2  ;;  %p170_p2 = scmp.lt.s32.totalorder %s3329_s14, 3 }
   0x5   : > { %s4105_s15 = smov (%p27_p1, %s25_s15), 0  ;;  %p171_p3 = pnand %p2535_p0, %p170_p2 }
   0x6   : > { %s2536_s28 = sshll.u32 (!%p171_p3), %s3321_s12, 7 }
   0x7   : > { %174 = sbr.rel (%p171_p3) target bundleno = 690 (0x2b2), region = 32  ;;  %p206_p4 = scmp.lt.s32.totalorder (!%p171_p3), %s2536_s28, 255 }
   0xc   : > { %v3255_v0 = vld [vmem:[%s4099_s1 + $0x38] sm:$0xff]  ;;  %v3254_v2 = vld [vmem:[%s4099_s1 + $0x30] sm:$0xff]  ;;  %v3253_v4 = vld [vmem:[%s4099_s1 + $0x28] sm:$0xff]  ;;  %s4107_s28 = smov (!%p206_p4, %s2536_s28), 255  ;;  %vm2298_vm1 = vcmask 257024  }
   0xd   : > { %v3263_v1 = vld [vmem:[%s4099_s1 + $0x78] sm:$0xff]  ;;  %1128 = vmatpush.bf16.msra.mxu0 %v3255_v0  ;;  %3264 = vmatpush.bf16.msra.mxu2 %v3255_v0  ;;  %v3262_v3 = vld [vmem:[%s4099_s1 + $0x70] sm:$0xff]  ;;  %v3261_v5 = vld [vmem:[%s4099_s1 + $0x68] sm:$0xff]  ;;  %s3119_s17 = sshll.u32 %s4107_s28, 3  ;;  %s2540_s5 = sshll.u32 %s4107_s28, 2 }
   0xe   : > { %1457 = vmatpush.bf16.msra.mxu1 %v3263_v1  ;;  %3272 = vmatpush.bf16.msra.mxu3 %v3263_v1  ;;  %v3252_v6 = vld [vmem:[%s4099_s1 + $0x20] sm:$0xff]  ;;  %v3251_v8 = vld [vmem:[%s4099_s1 + $0x18] sm:$0xff]  ;;  %v3250_v10 = vld [vmem:[%s4099_s1 + $0x10] sm:$0xff]  ;;  %s3417_s22 = scalar_lea.vmem %s4098_s0, %s3119_s17  ;;  %s3510_s8 = scalar_lea.vmem %s4101_s3, %s2540_s5 }
   0xf   : > { %v3260_v7 = vld [vmem:[%s4099_s1 + $0x60] sm:$0xff]  ;;  %v3259_v9 = vld [vmem:[%s4099_s1 + $0x58] sm:$0xff]  ;;  %v3258_v11 = vld [vmem:[%s4099_s1 + $0x50] sm:$0xff] }
  0x10   : > { %v3249_v12 = vld [vmem:[%s4099_s1 + $0x8] sm:$0xff]  ;;  %v3248_v14 = vld [vmem:[%s4099_s1] sm:$0xff]  ;;  %v2551_v28 = vld [vmem:[%s3417_s22 + $0x10] sm:$0xf] }
  0x11   : > { %1129 = vmatpush.bf16.msra.mxu0 %v3254_v2  ;;  %3265 = vmatpush.bf16.msra.mxu2 %v3254_v2  ;;  %v3257_v13 = vld [vmem:[%s4099_s1 + $0x48] sm:$0xff]  ;;  %v3256_v15 = vld [vmem:[%s4099_s1 + $0x40] sm:$0xff]  ;;  %v3123_v29 = vld [vmem:[%s3417_s22 + $0x14] sm:$0xf0] }
  0x12   : > { %1458 = vmatpush.bf16.msra.mxu1 %v3262_v3  ;;  %3273 = vmatpush.bf16.msra.mxu3 %v3262_v3  ;;  %v2543_v16 = vld [vmem:[%s3417_s22] sm:$0xf]  ;;  %v3121_v17 = vld [vmem:[%s3417_s22 + $0x4] sm:$0xf0]  ;;  %v3120_v20 = vld [vmem:[%s3417_s22 + $0x4] sm:$0xf]  ;;  %v2552_v36 = vor.u32 %v3123_v29, %v2551_v28 }
  0x13   : > { %v2799_v18 = vld [vmem:[%s3417_s22 + $0x200] sm:$0xf]  ;;  %v3185_v19 = vld [vmem:[%s3417_s22 + $0x204] sm:$0xf0]  ;;  %v2545_v21 = vld [vmem:[%s3417_s22 + $0x8] sm:$0xf0]  ;;  %v2544_v24 = vor.u32 %v3121_v17, %v2543_v16 }
  0x14   : > { %v3184_v22 = vld [vmem:[%s3417_s22 + $0x204] sm:$0xf]  ;;  %v2801_v23 = vld [vmem:[%s3417_s22 + $0x208] sm:$0xf0]  ;;  %v2800_v25 = vor.u32 %v3185_v19, %v2799_v18  ;;  %v2548_v26 = vor.u32 %v3120_v20, %v2545_v21  ;;  %v2807_v30 = vld [vmem:[%s3417_s22 + $0x210] sm:$0xf] }
  0x15   : > { %1130 = vmatpush.bf16.msra.mxu0 %v3253_v4  ;;  %3266 = vmatpush.bf16.msra.mxu2 %v3253_v4  ;;  %v2804_v27 = vor.u32 %v3184_v22, %v2801_v23  ;;  %v3187_v31 = vld [vmem:[%s3417_s22 + $0x214] sm:$0xf0]  ;;  %v3122_v32 = vld [vmem:[%s3417_s22 + $0x14] sm:$0xf]  ;;  %v2553_v33 = vld [vmem:[%s3417_s22 + $0x18] sm:$0xf0] }
  0x16   : > { %1459 = vmatpush.bf16.msra.mxu1 %v3261_v5  ;;  %3274 = vmatpush.bf16.msra.mxu3 %v3261_v5  ;;  %v3186_v34 = vld [vmem:[%s3417_s22 + $0x214] sm:$0xf]  ;;  %v2809_v35 = vld [vmem:[%s3417_s22 + $0x218] sm:$0xf0]  ;;  %v2808_v37 = vor.u32 %v3187_v31, %v2807_v30  ;;  %v2556_v38 = vor.u32 %v3122_v32, %v2553_v33  ;;  %v2559_v40 = vld [vmem:[%s3417_s22 + $0x20] sm:$0xf] }
  0x17   : > { %v2812_v39 = vor.u32 %v3186_v34, %v2809_v35  ;;  %v3125_v41 = vld [vmem:[%s3417_s22 + $0x24] sm:$0xf0]  ;;  %v2815_v42 = vld [vmem:[%s3417_s22 + $0x220] sm:$0xf]  ;;  %v3124_v44 = vld [vmem:[%s3417_s22 + $0x24] sm:$0xf] }
  0x18   : > { %v3189_v43 = vld [vmem:[%s3417_s22 + $0x224] sm:$0xf0]  ;;  %v2561_v45 = vld [vmem:[%s3417_s22 + $0x28] sm:$0xf0]  ;;  %v3188_v46 = vld [vmem:[%s3417_s22 + $0x224] sm:$0xf]  ;;  %v2560_v48 = vor.u32 %v3125_v41, %v2559_v40 }
  0x19   : > { %1131 = vmatpush.bf16.msra.mxu0 %v3252_v6  ;;  %3267 = vmatpush.bf16.msra.mxu2 %v3252_v6  ;;  %v2817_v47 = vld [vmem:[%s3417_s22 + $0x228] sm:$0xf0]  ;;  %v2816_v49 = vor.u32 %v3189_v43, %v2815_v42  ;;  %v2564_v50 = vor.u32 %v3124_v44, %v2561_v45  ;;  %v2567_v52 = vld [vmem:[%s3417_s22 + $0x30] sm:$0xf]  ;;  %v3127_v53 = vld [vmem:[%s3417_s22 + $0x34] sm:$0xf0] }
  0x1a   : > { %1460 = vmatpush.bf16.msra.mxu1 %v3260_v7  ;;  %3275 = vmatpush.bf16.msra.mxu3 %v3260_v7  ;;  %v2820_v51 = vor.u32 %v3188_v46, %v2817_v47  ;;  %v2823_v54 = vld [vmem:[%s3417_s22 + $0x230] sm:$0xf]  ;;  %v3191_v55 = vld [vmem:[%s3417_s22 + $0x234] sm:$0xf0]  ;;  %v3126_v56 = vld [vmem:[%s3417_s22 + $0x34] sm:$0xf]  ;;  %v2568_v60 = vor.u32 %v3127_v53, %v2567_v52 }
  0x1b   : > { %v2569_v57 = vld [vmem:[%s3417_s22 + $0x38] sm:$0xf0]  ;;  %v3190_v58 = vld [vmem:[%s3417_s22 + $0x234] sm:$0xf]  ;;  %v2824_v61 = vor.u32 %v3191_v55, %v2823_v54  ;;  %v2575_v0 = vld [vmem:[%s3417_s22 + $0x40] sm:$0xf] }
  0x1c   : > { %v2825_v59 = vld [vmem:[%s3417_s22 + $0x238] sm:$0xf0]  ;;  %v2572_v62 = vor.u32 %v3126_v56, %v2569_v57  ;;  %v3129_v1 = vld [vmem:[%s3417_s22 + $0x44] sm:$0xf0]  ;;  %v2831_v2 = vld [vmem:[%s3417_s22 + $0x240] sm:$0xf] }
  0x1d   : > { %1132 = vmatpush.bf16.msra.mxu0 %v3251_v8  ;;  %3268 = vmatpush.bf16.msra.mxu2 %v3251_v8  ;;  %v2828_v63 = vor.u32 %v3190_v58, %v2825_v59  ;;  %v3193_v3 = vld [vmem:[%s3417_s22 + $0x244] sm:$0xf0]  ;;  %v3128_v4 = vld [vmem:[%s3417_s22 + $0x44] sm:$0xf]  ;;  %v2577_v5 = vld [vmem:[%s3417_s22 + $0x48] sm:$0xf0]  ;;  %v2576_v8 = vor.u32 %v3129_v1, %v2575_v0 }
  0x1e   : > { %1461 = vmatpush.bf16.msra.mxu1 %v3259_v9  ;;  %3276 = vmatpush.bf16.msra.mxu3 %v3259_v9  ;;  %v3192_v6 = vld [vmem:[%s3417_s22 + $0x244] sm:$0xf]  ;;  %v2833_v7 = vld [vmem:[%s3417_s22 + $0x248] sm:$0xf0]  ;;  %v2832_v9 = vor.u32 %v3193_v3, %v2831_v2  ;;  %v3130_v16 = vld [vmem:[%s3417_s22 + $0x54] sm:$0xf] }
  0x1f   : > { %v2585_v17 = vld [vmem:[%s3417_s22 + $0x58] sm:$0xf0]  ;;  %v3194_v18 = vld [vmem:[%s3417_s22 + $0x254] sm:$0xf]  ;;  %v3132_v28 = vld [vmem:[%s3417_s22 + $0x64] sm:$0xf] }
  0x20   : > { %v2841_v19 = vld [vmem:[%s3417_s22 + $0x258] sm:$0xf0]  ;;  %v2588_v22 = vor.u32 %v3130_v16, %v2585_v17  ;;  %v2593_v29 = vld [vmem:[%s3417_s22 + $0x68] sm:$0xf0]  ;;  %v3196_v30 = vld [vmem:[%s3417_s22 + $0x264] sm:$0xf] }
  0x21   : > { %1133 = vmatpush.bf16.msra.mxu0 %v3250_v10  ;;  %3269 = vmatpush.bf16.msra.mxu2 %v3250_v10  ;;  %v2580_v10 = vor.u32 %v3128_v4, %v2577_v5  ;;  %v2844_v23 = vor.u32 %v3194_v18, %v2841_v19  ;;  %v2849_v31 = vld [vmem:[%s3417_s22 + $0x268] sm:$0xf0]  ;;  %v2596_v34 = vor.u32 %v3132_v28, %v2593_v29  ;;  %v3134_v40 = vld [vmem:[%s3417_s22 + $0x74] sm:$0xf]  ;;  %v2601_v41 = vld [vmem:[%s3417_s22 + $0x78] sm:$0xf0] }
  0x22   : > { %1462 = vmatpush.bf16.msra.mxu1 %v3258_v11  ;;  %3277 = vmatpush.bf16.msra.mxu3 %v3258_v11  ;;  %v2836_v11 = vor.u32 %v3192_v6, %v2833_v7  ;;  %v2852_v35 = vor.u32 %v3196_v30, %v2849_v31  ;;  %v3198_v42 = vld [vmem:[%s3417_s22 + $0x274] sm:$0xf]  ;;  %v2857_v43 = vld [vmem:[%s3417_s22 + $0x278] sm:$0xf0]  ;;  %v2604_v46 = vor.u32 %v3134_v40, %v2601_v41  ;;  %v3201_v52 = vld [vmem:[%s3417_s22 + $0x284] sm:$0xf0] }
  0x23   : > { %v2860_v47 = vor.u32 %v3198_v42, %v2857_v43  ;;  %v3136_v53 = vld [vmem:[%s3417_s22 + $0x84] sm:$0xf]  ;;  %v2609_v54 = vld [vmem:[%s3417_s22 + $0x88] sm:$0xf0]  ;;  %v3203_v16 = vld [vmem:[%s3417_s22 + $0x294] sm:$0xf0] }
  0x24   : > { %v3200_v55 = vld [vmem:[%s3417_s22 + $0x284] sm:$0xf]  ;;  %v2865_v56 = vld [vmem:[%s3417_s22 + $0x288] sm:$0xf0]  ;;  %v3138_v17 = vld [vmem:[%s3417_s22 + $0x94] sm:$0xf] }
  0x25   : > { %1134 = vmatpush.bf16.msra.mxu0 %v3249_v12  ;;  %3270 = vmatpush.bf16.msra.mxu2 %v3249_v12  ;;  %v2583_v12 = vld [vmem:[%s3417_s22 + $0x50] sm:$0xf]  ;;  %v2617_v18 = vld [vmem:[%s3417_s22 + $0x98] sm:$0xf0]  ;;  %v3202_v19 = vld [vmem:[%s3417_s22 + $0x294] sm:$0xf] }
  0x26   : > { %1463 = vmatpush.bf16.msra.mxu1 %v3257_v13  ;;  %3278 = vmatpush.bf16.msra.mxu3 %v3257_v13  ;;  %v3131_v13 = vld [vmem:[%s3417_s22 + $0x54] sm:$0xf0] }
  0x27   : > { %v2584_v20 = vor.u32 %v3131_v13, %v2583_v12  ;;  %v3139_v12 = vld [vmem:[%s3417_s22 + $0x94] sm:$0xf0]  ;;  %v2871_v13 = vld [vmem:[%s3417_s22 + $0x290] sm:$0xf] }
  0x28   : > { %v2872_v29 = vor.u32 %v3203_v16, %v2871_v13 }
  0x29   : > { %1135 = vmatpush.bf16.msra.mxu0 %v3248_v14  ;;  %3271 = vmatpush.bf16.msra.mxu2 %v3248_v14  ;;  %v2839_v14 = vld [vmem:[%s3417_s22 + $0x250] sm:$0xf] }
  0x2a   : > { %1464 = vmatpush.bf16.msra.mxu1 %v3256_v15  ;;  %3279 = vmatpush.bf16.msra.mxu3 %v3256_v15  ;;  %v3195_v15 = vld [vmem:[%s3417_s22 + $0x254] sm:$0xf0] }
  0x2b   : > { %v2840_v21 = vor.u32 %v3195_v15, %v2839_v14 }
  0x2c   : > { %1136 = vmatmul.bf16.vlgmr.msra.gmra.mxu0 %v2544_v24  ;;  %1296 = vmatmul.bf16.vlgmr.msra.gmra.mxu2 %v2800_v25  ;;  %v2591_v24 = vld [vmem:[%s3417_s22 + $0x60] sm:$0xf]  ;;  %v3133_v25 = vld [vmem:[%s3417_s22 + $0x64] sm:$0xf0] }
  0x2d   : > { %1465 = vmatmul.bf16.vlgmr.msra.gmra.mxu1 %v2548_v26  ;;  %1625 = vmatmul.bf16.vlgmr.msra.gmra.mxu3 %v2804_v27  ;;  %v2847_v26 = vld [vmem:[%s3417_s22 + $0x260] sm:$0xf]  ;;  %v3197_v27 = vld [vmem:[%s3417_s22 + $0x264] sm:$0xf0]  ;;  %v2592_v32 = vor.u32 %v3133_v25, %v2591_v24 }
  0x2e   : > { %v2848_v33 = vor.u32 %v3197_v27, %v2847_v26 }
  0x3c   : > { %1141 = vmatmul.bf16.gmra.mxu0 %v2552_v36  ;;  %1301 = vmatmul.bf16.gmra.mxu2 %v2808_v37  ;;  %v2599_v36 = vld [vmem:[%s3417_s22 + $0x70] sm:$0xf]  ;;  %v3135_v37 = vld [vmem:[%s3417_s22 + $0x74] sm:$0xf0] }
  0x3d   : > { %1470 = vmatmul.bf16.gmra.mxu1 %v2556_v38  ;;  %1630 = vmatmul.bf16.gmra.mxu3 %v2812_v39  ;;  %v2855_v38 = vld [vmem:[%s3417_s22 + $0x270] sm:$0xf]  ;;  %v3199_v39 = vld [vmem:[%s3417_s22 + $0x274] sm:$0xf0]  ;;  %v2600_v44 = vor.u32 %v3135_v37, %v2599_v36 }
  0x3e   : > { %v2856_v45 = vor.u32 %v3199_v39, %v2855_v38 }
  0x4c   : > { %1146 = vmatmul.bf16.gmra.mxu0 %v2560_v48  ;;  %1306 = vmatmul.bf16.gmra.mxu2 %v2816_v49  ;;  %v3495_v48 = vld [vmem:[%s4100_s2] ss:$0 sm:$0xff] }
  0x4d   : > { %1475 = vmatmul.bf16.gmra.mxu1 %v2564_v50  ;;  %1635 = vmatmul.bf16.gmra.mxu3 %v2820_v51  ;;  %v2607_v49 = vld [vmem:[%s3417_s22 + $0x80] sm:$0xf]  ;;  %v3137_v50 = vld [vmem:[%s3417_s22 + $0x84] sm:$0xf0] }
  0x4e   : > { %v2863_v51 = vld [vmem:[%s3417_s22 + $0x280] sm:$0xf]  ;;  %v2608_v57 = vor.u32 %v3137_v50, %v2607_v49 }
  0x4f   : > { %v2864_v58 = vor.u32 %v3201_v52, %v2863_v51  ;;  %v2623_v52 = vld [vmem:[%s3417_s22 + $0xa0] sm:$0xf] }
  0x5c   : > { %1151 = vmatmul.bf16.gmra.mxu0 %v2568_v60  ;;  %1311 = vmatmul.bf16.gmra.mxu2 %v2824_v61  ;;  %v2612_v60 = vor.u32 %v3136_v53, %v2609_v54  ;;  %v2868_v61 = vor.u32 %v3200_v55, %v2865_v56  ;;  %v3141_v53 = vld [vmem:[%s3417_s22 + $0xa4] sm:$0xf0]  ;;  %v2879_v54 = vld [vmem:[%s3417_s22 + $0x2a0] sm:$0xf] }
  0x5d   : > { %1480 = vmatmul.bf16.gmra.mxu1 %v2572_v62  ;;  %1640 = vmatmul.bf16.gmra.mxu3 %v2828_v63 }
  0x6c   : > { %1156 = vmatmul.bf16.gmra.mxu0 %v2576_v8  ;;  %1316 = vmatmul.bf16.gmra.mxu2 %v2832_v9 }
  0x6d   : > { %1485 = vmatmul.bf16.gmra.mxu1 %v2580_v10  ;;  %1645 = vmatmul.bf16.gmra.mxu3 %v2836_v11  ;;  %v2615_v11 = vld [vmem:[%s3417_s22 + $0x90] sm:$0xf] }
  0x6e   : > { %v2616_v28 = vor.u32 %v3139_v12, %v2615_v11 }
  0x7c   : > { %1161 = vmatmul.bf16.gmra.mxu0 %v2584_v20  ;;  %1321 = vmatmul.bf16.gmra.mxu2 %v2840_v21 }
  0x7d   : > { %1490 = vmatmul.bf16.gmra.mxu1 %v2588_v22  ;;  %1650 = vmatmul.bf16.gmra.mxu3 %v2844_v23  ;;  %v2873_v22 = vld [vmem:[%s3417_s22 + $0x298] sm:$0xf0] }
  0x8c   : > { %1166 = vmatmul.bf16.gmra.mxu0 %v2592_v32  ;;  %1326 = vmatmul.bf16.gmra.mxu2 %v2848_v33  ;;  %v2620_v32 = vor.u32 %v3138_v17, %v2617_v18  ;;  %v2876_v33 = vor.u32 %v3202_v19, %v2873_v22 }
  0x8d   : > { %1495 = vmatmul.bf16.gmra.mxu1 %v2596_v34  ;;  %1655 = vmatmul.bf16.gmra.mxu3 %v2852_v35 }
  0x9c   : > { %1171 = vmatmul.bf16.gmra.mxu0 %v2600_v44  ;;  %1331 = vmatmul.bf16.gmra.mxu2 %v2856_v45 }
  0x9d   : > { %1500 = vmatmul.bf16.gmra.mxu1 %v2604_v46  ;;  %1660 = vmatmul.bf16.gmra.mxu3 %v2860_v47 }
  0xa9   : > { %v1137_v59 = vpop.f32.mrf.mxu0 }
  0xaa   : > { %v1138_v62 = vadd.f32 %v3495_v48, %v1137_v59  ;;  %v1466_v63 = vpop.f32.mrf.mxu1  ;;  %v2625_v59 = vld [vmem:[%s3417_s22 + $0xa8] sm:$0xf0] }
  0xac   : > { %v1467_v0 = vadd.f32 %v1466_v63, %v1138_v62  ;;  %1176 = vmatmul.bf16.gmra.mxu0 %v2608_v57  ;;  %1336 = vmatmul.bf16.gmra.mxu2 %v2864_v58  ;;  %v3205_v57 = vld [vmem:[%s3417_s22 + $0x2a4] sm:$0xf0]  ;;  %v3140_v58 = vld [vmem:[%s3417_s22 + $0xa4] sm:$0xf]  ;;  %v2881_v63 = vld [vmem:[%s3417_s22 + $0x2a8] sm:$0xf0] }
  0xad   : > { %1505 = vmatmul.bf16.gmra.mxu1 %v2612_v60  ;;  %1665 = vmatmul.bf16.gmra.mxu3 %v2868_v61  ;;  %v3204_v60 = vld [vmem:[%s3417_s22 + $0x2a4] sm:$0xf] }
  0xae   : > { %vm1786_vm0 = vcmp.gt.f32.partialorder %v1467_v0, 0.0  ;;  %v1914_v1 = vmul.f32 0.2, %v1467_v0 }
  0xaf   : > { %v1297_v2 = vpop.f32.mrf.mxu2 }
  0xb0   : > { %v2042_v3 = vsel %vm1786_vm0, %v1467_v0, %v1914_v1  ;;  %v1298_v4 = vadd.f32 %v3495_v48, %v1297_v2  ;;  %v1626_v5 = vpop.f32.mrf.mxu3 }
  0xb1   : > { %v2170_v6 = vpack.c.bf16 %v2042_v3, %v2042_v3  ;;  %v1139_v7 = vpop.f32.mrf.mxu0 }
  0xb2   : > { %v1627_v8 = vadd.f32 %v1626_v5, %v1298_v4  ;;  %v1140_v9 = vadd.f32 %v3495_v48, %v1139_v7  ;;  %v1468_v10 = vpop.f32.mrf.mxu1  ;;  %v2624_v5 = vor.u32 %v3141_v53, %v2623_v52 }
  0xb3   : > { %2299 = vst.msk [vmem:[%s3510_s8] sm:$0xf] %vm2298_vm1, %v2170_v6  ;;  %v2880_v6 = vor.u32 %v3205_v57, %v2879_v54 }
  0xb4   : > { %vm1850_vm2 = vcmp.gt.f32.partialorder %v1627_v8, 0.0  ;;  %v1978_v14 = vmul.f32 0.2, %v1627_v8  ;;  %v1469_v15 = vadd.f32 %v1468_v10, %v1140_v9  ;;  %v2628_v9 = vor.u32 %v3140_v58, %v2625_v59 }
  0xb5   : > { %v2884_v10 = vor.u32 %v3204_v60, %v2881_v63 }
  0xb6   : > { %v2106_v20 = vsel %vm1850_vm2, %v1627_v8, %v1978_v14  ;;  %vm1787_vm3 = vcmp.gt.f32.partialorder %v1469_v15, 0.0  ;;  %v1915_v21 = vmul.f32 0.2, %v1469_v15 }
  0xb7   : > { %v2234_v23 = vpack.c.bf16 %v2106_v20, %v2106_v20  ;;  %v1299_v24 = vpop.f32.mrf.mxu2 }
  0xb8   : > { %v2043_v25 = vsel %vm1787_vm3, %v1469_v15, %v1915_v21  ;;  %v1300_v26 = vadd.f32 %v3495_v48, %v1299_v24  ;;  %v1628_v27 = vpop.f32.mrf.mxu3 }
  0xb9   : > { %2363 = vst.msk [vmem:[%s3510_s8 + $0x100] sm:$0xf] %vm2298_vm1, %v2234_v23  ;;  %v2171_v30 = vpack.c.bf16 %v2043_v25, %v2043_v25  ;;  %v1142_v31 = vpop.f32.mrf.mxu0 }
  0xba   : > { %v1629_v34 = vadd.f32 %v1628_v27, %v1300_v26  ;;  %v1143_v35 = vadd.f32 %v3495_v48, %v1142_v31  ;;  %v1471_v36 = vpop.f32.mrf.mxu1 }
  0xbb   : > { %2300 = vst.msk [vmem:[%s3510_s8 + $0x4] sm:$0xf] %vm2298_vm1, %v2171_v30  ;;  %v2887_v30 = vld [vmem:[%s3417_s22 + $0x2b0] sm:$0xf] }
  0xbc   : > { %vm1851_vm4 = vcmp.gt.f32.partialorder %v1629_v34, 0.0  ;;  %v1979_v37 = vmul.f32 0.2, %v1629_v34  ;;  %v1472_v38 = vadd.f32 %v1471_v36, %v1143_v35  ;;  %1181 = vmatmul.bf16.gmra.mxu0 %v2616_v28  ;;  %1341 = vmatmul.bf16.gmra.mxu2 %v2872_v29  ;;  %v2631_v28 = vld [vmem:[%s3417_s22 + $0xb0] sm:$0xf] }
  0xbd   : > { %1510 = vmatmul.bf16.gmra.mxu1 %v2620_v32  ;;  %1670 = vmatmul.bf16.gmra.mxu3 %v2876_v33  ;;  %v3143_v29 = vld [vmem:[%s3417_s22 + $0xb4] sm:$0xf0]  ;;  %v2633_v35 = vld [vmem:[%s3417_s22 + $0xb8] sm:$0xf0]  ;;  %v3206_v36 = vld [vmem:[%s3417_s22 + $0x2b4] sm:$0xf] }
  0xbe   : > { %v2107_v39 = vsel %vm1851_vm4, %v1629_v34, %v1979_v37  ;;  %vm1788_vm5 = vcmp.gt.f32.partialorder %v1472_v38, 0.0  ;;  %v1916_v40 = vmul.f32 0.2, %v1472_v38  ;;  %v3207_v33 = vld [vmem:[%s3417_s22 + $0x2b4] sm:$0xf0] }
  0xbf   : > { %v2235_v41 = vpack.c.bf16 %v2107_v39, %v2107_v39  ;;  %v1302_v42 = vpop.f32.mrf.mxu2  ;;  %v3142_v34 = vld [vmem:[%s3417_s22 + $0xb4] sm:$0xf]  ;;  %v2889_v39 = vld [vmem:[%s3417_s22 + $0x2b8] sm:$0xf0] }
  0xc0   : > { %v2044_v43 = vsel %vm1788_vm5, %v1472_v38, %v1916_v40  ;;  %v1303_v44 = vadd.f32 %v3495_v48, %v1302_v42  ;;  %v1631_v45 = vpop.f32.mrf.mxu3 }
  0xc1   : > { %2364 = vst.msk [vmem:[%s3510_s8 + $0x104] sm:$0xf] %vm2298_vm1, %v2235_v41  ;;  %v2172_v46 = vpack.c.bf16 %v2044_v43, %v2044_v43  ;;  %v1144_v47 = vpop.f32.mrf.mxu0 }
  0xc2   : > { %v1632_v49 = vadd.f32 %v1631_v45, %v1303_v44  ;;  %v1145_v50 = vadd.f32 %v3495_v48, %v1144_v47  ;;  %v1473_v51 = vpop.f32.mrf.mxu1  ;;  %v2632_v45 = vor.u32 %v3143_v29, %v2631_v28 }
  0xc3   : > { %2301 = vst.msk [vmem:[%s3510_s8 + $0x8] sm:$0xf] %vm2298_vm1, %v2172_v46  ;;  %v2888_v46 = vor.u32 %v3207_v33, %v2887_v30 }
  0xc4   : > { %vm1852_vm6 = vcmp.gt.f32.partialorder %v1632_v49, 0.0  ;;  %v1980_v55 = vmul.f32 0.2, %v1632_v49  ;;  %v1474_v56 = vadd.f32 %v1473_v51, %v1145_v50  ;;  %v2636_v50 = vor.u32 %v3142_v34, %v2633_v35 }
  0xc5   : > { %v2892_v51 = vor.u32 %v3206_v36, %v2889_v39 }
  0xc6   : > { %v2108_v61 = vsel %vm1852_vm6, %v1632_v49, %v1980_v55  ;;  %vm1789_vm7 = vcmp.gt.f32.partialorder %v1474_v56, 0.0  ;;  %v1917_v62 = vmul.f32 0.2, %v1474_v56 }
  0xc7   : > { %v2236_v0 = vpack.c.bf16 %v2108_v61, %v2108_v61  ;;  %v1304_v1 = vpop.f32.mrf.mxu2 }
  0xc8   : > { %v2045_v2 = vsel %vm1789_vm7, %v1474_v56, %v1917_v62  ;;  %v1305_v3 = vadd.f32 %v3495_v48, %v1304_v1  ;;  %v1633_v4 = vpop.f32.mrf.mxu3 }
  0xc9   : > { %2365 = vst.msk [vmem:[%s3510_s8 + $0x108] sm:$0xf] %vm2298_vm1, %v2236_v0  ;;  %v2173_v7 = vpack.c.bf16 %v2045_v2, %v2045_v2  ;;  %v1147_v8 = vpop.f32.mrf.mxu0 }
  0xca   : > { %v1634_v11 = vadd.f32 %v1633_v4, %v1305_v3  ;;  %v1148_v12 = vadd.f32 %v3495_v48, %v1147_v8  ;;  %v1476_v13 = vpop.f32.mrf.mxu1 }
  0xcb   : > { %2302 = vst.msk [vmem:[%s3510_s8 + $0xc] sm:$0xf] %vm2298_vm1, %v2173_v7  ;;  %v2895_v7 = vld [vmem:[%s3417_s22 + $0x2c0] sm:$0xf] }
  0xcc   : > { %vm1853_vm8 = vcmp.gt.f32.partialorder %v1634_v11, 0.0  ;;  %v1981_v14 = vmul.f32 0.2, %v1634_v11  ;;  %v1477_v15 = vadd.f32 %v1476_v13, %v1148_v12  ;;  %1186 = vmatmul.bf16.gmra.mxu0 %v2624_v5  ;;  %1346 = vmatmul.bf16.gmra.mxu2 %v2880_v6  ;;  %v2639_v5 = vld [vmem:[%s3417_s22 + $0xc0] sm:$0xf] }
  0xcd   : > { %1515 = vmatmul.bf16.gmra.mxu1 %v2628_v9  ;;  %1675 = vmatmul.bf16.gmra.mxu3 %v2884_v10  ;;  %v3145_v6 = vld [vmem:[%s3417_s22 + $0xc4] sm:$0xf0]  ;;  %v2641_v12 = vld [vmem:[%s3417_s22 + $0xc8] sm:$0xf0]  ;;  %v3208_v13 = vld [vmem:[%s3417_s22 + $0x2c4] sm:$0xf] }
  0xce   : > { %v2109_v16 = vsel %vm1853_vm8, %v1634_v11, %v1981_v14  ;;  %vm1790_vm9 = vcmp.gt.f32.partialorder %v1477_v15, 0.0  ;;  %v1918_v17 = vmul.f32 0.2, %v1477_v15  ;;  %v3209_v10 = vld [vmem:[%s3417_s22 + $0x2c4] sm:$0xf0] }
  0xcf   : > { %v2237_v18 = vpack.c.bf16 %v2109_v16, %v2109_v16  ;;  %v1307_v19 = vpop.f32.mrf.mxu2  ;;  %v3144_v11 = vld [vmem:[%s3417_s22 + $0xc4] sm:$0xf]  ;;  %v2897_v16 = vld [vmem:[%s3417_s22 + $0x2c8] sm:$0xf0] }
  0xd0   : > { %v2046_v20 = vsel %vm1790_vm9, %v1477_v15, %v1918_v17  ;;  %v1308_v21 = vadd.f32 %v3495_v48, %v1307_v19  ;;  %v1636_v22 = vpop.f32.mrf.mxu3 }
  0xd1   : > { %2366 = vst.msk [vmem:[%s3510_s8 + $0x10c] sm:$0xf] %vm2298_vm1, %v2237_v18  ;;  %v2174_v23 = vpack.c.bf16 %v2046_v20, %v2046_v20  ;;  %v1149_v24 = vpop.f32.mrf.mxu0 }
  0xd2   : > { %v1637_v25 = vadd.f32 %v1636_v22, %v1308_v21  ;;  %v1150_v26 = vadd.f32 %v3495_v48, %v1149_v24  ;;  %v1478_v27 = vpop.f32.mrf.mxu1  ;;  %v2640_v22 = vor.u32 %v3145_v6, %v2639_v5 }
  0xd3   : > { %2303 = vst.msk [vmem:[%s3510_s8 + $0x10] sm:$0xf] %vm2298_vm1, %v2174_v23  ;;  %v2896_v23 = vor.u32 %v3209_v10, %v2895_v7 }
  0xd4   : > { %vm1854_vm10 = vcmp.gt.f32.partialorder %v1637_v25, 0.0  ;;  %v1982_v31 = vmul.f32 0.2, %v1637_v25  ;;  %v1479_v32 = vadd.f32 %v1478_v27, %v1150_v26  ;;  %v2644_v26 = vor.u32 %v3144_v11, %v2641_v12 }
  0xd5   : > { %v2900_v27 = vor.u32 %v3208_v13, %v2897_v16 }
  0xd6   : > { %v2110_v37 = vsel %vm1854_vm10, %v1637_v25, %v1982_v31  ;;  %vm1791_vm11 = vcmp.gt.f32.partialorder %v1479_v32, 0.0  ;;  %v1919_v38 = vmul.f32 0.2, %v1479_v32 }
  0xd7   : > { %v2238_v40 = vpack.c.bf16 %v2110_v37, %v2110_v37  ;;  %v1309_v41 = vpop.f32.mrf.mxu2 }
  0xd8   : > { %v2047_v42 = vsel %vm1791_vm11, %v1479_v32, %v1919_v38  ;;  %v1310_v43 = vadd.f32 %v3495_v48, %v1309_v41  ;;  %v1638_v44 = vpop.f32.mrf.mxu3 }
  0xd9   : > { %2367 = vst.msk [vmem:[%s3510_s8 + $0x110] sm:$0xf] %vm2298_vm1, %v2238_v40  ;;  %v2175_v47 = vpack.c.bf16 %v2047_v42, %v2047_v42  ;;  %v1152_v49 = vpop.f32.mrf.mxu0 }
  0xda   : > { %v1639_v52 = vadd.f32 %v1638_v44, %v1310_v43  ;;  %v1153_v53 = vadd.f32 %v3495_v48, %v1152_v49  ;;  %v1481_v54 = vpop.f32.mrf.mxu1 }
  0xdb   : > { %2304 = vst.msk [vmem:[%s3510_s8 + $0x14] sm:$0xf] %vm2298_vm1, %v2175_v47  ;;  %v2903_v47 = vld [vmem:[%s3417_s22 + $0x2d0] sm:$0xf] }
  0xdc   : > { %vm1855_vm12 = vcmp.gt.f32.partialorder %v1639_v52, 0.0  ;;  %v1983_v55 = vmul.f32 0.2, %v1639_v52  ;;  %v1482_v56 = vadd.f32 %v1481_v54, %v1153_v53  ;;  %1191 = vmatmul.bf16.gmra.mxu0 %v2632_v45  ;;  %1351 = vmatmul.bf16.gmra.mxu2 %v2888_v46  ;;  %v2647_v45 = vld [vmem:[%s3417_s22 + $0xd0] sm:$0xf] }
  0xdd   : > { %1520 = vmatmul.bf16.gmra.mxu1 %v2636_v50  ;;  %1680 = vmatmul.bf16.gmra.mxu3 %v2892_v51  ;;  %v3147_v46 = vld [vmem:[%s3417_s22 + $0xd4] sm:$0xf0]  ;;  %v2649_v53 = vld [vmem:[%s3417_s22 + $0xd8] sm:$0xf0]  ;;  %v3210_v54 = vld [vmem:[%s3417_s22 + $0x2d4] sm:$0xf] }
  0xde   : > { %v2111_v57 = vsel %vm1855_vm12, %v1639_v52, %v1983_v55  ;;  %vm1792_vm13 = vcmp.gt.f32.partialorder %v1482_v56, 0.0  ;;  %v1920_v58 = vmul.f32 0.2, %v1482_v56  ;;  %v3211_v51 = vld [vmem:[%s3417_s22 + $0x2d4] sm:$0xf0] }
  0xdf   : > { %v2239_v59 = vpack.c.bf16 %v2111_v57, %v2111_v57  ;;  %v1312_v60 = vpop.f32.mrf.mxu2  ;;  %v3146_v52 = vld [vmem:[%s3417_s22 + $0xd4] sm:$0xf]  ;;  %v2905_v57 = vld [vmem:[%s3417_s22 + $0x2d8] sm:$0xf0] }
  0xe0   : > { %v2048_v61 = vsel %vm1792_vm13, %v1482_v56, %v1920_v58  ;;  %v1313_v62 = vadd.f32 %v3495_v48, %v1312_v60  ;;  %v1641_v63 = vpop.f32.mrf.mxu3 }
  0xe1   : > { %2368 = vst.msk [vmem:[%s3510_s8 + $0x114] sm:$0xf] %vm2298_vm1, %v2239_v59  ;;  %v2176_v0 = vpack.c.bf16 %v2048_v61, %v2048_v61  ;;  %v1154_v1 = vpop.f32.mrf.mxu0 }
  0xe2   : > { %v1642_v2 = vadd.f32 %v1641_v63, %v1313_v62  ;;  %v1155_v3 = vadd.f32 %v3495_v48, %v1154_v1  ;;  %v1483_v4 = vpop.f32.mrf.mxu1  ;;  %v2648_v63 = vor.u32 %v3147_v46, %v2647_v45 }
  0xe3   : > { %2305 = vst.msk [vmem:[%s3510_s8 + $0x18] sm:$0xf] %vm2298_vm1, %v2176_v0  ;;  %v2904_v0 = vor.u32 %v3211_v51, %v2903_v47 }
  0xe4   : > { %vm1856_vm14 = vcmp.gt.f32.partialorder %v1642_v2, 0.0  ;;  %v1984_v8 = vmul.f32 0.2, %v1642_v2  ;;  %v1484_v9 = vadd.f32 %v1483_v4, %v1155_v3  ;;  %v2652_v3 = vor.u32 %v3146_v52, %v2649_v53 }
  0xe5   : > { %v2908_v4 = vor.u32 %v3210_v54, %v2905_v57 }
  0xe6   : > { %v2112_v14 = vsel %vm1856_vm14, %v1642_v2, %v1984_v8  ;;  %vm1793_vm15 = vcmp.gt.f32.partialorder %v1484_v9, 0.0  ;;  %v1921_v15 = vmul.f32 0.2, %v1484_v9 }
  0xe7   : > { %v2240_v17 = vpack.c.bf16 %v2112_v14, %v2112_v14  ;;  %v1314_v18 = vpop.f32.mrf.mxu2 }
  0xe8   : > { %v2049_v19 = vsel %vm1793_vm15, %v1484_v9, %v1921_v15  ;;  %v1315_v20 = vadd.f32 %v3495_v48, %v1314_v18  ;;  %v1643_v21 = vpop.f32.mrf.mxu3 }
  0xe9   : > { %2369 = vst.msk [vmem:[%s3510_s8 + $0x118] sm:$0xf] %vm2298_vm1, %v2240_v17  ;;  %v2177_v24 = vpack.c.bf16 %v2049_v19, %v2049_v19  ;;  %v1157_v25 = vpop.f32.mrf.mxu0 }
  0xea   : > { %v1644_v28 = vadd.f32 %v1643_v21, %v1315_v20  ;;  %v1158_v29 = vadd.f32 %v3495_v48, %v1157_v25  ;;  %v1486_v30 = vpop.f32.mrf.mxu1 }
  0xeb   : > { %2306 = vst.msk [vmem:[%s3510_s8 + $0x1c] sm:$0xf] %vm2298_vm1, %v2177_v24  ;;  %v2911_v24 = vld [vmem:[%s3417_s22 + $0x2e0] sm:$0xf] }
  0xec   : > { %vm1857_vm0 = vcmp.gt.f32.partialorder %v1644_v28, 0.0  ;;  %v1985_v31 = vmul.f32 0.2, %v1644_v28  ;;  %v1487_v32 = vadd.f32 %v1486_v30, %v1158_v29  ;;  %1196 = vmatmul.bf16.gmra.mxu0 %v2640_v22  ;;  %1356 = vmatmul.bf16.gmra.mxu2 %v2896_v23  ;;  %v2655_v22 = vld [vmem:[%s3417_s22 + $0xe0] sm:$0xf] }
  0xed   : > { %1525 = vmatmul.bf16.gmra.mxu1 %v2644_v26  ;;  %1685 = vmatmul.bf16.gmra.mxu3 %v2900_v27  ;;  %v3149_v23 = vld [vmem:[%s3417_s22 + $0xe4] sm:$0xf0]  ;;  %v2657_v29 = vld [vmem:[%s3417_s22 + $0xe8] sm:$0xf0]  ;;  %v3212_v30 = vld [vmem:[%s3417_s22 + $0x2e4] sm:$0xf] }
  0xee   : > { %v2113_v33 = vsel %vm1857_vm0, %v1644_v28, %v1985_v31  ;;  %vm1794_vm2 = vcmp.gt.f32.partialorder %v1487_v32, 0.0  ;;  %v1922_v34 = vmul.f32 0.2, %v1487_v32  ;;  %v3213_v27 = vld [vmem:[%s3417_s22 + $0x2e4] sm:$0xf0] }
  0xef   : > { %v2241_v35 = vpack.c.bf16 %v2113_v33, %v2113_v33  ;;  %v1317_v36 = vpop.f32.mrf.mxu2  ;;  %v3148_v28 = vld [vmem:[%s3417_s22 + $0xe4] sm:$0xf]  ;;  %v2913_v33 = vld [vmem:[%s3417_s22 + $0x2e8] sm:$0xf0] }
  0xf0   : > { %v2050_v37 = vsel %vm1794_vm2, %v1487_v32, %v1922_v34  ;;  %v1318_v38 = vadd.f32 %v3495_v48, %v1317_v36  ;;  %v1646_v39 = vpop.f32.mrf.mxu3 }
  0xf1   : > { %2370 = vst.msk [vmem:[%s3510_s8 + $0x11c] sm:$0xf] %vm2298_vm1, %v2241_v35  ;;  %v2178_v40 = vpack.c.bf16 %v2050_v37, %v2050_v37  ;;  %v1159_v41 = vpop.f32.mrf.mxu0 }
  0xf2   : > { %v1647_v42 = vadd.f32 %v1646_v39, %v1318_v38  ;;  %v1160_v43 = vadd.f32 %v3495_v48, %v1159_v41  ;;  %v1488_v44 = vpop.f32.mrf.mxu1  ;;  %v2656_v39 = vor.u32 %v3149_v23, %v2655_v22 }
  0xf3   : > { %2307 = vst.msk [vmem:[%s3510_s8 + $0x20] sm:$0xf] %vm2298_vm1, %v2178_v40  ;;  %v2912_v40 = vor.u32 %v3213_v27, %v2911_v24 }
  0xf4   : > { %vm1858_vm3 = vcmp.gt.f32.partialorder %v1647_v42, 0.0  ;;  %v1986_v49 = vmul.f32 0.2, %v1647_v42  ;;  %v1489_v50 = vadd.f32 %v1488_v44, %v1160_v43  ;;  %v2660_v43 = vor.u32 %v3148_v28, %v2657_v29 }
  0xf5   : > { %v2916_v44 = vor.u32 %v3212_v30, %v2913_v33 }
  0xf6   : > { %v2114_v55 = vsel %vm1858_vm3, %v1647_v42, %v1986_v49  ;;  %vm1795_vm4 = vcmp.gt.f32.partialorder %v1489_v50, 0.0  ;;  %v1923_v56 = vmul.f32 0.2, %v1489_v50 }
  0xf7   : > { %v2242_v58 = vpack.c.bf16 %v2114_v55, %v2114_v55  ;;  %v1319_v59 = vpop.f32.mrf.mxu2 }
  0xf8   : > { %v2051_v60 = vsel %vm1795_vm4, %v1489_v50, %v1923_v56  ;;  %v1320_v61 = vadd.f32 %v3495_v48, %v1319_v59  ;;  %v1648_v62 = vpop.f32.mrf.mxu3 }
  0xf9   : > { %2371 = vst.msk [vmem:[%s3510_s8 + $0x120] sm:$0xf] %vm2298_vm1, %v2242_v58  ;;  %v2179_v1 = vpack.c.bf16 %v2051_v60, %v2051_v60  ;;  %v1162_v2 = vpop.f32.mrf.mxu0 }
  0xfa   : > { %v1649_v5 = vadd.f32 %v1648_v62, %v1320_v61  ;;  %v1163_v6 = vadd.f32 %v3495_v48, %v1162_v2  ;;  %v1491_v7 = vpop.f32.mrf.mxu1 }
  0xfb   : > { %2308 = vst.msk [vmem:[%s3510_s8 + $0x24] sm:$0xf] %vm2298_vm1, %v2179_v1  ;;  %v2919_v1 = vld [vmem:[%s3417_s22 + $0x2f0] sm:$0xf] }
  0xfc   : > { %vm1859_vm5 = vcmp.gt.f32.partialorder %v1649_v5, 0.0  ;;  %v1987_v8 = vmul.f32 0.2, %v1649_v5  ;;  %v1492_v9 = vadd.f32 %v1491_v7, %v1163_v6  ;;  %1201 = vmatmul.bf16.gmra.mxu0 %v2648_v63  ;;  %1361 = vmatmul.bf16.gmra.mxu2 %v2904_v0  ;;  %v2663_v63 = vld [vmem:[%s3417_s22 + $0xf0] sm:$0xf] }
  0xfd   : > { %1530 = vmatmul.bf16.gmra.mxu1 %v2652_v3  ;;  %1690 = vmatmul.bf16.gmra.mxu3 %v2908_v4  ;;  %v3151_v0 = vld [vmem:[%s3417_s22 + $0xf4] sm:$0xf0]  ;;  %v2665_v6 = vld [vmem:[%s3417_s22 + $0xf8] sm:$0xf0]  ;;  %v3214_v7 = vld [vmem:[%s3417_s22 + $0x2f4] sm:$0xf] }
  0xfe   : > { %v2115_v10 = vsel %vm1859_vm5, %v1649_v5, %v1987_v8  ;;  %vm1796_vm6 = vcmp.gt.f32.partialorder %v1492_v9, 0.0  ;;  %v1924_v11 = vmul.f32 0.2, %v1492_v9  ;;  %v3215_v4 = vld [vmem:[%s3417_s22 + $0x2f4] sm:$0xf0] }
  0xff   : > { %v2243_v12 = vpack.c.bf16 %v2115_v10, %v2115_v10  ;;  %v1322_v13 = vpop.f32.mrf.mxu2  ;;  %v3150_v5 = vld [vmem:[%s3417_s22 + $0xf4] sm:$0xf]  ;;  %v2921_v10 = vld [vmem:[%s3417_s22 + $0x2f8] sm:$0xf0] }
 0x100   : > { %v2052_v14 = vsel %vm1796_vm6, %v1492_v9, %v1924_v11  ;;  %v1323_v15 = vadd.f32 %v3495_v48, %v1322_v13  ;;  %v1651_v16 = vpop.f32.mrf.mxu3 }
 0x101   : > { %2372 = vst.msk [vmem:[%s3510_s8 + $0x124] sm:$0xf] %vm2298_vm1, %v2243_v12  ;;  %v2180_v17 = vpack.c.bf16 %v2052_v14, %v2052_v14  ;;  %v1164_v18 = vpop.f32.mrf.mxu0 }
 0x102   : > { %v1652_v19 = vadd.f32 %v1651_v16, %v1323_v15  ;;  %v1165_v20 = vadd.f32 %v3495_v48, %v1164_v18  ;;  %v1493_v21 = vpop.f32.mrf.mxu1  ;;  %v2664_v16 = vor.u32 %v3151_v0, %v2663_v63 }
 0x103   : > { %2309 = vst.msk [vmem:[%s3510_s8 + $0x28] sm:$0xf] %vm2298_vm1, %v2180_v17  ;;  %v2920_v17 = vor.u32 %v3215_v4, %v2919_v1 }
 0x104   : > { %vm1860_vm7 = vcmp.gt.f32.partialorder %v1652_v19, 0.0  ;;  %v1988_v25 = vmul.f32 0.2, %v1652_v19  ;;  %v1494_v26 = vadd.f32 %v1493_v21, %v1165_v20  ;;  %v2668_v20 = vor.u32 %v3150_v5, %v2665_v6 }
 0x105   : > { %v2924_v21 = vor.u32 %v3214_v7, %v2921_v10 }
 0x106   : > { %v2116_v31 = vsel %vm1860_vm7, %v1652_v19, %v1988_v25  ;;  %vm1797_vm8 = vcmp.gt.f32.partialorder %v1494_v26, 0.0  ;;  %v1925_v32 = vmul.f32 0.2, %v1494_v26 }
 0x107   : > { %v2244_v34 = vpack.c.bf16 %v2116_v31, %v2116_v31  ;;  %v1324_v35 = vpop.f32.mrf.mxu2 }
 0x108   : > { %v2053_v36 = vsel %vm1797_vm8, %v1494_v26, %v1925_v32  ;;  %v1325_v37 = vadd.f32 %v3495_v48, %v1324_v35  ;;  %v1653_v38 = vpop.f32.mrf.mxu3 }
 0x109   : > { %2373 = vst.msk [vmem:[%s3510_s8 + $0x128] sm:$0xf] %vm2298_vm1, %v2244_v34  ;;  %v2181_v41 = vpack.c.bf16 %v2053_v36, %v2053_v36  ;;  %v1167_v42 = vpop.f32.mrf.mxu0 }
 0x10a   : > { %v1654_v45 = vadd.f32 %v1653_v38, %v1325_v37  ;;  %v1168_v46 = vadd.f32 %v3495_v48, %v1167_v42  ;;  %v1496_v47 = vpop.f32.mrf.mxu1 }
 0x10b   : > { %2310 = vst.msk [vmem:[%s3510_s8 + $0x2c] sm:$0xf] %vm2298_vm1, %v2181_v41  ;;  %v2927_v41 = vld [vmem:[%s3417_s22 + $0x300] sm:$0xf] }
 0x10c   : > { %vm1861_vm9 = vcmp.gt.f32.partialorder %v1654_v45, 0.0  ;;  %v1989_v49 = vmul.f32 0.2, %v1654_v45  ;;  %v1497_v50 = vadd.f32 %v1496_v47, %v1168_v46  ;;  %1206 = vmatmul.bf16.gmra.mxu0 %v2656_v39  ;;  %1366 = vmatmul.bf16.gmra.mxu2 %v2912_v40  ;;  %v2671_v39 = vld [vmem:[%s3417_s22 + $0x100] sm:$0xf] }
 0x10d   : > { %1535 = vmatmul.bf16.gmra.mxu1 %v2660_v43  ;;  %1695 = vmatmul.bf16.gmra.mxu3 %v2916_v44  ;;  %v3153_v40 = vld [vmem:[%s3417_s22 + $0x104] sm:$0xf0]  ;;  %v2673_v46 = vld [vmem:[%s3417_s22 + $0x108] sm:$0xf0]  ;;  %v3216_v47 = vld [vmem:[%s3417_s22 + $0x304] sm:$0xf] }
 0x10e   : > { %v2117_v51 = vsel %vm1861_vm9, %v1654_v45, %v1989_v49  ;;  %vm1798_vm10 = vcmp.gt.f32.partialorder %v1497_v50, 0.0  ;;  %v1926_v52 = vmul.f32 0.2, %v1497_v50  ;;  %v3217_v44 = vld [vmem:[%s3417_s22 + $0x304] sm:$0xf0] }
 0x10f   : > { %v2245_v53 = vpack.c.bf16 %v2117_v51, %v2117_v51  ;;  %v1327_v54 = vpop.f32.mrf.mxu2  ;;  %v3152_v45 = vld [vmem:[%s3417_s22 + $0x104] sm:$0xf]  ;;  %v2929_v51 = vld [vmem:[%s3417_s22 + $0x308] sm:$0xf0] }
 0x110   : > { %v2054_v55 = vsel %vm1798_vm10, %v1497_v50, %v1926_v52  ;;  %v1328_v56 = vadd.f32 %v3495_v48, %v1327_v54  ;;  %v1656_v57 = vpop.f32.mrf.mxu3 }
 0x111   : > { %2374 = vst.msk [vmem:[%s3510_s8 + $0x12c] sm:$0xf] %vm2298_vm1, %v2245_v53  ;;  %v2182_v58 = vpack.c.bf16 %v2054_v55, %v2054_v55  ;;  %v1169_v59 = vpop.f32.mrf.mxu0 }
 0x112   : > { %v1657_v60 = vadd.f32 %v1656_v57, %v1328_v56  ;;  %v1170_v61 = vadd.f32 %v3495_v48, %v1169_v59  ;;  %v1498_v62 = vpop.f32.mrf.mxu1  ;;  %v2672_v57 = vor.u32 %v3153_v40, %v2671_v39 }
 0x113   : > { %2311 = vst.msk [vmem:[%s3510_s8 + $0x30] sm:$0xf] %vm2298_vm1, %v2182_v58  ;;  %v2928_v58 = vor.u32 %v3217_v44, %v2927_v41 }
 0x114   : > { %vm1862_vm11 = vcmp.gt.f32.partialorder %v1657_v60, 0.0  ;;  %v1990_v2 = vmul.f32 0.2, %v1657_v60  ;;  %v1499_v3 = vadd.f32 %v1498_v62, %v1170_v61  ;;  %v2676_v61 = vor.u32 %v3152_v45, %v2673_v46 }
 0x115   : > { %v2932_v62 = vor.u32 %v3216_v47, %v2929_v51 }
 0x116   : > { %v2118_v8 = vsel %vm1862_vm11, %v1657_v60, %v1990_v2  ;;  %vm1799_vm12 = vcmp.gt.f32.partialorder %v1499_v3, 0.0  ;;  %v1927_v9 = vmul.f32 0.2, %v1499_v3 }
 0x117   : > { %v2246_v11 = vpack.c.bf16 %v2118_v8, %v2118_v8  ;;  %v1329_v12 = vpop.f32.mrf.mxu2 }
 0x118   : > { %v2055_v13 = vsel %vm1799_vm12, %v1499_v3, %v1927_v9  ;;  %v1330_v14 = vadd.f32 %v3495_v48, %v1329_v12  ;;  %v1658_v15 = vpop.f32.mrf.mxu3 }
 0x119   : > { %2375 = vst.msk [vmem:[%s3510_s8 + $0x130] sm:$0xf] %vm2298_vm1, %v2246_v11  ;;  %v2183_v18 = vpack.c.bf16 %v2055_v13, %v2055_v13  ;;  %v1172_v19 = vpop.f32.mrf.mxu0 }
 0x11a   : > { %v1659_v22 = vadd.f32 %v1658_v15, %v1330_v14  ;;  %v1173_v23 = vadd.f32 %v3495_v48, %v1172_v19  ;;  %v1501_v24 = vpop.f32.mrf.mxu1 }
 0x11b   : > { %2312 = vst.msk [vmem:[%s3510_s8 + $0x34] sm:$0xf] %vm2298_vm1, %v2183_v18  ;;  %v2935_v18 = vld [vmem:[%s3417_s22 + $0x310] sm:$0xf] }
 0x11c   : > { %vm1863_vm13 = vcmp.gt.f32.partialorder %v1659_v22, 0.0  ;;  %v1991_v25 = vmul.f32 0.2, %v1659_v22  ;;  %v1502_v26 = vadd.f32 %v1501_v24, %v1173_v23  ;;  %1211 = vmatmul.bf16.gmra.mxu0 %v2664_v16  ;;  %1371 = vmatmul.bf16.gmra.mxu2 %v2920_v17  ;;  %v2679_v16 = vld [vmem:[%s3417_s22 + $0x110] sm:$0xf] }
 0x11d   : > { %1540 = vmatmul.bf16.gmra.mxu1 %v2668_v20  ;;  %1700 = vmatmul.bf16.gmra.mxu3 %v2924_v21  ;;  %v3155_v17 = vld [vmem:[%s3417_s22 + $0x114] sm:$0xf0]  ;;  %v2681_v23 = vld [vmem:[%s3417_s22 + $0x118] sm:$0xf0]  ;;  %v3218_v24 = vld [vmem:[%s3417_s22 + $0x314] sm:$0xf] }
 0x11e   : > { %v2119_v27 = vsel %vm1863_vm13, %v1659_v22, %v1991_v25  ;;  %vm1800_vm14 = vcmp.gt.f32.partialorder %v1502_v26, 0.0  ;;  %v1928_v28 = vmul.f32 0.2, %v1502_v26  ;;  %v3219_v21 = vld [vmem:[%s3417_s22 + $0x314] sm:$0xf0] }
 0x11f   : > { %v2247_v29 = vpack.c.bf16 %v2119_v27, %v2119_v27  ;;  %v1332_v30 = vpop.f32.mrf.mxu2  ;;  %v3154_v22 = vld [vmem:[%s3417_s22 + $0x114] sm:$0xf]  ;;  %v2937_v27 = vld [vmem:[%s3417_s22 + $0x318] sm:$0xf0] }
 0x120   : > { %v2056_v31 = vsel %vm1800_vm14, %v1502_v26, %v1928_v28  ;;  %v1333_v32 = vadd.f32 %v3495_v48, %v1332_v30  ;;  %v1661_v33 = vpop.f32.mrf.mxu3 }
 0x121   : > { %2376 = vst.msk [vmem:[%s3510_s8 + $0x134] sm:$0xf] %vm2298_vm1, %v2247_v29  ;;  %v2184_v34 = vpack.c.bf16 %v2056_v31, %v2056_v31  ;;  %v1174_v35 = vpop.f32.mrf.mxu0 }
 0x122   : > { %v1662_v36 = vadd.f32 %v1661_v33, %v1333_v32  ;;  %v1175_v37 = vadd.f32 %v3495_v48, %v1174_v35  ;;  %v1503_v38 = vpop.f32.mrf.mxu1  ;;  %v2680_v33 = vor.u32 %v3155_v17, %v2679_v16 }
 0x123   : > { %2313 = vst.msk [vmem:[%s3510_s8 + $0x38] sm:$0xf] %vm2298_vm1, %v2184_v34  ;;  %v2936_v34 = vor.u32 %v3219_v21, %v2935_v18 }
 0x124   : > { %vm1864_vm15 = vcmp.gt.f32.partialorder %v1662_v36, 0.0  ;;  %v1992_v42 = vmul.f32 0.2, %v1662_v36  ;;  %v1504_v43 = vadd.f32 %v1503_v38, %v1175_v37  ;;  %v2684_v37 = vor.u32 %v3154_v22, %v2681_v23 }
 0x125   : > { %v2940_v38 = vor.u32 %v3218_v24, %v2937_v27 }
 0x126   : > { %v2120_v49 = vsel %vm1864_vm15, %v1662_v36, %v1992_v42  ;;  %vm1801_vm0 = vcmp.gt.f32.partialorder %v1504_v43, 0.0  ;;  %v1929_v50 = vmul.f32 0.2, %v1504_v43 }
 0x127   : > { %v2248_v52 = vpack.c.bf16 %v2120_v49, %v2120_v49  ;;  %v1334_v53 = vpop.f32.mrf.mxu2 }
 0x128   : > { %v2057_v54 = vsel %vm1801_vm0, %v1504_v43, %v1929_v50  ;;  %v1335_v55 = vadd.f32 %v3495_v48, %v1334_v53  ;;  %v1663_v56 = vpop.f32.mrf.mxu3 }
 0x129   : > { %2377 = vst.msk [vmem:[%s3510_s8 + $0x138] sm:$0xf] %vm2298_vm1, %v2248_v52  ;;  %v2185_v59 = vpack.c.bf16 %v2057_v54, %v2057_v54  ;;  %v1177_v60 = vpop.f32.mrf.mxu0 }
 0x12a   : > { %v1664_v63 = vadd.f32 %v1663_v56, %v1335_v55  ;;  %v1178_v0 = vadd.f32 %v3495_v48, %v1177_v60  ;;  %v1506_v1 = vpop.f32.mrf.mxu1 }
 0x12b   : > { %2314 = vst.msk [vmem:[%s3510_s8 + $0x3c] sm:$0xf] %vm2298_vm1, %v2185_v59  ;;  %v2943_v59 = vld [vmem:[%s3417_s22 + $0x320] sm:$0xf] }
 0x12c   : > { %vm1865_vm2 = vcmp.gt.f32.partialorder %v1664_v63, 0.0  ;;  %v1993_v2 = vmul.f32 0.2, %v1664_v63  ;;  %v1507_v3 = vadd.f32 %v1506_v1, %v1178_v0  ;;  %1216 = vmatmul.bf16.gmra.mxu0 %v2672_v57  ;;  %1376 = vmatmul.bf16.gmra.mxu2 %v2928_v58  ;;  %v2687_v57 = vld [vmem:[%s3417_s22 + $0x120] sm:$0xf] }
 0x12d   : > { %1545 = vmatmul.bf16.gmra.mxu1 %v2676_v61  ;;  %1705 = vmatmul.bf16.gmra.mxu3 %v2932_v62  ;;  %v3157_v58 = vld [vmem:[%s3417_s22 + $0x124] sm:$0xf0]  ;;  %v2689_v0 = vld [vmem:[%s3417_s22 + $0x128] sm:$0xf0]  ;;  %v3220_v1 = vld [vmem:[%s3417_s22 + $0x324] sm:$0xf] }
 0x12e   : > { %v2121_v4 = vsel %vm1865_vm2, %v1664_v63, %v1993_v2  ;;  %vm1802_vm3 = vcmp.gt.f32.partialorder %v1507_v3, 0.0  ;;  %v1930_v5 = vmul.f32 0.2, %v1507_v3  ;;  %v3221_v62 = vld [vmem:[%s3417_s22 + $0x324] sm:$0xf0] }
 0x12f   : > { %v2249_v6 = vpack.c.bf16 %v2121_v4, %v2121_v4  ;;  %v1337_v7 = vpop.f32.mrf.mxu2  ;;  %v3156_v63 = vld [vmem:[%s3417_s22 + $0x124] sm:$0xf]  ;;  %v2945_v4 = vld [vmem:[%s3417_s22 + $0x328] sm:$0xf0] }
 0x130   : > { %v2058_v8 = vsel %vm1802_vm3, %v1507_v3, %v1930_v5  ;;  %v1338_v9 = vadd.f32 %v3495_v48, %v1337_v7  ;;  %v1666_v10 = vpop.f32.mrf.mxu3  ;;  %v3707_v7 = vld [vmem:[%s4100_s2] ss:$0 sm:$0xff] }
 0x131   : > { %2378 = vst.msk [vmem:[%s3510_s8 + $0x13c] sm:$0xf] %vm2298_vm1, %v2249_v6  ;;  %v2186_v11 = vpack.c.bf16 %v2058_v8, %v2058_v8  ;;  %v1179_v12 = vpop.f32.mrf.mxu0 }
 0x132   : > { %v1667_v13 = vadd.f32 %v1666_v10, %v1338_v9  ;;  %v1180_v14 = vadd.f32 %v3495_v48, %v1179_v12  ;;  %v1508_v15 = vpop.f32.mrf.mxu1  ;;  %v2688_v10 = vor.u32 %v3157_v58, %v2687_v57 }
 0x133   : > { %2315 = vst.msk [vmem:[%s3510_s8 + $0x40] sm:$0xf] %vm2298_vm1, %v2186_v11  ;;  %v2944_v11 = vor.u32 %v3221_v62, %v2943_v59 }
 0x134   : > { %vm1866_vm4 = vcmp.gt.f32.partialorder %v1667_v13, 0.0  ;;  %v1994_v19 = vmul.f32 0.2, %v1667_v13  ;;  %v1509_v20 = vadd.f32 %v1508_v15, %v1180_v14  ;;  %v2692_v14 = vor.u32 %v3156_v63, %v2689_v0 }
 0x135   : > { %v2948_v15 = vor.u32 %v3220_v1, %v2945_v4 }
 0x136   : > { %v2122_v25 = vsel %vm1866_vm4, %v1667_v13, %v1994_v19  ;;  %vm1803_vm5 = vcmp.gt.f32.partialorder %v1509_v20, 0.0  ;;  %v1931_v26 = vmul.f32 0.2, %v1509_v20 }
 0x137   : > { %v2250_v28 = vpack.c.bf16 %v2122_v25, %v2122_v25  ;;  %v1339_v29 = vpop.f32.mrf.mxu2 }
 0x138   : > { %v2059_v30 = vsel %vm1803_vm5, %v1509_v20, %v1931_v26  ;;  %v1340_v31 = vadd.f32 %v3495_v48, %v1339_v29  ;;  %v1668_v32 = vpop.f32.mrf.mxu3 }
 0x139   : > { %2379 = vst.msk [vmem:[%s3510_s8 + $0x140] sm:$0xf] %vm2298_vm1, %v2250_v28  ;;  %v2187_v35 = vpack.c.bf16 %v2059_v30, %v2059_v30  ;;  %v1182_v36 = vpop.f32.mrf.mxu0 }
 0x13a   : > { %v1669_v39 = vadd.f32 %v1668_v32, %v1340_v31  ;;  %v1183_v40 = vadd.f32 %v3495_v48, %v1182_v36  ;;  %v1511_v41 = vpop.f32.mrf.mxu1 }
 0x13b   : > { %2316 = vst.msk [vmem:[%s3510_s8 + $0x44] sm:$0xf] %vm2298_vm1, %v2187_v35  ;;  %v2951_v35 = vld [vmem:[%s3417_s22 + $0x330] sm:$0xf] }
 0x13c   : > { %vm1867_vm6 = vcmp.gt.f32.partialorder %v1669_v39, 0.0  ;;  %v1995_v42 = vmul.f32 0.2, %v1669_v39  ;;  %v1512_v43 = vadd.f32 %v1511_v41, %v1183_v40  ;;  %1221 = vmatmul.bf16.gmra.mxu0 %v2680_v33  ;;  %1381 = vmatmul.bf16.gmra.mxu2 %v2936_v34  ;;  %v2695_v33 = vld [vmem:[%s3417_s22 + $0x130] sm:$0xf] }
 0x13d   : > { %1550 = vmatmul.bf16.gmra.mxu1 %v2684_v37  ;;  %1710 = vmatmul.bf16.gmra.mxu3 %v2940_v38  ;;  %v3159_v34 = vld [vmem:[%s3417_s22 + $0x134] sm:$0xf0]  ;;  %v2697_v40 = vld [vmem:[%s3417_s22 + $0x138] sm:$0xf0]  ;;  %v3222_v41 = vld [vmem:[%s3417_s22 + $0x334] sm:$0xf] }
 0x13e   : > { %v2123_v44 = vsel %vm1867_vm6, %v1669_v39, %v1995_v42  ;;  %vm1804_vm7 = vcmp.gt.f32.partialorder %v1512_v43, 0.0  ;;  %v1932_v45 = vmul.f32 0.2, %v1512_v43  ;;  %v3223_v38 = vld [vmem:[%s3417_s22 + $0x334] sm:$0xf0] }
 0x13f   : > { %v2251_v46 = vpack.c.bf16 %v2123_v44, %v2123_v44  ;;  %v1342_v47 = vpop.f32.mrf.mxu2  ;;  %v3158_v39 = vld [vmem:[%s3417_s22 + $0x134] sm:$0xf]  ;;  %v2953_v44 = vld [vmem:[%s3417_s22 + $0x338] sm:$0xf0] }
 0x140   : > { %v2060_v49 = vsel %vm1804_vm7, %v1512_v43, %v1932_v45  ;;  %v1343_v50 = vadd.f32 %v3495_v48, %v1342_v47  ;;  %v1671_v51 = vpop.f32.mrf.mxu3 }
 0x141   : > { %2380 = vst.msk [vmem:[%s3510_s8 + $0x144] sm:$0xf] %vm2298_vm1, %v2251_v46  ;;  %v2188_v52 = vpack.c.bf16 %v2060_v49, %v2060_v49  ;;  %v1184_v53 = vpop.f32.mrf.mxu0 }
 0x142   : > { %v1672_v54 = vadd.f32 %v1671_v51, %v1343_v50  ;;  %v1185_v55 = vadd.f32 %v3495_v48, %v1184_v53  ;;  %v1513_v56 = vpop.f32.mrf.mxu1  ;;  %v2696_v51 = vor.u32 %v3159_v34, %v2695_v33 }
 0x143   : > { %2317 = vst.msk [vmem:[%s3510_s8 + $0x48] sm:$0xf] %vm2298_vm1, %v2188_v52  ;;  %v2952_v52 = vor.u32 %v3223_v38, %v2951_v35 }
 0x144   : > { %vm1868_vm8 = vcmp.gt.f32.partialorder %v1672_v54, 0.0  ;;  %v1996_v60 = vmul.f32 0.2, %v1672_v54  ;;  %v1514_v61 = vadd.f32 %v1513_v56, %v1185_v55  ;;  %v2700_v55 = vor.u32 %v3158_v39, %v2697_v40 }
 0x145   : > { %v2956_v56 = vor.u32 %v3222_v41, %v2953_v44 }
 0x146   : > { %v2124_v2 = vsel %vm1868_vm8, %v1672_v54, %v1996_v60  ;;  %vm1805_vm9 = vcmp.gt.f32.partialorder %v1514_v61, 0.0  ;;  %v1933_v3 = vmul.f32 0.2, %v1514_v61 }
 0x147   : > { %v2252_v48 = vpack.c.bf16 %v2124_v2, %v2124_v2  ;;  %v1344_v5 = vpop.f32.mrf.mxu2 }
 0x148   : > { %v2061_v6 = vsel %vm1805_vm9, %v1514_v61, %v1933_v3  ;;  %v1345_v8 = vadd.f32 %v3707_v7, %v1344_v5  ;;  %v1673_v9 = vpop.f32.mrf.mxu3 }
 0x149   : > { %2381 = vst.msk [vmem:[%s3510_s8 + $0x148] sm:$0xf] %vm2298_vm1, %v2252_v48  ;;  %v2189_v12 = vpack.c.bf16 %v2061_v6, %v2061_v6  ;;  %v1187_v13 = vpop.f32.mrf.mxu0 }
 0x14a   : > { %v1674_v16 = vadd.f32 %v1673_v9, %v1345_v8  ;;  %v1188_v17 = vadd.f32 %v3707_v7, %v1187_v13  ;;  %v1516_v18 = vpop.f32.mrf.mxu1 }
 0x14b   : > { %2318 = vst.msk [vmem:[%s3510_s8 + $0x4c] sm:$0xf] %vm2298_vm1, %v2189_v12  ;;  %v2959_v12 = vld [vmem:[%s3417_s22 + $0x340] sm:$0xf] }
 0x14c   : > { %vm1869_vm10 = vcmp.gt.f32.partialorder %v1674_v16, 0.0  ;;  %v1997_v19 = vmul.f32 0.2, %v1674_v16  ;;  %v1517_v20 = vadd.f32 %v1516_v18, %v1188_v17  ;;  %1226 = vmatmul.bf16.gmra.mxu0 %v2688_v10  ;;  %1386 = vmatmul.bf16.gmra.mxu2 %v2944_v11  ;;  %v2703_v10 = vld [vmem:[%s3417_s22 + $0x140] sm:$0xf] }
 0x14d   : > { %1555 = vmatmul.bf16.gmra.mxu1 %v2692_v14  ;;  %1715 = vmatmul.bf16.gmra.mxu3 %v2948_v15  ;;  %v3161_v11 = vld [vmem:[%s3417_s22 + $0x144] sm:$0xf0]  ;;  %v2705_v17 = vld [vmem:[%s3417_s22 + $0x148] sm:$0xf0]  ;;  %v3224_v18 = vld [vmem:[%s3417_s22 + $0x344] sm:$0xf] }
 0x14e   : > { %v2125_v21 = vsel %vm1869_vm10, %v1674_v16, %v1997_v19  ;;  %vm1806_vm11 = vcmp.gt.f32.partialorder %v1517_v20, 0.0  ;;  %v1934_v22 = vmul.f32 0.2, %v1517_v20  ;;  %v3225_v15 = vld [vmem:[%s3417_s22 + $0x344] sm:$0xf0] }
 0x14f   : > { %v2253_v23 = vpack.c.bf16 %v2125_v21, %v2125_v21  ;;  %v1347_v24 = vpop.f32.mrf.mxu2  ;;  %v3160_v16 = vld [vmem:[%s3417_s22 + $0x144] sm:$0xf]  ;;  %v2961_v21 = vld [vmem:[%s3417_s22 + $0x348] sm:$0xf0] }
 0x150   : > { %v2062_v25 = vsel %vm1806_vm11, %v1517_v20, %v1934_v22  ;;  %v1348_v26 = vadd.f32 %v3707_v7, %v1347_v24  ;;  %v1676_v27 = vpop.f32.mrf.mxu3 }
 0x151   : > { %2382 = vst.msk [vmem:[%s3510_s8 + $0x14c] sm:$0xf] %vm2298_vm1, %v2253_v23  ;;  %v2190_v28 = vpack.c.bf16 %v2062_v25, %v2062_v25  ;;  %v1189_v29 = vpop.f32.mrf.mxu0 }
 0x152   : > { %v1677_v30 = vadd.f32 %v1676_v27, %v1348_v26  ;;  %v1190_v31 = vadd.f32 %v3707_v7, %v1189_v29  ;;  %v1518_v32 = vpop.f32.mrf.mxu1  ;;  %v2704_v27 = vor.u32 %v3161_v11, %v2703_v10 }
 0x153   : > { %2319 = vst.msk [vmem:[%s3510_s8 + $0x50] sm:$0xf] %vm2298_vm1, %v2190_v28  ;;  %v2960_v28 = vor.u32 %v3225_v15, %v2959_v12 }
 0x154   : > { %vm1870_vm12 = vcmp.gt.f32.partialorder %v1677_v30, 0.0  ;;  %v1998_v36 = vmul.f32 0.2, %v1677_v30  ;;  %v1519_v37 = vadd.f32 %v1518_v32, %v1190_v31  ;;  %v2708_v31 = vor.u32 %v3160_v16, %v2705_v17 }
 0x155   : > { %v2964_v32 = vor.u32 %v3224_v18, %v2961_v21 }
 0x156   : > { %v2126_v42 = vsel %vm1870_vm12, %v1677_v30, %v1998_v36  ;;  %vm1807_vm13 = vcmp.gt.f32.partialorder %v1519_v37, 0.0  ;;  %v1935_v43 = vmul.f32 0.2, %v1519_v37 }
 0x157   : > { %v2254_v45 = vpack.c.bf16 %v2126_v42, %v2126_v42  ;;  %v1349_v46 = vpop.f32.mrf.mxu2 }
 0x158   : > { %v2063_v47 = vsel %vm1807_vm13, %v1519_v37, %v1935_v43  ;;  %v1350_v49 = vadd.f32 %v3707_v7, %v1349_v46  ;;  %v1678_v50 = vpop.f32.mrf.mxu3 }
 0x159   : > { %2383 = vst.msk [vmem:[%s3510_s8 + $0x150] sm:$0xf] %vm2298_vm1, %v2254_v45  ;;  %v2191_v53 = vpack.c.bf16 %v2063_v47, %v2063_v47  ;;  %v1192_v54 = vpop.f32.mrf.mxu0 }
 0x15a   : > { %v1679_v57 = vadd.f32 %v1678_v50, %v1350_v49  ;;  %v1193_v58 = vadd.f32 %v3707_v7, %v1192_v54  ;;  %v1521_v59 = vpop.f32.mrf.mxu1 }
 0x15b   : > { %2320 = vst.msk [vmem:[%s3510_s8 + $0x54] sm:$0xf] %vm2298_vm1, %v2191_v53  ;;  %v2967_v53 = vld [vmem:[%s3417_s22 + $0x350] sm:$0xf] }
 0x15c   : > { %vm1871_vm14 = vcmp.gt.f32.partialorder %v1679_v57, 0.0  ;;  %v1999_v60 = vmul.f32 0.2, %v1679_v57  ;;  %v1522_v61 = vadd.f32 %v1521_v59, %v1193_v58  ;;  %1231 = vmatmul.bf16.gmra.mxu0 %v2696_v51  ;;  %1391 = vmatmul.bf16.gmra.mxu2 %v2952_v52  ;;  %v2711_v51 = vld [vmem:[%s3417_s22 + $0x150] sm:$0xf] }
 0x15d   : > { %1560 = vmatmul.bf16.gmra.mxu1 %v2700_v55  ;;  %1720 = vmatmul.bf16.gmra.mxu3 %v2956_v56  ;;  %v3163_v52 = vld [vmem:[%s3417_s22 + $0x154] sm:$0xf0]  ;;  %v2713_v58 = vld [vmem:[%s3417_s22 + $0x158] sm:$0xf0]  ;;  %v3226_v59 = vld [vmem:[%s3417_s22 + $0x354] sm:$0xf] }
 0x15e   : > { %v2127_v62 = vsel %vm1871_vm14, %v1679_v57, %v1999_v60  ;;  %vm1808_vm15 = vcmp.gt.f32.partialorder %v1522_v61, 0.0  ;;  %v1936_v63 = vmul.f32 0.2, %v1522_v61  ;;  %v3227_v56 = vld [vmem:[%s3417_s22 + $0x354] sm:$0xf0] }
 0x15f   : > { %v2255_v0 = vpack.c.bf16 %v2127_v62, %v2127_v62  ;;  %v1352_v1 = vpop.f32.mrf.mxu2  ;;  %v3162_v57 = vld [vmem:[%s3417_s22 + $0x154] sm:$0xf]  ;;  %v2969_v62 = vld [vmem:[%s3417_s22 + $0x358] sm:$0xf0] }
 0x160   : > { %v2064_v2 = vsel %vm1808_vm15, %v1522_v61, %v1936_v63  ;;  %v1353_v3 = vadd.f32 %v3707_v7, %v1352_v1  ;;  %v1681_v4 = vpop.f32.mrf.mxu3 }
 0x161   : > { %2384 = vst.msk [vmem:[%s3510_s8 + $0x154] sm:$0xf] %vm2298_vm1, %v2255_v0  ;;  %v2192_v48 = vpack.c.bf16 %v2064_v2, %v2064_v2  ;;  %v1194_v5 = vpop.f32.mrf.mxu0 }
 0x162   : > { %v1682_v6 = vadd.f32 %v1681_v4, %v1353_v3  ;;  %v1195_v8 = vadd.f32 %v3707_v7, %v1194_v5  ;;  %v1523_v9 = vpop.f32.mrf.mxu1  ;;  %v2712_v4 = vor.u32 %v3163_v52, %v2711_v51 }
 0x163   : > { %2321 = vst.msk [vmem:[%s3510_s8 + $0x58] sm:$0xf] %vm2298_vm1, %v2192_v48  ;;  %v2968_v48 = vor.u32 %v3227_v56, %v2967_v53 }
 0x164   : > { %vm1872_vm0 = vcmp.gt.f32.partialorder %v1682_v6, 0.0  ;;  %v2000_v13 = vmul.f32 0.2, %v1682_v6  ;;  %v1524_v14 = vadd.f32 %v1523_v9, %v1195_v8  ;;  %v2716_v8 = vor.u32 %v3162_v57, %v2713_v58 }
 0x165   : > { %v2972_v9 = vor.u32 %v3226_v59, %v2969_v62 }
 0x166   : > { %v2128_v19 = vsel %vm1872_vm0, %v1682_v6, %v2000_v13  ;;  %vm1809_vm2 = vcmp.gt.f32.partialorder %v1524_v14, 0.0  ;;  %v1937_v20 = vmul.f32 0.2, %v1524_v14 }
 0x167   : > { %v2256_v22 = vpack.c.bf16 %v2128_v19, %v2128_v19  ;;  %v1354_v23 = vpop.f32.mrf.mxu2 }
 0x168   : > { %v2065_v24 = vsel %vm1809_vm2, %v1524_v14, %v1937_v20  ;;  %v1355_v25 = vadd.f32 %v3707_v7, %v1354_v23  ;;  %v1683_v26 = vpop.f32.mrf.mxu3 }
 0x169   : > { %2385 = vst.msk [vmem:[%s3510_s8 + $0x158] sm:$0xf] %vm2298_vm1, %v2256_v22  ;;  %v2193_v29 = vpack.c.bf16 %v2065_v24, %v2065_v24  ;;  %v1197_v30 = vpop.f32.mrf.mxu0 }
 0x16a   : > { %v1684_v33 = vadd.f32 %v1683_v26, %v1355_v25  ;;  %v1198_v34 = vadd.f32 %v3707_v7, %v1197_v30  ;;  %v1526_v35 = vpop.f32.mrf.mxu1 }
 0x16b   : > { %2322 = vst.msk [vmem:[%s3510_s8 + $0x5c] sm:$0xf] %vm2298_vm1, %v2193_v29  ;;  %v2975_v29 = vld [vmem:[%s3417_s22 + $0x360] sm:$0xf] }
 0x16c   : > { %vm1873_vm3 = vcmp.gt.f32.partialorder %v1684_v33, 0.0  ;;  %v2001_v36 = vmul.f32 0.2, %v1684_v33  ;;  %v1527_v37 = vadd.f32 %v1526_v35, %v1198_v34  ;;  %1236 = vmatmul.bf16.gmra.mxu0 %v2704_v27  ;;  %1396 = vmatmul.bf16.gmra.mxu2 %v2960_v28  ;;  %v2719_v27 = vld [vmem:[%s3417_s22 + $0x160] sm:$0xf] }
 0x16d   : > { %1565 = vmatmul.bf16.gmra.mxu1 %v2708_v31  ;;  %1725 = vmatmul.bf16.gmra.mxu3 %v2964_v32  ;;  %v3165_v28 = vld [vmem:[%s3417_s22 + $0x164] sm:$0xf0]  ;;  %v2721_v34 = vld [vmem:[%s3417_s22 + $0x168] sm:$0xf0]  ;;  %v3228_v35 = vld [vmem:[%s3417_s22 + $0x364] sm:$0xf] }
 0x16e   : > { %v2129_v38 = vsel %vm1873_vm3, %v1684_v33, %v2001_v36  ;;  %vm1810_vm4 = vcmp.gt.f32.partialorder %v1527_v37, 0.0  ;;  %v1938_v39 = vmul.f32 0.2, %v1527_v37  ;;  %v3229_v32 = vld [vmem:[%s3417_s22 + $0x364] sm:$0xf0] }
 0x16f   : > { %v2257_v40 = vpack.c.bf16 %v2129_v38, %v2129_v38  ;;  %v1357_v41 = vpop.f32.mrf.mxu2  ;;  %v3164_v33 = vld [vmem:[%s3417_s22 + $0x164] sm:$0xf]  ;;  %v2977_v38 = vld [vmem:[%s3417_s22 + $0x368] sm:$0xf0] }
 0x170   : > { %v2066_v42 = vsel %vm1810_vm4, %v1527_v37, %v1938_v39  ;;  %v1358_v43 = vadd.f32 %v3707_v7, %v1357_v41  ;;  %v1686_v44 = vpop.f32.mrf.mxu3 }
 0x171   : > { %2386 = vst.msk [vmem:[%s3510_s8 + $0x15c] sm:$0xf] %vm2298_vm1, %v2257_v40  ;;  %v2194_v45 = vpack.c.bf16 %v2066_v42, %v2066_v42  ;;  %v1199_v46 = vpop.f32.mrf.mxu0 }
 0x172   : > { %v1687_v47 = vadd.f32 %v1686_v44, %v1358_v43  ;;  %v1200_v49 = vadd.f32 %v3707_v7, %v1199_v46  ;;  %v1528_v50 = vpop.f32.mrf.mxu1  ;;  %v2720_v44 = vor.u32 %v3165_v28, %v2719_v27 }
 0x173   : > { %2323 = vst.msk [vmem:[%s3510_s8 + $0x60] sm:$0xf] %vm2298_vm1, %v2194_v45  ;;  %v2976_v45 = vor.u32 %v3229_v32, %v2975_v29 }
 0x174   : > { %vm1874_vm5 = vcmp.gt.f32.partialorder %v1687_v47, 0.0  ;;  %v2002_v54 = vmul.f32 0.2, %v1687_v47  ;;  %v1529_v55 = vadd.f32 %v1528_v50, %v1200_v49  ;;  %v2724_v49 = vor.u32 %v3164_v33, %v2721_v34 }
 0x175   : > { %v2980_v50 = vor.u32 %v3228_v35, %v2977_v38 }
 0x176   : > { %v2130_v60 = vsel %vm1874_vm5, %v1687_v47, %v2002_v54  ;;  %vm1811_vm6 = vcmp.gt.f32.partialorder %v1529_v55, 0.0  ;;  %v1939_v61 = vmul.f32 0.2, %v1529_v55 }
 0x177   : > { %v2258_v63 = vpack.c.bf16 %v2130_v60, %v2130_v60  ;;  %v1359_v0 = vpop.f32.mrf.mxu2 }
 0x178   : > { %v2067_v1 = vsel %vm1811_vm6, %v1529_v55, %v1939_v61  ;;  %v1360_v2 = vadd.f32 %v3707_v7, %v1359_v0  ;;  %v1688_v3 = vpop.f32.mrf.mxu3 }
 0x179   : > { %2387 = vst.msk [vmem:[%s3510_s8 + $0x160] sm:$0xf] %vm2298_vm1, %v2258_v63  ;;  %v2195_v5 = vpack.c.bf16 %v2067_v1, %v2067_v1  ;;  %v1202_v6 = vpop.f32.mrf.mxu0 }
 0x17a   : > { %v1689_v10 = vadd.f32 %v1688_v3, %v1360_v2  ;;  %v1203_v11 = vadd.f32 %v3707_v7, %v1202_v6  ;;  %v1531_v12 = vpop.f32.mrf.mxu1 }
 0x17b   : > { %2324 = vst.msk [vmem:[%s3510_s8 + $0x64] sm:$0xf] %vm2298_vm1, %v2195_v5  ;;  %v2983_v5 = vld [vmem:[%s3417_s22 + $0x370] sm:$0xf] }
 0x17c   : > { %vm1875_vm7 = vcmp.gt.f32.partialorder %v1689_v10, 0.0  ;;  %v2003_v13 = vmul.f32 0.2, %v1689_v10  ;;  %v1532_v14 = vadd.f32 %v1531_v12, %v1203_v11  ;;  %1241 = vmatmul.bf16.gmra.mxu0 %v2712_v4  ;;  %1401 = vmatmul.bf16.gmra.mxu2 %v2968_v48  ;;  %v2727_v4 = vld [vmem:[%s3417_s22 + $0x170] sm:$0xf] }
 0x17d   : > { %1570 = vmatmul.bf16.gmra.mxu1 %v2716_v8  ;;  %1730 = vmatmul.bf16.gmra.mxu3 %v2972_v9  ;;  %v3167_v48 = vld [vmem:[%s3417_s22 + $0x174] sm:$0xf0]  ;;  %v2729_v11 = vld [vmem:[%s3417_s22 + $0x178] sm:$0xf0]  ;;  %v3230_v12 = vld [vmem:[%s3417_s22 + $0x374] sm:$0xf] }
 0x17e   : > { %v2131_v15 = vsel %vm1875_vm7, %v1689_v10, %v2003_v13  ;;  %vm1812_vm8 = vcmp.gt.f32.partialorder %v1532_v14, 0.0  ;;  %v1940_v16 = vmul.f32 0.2, %v1532_v14  ;;  %v3231_v9 = vld [vmem:[%s3417_s22 + $0x374] sm:$0xf0] }
 0x17f   : > { %v2259_v17 = vpack.c.bf16 %v2131_v15, %v2131_v15  ;;  %v1362_v18 = vpop.f32.mrf.mxu2  ;;  %v3166_v10 = vld [vmem:[%s3417_s22 + $0x174] sm:$0xf]  ;;  %v2985_v15 = vld [vmem:[%s3417_s22 + $0x378] sm:$0xf0] }
 0x180   : > { %v2068_v19 = vsel %vm1812_vm8, %v1532_v14, %v1940_v16  ;;  %v1363_v20 = vadd.f32 %v3707_v7, %v1362_v18  ;;  %v1691_v21 = vpop.f32.mrf.mxu3 }
 0x181   : > { %2388 = vst.msk [vmem:[%s3510_s8 + $0x164] sm:$0xf] %vm2298_vm1, %v2259_v17  ;;  %v2196_v22 = vpack.c.bf16 %v2068_v19, %v2068_v19  ;;  %v1204_v23 = vpop.f32.mrf.mxu0 }
 0x182   : > { %v1692_v24 = vadd.f32 %v1691_v21, %v1363_v20  ;;  %v1205_v25 = vadd.f32 %v3707_v7, %v1204_v23  ;;  %v1533_v26 = vpop.f32.mrf.mxu1  ;;  %v2728_v21 = vor.u32 %v3167_v48, %v2727_v4 }
 0x183   : > { %2325 = vst.msk [vmem:[%s3510_s8 + $0x68] sm:$0xf] %vm2298_vm1, %v2196_v22  ;;  %v2984_v22 = vor.u32 %v3231_v9, %v2983_v5 }
 0x184   : > { %vm1876_vm9 = vcmp.gt.f32.partialorder %v1692_v24, 0.0  ;;  %v2004_v30 = vmul.f32 0.2, %v1692_v24  ;;  %v1534_v31 = vadd.f32 %v1533_v26, %v1205_v25  ;;  %v2732_v25 = vor.u32 %v3166_v10, %v2729_v11 }
 0x185   : > { %v2988_v26 = vor.u32 %v3230_v12, %v2985_v15 }
 0x186   : > { %v2132_v36 = vsel %vm1876_vm9, %v1692_v24, %v2004_v30  ;;  %vm1813_vm10 = vcmp.gt.f32.partialorder %v1534_v31, 0.0  ;;  %v1941_v37 = vmul.f32 0.2, %v1534_v31 }
 0x187   : > { %v2260_v39 = vpack.c.bf16 %v2132_v36, %v2132_v36  ;;  %v1364_v40 = vpop.f32.mrf.mxu2 }
 0x188   : > { %v2069_v41 = vsel %vm1813_vm10, %v1534_v31, %v1941_v37  ;;  %v1365_v42 = vadd.f32 %v3707_v7, %v1364_v40  ;;  %v1693_v43 = vpop.f32.mrf.mxu3 }
 0x189   : > { %2389 = vst.msk [vmem:[%s3510_s8 + $0x168] sm:$0xf] %vm2298_vm1, %v2260_v39  ;;  %v2197_v46 = vpack.c.bf16 %v2069_v41, %v2069_v41  ;;  %v1207_v47 = vpop.f32.mrf.mxu0 }
 0x18a   : > { %v1694_v51 = vadd.f32 %v1693_v43, %v1365_v42  ;;  %v1208_v52 = vadd.f32 %v3707_v7, %v1207_v47  ;;  %v1536_v53 = vpop.f32.mrf.mxu1 }
 0x18b   : > { %2326 = vst.msk [vmem:[%s3510_s8 + $0x6c] sm:$0xf] %vm2298_vm1, %v2197_v46  ;;  %v2991_v46 = vld [vmem:[%s3417_s22 + $0x380] sm:$0xf] }
 0x18c   : > { %vm1877_vm11 = vcmp.gt.f32.partialorder %v1694_v51, 0.0  ;;  %v2005_v54 = vmul.f32 0.2, %v1694_v51  ;;  %v1537_v55 = vadd.f32 %v1536_v53, %v1208_v52  ;;  %1246 = vmatmul.bf16.gmra.mxu0 %v2720_v44  ;;  %1406 = vmatmul.bf16.gmra.mxu2 %v2976_v45  ;;  %v2735_v44 = vld [vmem:[%s3417_s22 + $0x180] sm:$0xf] }
 0x18d   : > { %1575 = vmatmul.bf16.gmra.mxu1 %v2724_v49  ;;  %1735 = vmatmul.bf16.gmra.mxu3 %v2980_v50  ;;  %v3169_v45 = vld [vmem:[%s3417_s22 + $0x184] sm:$0xf0]  ;;  %v2737_v52 = vld [vmem:[%s3417_s22 + $0x188] sm:$0xf0]  ;;  %v3232_v53 = vld [vmem:[%s3417_s22 + $0x384] sm:$0xf] }
 0x18e   : > { %v2133_v56 = vsel %vm1877_vm11, %v1694_v51, %v2005_v54  ;;  %vm1814_vm12 = vcmp.gt.f32.partialorder %v1537_v55, 0.0  ;;  %v1942_v57 = vmul.f32 0.2, %v1537_v55  ;;  %v3233_v50 = vld [vmem:[%s3417_s22 + $0x384] sm:$0xf0] }
 0x18f   : > { %v2261_v58 = vpack.c.bf16 %v2133_v56, %v2133_v56  ;;  %v1367_v59 = vpop.f32.mrf.mxu2  ;;  %v3168_v51 = vld [vmem:[%s3417_s22 + $0x184] sm:$0xf]  ;;  %v2993_v56 = vld [vmem:[%s3417_s22 + $0x388] sm:$0xf0] }
 0x190   : > { %v2070_v60 = vsel %vm1814_vm12, %v1537_v55, %v1942_v57  ;;  %v1368_v61 = vadd.f32 %v3707_v7, %v1367_v59  ;;  %v1696_v62 = vpop.f32.mrf.mxu3 }
 0x191   : > { %2390 = vst.msk [vmem:[%s3510_s8 + $0x16c] sm:$0xf] %vm2298_vm1, %v2261_v58  ;;  %v2198_v63 = vpack.c.bf16 %v2070_v60, %v2070_v60  ;;  %v1209_v0 = vpop.f32.mrf.mxu0 }
 0x192   : > { %v1697_v1 = vadd.f32 %v1696_v62, %v1368_v61  ;;  %v1210_v2 = vadd.f32 %v3707_v7, %v1209_v0  ;;  %v1538_v3 = vpop.f32.mrf.mxu1  ;;  %v2736_v62 = vor.u32 %v3169_v45, %v2735_v44 }
 0x193   : > { %2327 = vst.msk [vmem:[%s3510_s8 + $0x70] sm:$0xf] %vm2298_vm1, %v2198_v63  ;;  %v2992_v63 = vor.u32 %v3233_v50, %v2991_v46 }
 0x194   : > { %vm1878_vm13 = vcmp.gt.f32.partialorder %v1697_v1, 0.0  ;;  %v2006_v6 = vmul.f32 0.2, %v1697_v1  ;;  %v1539_v8 = vadd.f32 %v1538_v3, %v1210_v2  ;;  %v2740_v2 = vor.u32 %v3168_v51, %v2737_v52 }
 0x195   : > { %v2996_v3 = vor.u32 %v3232_v53, %v2993_v56 }
 0x196   : > { %v2134_v13 = vsel %vm1878_vm13, %v1697_v1, %v2006_v6  ;;  %vm1815_vm14 = vcmp.gt.f32.partialorder %v1539_v8, 0.0  ;;  %v1943_v14 = vmul.f32 0.2, %v1539_v8 }
 0x197   : > { %v2262_v16 = vpack.c.bf16 %v2134_v13, %v2134_v13  ;;  %v1369_v17 = vpop.f32.mrf.mxu2 }
 0x198   : > { %v2071_v18 = vsel %vm1815_vm14, %v1539_v8, %v1943_v14  ;;  %v1370_v19 = vadd.f32 %v3707_v7, %v1369_v17  ;;  %v1698_v20 = vpop.f32.mrf.mxu3 }
 0x199   : > { %2391 = vst.msk [vmem:[%s3510_s8 + $0x170] sm:$0xf] %vm2298_vm1, %v2262_v16  ;;  %v2199_v23 = vpack.c.bf16 %v2071_v18, %v2071_v18  ;;  %v1212_v24 = vpop.f32.mrf.mxu0 }
 0x19a   : > { %v1699_v27 = vadd.f32 %v1698_v20, %v1370_v19  ;;  %v1213_v28 = vadd.f32 %v3707_v7, %v1212_v24  ;;  %v1541_v29 = vpop.f32.mrf.mxu1 }
 0x19b   : > { %2328 = vst.msk [vmem:[%s3510_s8 + $0x74] sm:$0xf] %vm2298_vm1, %v2199_v23  ;;  %v2999_v23 = vld [vmem:[%s3417_s22 + $0x390] sm:$0xf] }
 0x19c   : > { %vm1879_vm15 = vcmp.gt.f32.partialorder %v1699_v27, 0.0  ;;  %v2007_v30 = vmul.f32 0.2, %v1699_v27  ;;  %v1542_v31 = vadd.f32 %v1541_v29, %v1213_v28  ;;  %1251 = vmatmul.bf16.gmra.mxu0 %v2728_v21  ;;  %1411 = vmatmul.bf16.gmra.mxu2 %v2984_v22  ;;  %v2743_v21 = vld [vmem:[%s3417_s22 + $0x190] sm:$0xf] }
 0x19d   : > { %1580 = vmatmul.bf16.gmra.mxu1 %v2732_v25  ;;  %1740 = vmatmul.bf16.gmra.mxu3 %v2988_v26  ;;  %v3171_v22 = vld [vmem:[%s3417_s22 + $0x194] sm:$0xf0]  ;;  %v2745_v28 = vld [vmem:[%s3417_s22 + $0x198] sm:$0xf0]  ;;  %v3234_v29 = vld [vmem:[%s3417_s22 + $0x394] sm:$0xf] }
 0x19e   : > { %v2135_v32 = vsel %vm1879_vm15, %v1699_v27, %v2007_v30  ;;  %vm1816_vm0 = vcmp.gt.f32.partialorder %v1542_v31, 0.0  ;;  %v1944_v33 = vmul.f32 0.2, %v1542_v31  ;;  %v3235_v26 = vld [vmem:[%s3417_s22 + $0x394] sm:$0xf0] }
 0x19f   : > { %v2263_v34 = vpack.c.bf16 %v2135_v32, %v2135_v32  ;;  %v1372_v35 = vpop.f32.mrf.mxu2  ;;  %v3170_v27 = vld [vmem:[%s3417_s22 + $0x194] sm:$0xf]  ;;  %v3001_v32 = vld [vmem:[%s3417_s22 + $0x398] sm:$0xf0] }
 0x1a0   : > { %v2072_v36 = vsel %vm1816_vm0, %v1542_v31, %v1944_v33  ;;  %v1373_v37 = vadd.f32 %v3707_v7, %v1372_v35  ;;  %v1701_v38 = vpop.f32.mrf.mxu3 }
 0x1a1   : > { %2392 = vst.msk [vmem:[%s3510_s8 + $0x174] sm:$0xf] %vm2298_vm1, %v2263_v34  ;;  %v2200_v39 = vpack.c.bf16 %v2072_v36, %v2072_v36  ;;  %v1214_v40 = vpop.f32.mrf.mxu0 }
 0x1a2   : > { %v1702_v41 = vadd.f32 %v1701_v38, %v1373_v37  ;;  %v1215_v42 = vadd.f32 %v3707_v7, %v1214_v40  ;;  %v1543_v43 = vpop.f32.mrf.mxu1  ;;  %v2744_v38 = vor.u32 %v3171_v22, %v2743_v21 }
 0x1a3   : > { %2329 = vst.msk [vmem:[%s3510_s8 + $0x78] sm:$0xf] %vm2298_vm1, %v2200_v39  ;;  %v3000_v39 = vor.u32 %v3235_v26, %v2999_v23 }
 0x1a4   : > { %vm1880_vm2 = vcmp.gt.f32.partialorder %v1702_v41, 0.0  ;;  %v2008_v47 = vmul.f32 0.2, %v1702_v41  ;;  %v1544_v49 = vadd.f32 %v1543_v43, %v1215_v42  ;;  %v2748_v42 = vor.u32 %v3170_v27, %v2745_v28 }
 0x1a5   : > { %v3004_v43 = vor.u32 %v3234_v29, %v3001_v32 }
 0x1a6   : > { %v2136_v54 = vsel %vm1880_vm2, %v1702_v41, %v2008_v47  ;;  %vm1817_vm3 = vcmp.gt.f32.partialorder %v1544_v49, 0.0  ;;  %v1945_v55 = vmul.f32 0.2, %v1544_v49 }
 0x1a7   : > { %v2264_v57 = vpack.c.bf16 %v2136_v54, %v2136_v54  ;;  %v1374_v58 = vpop.f32.mrf.mxu2 }
 0x1a8   : > { %v2073_v59 = vsel %vm1817_vm3, %v1544_v49, %v1945_v55  ;;  %v1375_v60 = vadd.f32 %v3707_v7, %v1374_v58  ;;  %v1703_v61 = vpop.f32.mrf.mxu3 }
 0x1a9   : > { %2393 = vst.msk [vmem:[%s3510_s8 + $0x178] sm:$0xf] %vm2298_vm1, %v2264_v57  ;;  %v2201_v0 = vpack.c.bf16 %v2073_v59, %v2073_v59  ;;  %v1217_v1 = vpop.f32.mrf.mxu0 }
 0x1aa   : > { %v1704_v4 = vadd.f32 %v1703_v61, %v1375_v60  ;;  %v1218_v48 = vadd.f32 %v3707_v7, %v1217_v1  ;;  %v1546_v5 = vpop.f32.mrf.mxu1 }
 0x1ab   : > { %2330 = vst.msk [vmem:[%s3510_s8 + $0x7c] sm:$0xf] %vm2298_vm1, %v2201_v0  ;;  %v3007_v0 = vld [vmem:[%s3417_s22 + $0x3a0] sm:$0xf] }
 0x1ac   : > { %vm1881_vm4 = vcmp.gt.f32.partialorder %v1704_v4, 0.0  ;;  %v2009_v6 = vmul.f32 0.2, %v1704_v4  ;;  %v1547_v8 = vadd.f32 %v1546_v5, %v1218_v48  ;;  %1256 = vmatmul.bf16.gmra.mxu0 %v2736_v62  ;;  %1416 = vmatmul.bf16.gmra.mxu2 %v2992_v63  ;;  %v2751_v62 = vld [vmem:[%s3417_s22 + $0x1a0] sm:$0xf] }
 0x1ad   : > { %1585 = vmatmul.bf16.gmra.mxu1 %v2740_v2  ;;  %1745 = vmatmul.bf16.gmra.mxu3 %v2996_v3  ;;  %v3173_v63 = vld [vmem:[%s3417_s22 + $0x1a4] sm:$0xf0]  ;;  %v2753_v48 = vld [vmem:[%s3417_s22 + $0x1a8] sm:$0xf0]  ;;  %v3236_v5 = vld [vmem:[%s3417_s22 + $0x3a4] sm:$0xf] }
 0x1ae   : > { %v2137_v9 = vsel %vm1881_vm4, %v1704_v4, %v2009_v6  ;;  %vm1818_vm5 = vcmp.gt.f32.partialorder %v1547_v8, 0.0  ;;  %v1946_v10 = vmul.f32 0.2, %v1547_v8  ;;  %v3237_v3 = vld [vmem:[%s3417_s22 + $0x3a4] sm:$0xf0] }
 0x1af   : > { %v2265_v11 = vpack.c.bf16 %v2137_v9, %v2137_v9  ;;  %v1377_v12 = vpop.f32.mrf.mxu2  ;;  %v3172_v4 = vld [vmem:[%s3417_s22 + $0x1a4] sm:$0xf]  ;;  %v3009_v9 = vld [vmem:[%s3417_s22 + $0x3a8] sm:$0xf0] }
 0x1b0   : > { %v2074_v13 = vsel %vm1818_vm5, %v1547_v8, %v1946_v10  ;;  %v1378_v14 = vadd.f32 %v3707_v7, %v1377_v12  ;;  %v1706_v15 = vpop.f32.mrf.mxu3 }
 0x1b1   : > { %2394 = vst.msk [vmem:[%s3510_s8 + $0x17c] sm:$0xf] %vm2298_vm1, %v2265_v11  ;;  %v2202_v16 = vpack.c.bf16 %v2074_v13, %v2074_v13  ;;  %v1219_v17 = vpop.f32.mrf.mxu0 }
 0x1b2   : > { %v1707_v18 = vadd.f32 %v1706_v15, %v1378_v14  ;;  %v1220_v19 = vadd.f32 %v3707_v7, %v1219_v17  ;;  %v1548_v20 = vpop.f32.mrf.mxu1  ;;  %v2752_v15 = vor.u32 %v3173_v63, %v2751_v62 }
 0x1b3   : > { %2331 = vst.msk [vmem:[%s3510_s8 + $0x80] sm:$0xf] %vm2298_vm1, %v2202_v16  ;;  %v3008_v16 = vor.u32 %v3237_v3, %v3007_v0 }
 0x1b4   : > { %vm1882_vm6 = vcmp.gt.f32.partialorder %v1707_v18, 0.0  ;;  %v2010_v24 = vmul.f32 0.2, %v1707_v18  ;;  %v1549_v25 = vadd.f32 %v1548_v20, %v1220_v19  ;;  %v2756_v19 = vor.u32 %v3172_v4, %v2753_v48 }
 0x1b5   : > { %v3012_v20 = vor.u32 %v3236_v5, %v3009_v9 }
 0x1b6   : > { %v2138_v30 = vsel %vm1882_vm6, %v1707_v18, %v2010_v24  ;;  %vm1819_vm7 = vcmp.gt.f32.partialorder %v1549_v25, 0.0  ;;  %v1947_v31 = vmul.f32 0.2, %v1549_v25 }
 0x1b7   : > { %v2266_v33 = vpack.c.bf16 %v2138_v30, %v2138_v30  ;;  %v1379_v34 = vpop.f32.mrf.mxu2 }
 0x1b8   : > { %v2075_v35 = vsel %vm1819_vm7, %v1549_v25, %v1947_v31  ;;  %v1380_v36 = vadd.f32 %v3707_v7, %v1379_v34  ;;  %v1708_v37 = vpop.f32.mrf.mxu3 }
 0x1b9   : > { %2395 = vst.msk [vmem:[%s3510_s8 + $0x180] sm:$0xf] %vm2298_vm1, %v2266_v33  ;;  %v2203_v40 = vpack.c.bf16 %v2075_v35, %v2075_v35  ;;  %v1222_v41 = vpop.f32.mrf.mxu0 }
 0x1ba   : > { %v1709_v44 = vadd.f32 %v1708_v37, %v1380_v36  ;;  %v1223_v45 = vadd.f32 %v3707_v7, %v1222_v41  ;;  %v1551_v46 = vpop.f32.mrf.mxu1 }
 0x1bb   : > { %2332 = vst.msk [vmem:[%s3510_s8 + $0x84] sm:$0xf] %vm2298_vm1, %v2203_v40  ;;  %v3015_v40 = vld [vmem:[%s3417_s22 + $0x3b0] sm:$0xf] }
 0x1bc   : > { %vm1883_vm8 = vcmp.gt.f32.partialorder %v1709_v44, 0.0  ;;  %v2011_v47 = vmul.f32 0.2, %v1709_v44  ;;  %v1552_v49 = vadd.f32 %v1551_v46, %v1223_v45  ;;  %1261 = vmatmul.bf16.gmra.mxu0 %v2744_v38  ;;  %1421 = vmatmul.bf16.gmra.mxu2 %v3000_v39  ;;  %v2759_v38 = vld [vmem:[%s3417_s22 + $0x1b0] sm:$0xf] }
 0x1bd   : > { %1590 = vmatmul.bf16.gmra.mxu1 %v2748_v42  ;;  %1750 = vmatmul.bf16.gmra.mxu3 %v3004_v43  ;;  %v3175_v39 = vld [vmem:[%s3417_s22 + $0x1b4] sm:$0xf0]  ;;  %v2761_v45 = vld [vmem:[%s3417_s22 + $0x1b8] sm:$0xf0]  ;;  %v3238_v46 = vld [vmem:[%s3417_s22 + $0x3b4] sm:$0xf] }
 0x1be   : > { %v2139_v50 = vsel %vm1883_vm8, %v1709_v44, %v2011_v47  ;;  %vm1820_vm9 = vcmp.gt.f32.partialorder %v1552_v49, 0.0  ;;  %v1948_v51 = vmul.f32 0.2, %v1552_v49  ;;  %v3239_v43 = vld [vmem:[%s3417_s22 + $0x3b4] sm:$0xf0] }
 0x1bf   : > { %v2267_v52 = vpack.c.bf16 %v2139_v50, %v2139_v50  ;;  %v1382_v53 = vpop.f32.mrf.mxu2  ;;  %v3174_v44 = vld [vmem:[%s3417_s22 + $0x1b4] sm:$0xf]  ;;  %v3017_v50 = vld [vmem:[%s3417_s22 + $0x3b8] sm:$0xf0] }
 0x1c0   : > { %v2076_v54 = vsel %vm1820_vm9, %v1552_v49, %v1948_v51  ;;  %v1383_v55 = vadd.f32 %v3707_v7, %v1382_v53  ;;  %v1711_v56 = vpop.f32.mrf.mxu3 }
 0x1c1   : > { %2396 = vst.msk [vmem:[%s3510_s8 + $0x184] sm:$0xf] %vm2298_vm1, %v2267_v52  ;;  %v2204_v57 = vpack.c.bf16 %v2076_v54, %v2076_v54  ;;  %v1224_v58 = vpop.f32.mrf.mxu0 }
 0x1c2   : > { %v1712_v59 = vadd.f32 %v1711_v56, %v1383_v55  ;;  %v1225_v60 = vadd.f32 %v3707_v7, %v1224_v58  ;;  %v1553_v61 = vpop.f32.mrf.mxu1  ;;  %v2760_v56 = vor.u32 %v3175_v39, %v2759_v38 }
 0x1c3   : > { %2333 = vst.msk [vmem:[%s3510_s8 + $0x88] sm:$0xf] %vm2298_vm1, %v2204_v57  ;;  %v3016_v57 = vor.u32 %v3239_v43, %v3015_v40 }
 0x1c4   : > { %vm1884_vm10 = vcmp.gt.f32.partialorder %v1712_v59, 0.0  ;;  %v2012_v1 = vmul.f32 0.2, %v1712_v59  ;;  %v1554_v2 = vadd.f32 %v1553_v61, %v1225_v60  ;;  %v2764_v60 = vor.u32 %v3174_v44, %v2761_v45 }
 0x1c5   : > { %v3020_v61 = vor.u32 %v3238_v46, %v3017_v50 }
 0x1c6   : > { %v2140_v6 = vsel %vm1884_vm10, %v1712_v59, %v2012_v1  ;;  %vm1821_vm11 = vcmp.gt.f32.partialorder %v1554_v2, 0.0  ;;  %v1949_v8 = vmul.f32 0.2, %v1554_v2 }
 0x1c7   : > { %v2268_v10 = vpack.c.bf16 %v2140_v6, %v2140_v6  ;;  %v1384_v11 = vpop.f32.mrf.mxu2 }
 0x1c8   : > { %v2077_v12 = vsel %vm1821_vm11, %v1554_v2, %v1949_v8  ;;  %v1385_v13 = vadd.f32 %v3707_v7, %v1384_v11  ;;  %v1713_v14 = vpop.f32.mrf.mxu3 }
 0x1c9   : > { %2397 = vst.msk [vmem:[%s3510_s8 + $0x188] sm:$0xf] %vm2298_vm1, %v2268_v10  ;;  %v2205_v17 = vpack.c.bf16 %v2077_v12, %v2077_v12  ;;  %v1227_v18 = vpop.f32.mrf.mxu0 }
 0x1ca   : > { %v1714_v21 = vadd.f32 %v1713_v14, %v1385_v13  ;;  %v1228_v22 = vadd.f32 %v3707_v7, %v1227_v18  ;;  %v1556_v23 = vpop.f32.mrf.mxu1 }
 0x1cb   : > { %2334 = vst.msk [vmem:[%s3510_s8 + $0x8c] sm:$0xf] %vm2298_vm1, %v2205_v17  ;;  %v3023_v17 = vld [vmem:[%s3417_s22 + $0x3c0] sm:$0xf] }
 0x1cc   : > { %vm1885_vm12 = vcmp.gt.f32.partialorder %v1714_v21, 0.0  ;;  %v2013_v24 = vmul.f32 0.2, %v1714_v21  ;;  %v1557_v25 = vadd.f32 %v1556_v23, %v1228_v22  ;;  %1266 = vmatmul.bf16.gmra.mxu0 %v2752_v15  ;;  %1426 = vmatmul.bf16.gmra.mxu2 %v3008_v16  ;;  %v2767_v15 = vld [vmem:[%s3417_s22 + $0x1c0] sm:$0xf] }
 0x1cd   : > { %1595 = vmatmul.bf16.gmra.mxu1 %v2756_v19  ;;  %1755 = vmatmul.bf16.gmra.mxu3 %v3012_v20  ;;  %v3177_v16 = vld [vmem:[%s3417_s22 + $0x1c4] sm:$0xf0]  ;;  %v2769_v22 = vld [vmem:[%s3417_s22 + $0x1c8] sm:$0xf0]  ;;  %v3240_v23 = vld [vmem:[%s3417_s22 + $0x3c4] sm:$0xf] }
 0x1ce   : > { %v2141_v26 = vsel %vm1885_vm12, %v1714_v21, %v2013_v24  ;;  %vm1822_vm13 = vcmp.gt.f32.partialorder %v1557_v25, 0.0  ;;  %v1950_v27 = vmul.f32 0.2, %v1557_v25  ;;  %v3241_v20 = vld [vmem:[%s3417_s22 + $0x3c4] sm:$0xf0] }
 0x1cf   : > { %v2269_v28 = vpack.c.bf16 %v2141_v26, %v2141_v26  ;;  %v1387_v29 = vpop.f32.mrf.mxu2  ;;  %v3176_v21 = vld [vmem:[%s3417_s22 + $0x1c4] sm:$0xf]  ;;  %v3025_v26 = vld [vmem:[%s3417_s22 + $0x3c8] sm:$0xf0] }
 0x1d0   : > { %v2078_v30 = vsel %vm1822_vm13, %v1557_v25, %v1950_v27  ;;  %v1388_v31 = vadd.f32 %v3707_v7, %v1387_v29  ;;  %v1716_v32 = vpop.f32.mrf.mxu3  ;;  %v3912_v29 = vld [vmem:[%s4100_s2] ss:$0 sm:$0xff] }
 0x1d1   : > { %2398 = vst.msk [vmem:[%s3510_s8 + $0x18c] sm:$0xf] %vm2298_vm1, %v2269_v28  ;;  %v2206_v33 = vpack.c.bf16 %v2078_v30, %v2078_v30  ;;  %v1229_v34 = vpop.f32.mrf.mxu0 }
 0x1d2   : > { %v1717_v35 = vadd.f32 %v1716_v32, %v1388_v31  ;;  %v1230_v36 = vadd.f32 %v3707_v7, %v1229_v34  ;;  %v1558_v37 = vpop.f32.mrf.mxu1  ;;  %v2768_v32 = vor.u32 %v3177_v16, %v2767_v15 }
 0x1d3   : > { %2335 = vst.msk [vmem:[%s3510_s8 + $0x90] sm:$0xf] %vm2298_vm1, %v2206_v33  ;;  %v3024_v33 = vor.u32 %v3241_v20, %v3023_v17 }
 0x1d4   : > { %vm1886_vm14 = vcmp.gt.f32.partialorder %v1717_v35, 0.0  ;;  %v2014_v41 = vmul.f32 0.2, %v1717_v35  ;;  %v1559_v42 = vadd.f32 %v1558_v37, %v1230_v36  ;;  %v2772_v36 = vor.u32 %v3176_v21, %v2769_v22 }
 0x1d5   : > { %v3028_v37 = vor.u32 %v3240_v23, %v3025_v26 }
 0x1d6   : > { %v2142_v47 = vsel %vm1886_vm14, %v1717_v35, %v2014_v41  ;;  %vm1823_vm15 = vcmp.gt.f32.partialorder %v1559_v42, 0.0  ;;  %v1951_v49 = vmul.f32 0.2, %v1559_v42 }
 0x1d7   : > { %v2270_v51 = vpack.c.bf16 %v2142_v47, %v2142_v47  ;;  %v1389_v52 = vpop.f32.mrf.mxu2 }
 0x1d8   : > { %v2079_v53 = vsel %vm1823_vm15, %v1559_v42, %v1951_v49  ;;  %v1390_v54 = vadd.f32 %v3707_v7, %v1389_v52  ;;  %v1718_v55 = vpop.f32.mrf.mxu3 }
 0x1d9   : > { %2399 = vst.msk [vmem:[%s3510_s8 + $0x190] sm:$0xf] %vm2298_vm1, %v2270_v51  ;;  %v2207_v58 = vpack.c.bf16 %v2079_v53, %v2079_v53  ;;  %v1232_v59 = vpop.f32.mrf.mxu0 }
 0x1da   : > { %v1719_v62 = vadd.f32 %v1718_v55, %v1390_v54  ;;  %v1233_v63 = vadd.f32 %v3707_v7, %v1232_v59  ;;  %v1561_v0 = vpop.f32.mrf.mxu1 }
 0x1db   : > { %2336 = vst.msk [vmem:[%s3510_s8 + $0x94] sm:$0xf] %vm2298_vm1, %v2207_v58  ;;  %v3031_v58 = vld [vmem:[%s3417_s22 + $0x3d0] sm:$0xf] }
 0x1dc   : > { %vm1887_vm0 = vcmp.gt.f32.partialorder %v1719_v62, 0.0  ;;  %v2015_v1 = vmul.f32 0.2, %v1719_v62  ;;  %v1562_v2 = vadd.f32 %v1561_v0, %v1233_v63  ;;  %1271 = vmatmul.bf16.gmra.mxu0 %v2760_v56  ;;  %1431 = vmatmul.bf16.gmra.mxu2 %v3016_v57  ;;  %v2775_v56 = vld [vmem:[%s3417_s22 + $0x1d0] sm:$0xf] }
 0x1dd   : > { %1600 = vmatmul.bf16.gmra.mxu1 %v2764_v60  ;;  %1760 = vmatmul.bf16.gmra.mxu3 %v3020_v61  ;;  %v3179_v57 = vld [vmem:[%s3417_s22 + $0x1d4] sm:$0xf0]  ;;  %v2777_v63 = vld [vmem:[%s3417_s22 + $0x1d8] sm:$0xf0]  ;;  %v3242_v0 = vld [vmem:[%s3417_s22 + $0x3d4] sm:$0xf] }
 0x1de   : > { %v2143_v3 = vsel %vm1887_vm0, %v1719_v62, %v2015_v1  ;;  %vm1824_vm2 = vcmp.gt.f32.partialorder %v1562_v2, 0.0  ;;  %v1952_v4 = vmul.f32 0.2, %v1562_v2  ;;  %v3243_v61 = vld [vmem:[%s3417_s22 + $0x3d4] sm:$0xf0] }
 0x1df   : > { %v2271_v48 = vpack.c.bf16 %v2143_v3, %v2143_v3  ;;  %v1392_v5 = vpop.f32.mrf.mxu2  ;;  %v3178_v62 = vld [vmem:[%s3417_s22 + $0x1d4] sm:$0xf]  ;;  %v3033_v3 = vld [vmem:[%s3417_s22 + $0x3d8] sm:$0xf0] }
 0x1e0   : > { %v2080_v6 = vsel %vm1824_vm2, %v1562_v2, %v1952_v4  ;;  %v1393_v8 = vadd.f32 %v3707_v7, %v1392_v5  ;;  %v1721_v9 = vpop.f32.mrf.mxu3 }
 0x1e1   : > { %2400 = vst.msk [vmem:[%s3510_s8 + $0x194] sm:$0xf] %vm2298_vm1, %v2271_v48  ;;  %v2208_v10 = vpack.c.bf16 %v2080_v6, %v2080_v6  ;;  %v1234_v11 = vpop.f32.mrf.mxu0 }
 0x1e2   : > { %v1722_v12 = vadd.f32 %v1721_v9, %v1393_v8  ;;  %v1235_v13 = vadd.f32 %v3707_v7, %v1234_v11  ;;  %v1563_v14 = vpop.f32.mrf.mxu1  ;;  %v2776_v9 = vor.u32 %v3179_v57, %v2775_v56 }
 0x1e3   : > { %2337 = vst.msk [vmem:[%s3510_s8 + $0x98] sm:$0xf] %vm2298_vm1, %v2208_v10  ;;  %v3032_v10 = vor.u32 %v3243_v61, %v3031_v58 }
 0x1e4   : > { %vm1888_vm3 = vcmp.gt.f32.partialorder %v1722_v12, 0.0  ;;  %v2016_v18 = vmul.f32 0.2, %v1722_v12  ;;  %v1564_v19 = vadd.f32 %v1563_v14, %v1235_v13  ;;  %v2780_v13 = vor.u32 %v3178_v62, %v2777_v63 }
 0x1e5   : > { %v3036_v14 = vor.u32 %v3242_v0, %v3033_v3 }
 0x1e6   : > { %v2144_v24 = vsel %vm1888_vm3, %v1722_v12, %v2016_v18  ;;  %vm1825_vm4 = vcmp.gt.f32.partialorder %v1564_v19, 0.0  ;;  %v1953_v25 = vmul.f32 0.2, %v1564_v19 }
 0x1e7   : > { %v2272_v7 = vpack.c.bf16 %v2144_v24, %v2144_v24  ;;  %v1394_v27 = vpop.f32.mrf.mxu2 }
 0x1e8   : > { %v2081_v28 = vsel %vm1825_vm4, %v1564_v19, %v1953_v25  ;;  %v1395_v30 = vadd.f32 %v3912_v29, %v1394_v27  ;;  %v1723_v31 = vpop.f32.mrf.mxu3 }
 0x1e9   : > { %2401 = vst.msk [vmem:[%s3510_s8 + $0x198] sm:$0xf] %vm2298_vm1, %v2272_v7  ;;  %v2209_v34 = vpack.c.bf16 %v2081_v28, %v2081_v28  ;;  %v1237_v35 = vpop.f32.mrf.mxu0 }
 0x1ea   : > { %v1724_v38 = vadd.f32 %v1723_v31, %v1395_v30  ;;  %v1238_v39 = vadd.f32 %v3912_v29, %v1237_v35  ;;  %v1566_v40 = vpop.f32.mrf.mxu1 }
 0x1eb   : > { %2338 = vst.msk [vmem:[%s3510_s8 + $0x9c] sm:$0xf] %vm2298_vm1, %v2209_v34  ;;  %v3039_v34 = vld [vmem:[%s3417_s22 + $0x3e0] sm:$0xf] }
 0x1ec   : > { %vm1889_vm5 = vcmp.gt.f32.partialorder %v1724_v38, 0.0  ;;  %v2017_v41 = vmul.f32 0.2, %v1724_v38  ;;  %v1567_v42 = vadd.f32 %v1566_v40, %v1238_v39  ;;  %1276 = vmatmul.bf16.gmra.mxu0 %v2768_v32  ;;  %1436 = vmatmul.bf16.gmra.mxu2 %v3024_v33  ;;  %v2783_v32 = vld [vmem:[%s3417_s22 + $0x1e0] sm:$0xf] }
 0x1ed   : > { %1605 = vmatmul.bf16.gmra.mxu1 %v2772_v36  ;;  %1765 = vmatmul.bf16.gmra.mxu3 %v3028_v37  ;;  %v3181_v33 = vld [vmem:[%s3417_s22 + $0x1e4] sm:$0xf0]  ;;  %v2785_v39 = vld [vmem:[%s3417_s22 + $0x1e8] sm:$0xf0]  ;;  %v3244_v40 = vld [vmem:[%s3417_s22 + $0x3e4] sm:$0xf] }
 0x1ee   : > { %v2145_v43 = vsel %vm1889_vm5, %v1724_v38, %v2017_v41  ;;  %vm1826_vm6 = vcmp.gt.f32.partialorder %v1567_v42, 0.0  ;;  %v1954_v44 = vmul.f32 0.2, %v1567_v42  ;;  %v3245_v37 = vld [vmem:[%s3417_s22 + $0x3e4] sm:$0xf0] }
 0x1ef   : > { %v2273_v45 = vpack.c.bf16 %v2145_v43, %v2145_v43  ;;  %v1397_v46 = vpop.f32.mrf.mxu2  ;;  %v3180_v38 = vld [vmem:[%s3417_s22 + $0x1e4] sm:$0xf]  ;;  %v3041_v43 = vld [vmem:[%s3417_s22 + $0x3e8] sm:$0xf0] }
 0x1f0   : > { %v2082_v47 = vsel %vm1826_vm6, %v1567_v42, %v1954_v44  ;;  %v1398_v49 = vadd.f32 %v3912_v29, %v1397_v46  ;;  %v1726_v50 = vpop.f32.mrf.mxu3 }
 0x1f1   : > { %2402 = vst.msk [vmem:[%s3510_s8 + $0x19c] sm:$0xf] %vm2298_vm1, %v2273_v45  ;;  %v2210_v51 = vpack.c.bf16 %v2082_v47, %v2082_v47  ;;  %v1239_v52 = vpop.f32.mrf.mxu0 }
 0x1f2   : > { %v1727_v53 = vadd.f32 %v1726_v50, %v1398_v49  ;;  %v1240_v54 = vadd.f32 %v3912_v29, %v1239_v52  ;;  %v1568_v55 = vpop.f32.mrf.mxu1  ;;  %v2784_v50 = vor.u32 %v3181_v33, %v2783_v32 }
 0x1f3   : > { %2339 = vst.msk [vmem:[%s3510_s8 + $0xa0] sm:$0xf] %vm2298_vm1, %v2210_v51  ;;  %v3040_v51 = vor.u32 %v3245_v37, %v3039_v34 }
 0x1f4   : > { %vm1890_vm7 = vcmp.gt.f32.partialorder %v1727_v53, 0.0  ;;  %v2018_v59 = vmul.f32 0.2, %v1727_v53  ;;  %v1569_v60 = vadd.f32 %v1568_v55, %v1240_v54  ;;  %v2788_v54 = vor.u32 %v3180_v38, %v2785_v39 }
 0x1f5   : > { %v3044_v55 = vor.u32 %v3244_v40, %v3041_v43 }
 0x1f6   : > { %v2146_v1 = vsel %vm1890_vm7, %v1727_v53, %v2018_v59  ;;  %vm1827_vm8 = vcmp.gt.f32.partialorder %v1569_v60, 0.0  ;;  %v1955_v2 = vmul.f32 0.2, %v1569_v60 }
 0x1f7   : > { %v2274_v4 = vpack.c.bf16 %v2146_v1, %v2146_v1  ;;  %v1399_v48 = vpop.f32.mrf.mxu2 }
 0x1f8   : > { %v2083_v5 = vsel %vm1827_vm8, %v1569_v60, %v1955_v2  ;;  %v1400_v6 = vadd.f32 %v3912_v29, %v1399_v48  ;;  %v1728_v8 = vpop.f32.mrf.mxu3 }
 0x1f9   : > { %2403 = vst.msk [vmem:[%s3510_s8 + $0x1a0] sm:$0xf] %vm2298_vm1, %v2274_v4  ;;  %v2211_v11 = vpack.c.bf16 %v2083_v5, %v2083_v5  ;;  %v1242_v12 = vpop.f32.mrf.mxu0 }
 0x1fa   : > { %v1729_v15 = vadd.f32 %v1728_v8, %v1400_v6  ;;  %v1243_v16 = vadd.f32 %v3912_v29, %v1242_v12  ;;  %v1571_v17 = vpop.f32.mrf.mxu1 }
 0x1fb   : > { %2340 = vst.msk [vmem:[%s3510_s8 + $0xa4] sm:$0xf] %vm2298_vm1, %v2211_v11  ;;  %v3047_v11 = vld [vmem:[%s3417_s22 + $0x3f0] sm:$0xf] }
 0x1fc   : > { %vm1891_vm9 = vcmp.gt.f32.partialorder %v1729_v15, 0.0  ;;  %v2019_v18 = vmul.f32 0.2, %v1729_v15  ;;  %v1572_v19 = vadd.f32 %v1571_v17, %v1243_v16  ;;  %1281 = vmatmul.bf16.gmra.mxu0 %v2776_v9  ;;  %1441 = vmatmul.bf16.gmra.mxu2 %v3032_v10  ;;  %v2791_v9 = vld [vmem:[%s3417_s22 + $0x1f0] sm:$0xf] }
 0x1fd   : > { %1610 = vmatmul.bf16.gmra.mxu1 %v2780_v13  ;;  %1770 = vmatmul.bf16.gmra.mxu3 %v3036_v14  ;;  %v3183_v10 = vld [vmem:[%s3417_s22 + $0x1f4] sm:$0xf0]  ;;  %v2793_v16 = vld [vmem:[%s3417_s22 + $0x1f8] sm:$0xf0]  ;;  %v3246_v17 = vld [vmem:[%s3417_s22 + $0x3f4] sm:$0xf] }
 0x1fe   : > { %v2147_v20 = vsel %vm1891_vm9, %v1729_v15, %v2019_v18  ;;  %vm1828_vm10 = vcmp.gt.f32.partialorder %v1572_v19, 0.0  ;;  %v1956_v21 = vmul.f32 0.2, %v1572_v19  ;;  %v3247_v14 = vld [vmem:[%s3417_s22 + $0x3f4] sm:$0xf0] }
 0x1ff   : > { %v2275_v22 = vpack.c.bf16 %v2147_v20, %v2147_v20  ;;  %v1402_v23 = vpop.f32.mrf.mxu2  ;;  %v3182_v15 = vld [vmem:[%s3417_s22 + $0x1f4] sm:$0xf]  ;;  %v3049_v20 = vld [vmem:[%s3417_s22 + $0x3f8] sm:$0xf0] }
 0x200   : > { %v2084_v24 = vsel %vm1828_vm10, %v1572_v19, %v1956_v21  ;;  %v1403_v25 = vadd.f32 %v3912_v29, %v1402_v23  ;;  %v1731_v26 = vpop.f32.mrf.mxu3 }
 0x201   : > { %2404 = vst.msk [vmem:[%s3510_s8 + $0x1a4] sm:$0xf] %vm2298_vm1, %v2275_v22  ;;  %v2212_v7 = vpack.c.bf16 %v2084_v24, %v2084_v24  ;;  %v1244_v27 = vpop.f32.mrf.mxu0 }
 0x202   : > { %v1732_v28 = vadd.f32 %v1731_v26, %v1403_v25  ;;  %v1245_v30 = vadd.f32 %v3912_v29, %v1244_v27  ;;  %v1573_v31 = vpop.f32.mrf.mxu1  ;;  %v2792_v26 = vor.u32 %v3183_v10, %v2791_v9 }
 0x203   : > { %2341 = vst.msk [vmem:[%s3510_s8 + $0xa8] sm:$0xf] %vm2298_vm1, %v2212_v7  ;;  %v3048_v7 = vor.u32 %v3247_v14, %v3047_v11 }
 0x204   : > { %vm1892_vm11 = vcmp.gt.f32.partialorder %v1732_v28, 0.0  ;;  %v2020_v35 = vmul.f32 0.2, %v1732_v28  ;;  %v1574_v36 = vadd.f32 %v1573_v31, %v1245_v30  ;;  %v2796_v30 = vor.u32 %v3182_v15, %v2793_v16 }
 0x205   : > { %v3052_v31 = vor.u32 %v3246_v17, %v3049_v20 }
 0x206   : > { %v2148_v41 = vsel %vm1892_vm11, %v1732_v28, %v2020_v35  ;;  %vm1829_vm12 = vcmp.gt.f32.partialorder %v1574_v36, 0.0  ;;  %v1957_v42 = vmul.f32 0.2, %v1574_v36 }
 0x207   : > { %v2276_v44 = vpack.c.bf16 %v2148_v41, %v2148_v41  ;;  %v1404_v45 = vpop.f32.mrf.mxu2 }
 0x208   : > { %v2085_v46 = vsel %vm1829_vm12, %v1574_v36, %v1957_v42  ;;  %v1405_v47 = vadd.f32 %v3912_v29, %v1404_v45  ;;  %v1733_v49 = vpop.f32.mrf.mxu3 }
 0x209   : > { %2405 = vst.msk [vmem:[%s3510_s8 + $0x1a8] sm:$0xf] %vm2298_vm1, %v2276_v44  ;;  %v2213_v52 = vpack.c.bf16 %v2085_v46, %v2085_v46  ;;  %v1247_v53 = vpop.f32.mrf.mxu0 }
 0x20a   : > { %v1734_v56 = vadd.f32 %v1733_v49, %v1405_v47  ;;  %v1248_v57 = vadd.f32 %v3912_v29, %v1247_v53  ;;  %v1576_v58 = vpop.f32.mrf.mxu1 }
 0x20b   : > { %2342 = vst.msk [vmem:[%s3510_s8 + $0xac] sm:$0xf] %vm2298_vm1, %v2213_v52 }
 0x20c   : > { %vm1893_vm13 = vcmp.gt.f32.partialorder %v1734_v56, 0.0  ;;  %v2021_v59 = vmul.f32 0.2, %v1734_v56  ;;  %v1577_v60 = vadd.f32 %v1576_v58, %v1248_v57  ;;  %1286 = vmatmul.bf16.gmra.mxu0 %v2784_v50  ;;  %1446 = vmatmul.bf16.gmra.mxu2 %v3040_v51 }
 0x20d   : > { %1615 = vmatmul.bf16.gmra.mxu1 %v2788_v54  ;;  %1775 = vmatmul.bf16.gmra.mxu3 %v3044_v55 }
 0x20e   : > { %v2149_v61 = vsel %vm1893_vm13, %v1734_v56, %v2021_v59  ;;  %vm1830_vm14 = vcmp.gt.f32.partialorder %v1577_v60, 0.0  ;;  %v1958_v62 = vmul.f32 0.2, %v1577_v60 }
 0x20f   : > { %v2277_v63 = vpack.c.bf16 %v2149_v61, %v2149_v61  ;;  %v1407_v0 = vpop.f32.mrf.mxu2 }
 0x210   : > { %v2086_v1 = vsel %vm1830_vm14, %v1577_v60, %v1958_v62  ;;  %v1408_v2 = vadd.f32 %v3912_v29, %v1407_v0  ;;  %v1736_v3 = vpop.f32.mrf.mxu3 }
 0x211   : > { %2406 = vst.msk [vmem:[%s3510_s8 + $0x1ac] sm:$0xf] %vm2298_vm1, %v2277_v63  ;;  %v2214_v4 = vpack.c.bf16 %v2086_v1, %v2086_v1  ;;  %v1249_v48 = vpop.f32.mrf.mxu0 }
 0x212   : > { %v1737_v5 = vadd.f32 %v1736_v3, %v1408_v2  ;;  %v1250_v6 = vadd.f32 %v3912_v29, %v1249_v48  ;;  %v1578_v8 = vpop.f32.mrf.mxu1 }
 0x213   : > { %2343 = vst.msk [vmem:[%s3510_s8 + $0xb0] sm:$0xf] %vm2298_vm1, %v2214_v4 }
 0x214   : > { %vm1894_vm15 = vcmp.gt.f32.partialorder %v1737_v5, 0.0  ;;  %v2022_v12 = vmul.f32 0.2, %v1737_v5  ;;  %v1579_v13 = vadd.f32 %v1578_v8, %v1250_v6 }
 0x216   : > { %v2150_v18 = vsel %vm1894_vm15, %v1737_v5, %v2022_v12  ;;  %vm1831_vm0 = vcmp.gt.f32.partialorder %v1579_v13, 0.0  ;;  %v1959_v19 = vmul.f32 0.2, %v1579_v13 }
 0x217   : > { %v2278_v21 = vpack.c.bf16 %v2150_v18, %v2150_v18  ;;  %v1409_v22 = vpop.f32.mrf.mxu2 }
 0x218   : > { %v2087_v23 = vsel %vm1831_vm0, %v1579_v13, %v1959_v19  ;;  %v1410_v24 = vadd.f32 %v3912_v29, %v1409_v22  ;;  %v1738_v25 = vpop.f32.mrf.mxu3 }
 0x219   : > { %2407 = vst.msk [vmem:[%s3510_s8 + $0x1b0] sm:$0xf] %vm2298_vm1, %v2278_v21  ;;  %v2215_v27 = vpack.c.bf16 %v2087_v23, %v2087_v23  ;;  %v1252_v28 = vpop.f32.mrf.mxu0 }
 0x21a   : > { %v1739_v32 = vadd.f32 %v1738_v25, %v1410_v24  ;;  %v1253_v33 = vadd.f32 %v3912_v29, %v1252_v28  ;;  %v1581_v34 = vpop.f32.mrf.mxu1 }
 0x21b   : > { %2344 = vst.msk [vmem:[%s3510_s8 + $0xb4] sm:$0xf] %vm2298_vm1, %v2215_v27 }
 0x21c   : > { %vm1895_vm2 = vcmp.gt.f32.partialorder %v1739_v32, 0.0  ;;  %v2023_v35 = vmul.f32 0.2, %v1739_v32  ;;  %v1582_v36 = vadd.f32 %v1581_v34, %v1253_v33  ;;  %1291 = vmatmul.bf16.gmra.mxu0 %v2792_v26  ;;  %1451 = vmatmul.bf16.gmra.mxu2 %v3048_v7 }
 0x21d   : > { %1620 = vmatmul.bf16.gmra.mxu1 %v2796_v30  ;;  %1780 = vmatmul.bf16.gmra.mxu3 %v3052_v31 }
 0x21e   : > { %v2151_v37 = vsel %vm1895_vm2, %v1739_v32, %v2023_v35  ;;  %vm1832_vm3 = vcmp.gt.f32.partialorder %v1582_v36, 0.0  ;;  %v1960_v38 = vmul.f32 0.2, %v1582_v36 }
 0x21f   : > { %v2279_v39 = vpack.c.bf16 %v2151_v37, %v2151_v37  ;;  %v1412_v40 = vpop.f32.mrf.mxu2 }
 0x220   : > { %v2088_v41 = vsel %vm1832_vm3, %v1582_v36, %v1960_v38  ;;  %v1413_v42 = vadd.f32 %v3912_v29, %v1412_v40  ;;  %v1741_v43 = vpop.f32.mrf.mxu3 }
 0x221   : > { %2408 = vst.msk [vmem:[%s3510_s8 + $0x1b4] sm:$0xf] %vm2298_vm1, %v2279_v39  ;;  %v2216_v44 = vpack.c.bf16 %v2088_v41, %v2088_v41  ;;  %v1254_v45 = vpop.f32.mrf.mxu0 }
 0x222   : > { %v1742_v46 = vadd.f32 %v1741_v43, %v1413_v42  ;;  %v1255_v47 = vadd.f32 %v3912_v29, %v1254_v45  ;;  %v1583_v49 = vpop.f32.mrf.mxu1 }
 0x223   : > { %2345 = vst.msk [vmem:[%s3510_s8 + $0xb8] sm:$0xf] %vm2298_vm1, %v2216_v44 }
 0x224   : > { %vm1896_vm4 = vcmp.gt.f32.partialorder %v1742_v46, 0.0  ;;  %v2024_v50 = vmul.f32 0.2, %v1742_v46  ;;  %v1584_v51 = vadd.f32 %v1583_v49, %v1255_v47 }
 0x226   : > { %v2152_v52 = vsel %vm1896_vm4, %v1742_v46, %v2024_v50  ;;  %vm1833_vm5 = vcmp.gt.f32.partialorder %v1584_v51, 0.0  ;;  %v1961_v53 = vmul.f32 0.2, %v1584_v51 }
 0x227   : > { %v2280_v54 = vpack.c.bf16 %v2152_v52, %v2152_v52  ;;  %v1414_v55 = vpop.f32.mrf.mxu2 }
 0x228   : > { %v2089_v56 = vsel %vm1833_vm5, %v1584_v51, %v1961_v53  ;;  %v1415_v57 = vadd.f32 %v3912_v29, %v1414_v55  ;;  %v1743_v58 = vpop.f32.mrf.mxu3 }
 0x229   : > { %2409 = vst.msk [vmem:[%s3510_s8 + $0x1b8] sm:$0xf] %vm2298_vm1, %v2280_v54  ;;  %v2217_v59 = vpack.c.bf16 %v2089_v56, %v2089_v56  ;;  %v1257_v60 = vpop.f32.mrf.mxu0 }
 0x22a   : > { %v1744_v61 = vadd.f32 %v1743_v58, %v1415_v57  ;;  %v1258_v62 = vadd.f32 %v3912_v29, %v1257_v60  ;;  %v1586_v63 = vpop.f32.mrf.mxu1 }
 0x22b   : > { %2346 = vst.msk [vmem:[%s3510_s8 + $0xbc] sm:$0xf] %vm2298_vm1, %v2217_v59 }
 0x22c   : > { %vm1897_vm6 = vcmp.gt.f32.partialorder %v1744_v61, 0.0  ;;  %v2025_v0 = vmul.f32 0.2, %v1744_v61  ;;  %v1587_v1 = vadd.f32 %v1586_v63, %v1258_v62 }
 0x22e   : > { %v2153_v2 = vsel %vm1897_vm6, %v1744_v61, %v2025_v0  ;;  %vm1834_vm7 = vcmp.gt.f32.partialorder %v1587_v1, 0.0  ;;  %v1962_v3 = vmul.f32 0.2, %v1587_v1 }
 0x22f   : > { %v2281_v4 = vpack.c.bf16 %v2153_v2, %v2153_v2  ;;  %v1417_v48 = vpop.f32.mrf.mxu2 }
 0x230   : > { %v2090_v5 = vsel %vm1834_vm7, %v1587_v1, %v1962_v3  ;;  %v1418_v6 = vadd.f32 %v3912_v29, %v1417_v48  ;;  %v1746_v8 = vpop.f32.mrf.mxu3 }
 0x231   : > { %2410 = vst.msk [vmem:[%s3510_s8 + $0x1bc] sm:$0xf] %vm2298_vm1, %v2281_v4  ;;  %v2218_v9 = vpack.c.bf16 %v2090_v5, %v2090_v5  ;;  %v1259_v10 = vpop.f32.mrf.mxu0 }
 0x232   : > { %v1747_v11 = vadd.f32 %v1746_v8, %v1418_v6  ;;  %v1260_v12 = vadd.f32 %v3912_v29, %v1259_v10  ;;  %v1588_v13 = vpop.f32.mrf.mxu1 }
 0x233   : > { %2347 = vst.msk [vmem:[%s3510_s8 + $0xc0] sm:$0xf] %vm2298_vm1, %v2218_v9 }
 0x234   : > { %vm1898_vm8 = vcmp.gt.f32.partialorder %v1747_v11, 0.0  ;;  %v2026_v14 = vmul.f32 0.2, %v1747_v11  ;;  %v1589_v15 = vadd.f32 %v1588_v13, %v1260_v12 }
 0x236   : > { %v2154_v16 = vsel %vm1898_vm8, %v1747_v11, %v2026_v14  ;;  %vm1835_vm9 = vcmp.gt.f32.partialorder %v1589_v15, 0.0  ;;  %v1963_v17 = vmul.f32 0.2, %v1589_v15 }
 0x237   : > { %v2282_v18 = vpack.c.bf16 %v2154_v16, %v2154_v16  ;;  %v1419_v19 = vpop.f32.mrf.mxu2 }
 0x238   : > { %v2091_v20 = vsel %vm1835_vm9, %v1589_v15, %v1963_v17  ;;  %v1420_v21 = vadd.f32 %v3912_v29, %v1419_v19  ;;  %v1748_v22 = vpop.f32.mrf.mxu3 }
 0x239   : > { %2411 = vst.msk [vmem:[%s3510_s8 + $0x1c0] sm:$0xf] %vm2298_vm1, %v2282_v18  ;;  %v2219_v23 = vpack.c.bf16 %v2091_v20, %v2091_v20  ;;  %v1262_v24 = vpop.f32.mrf.mxu0 }
 0x23a   : > { %v1749_v25 = vadd.f32 %v1748_v22, %v1420_v21  ;;  %v1263_v26 = vadd.f32 %v3912_v29, %v1262_v24  ;;  %v1591_v7 = vpop.f32.mrf.mxu1 }
 0x23b   : > { %2348 = vst.msk [vmem:[%s3510_s8 + $0xc4] sm:$0xf] %vm2298_vm1, %v2219_v23 }
 0x23c   : > { %vm1899_vm10 = vcmp.gt.f32.partialorder %v1749_v25, 0.0  ;;  %v2027_v27 = vmul.f32 0.2, %v1749_v25  ;;  %v1592_v28 = vadd.f32 %v1591_v7, %v1263_v26 }
 0x23e   : > { %v2155_v30 = vsel %vm1899_vm10, %v1749_v25, %v2027_v27  ;;  %vm1836_vm11 = vcmp.gt.f32.partialorder %v1592_v28, 0.0  ;;  %v1964_v31 = vmul.f32 0.2, %v1592_v28 }
 0x23f   : > { %v2283_v32 = vpack.c.bf16 %v2155_v30, %v2155_v30  ;;  %v1422_v33 = vpop.f32.mrf.mxu2 }
 0x240   : > { %v2092_v34 = vsel %vm1836_vm11, %v1592_v28, %v1964_v31  ;;  %v1423_v35 = vadd.f32 %v3912_v29, %v1422_v33  ;;  %v1751_v36 = vpop.f32.mrf.mxu3 }
 0x241   : > { %2412 = vst.msk [vmem:[%s3510_s8 + $0x1c4] sm:$0xf] %vm2298_vm1, %v2283_v32  ;;  %v2220_v37 = vpack.c.bf16 %v2092_v34, %v2092_v34  ;;  %v1264_v38 = vpop.f32.mrf.mxu0 }
 0x242   : > { %v1752_v39 = vadd.f32 %v1751_v36, %v1423_v35  ;;  %v1265_v40 = vadd.f32 %v3912_v29, %v1264_v38  ;;  %v1593_v41 = vpop.f32.mrf.mxu1 }
 0x243   : > { %2349 = vst.msk [vmem:[%s3510_s8 + $0xc8] sm:$0xf] %vm2298_vm1, %v2220_v37 }
 0x244   : > { %vm1900_vm12 = vcmp.gt.f32.partialorder %v1752_v39, 0.0  ;;  %v2028_v42 = vmul.f32 0.2, %v1752_v39  ;;  %v1594_v43 = vadd.f32 %v1593_v41, %v1265_v40 }
 0x246   : > { %v2156_v44 = vsel %vm1900_vm12, %v1752_v39, %v2028_v42  ;;  %vm1837_vm13 = vcmp.gt.f32.partialorder %v1594_v43, 0.0  ;;  %v1965_v45 = vmul.f32 0.2, %v1594_v43 }
 0x247   : > { %v2284_v46 = vpack.c.bf16 %v2156_v44, %v2156_v44  ;;  %v1424_v47 = vpop.f32.mrf.mxu2 }
 0x248   : > { %v2093_v49 = vsel %vm1837_vm13, %v1594_v43, %v1965_v45  ;;  %v1425_v50 = vadd.f32 %v3912_v29, %v1424_v47  ;;  %v1753_v51 = vpop.f32.mrf.mxu3 }
 0x249   : > { %2413 = vst.msk [vmem:[%s3510_s8 + $0x1c8] sm:$0xf] %vm2298_vm1, %v2284_v46  ;;  %v2221_v52 = vpack.c.bf16 %v2093_v49, %v2093_v49  ;;  %v1267_v53 = vpop.f32.mrf.mxu0 }
 0x24a   : > { %v1754_v54 = vadd.f32 %v1753_v51, %v1425_v50  ;;  %v1268_v55 = vadd.f32 %v3912_v29, %v1267_v53  ;;  %v1596_v56 = vpop.f32.mrf.mxu1 }
 0x24b   : > { %2350 = vst.msk [vmem:[%s3510_s8 + $0xcc] sm:$0xf] %vm2298_vm1, %v2221_v52 }
 0x24c   : > { %vm1901_vm14 = vcmp.gt.f32.partialorder %v1754_v54, 0.0  ;;  %v2029_v57 = vmul.f32 0.2, %v1754_v54  ;;  %v1597_v58 = vadd.f32 %v1596_v56, %v1268_v55 }
 0x24e   : > { %v2157_v59 = vsel %vm1901_vm14, %v1754_v54, %v2029_v57  ;;  %vm1838_vm15 = vcmp.gt.f32.partialorder %v1597_v58, 0.0  ;;  %v1966_v60 = vmul.f32 0.2, %v1597_v58 }
 0x24f   : > { %v2285_v61 = vpack.c.bf16 %v2157_v59, %v2157_v59  ;;  %v1427_v62 = vpop.f32.mrf.mxu2 }
 0x250   : > { %v2094_v63 = vsel %vm1838_vm15, %v1597_v58, %v1966_v60  ;;  %v1428_v0 = vadd.f32 %v3912_v29, %v1427_v62  ;;  %v1756_v1 = vpop.f32.mrf.mxu3 }
 0x251   : > { %2414 = vst.msk [vmem:[%s3510_s8 + $0x1cc] sm:$0xf] %vm2298_vm1, %v2285_v61  ;;  %v2222_v2 = vpack.c.bf16 %v2094_v63, %v2094_v63  ;;  %v1269_v3 = vpop.f32.mrf.mxu0 }
 0x252   : > { %v1757_v4 = vadd.f32 %v1756_v1, %v1428_v0  ;;  %v1270_v48 = vadd.f32 %v3912_v29, %v1269_v3  ;;  %v1598_v5 = vpop.f32.mrf.mxu1 }
 0x253   : > { %2351 = vst.msk [vmem:[%s3510_s8 + $0xd0] sm:$0xf] %vm2298_vm1, %v2222_v2 }
 0x254   : > { %vm1902_vm0 = vcmp.gt.f32.partialorder %v1757_v4, 0.0  ;;  %v2030_v6 = vmul.f32 0.2, %v1757_v4  ;;  %v1599_v8 = vadd.f32 %v1598_v5, %v1270_v48 }
 0x256   : > { %v2158_v9 = vsel %vm1902_vm0, %v1757_v4, %v2030_v6  ;;  %vm1839_vm2 = vcmp.gt.f32.partialorder %v1599_v8, 0.0  ;;  %v1967_v10 = vmul.f32 0.2, %v1599_v8 }
 0x257   : > { %v2286_v11 = vpack.c.bf16 %v2158_v9, %v2158_v9  ;;  %v1429_v12 = vpop.f32.mrf.mxu2 }
 0x258   : > { %v2095_v13 = vsel %vm1839_vm2, %v1599_v8, %v1967_v10  ;;  %v1430_v14 = vadd.f32 %v3912_v29, %v1429_v12  ;;  %v1758_v15 = vpop.f32.mrf.mxu3 }
 0x259   : > { %2415 = vst.msk [vmem:[%s3510_s8 + $0x1d0] sm:$0xf] %vm2298_vm1, %v2286_v11  ;;  %v2223_v16 = vpack.c.bf16 %v2095_v13, %v2095_v13  ;;  %v1272_v17 = vpop.f32.mrf.mxu0 }
 0x25a   : > { %v1759_v18 = vadd.f32 %v1758_v15, %v1430_v14  ;;  %v1273_v19 = vadd.f32 %v3912_v29, %v1272_v17  ;;  %v1601_v20 = vpop.f32.mrf.mxu1 }
 0x25b   : > { %2352 = vst.msk [vmem:[%s3510_s8 + $0xd4] sm:$0xf] %vm2298_vm1, %v2223_v16 }
 0x25c   : > { %vm1903_vm3 = vcmp.gt.f32.partialorder %v1759_v18, 0.0  ;;  %v2031_v21 = vmul.f32 0.2, %v1759_v18  ;;  %v1602_v22 = vadd.f32 %v1601_v20, %v1273_v19 }
 0x25e   : > { %v2159_v23 = vsel %vm1903_vm3, %v1759_v18, %v2031_v21  ;;  %vm1840_vm4 = vcmp.gt.f32.partialorder %v1602_v22, 0.0  ;;  %v1968_v24 = vmul.f32 0.2, %v1602_v22 }
 0x25f   : > { %v2287_v25 = vpack.c.bf16 %v2159_v23, %v2159_v23  ;;  %v1432_v26 = vpop.f32.mrf.mxu2 }
 0x260   : > { %v2096_v7 = vsel %vm1840_vm4, %v1602_v22, %v1968_v24  ;;  %v1433_v27 = vadd.f32 %v3912_v29, %v1432_v26  ;;  %v1761_v28 = vpop.f32.mrf.mxu3 }
 0x261   : > { %2416 = vst.msk [vmem:[%s3510_s8 + $0x1d4] sm:$0xf] %vm2298_vm1, %v2287_v25  ;;  %v2224_v30 = vpack.c.bf16 %v2096_v7, %v2096_v7  ;;  %v1274_v31 = vpop.f32.mrf.mxu0 }
 0x262   : > { %v1762_v32 = vadd.f32 %v1761_v28, %v1433_v27  ;;  %v1275_v33 = vadd.f32 %v3912_v29, %v1274_v31  ;;  %v1603_v34 = vpop.f32.mrf.mxu1 }
 0x263   : > { %2353 = vst.msk [vmem:[%s3510_s8 + $0xd8] sm:$0xf] %vm2298_vm1, %v2224_v30 }
 0x264   : > { %vm1904_vm5 = vcmp.gt.f32.partialorder %v1762_v32, 0.0  ;;  %v2032_v35 = vmul.f32 0.2, %v1762_v32  ;;  %v1604_v36 = vadd.f32 %v1603_v34, %v1275_v33 }
 0x266   : > { %v2160_v37 = vsel %vm1904_vm5, %v1762_v32, %v2032_v35  ;;  %vm1841_vm6 = vcmp.gt.f32.partialorder %v1604_v36, 0.0  ;;  %v1969_v38 = vmul.f32 0.2, %v1604_v36 }
 0x267   : > { %v2288_v39 = vpack.c.bf16 %v2160_v37, %v2160_v37  ;;  %v1434_v40 = vpop.f32.mrf.mxu2 }
 0x268   : > { %v2097_v41 = vsel %vm1841_vm6, %v1604_v36, %v1969_v38  ;;  %v1435_v42 = vadd.f32 %v3912_v29, %v1434_v40  ;;  %v1763_v43 = vpop.f32.mrf.mxu3 }
 0x269   : > { %2417 = vst.msk [vmem:[%s3510_s8 + $0x1d8] sm:$0xf] %vm2298_vm1, %v2288_v39  ;;  %v2225_v44 = vpack.c.bf16 %v2097_v41, %v2097_v41  ;;  %v1277_v45 = vpop.f32.mrf.mxu0 }
 0x26a   : > { %v1764_v46 = vadd.f32 %v1763_v43, %v1435_v42  ;;  %v1278_v47 = vadd.f32 %v3912_v29, %v1277_v45  ;;  %v1606_v49 = vpop.f32.mrf.mxu1 }
 0x26b   : > { %2354 = vst.msk [vmem:[%s3510_s8 + $0xdc] sm:$0xf] %vm2298_vm1, %v2225_v44 }
 0x26c   : > { %vm1905_vm7 = vcmp.gt.f32.partialorder %v1764_v46, 0.0  ;;  %v2033_v50 = vmul.f32 0.2, %v1764_v46  ;;  %v1607_v51 = vadd.f32 %v1606_v49, %v1278_v47 }
 0x26e   : > { %v2161_v52 = vsel %vm1905_vm7, %v1764_v46, %v2033_v50  ;;  %vm1842_vm8 = vcmp.gt.f32.partialorder %v1607_v51, 0.0  ;;  %v1970_v53 = vmul.f32 0.2, %v1607_v51 }
 0x26f   : > { %v2289_v54 = vpack.c.bf16 %v2161_v52, %v2161_v52  ;;  %v1437_v55 = vpop.f32.mrf.mxu2 }
 0x270   : > { %v2098_v56 = vsel %vm1842_vm8, %v1607_v51, %v1970_v53  ;;  %v1438_v57 = vadd.f32 %v3912_v29, %v1437_v55  ;;  %v1766_v58 = vpop.f32.mrf.mxu3 }
 0x271   : > { %2418 = vst.msk [vmem:[%s3510_s8 + $0x1dc] sm:$0xf] %vm2298_vm1, %v2289_v54  ;;  %v2226_v59 = vpack.c.bf16 %v2098_v56, %v2098_v56  ;;  %v1279_v60 = vpop.f32.mrf.mxu0 }
 0x272   : > { %v1767_v61 = vadd.f32 %v1766_v58, %v1438_v57  ;;  %v1280_v62 = vadd.f32 %v3912_v29, %v1279_v60  ;;  %v1608_v63 = vpop.f32.mrf.mxu1 }
 0x273   : > { %2355 = vst.msk [vmem:[%s3510_s8 + $0xe0] sm:$0xf] %vm2298_vm1, %v2226_v59 }
 0x274   : > { %vm1906_vm9 = vcmp.gt.f32.partialorder %v1767_v61, 0.0  ;;  %v2034_v0 = vmul.f32 0.2, %v1767_v61  ;;  %v1609_v1 = vadd.f32 %v1608_v63, %v1280_v62 }
 0x276   : > { %v2162_v2 = vsel %vm1906_vm9, %v1767_v61, %v2034_v0  ;;  %vm1843_vm10 = vcmp.gt.f32.partialorder %v1609_v1, 0.0  ;;  %v1971_v3 = vmul.f32 0.2, %v1609_v1 }
 0x277   : > { %v2290_v4 = vpack.c.bf16 %v2162_v2, %v2162_v2  ;;  %v1439_v48 = vpop.f32.mrf.mxu2 }
 0x278   : > { %v2099_v5 = vsel %vm1843_vm10, %v1609_v1, %v1971_v3  ;;  %v1440_v6 = vadd.f32 %v3912_v29, %v1439_v48  ;;  %v1768_v8 = vpop.f32.mrf.mxu3 }
 0x279   : > { %2419 = vst.msk [vmem:[%s3510_s8 + $0x1e0] sm:$0xf] %vm2298_vm1, %v2290_v4  ;;  %v2227_v9 = vpack.c.bf16 %v2099_v5, %v2099_v5  ;;  %v1282_v10 = vpop.f32.mrf.mxu0 }
 0x27a   : > { %v1769_v11 = vadd.f32 %v1768_v8, %v1440_v6  ;;  %v1283_v12 = vadd.f32 %v3912_v29, %v1282_v10  ;;  %v1611_v13 = vpop.f32.mrf.mxu1 }
 0x27b   : > { %2356 = vst.msk [vmem:[%s3510_s8 + $0xe4] sm:$0xf] %vm2298_vm1, %v2227_v9 }
 0x27c   : > { %vm1907_vm11 = vcmp.gt.f32.partialorder %v1769_v11, 0.0  ;;  %v2035_v14 = vmul.f32 0.2, %v1769_v11  ;;  %v1612_v15 = vadd.f32 %v1611_v13, %v1283_v12 }
 0x27e   : > { %v2163_v16 = vsel %vm1907_vm11, %v1769_v11, %v2035_v14  ;;  %vm1844_vm12 = vcmp.gt.f32.partialorder %v1612_v15, 0.0  ;;  %v1972_v17 = vmul.f32 0.2, %v1612_v15 }
 0x27f   : > { %v2291_v18 = vpack.c.bf16 %v2163_v16, %v2163_v16  ;;  %v1442_v19 = vpop.f32.mrf.mxu2 }
 0x280   : > { %v2100_v20 = vsel %vm1844_vm12, %v1612_v15, %v1972_v17  ;;  %v1443_v21 = vadd.f32 %v3912_v29, %v1442_v19  ;;  %v1771_v22 = vpop.f32.mrf.mxu3 }
 0x281   : > { %2420 = vst.msk [vmem:[%s3510_s8 + $0x1e4] sm:$0xf] %vm2298_vm1, %v2291_v18  ;;  %v2228_v23 = vpack.c.bf16 %v2100_v20, %v2100_v20  ;;  %v1284_v24 = vpop.f32.mrf.mxu0 }
 0x282   : > { %v1772_v25 = vadd.f32 %v1771_v22, %v1443_v21  ;;  %v1285_v26 = vadd.f32 %v3912_v29, %v1284_v24  ;;  %v1613_v7 = vpop.f32.mrf.mxu1 }
 0x283   : > { %2357 = vst.msk [vmem:[%s3510_s8 + $0xe8] sm:$0xf] %vm2298_vm1, %v2228_v23 }
 0x284   : > { %vm1908_vm13 = vcmp.gt.f32.partialorder %v1772_v25, 0.0  ;;  %v2036_v27 = vmul.f32 0.2, %v1772_v25  ;;  %v1614_v28 = vadd.f32 %v1613_v7, %v1285_v26 }
 0x286   : > { %v2164_v30 = vsel %vm1908_vm13, %v1772_v25, %v2036_v27  ;;  %vm1845_vm14 = vcmp.gt.f32.partialorder %v1614_v28, 0.0  ;;  %v1973_v31 = vmul.f32 0.2, %v1614_v28 }
 0x287   : > { %v2292_v32 = vpack.c.bf16 %v2164_v30, %v2164_v30  ;;  %v1444_v33 = vpop.f32.mrf.mxu2 }
 0x288   : > { %v2101_v34 = vsel %vm1845_vm14, %v1614_v28, %v1973_v31  ;;  %v1445_v35 = vadd.f32 %v3912_v29, %v1444_v33  ;;  %v1773_v36 = vpop.f32.mrf.mxu3 }
 0x289   : > { %2421 = vst.msk [vmem:[%s3510_s8 + $0x1e8] sm:$0xf] %vm2298_vm1, %v2292_v32  ;;  %v2229_v37 = vpack.c.bf16 %v2101_v34, %v2101_v34  ;;  %v1287_v38 = vpop.f32.mrf.mxu0 }
 0x28a   : > { %v1774_v39 = vadd.f32 %v1773_v36, %v1445_v35  ;;  %v1288_v40 = vadd.f32 %v3912_v29, %v1287_v38  ;;  %v1616_v41 = vpop.f32.mrf.mxu1 }
 0x28b   : > { %2358 = vst.msk [vmem:[%s3510_s8 + $0xec] sm:$0xf] %vm2298_vm1, %v2229_v37 }
 0x28c   : > { %vm1909_vm15 = vcmp.gt.f32.partialorder %v1774_v39, 0.0  ;;  %v2037_v42 = vmul.f32 0.2, %v1774_v39  ;;  %v1617_v43 = vadd.f32 %v1616_v41, %v1288_v40 }
 0x28e   : > { %v2165_v44 = vsel %vm1909_vm15, %v1774_v39, %v2037_v42  ;;  %vm1846_vm0 = vcmp.gt.f32.partialorder %v1617_v43, 0.0  ;;  %v1974_v45 = vmul.f32 0.2, %v1617_v43 }
 0x28f   : > { %v2293_v46 = vpack.c.bf16 %v2165_v44, %v2165_v44  ;;  %v1447_v47 = vpop.f32.mrf.mxu2 }
 0x290   : > { %v2102_v49 = vsel %vm1846_vm0, %v1617_v43, %v1974_v45  ;;  %v1448_v50 = vadd.f32 %v3912_v29, %v1447_v47  ;;  %v1776_v51 = vpop.f32.mrf.mxu3 }
 0x291   : > { %2422 = vst.msk [vmem:[%s3510_s8 + $0x1ec] sm:$0xf] %vm2298_vm1, %v2293_v46  ;;  %v2230_v52 = vpack.c.bf16 %v2102_v49, %v2102_v49  ;;  %v1289_v53 = vpop.f32.mrf.mxu0 }
 0x292   : > { %v1777_v54 = vadd.f32 %v1776_v51, %v1448_v50  ;;  %v1290_v55 = vadd.f32 %v3912_v29, %v1289_v53  ;;  %v1618_v56 = vpop.f32.mrf.mxu1 }
 0x293   : > { %2359 = vst.msk [vmem:[%s3510_s8 + $0xf0] sm:$0xf] %vm2298_vm1, %v2230_v52 }
 0x294   : > { %vm1910_vm2 = vcmp.gt.f32.partialorder %v1777_v54, 0.0  ;;  %v2038_v57 = vmul.f32 0.2, %v1777_v54  ;;  %v1619_v58 = vadd.f32 %v1618_v56, %v1290_v55 }
 0x296   : > { %v2166_v59 = vsel %vm1910_vm2, %v1777_v54, %v2038_v57  ;;  %vm1847_vm3 = vcmp.gt.f32.partialorder %v1619_v58, 0.0  ;;  %v1975_v60 = vmul.f32 0.2, %v1619_v58 }
 0x297   : > { %v2294_v61 = vpack.c.bf16 %v2166_v59, %v2166_v59  ;;  %v1449_v62 = vpop.f32.mrf.mxu2 }
 0x298   : > { %v2103_v63 = vsel %vm1847_vm3, %v1619_v58, %v1975_v60  ;;  %v1450_v0 = vadd.f32 %v3912_v29, %v1449_v62  ;;  %v1778_v1 = vpop.f32.mrf.mxu3 }
 0x299   : > { %2423 = vst.msk [vmem:[%s3510_s8 + $0x1f0] sm:$0xf] %vm2298_vm1, %v2294_v61  ;;  %v2231_v2 = vpack.c.bf16 %v2103_v63, %v2103_v63  ;;  %v1292_v3 = vpop.f32.mrf.mxu0 }
 0x29a   : > { %v1779_v4 = vadd.f32 %v1778_v1, %v1450_v0  ;;  %v1293_v48 = vadd.f32 %v3912_v29, %v1292_v3  ;;  %v1621_v5 = vpop.f32.mrf.mxu1 }
 0x29b   : > { %2360 = vst.msk [vmem:[%s3510_s8 + $0xf4] sm:$0xf] %vm2298_vm1, %v2231_v2 }
 0x29c   : > { %vm1911_vm4 = vcmp.gt.f32.partialorder %v1779_v4, 0.0  ;;  %v2039_v6 = vmul.f32 0.2, %v1779_v4  ;;  %v1622_v8 = vadd.f32 %v1621_v5, %v1293_v48 }
 0x29e   : > { %v2167_v9 = vsel %vm1911_vm4, %v1779_v4, %v2039_v6  ;;  %vm1848_vm5 = vcmp.gt.f32.partialorder %v1622_v8, 0.0  ;;  %v1976_v10 = vmul.f32 0.2, %v1622_v8 }
 0x29f   : > { %v2295_v11 = vpack.c.bf16 %v2167_v9, %v2167_v9  ;;  %v1452_v12 = vpop.f32.mrf.mxu2 }
 0x2a0   : > { %v2104_v13 = vsel %vm1848_vm5, %v1622_v8, %v1976_v10  ;;  %v1453_v14 = vadd.f32 %v3912_v29, %v1452_v12  ;;  %v1781_v15 = vpop.f32.mrf.mxu3 }
 0x2a1   : > { %2424 = vst.msk [vmem:[%s3510_s8 + $0x1f4] sm:$0xf] %vm2298_vm1, %v2295_v11  ;;  %v2232_v16 = vpack.c.bf16 %v2104_v13, %v2104_v13  ;;  %v1294_v17 = vpop.f32.mrf.mxu0 }
 0x2a2   : > { %v1782_v18 = vadd.f32 %v1781_v15, %v1453_v14  ;;  %v1295_v19 = vadd.f32 %v3912_v29, %v1294_v17  ;;  %v1623_v20 = vpop.f32.mrf.mxu1 }
 0x2a3   : > { %2361 = vst.msk [vmem:[%s3510_s8 + $0xf8] sm:$0xf] %vm2298_vm1, %v2232_v16 }
 0x2a4   : > { %vm1912_vm6 = vcmp.gt.f32.partialorder %v1782_v18, 0.0  ;;  %v2040_v21 = vmul.f32 0.2, %v1782_v18  ;;  %v1624_v22 = vadd.f32 %v1623_v20, %v1295_v19 }
 0x2a6   : > { %v2168_v23 = vsel %vm1912_vm6, %v1782_v18, %v2040_v21  ;;  %vm1849_vm7 = vcmp.gt.f32.partialorder %v1624_v22, 0.0  ;;  %v1977_v24 = vmul.f32 0.2, %v1624_v22 }
 0x2a7   : > { %v2296_v25 = vpack.c.bf16 %v2168_v23, %v2168_v23  ;;  %v1454_v26 = vpop.f32.mrf.mxu2 }
 0x2a8   : > { %v2105_v7 = vsel %vm1849_vm7, %v1624_v22, %v1977_v24  ;;  %v1455_v27 = vadd.f32 %v3912_v29, %v1454_v26  ;;  %v1783_v30 = vpop.f32.mrf.mxu3 }
 0x2a9   : > { %2425 = vst.msk [vmem:[%s3510_s8 + $0x1f8] sm:$0xf] %vm2298_vm1, %v2296_v25  ;;  %v2233_v28 = vpack.c.bf16 %v2105_v7, %v2105_v7 }
 0x2aa   : > { %v1784_v31 = vadd.f32 %v1783_v30, %v1455_v27 }
 0x2ab   : > { %2362 = vst.msk [vmem:[%s3510_s8 + $0xfc] sm:$0xf] %vm2298_vm1, %v2233_v28 }
 0x2ac   : > { %vm1913_vm8 = vcmp.gt.f32.partialorder %v1784_v31, 0.0  ;;  %v2041_v32 = vmul.f32 0.2, %v1784_v31 }
 0x2ae   : > { %v2169_v33 = vsel %vm1913_vm8, %v1784_v31, %v2041_v32 }
 0x2af   : > { %v2297_v34 = vpack.c.bf16 %v2169_v33, %v2169_v33 }
 0x2b1   : > { %2426 = vst.msk [vmem:[%s3510_s8 + $0x1fc] sm:$0xf] %vm2298_vm1, %v2297_v34 }
 0x2b2 PF: > { %s13_s14 = sadd.s32 1, %s3329_s14   ;;  %s4102_s12 = smov %s3325_s13 }
 0x2b3   : > { %p10_p5 = scmp.ge.s32.totalorder %s13_s14, 4   ;;  %s4103_s13 = smov %s4105_s15 }
 0x2b5   :  { %12 = sbr.rel (!%p10_p5) target bundleno = 2 (0x2), region = 68 }

// kernel: discriminator_forward.7
= control target key start
LH: loop header
LB: loop body
LE: loop exit
PB: predicated region body
PF: predicated region fallthrough
CT: control target
= control target key end

     0   :  { %s2056_s12 = smov 0   ;;  %s2058_s13 = smov 0   ;;  %s2426_s0 = inlined_call_operand.vmem [shape: bf16[512,512], index: 0, kind: input, shape index: {}]   ;;  %s2427_s1 = inlined_call_operand.vmem [shape: bf16[512,64], index: 1, kind: input, shape index: {}]   ;;  %s2428_s2 = inlined_call_operand.vmem [shape: f32[1,64], index: 2, kind: input, shape index: {}]   ;;  %s2429_s3 = inlined_call_operand.vmem [shape: bf16[512,64], index: 3, kind: output, shape index: {}]  }
   0x1   :  { %s2060_s14 = smov 0  }
   0x2 LB: > { %s25_s15 = sadd.s32 1, %s2030_s13  ;;  %p1497_p0 = scmp.ge.s32.totalorder %s2034_s14, 1  ;;  %s2034_s14 = sphi %s2060_s14, %s13_s14   ;;  %s2030_s13 = sphi %s2058_s13, %s2431_s13   ;;  %s2026_s12 = sphi %s2056_s12, %s2430_s12  }
   0x3   : > { %p27_p1 = scmp.ge.s32.totalorder %s25_s15, 2  ;;  %p170_p2 = scmp.lt.s32.totalorder %s2034_s14, 3 }
   0x5   : > { %s2433_s15 = smov (%p27_p1, %s25_s15), 0  ;;  %p171_p3 = pnand %p1497_p0, %p170_p2 }
   0x6   : > { %s1498_s17 = sshll.u32 (!%p171_p3), %s2026_s12, 5 }
   0x7   : > { %174 = sbr.rel (%p171_p3) target bundleno = 436 (0x1b4), region = 32  ;;  %p206_p4 = scmp.lt.s32.totalorder (!%p171_p3), %s1498_s17, 63 }
   0xc   : > { %v1961_v0 = vld [vmem:[%s2427_s1 + $0x38] sm:$0xff]  ;;  %v1960_v4 = vld [vmem:[%s2427_s1 + $0x30] sm:$0xff]  ;;  %v1959_v8 = vld [vmem:[%s2427_s1 + $0x28] sm:$0xff]  ;;  %s2435_s17 = smov (!%p206_p4, %s1498_s17), 63  ;;  %vm1356_vm1 = vcmask 519168  }
   0xd   : > { %v1969_v1 = vld [vmem:[%s2427_s1 + $0x78] sm:$0xff]  ;;  %872 = vmatpush.bf16.msra.mxu0 %v1961_v0  ;;  %v1968_v5 = vld [vmem:[%s2427_s1 + $0x70] sm:$0xff]  ;;  %v1967_v9 = vld [vmem:[%s2427_s1 + $0x68] sm:$0xff]  ;;  %s1889_s19 = sshll.u32 %s2435_s17, 4  ;;  %s1502_s18 = sshll.u32 %s2435_s17, 2 }
   0xe   : > { %v1977_v2 = vld [vmem:[%s2427_s1 + $0xb8] sm:$0xff]  ;;  %961 = vmatpush.bf16.msra.mxu1 %v1969_v1  ;;  %v1976_v6 = vld [vmem:[%s2427_s1 + $0xb0] sm:$0xff]  ;;  %v1975_v10 = vld [vmem:[%s2427_s1 + $0xa8] sm:$0xff]  ;;  %s2161_s12 = scalar_lea.vmem %s2426_s0, %s1889_s19  ;;  %s2272_s21 = scalar_lea.vmem %s2429_s3, %s1502_s18 }
   0xf   : > { %v1985_v3 = vld [vmem:[%s2427_s1 + $0xf8] sm:$0xff]  ;;  %1050 = vmatpush.bf16.msra.mxu2 %v1977_v2  ;;  %v1984_v7 = vld [vmem:[%s2427_s1 + $0xf0] sm:$0xff]  ;;  %v1983_v11 = vld [vmem:[%s2427_s1 + $0xe8] sm:$0xff] }
  0x10   : > { %1139 = vmatpush.bf16.msra.mxu3 %v1985_v3  ;;  %v1958_v12 = vld [vmem:[%s2427_s1 + $0x20] sm:$0xff]  ;;  %v1957_v16 = vld [vmem:[%s2427_s1 + $0x18] sm:$0xff]  ;;  %v1956_v20 = vld [vmem:[%s2427_s1 + $0x10] sm:$0xff] }
  0x11   : > { %873 = vmatpush.bf16.msra.mxu0 %v1960_v4  ;;  %v1966_v13 = vld [vmem:[%s2427_s1 + $0x60] sm:$0xff]  ;;  %v1965_v17 = vld [vmem:[%s2427_s1 + $0x58] sm:$0xff]  ;;  %v1964_v21 = vld [vmem:[%s2427_s1 + $0x50] sm:$0xff] }
  0x12   : > { %962 = vmatpush.bf16.msra.mxu1 %v1968_v5  ;;  %v1974_v14 = vld [vmem:[%s2427_s1 + $0xa0] sm:$0xff]  ;;  %v1973_v18 = vld [vmem:[%s2427_s1 + $0x98] sm:$0xff]  ;;  %v1972_v22 = vld [vmem:[%s2427_s1 + $0x90] sm:$0xff] }
  0x13   : > { %1051 = vmatpush.bf16.msra.mxu2 %v1976_v6  ;;  %v1982_v15 = vld [vmem:[%s2427_s1 + $0xe0] sm:$0xff]  ;;  %v1981_v19 = vld [vmem:[%s2427_s1 + $0xd8] sm:$0xff]  ;;  %v1980_v23 = vld [vmem:[%s2427_s1 + $0xd0] sm:$0xff] }
  0x14   : > { %1140 = vmatpush.bf16.msra.mxu3 %v1984_v7  ;;  %v1955_v24 = vld [vmem:[%s2427_s1 + $0x8] sm:$0xff]  ;;  %v1954_v28 = vld [vmem:[%s2427_s1] sm:$0xff]  ;;  %v1892_v33 = vld [vmem:[%s2161_s12 + $0xc] sm:$0xf0] }
  0x15   : > { %874 = vmatpush.bf16.msra.mxu0 %v1959_v8  ;;  %v1963_v25 = vld [vmem:[%s2427_s1 + $0x48] sm:$0xff]  ;;  %v1962_v29 = vld [vmem:[%s2427_s1 + $0x40] sm:$0xff]  ;;  %v1507_v35 = vld [vmem:[%s2161_s12 + $0x10] sm:$0xf0] }
  0x16   : > { %963 = vmatpush.bf16.msra.mxu1 %v1967_v9  ;;  %v1971_v26 = vld [vmem:[%s2427_s1 + $0x88] sm:$0xff]  ;;  %v1970_v30 = vld [vmem:[%s2427_s1 + $0x80] sm:$0xff]  ;;  %v1893_v37 = vld [vmem:[%s2161_s12 + $0x14] sm:$0xf0] }
  0x17   : > { %1052 = vmatpush.bf16.msra.mxu2 %v1975_v10  ;;  %v1979_v27 = vld [vmem:[%s2427_s1 + $0xc8] sm:$0xff]  ;;  %v1978_v31 = vld [vmem:[%s2427_s1 + $0xc0] sm:$0xff]  ;;  %v1515_v39 = vld [vmem:[%s2161_s12 + $0x18] sm:$0xf0] }
  0x18   : > { %1141 = vmatpush.bf16.msra.mxu3 %v1983_v11  ;;  %v1505_v32 = vld [vmem:[%s2161_s12] sm:$0xf]  ;;  %v1890_v34 = vld [vmem:[%s2161_s12 + $0x4] sm:$0xf]  ;;  %v1513_v36 = vld [vmem:[%s2161_s12 + $0x8] sm:$0xf] }
  0x19   : > { %875 = vmatpush.bf16.msra.mxu0 %v1958_v12  ;;  %v1891_v38 = vld [vmem:[%s2161_s12 + $0xc] sm:$0xf]  ;;  %v1506_v40 = vor.u32 %v1892_v33, %v1505_v32  ;;  %v1510_v41 = vor.u32 %v1890_v34, %v1507_v35  ;;  %v1514_v42 = vor.u32 %v1893_v37, %v1513_v36  ;;  %v1521_v44 = vld [vmem:[%s2161_s12 + $0x20] sm:$0xf]  ;;  %v1896_v45 = vld [vmem:[%s2161_s12 + $0x2c] sm:$0xf0] }
  0x1a   : > { %964 = vmatpush.bf16.msra.mxu1 %v1966_v13  ;;  %v1518_v43 = vor.u32 %v1891_v38, %v1515_v39  ;;  %v1894_v46 = vld [vmem:[%s2161_s12 + $0x24] sm:$0xf]  ;;  %v1523_v47 = vld [vmem:[%s2161_s12 + $0x30] sm:$0xf0]  ;;  %v1529_v48 = vld [vmem:[%s2161_s12 + $0x28] sm:$0xf]  ;;  %v1522_v52 = vor.u32 %v1896_v45, %v1521_v44 }
  0x1b   : > { %1053 = vmatpush.bf16.msra.mxu2 %v1974_v14  ;;  %v1897_v49 = vld [vmem:[%s2161_s12 + $0x34] sm:$0xf0]  ;;  %v1895_v50 = vld [vmem:[%s2161_s12 + $0x2c] sm:$0xf]  ;;  %v1531_v51 = vld [vmem:[%s2161_s12 + $0x38] sm:$0xf0]  ;;  %v1526_v53 = vor.u32 %v1894_v46, %v1523_v47 }
  0x1c   : > { %1142 = vmatpush.bf16.msra.mxu3 %v1982_v15  ;;  %v1530_v54 = vor.u32 %v1897_v49, %v1529_v48  ;;  %v1534_v55 = vor.u32 %v1895_v50, %v1531_v51  ;;  %v1537_v56 = vld [vmem:[%s2161_s12 + $0x40] sm:$0xf]  ;;  %v1900_v57 = vld [vmem:[%s2161_s12 + $0x4c] sm:$0xf0]  ;;  %v1898_v58 = vld [vmem:[%s2161_s12 + $0x44] sm:$0xf] }
  0x1d   : > { %876 = vmatpush.bf16.msra.mxu0 %v1957_v16  ;;  %v1539_v59 = vld [vmem:[%s2161_s12 + $0x50] sm:$0xf0]  ;;  %v1545_v60 = vld [vmem:[%s2161_s12 + $0x48] sm:$0xf]  ;;  %v1901_v61 = vld [vmem:[%s2161_s12 + $0x54] sm:$0xf0]  ;;  %v1538_v0 = vor.u32 %v1900_v57, %v1537_v56 }
  0x1e   : > { %965 = vmatpush.bf16.msra.mxu1 %v1965_v17  ;;  %v1899_v62 = vld [vmem:[%s2161_s12 + $0x4c] sm:$0xf]  ;;  %v1547_v63 = vld [vmem:[%s2161_s12 + $0x58] sm:$0xf0]  ;;  %v1542_v1 = vor.u32 %v1898_v58, %v1539_v59  ;;  %v1546_v2 = vor.u32 %v1901_v61, %v1545_v60  ;;  %v1553_v4 = vld [vmem:[%s2161_s12 + $0x60] sm:$0xf] }
  0x1f   : > { %1054 = vmatpush.bf16.msra.mxu2 %v1973_v18  ;;  %v1550_v3 = vor.u32 %v1899_v62, %v1547_v63  ;;  %v1904_v5 = vld [vmem:[%s2161_s12 + $0x6c] sm:$0xf0]  ;;  %v1902_v6 = vld [vmem:[%s2161_s12 + $0x64] sm:$0xf]  ;;  %v1555_v7 = vld [vmem:[%s2161_s12 + $0x70] sm:$0xf0] }
  0x20   : > { %1143 = vmatpush.bf16.msra.mxu3 %v1981_v19  ;;  %v1561_v8 = vld [vmem:[%s2161_s12 + $0x68] sm:$0xf]  ;;  %v1905_v9 = vld [vmem:[%s2161_s12 + $0x74] sm:$0xf0]  ;;  %v1903_v10 = vld [vmem:[%s2161_s12 + $0x6c] sm:$0xf]  ;;  %v1554_v12 = vor.u32 %v1904_v5, %v1553_v4  ;;  %v1558_v13 = vor.u32 %v1902_v6, %v1555_v7 }
  0x21   : > { %877 = vmatpush.bf16.msra.mxu0 %v1956_v20  ;;  %v1563_v11 = vld [vmem:[%s2161_s12 + $0x78] sm:$0xf0]  ;;  %v1562_v14 = vor.u32 %v1905_v9, %v1561_v8  ;;  %v1569_v16 = vld [vmem:[%s2161_s12 + $0x80] sm:$0xf]  ;;  %v1908_v17 = vld [vmem:[%s2161_s12 + $0x8c] sm:$0xf0] }
  0x22   : > { %966 = vmatpush.bf16.msra.mxu1 %v1964_v21  ;;  %v1566_v15 = vor.u32 %v1903_v10, %v1563_v11  ;;  %v1906_v18 = vld [vmem:[%s2161_s12 + $0x84] sm:$0xf]  ;;  %v1571_v19 = vld [vmem:[%s2161_s12 + $0x90] sm:$0xf0]  ;;  %v1577_v20 = vld [vmem:[%s2161_s12 + $0x88] sm:$0xf] }
  0x23   : > { %1055 = vmatpush.bf16.msra.mxu2 %v1972_v22  ;;  %v1909_v21 = vld [vmem:[%s2161_s12 + $0x94] sm:$0xf0]  ;;  %v1907_v22 = vld [vmem:[%s2161_s12 + $0x8c] sm:$0xf]  ;;  %v1593_v32 = vld [vmem:[%s2161_s12 + $0xa8] sm:$0xf] }
  0x24   : > { %1144 = vmatpush.bf16.msra.mxu3 %v1980_v23  ;;  %v1579_v23 = vld [vmem:[%s2161_s12 + $0x98] sm:$0xf0]  ;;  %v1913_v33 = vld [vmem:[%s2161_s12 + $0xb4] sm:$0xf0]  ;;  %v1911_v34 = vld [vmem:[%s2161_s12 + $0xac] sm:$0xf] }
  0x25   : > { %878 = vmatpush.bf16.msra.mxu0 %v1955_v24  ;;  %v1570_v24 = vor.u32 %v1908_v17, %v1569_v16  ;;  %v1595_v35 = vld [vmem:[%s2161_s12 + $0xb8] sm:$0xf0]  ;;  %v1594_v38 = vor.u32 %v1913_v33, %v1593_v32  ;;  %v1609_v44 = vld [vmem:[%s2161_s12 + $0xc8] sm:$0xf]  ;;  %v1917_v45 = vld [vmem:[%s2161_s12 + $0xd4] sm:$0xf0] }
  0x26   : > { %967 = vmatpush.bf16.msra.mxu1 %v1963_v25  ;;  %v1574_v25 = vor.u32 %v1906_v18, %v1571_v19  ;;  %v1598_v39 = vor.u32 %v1911_v34, %v1595_v35  ;;  %v1915_v46 = vld [vmem:[%s2161_s12 + $0xcc] sm:$0xf]  ;;  %v1611_v47 = vld [vmem:[%s2161_s12 + $0xd8] sm:$0xf0]  ;;  %v1610_v50 = vor.u32 %v1917_v45, %v1609_v44  ;;  %v1625_v56 = vld [vmem:[%s2161_s12 + $0xe8] sm:$0xf] }
  0x27   : > { %1056 = vmatpush.bf16.msra.mxu2 %v1971_v26  ;;  %v1578_v26 = vor.u32 %v1909_v21, %v1577_v20  ;;  %v1614_v51 = vor.u32 %v1915_v46, %v1611_v47  ;;  %v1921_v57 = vld [vmem:[%s2161_s12 + $0xf4] sm:$0xf0]  ;;  %v1919_v58 = vld [vmem:[%s2161_s12 + $0xec] sm:$0xf]  ;;  %v1627_v59 = vld [vmem:[%s2161_s12 + $0xf8] sm:$0xf0] }
  0x28   : > { %1145 = vmatpush.bf16.msra.mxu3 %v1979_v27  ;;  %v1582_v27 = vor.u32 %v1907_v22, %v1579_v23  ;;  %v1626_v62 = vor.u32 %v1921_v57, %v1625_v56  ;;  %v1630_v63 = vor.u32 %v1919_v58, %v1627_v59  ;;  %v1635_v4 = vld [vmem:[%s2161_s12 + $0x110] sm:$0xf0]  ;;  %v1641_v5 = vld [vmem:[%s2161_s12 + $0x108] sm:$0xf]  ;;  %v1925_v6 = vld [vmem:[%s2161_s12 + $0x114] sm:$0xf0] }
  0x29   : > { %879 = vmatpush.bf16.msra.mxu0 %v1954_v28  ;;  %v1585_v28 = vld [vmem:[%s2161_s12 + $0xa0] sm:$0xf]  ;;  %v1923_v7 = vld [vmem:[%s2161_s12 + $0x10c] sm:$0xf]  ;;  %v1643_v8 = vld [vmem:[%s2161_s12 + $0x118] sm:$0xf0] }
  0x2a   : > { %968 = vmatpush.bf16.msra.mxu1 %v1962_v29  ;;  %v1912_v29 = vld [vmem:[%s2161_s12 + $0xac] sm:$0xf0]  ;;  %v1659_v32 = vld [vmem:[%s2161_s12 + $0x138] sm:$0xf0]  ;;  %v1665_v58 = vld [vmem:[%s2161_s12 + $0x140] sm:$0xf] }
  0x2b   : > { %1057 = vmatpush.bf16.msra.mxu2 %v1970_v30  ;;  %v1910_v30 = vld [vmem:[%s2161_s12 + $0xa4] sm:$0xf]  ;;  %v1586_v36 = vor.u32 %v1912_v29, %v1585_v28  ;;  %v1657_v29 = vld [vmem:[%s2161_s12 + $0x128] sm:$0xf]  ;;  %v1932_v59 = vld [vmem:[%s2161_s12 + $0x14c] sm:$0xf0] }
  0x2c   : > { %1146 = vmatpush.bf16.msra.mxu3 %v1978_v31  ;;  %880 = vmatmul.bf16.vlgmr.msra.gmra.mxu0 %v1506_v40  ;;  %v1587_v31 = vld [vmem:[%s2161_s12 + $0xb0] sm:$0xf0]  ;;  %v1601_v40 = vld [vmem:[%s2161_s12 + $0xc0] sm:$0xf] }
  0x2d   : > { %969 = vmatmul.bf16.vlgmr.msra.gmra.mxu1 %v1510_v41  ;;  %v1590_v37 = vor.u32 %v1910_v30, %v1587_v31  ;;  %v1916_v41 = vld [vmem:[%s2161_s12 + $0xcc] sm:$0xf0]  ;;  %v1929_v30 = vld [vmem:[%s2161_s12 + $0x134] sm:$0xf0]  ;;  %v1927_v31 = vld [vmem:[%s2161_s12 + $0x12c] sm:$0xf] }
  0x2e   : > { %1058 = vmatmul.bf16.vlgmr.msra.gmra.mxu2 %v1514_v42  ;;  %v1914_v42 = vld [vmem:[%s2161_s12 + $0xc4] sm:$0xf]  ;;  %v1602_v48 = vor.u32 %v1916_v41, %v1601_v40  ;;  %v1662_v44 = vor.u32 %v1927_v31, %v1659_v32  ;;  %v1683_v32 = vld [vmem:[%s2161_s12 + $0x170] sm:$0xf0] }
  0x2f   : > { %1147 = vmatmul.bf16.vlgmr.msra.gmra.mxu3 %v1518_v43  ;;  %v1603_v43 = vld [vmem:[%s2161_s12 + $0xd0] sm:$0xf0]  ;;  %v1934_v31 = vld [vmem:[%s2161_s12 + $0x164] sm:$0xf] }
  0x30   : > { %v1606_v49 = vor.u32 %v1914_v42, %v1603_v43  ;;  %v1658_v43 = vor.u32 %v1929_v30, %v1657_v29  ;;  %v1681_v29 = vld [vmem:[%s2161_s12 + $0x160] sm:$0xf]  ;;  %v1936_v30 = vld [vmem:[%s2161_s12 + $0x16c] sm:$0xf0] }
  0x3c   : > { %885 = vmatmul.bf16.gmra.mxu0 %v1522_v52  ;;  %v1617_v52 = vld [vmem:[%s2161_s12 + $0xe0] sm:$0xf] }
  0x3d   : > { %974 = vmatmul.bf16.gmra.mxu1 %v1526_v53  ;;  %v1920_v53 = vld [vmem:[%s2161_s12 + $0xec] sm:$0xf0] }
  0x3e   : > { %1063 = vmatmul.bf16.gmra.mxu2 %v1530_v54  ;;  %v1918_v54 = vld [vmem:[%s2161_s12 + $0xe4] sm:$0xf]  ;;  %v1618_v60 = vor.u32 %v1920_v53, %v1617_v52 }
  0x3f   : > { %1152 = vmatmul.bf16.gmra.mxu3 %v1534_v55  ;;  %v1619_v55 = vld [vmem:[%s2161_s12 + $0xf0] sm:$0xf0] }
  0x40   : > { %v1622_v61 = vor.u32 %v1918_v54, %v1619_v55 }
  0x4c   : > { %890 = vmatmul.bf16.gmra.mxu0 %v1538_v0  ;;  %v2248_v0 = vld [vmem:[%s2428_s2] ss:$0 sm:$0xff] }
  0x4d   : > { %979 = vmatmul.bf16.gmra.mxu1 %v1542_v1  ;;  %v1633_v1 = vld [vmem:[%s2161_s12 + $0x100] sm:$0xf] }
  0x4e   : > { %1068 = vmatmul.bf16.gmra.mxu2 %v1546_v2  ;;  %v1924_v2 = vld [vmem:[%s2161_s12 + $0x10c] sm:$0xf0] }
  0x4f   : > { %1157 = vmatmul.bf16.gmra.mxu3 %v1550_v3  ;;  %v1922_v3 = vld [vmem:[%s2161_s12 + $0x104] sm:$0xf]  ;;  %v1634_v9 = vor.u32 %v1924_v2, %v1633_v1  ;;  %v1933_v1 = vld [vmem:[%s2161_s12 + $0x154] sm:$0xf0]  ;;  %v1931_v2 = vld [vmem:[%s2161_s12 + $0x14c] sm:$0xf] }
  0x50   : > { %v1638_v10 = vor.u32 %v1922_v3, %v1635_v4  ;;  %v1675_v3 = vld [vmem:[%s2161_s12 + $0x158] sm:$0xf0] }
  0x5c   : > { %895 = vmatmul.bf16.gmra.mxu0 %v1554_v12 }
  0x5d   : > { %984 = vmatmul.bf16.gmra.mxu1 %v1558_v13  ;;  %v1642_v13 = vor.u32 %v1925_v6, %v1641_v5 }
  0x5e   : > { %1073 = vmatmul.bf16.gmra.mxu2 %v1562_v14  ;;  %v1646_v14 = vor.u32 %v1923_v7, %v1643_v8 }
  0x5f   : > { %1162 = vmatmul.bf16.gmra.mxu3 %v1566_v15 }
  0x6c   : > { %900 = vmatmul.bf16.gmra.mxu0 %v1570_v24  ;;  %v1649_v24 = vld [vmem:[%s2161_s12 + $0x120] sm:$0xf] }
  0x6d   : > { %989 = vmatmul.bf16.gmra.mxu1 %v1574_v25  ;;  %v1928_v25 = vld [vmem:[%s2161_s12 + $0x12c] sm:$0xf0] }
  0x6e   : > { %1078 = vmatmul.bf16.gmra.mxu2 %v1578_v26  ;;  %v1926_v26 = vld [vmem:[%s2161_s12 + $0x124] sm:$0xf] }
  0x6f   : > { %1167 = vmatmul.bf16.gmra.mxu3 %v1582_v27  ;;  %v1651_v27 = vld [vmem:[%s2161_s12 + $0x130] sm:$0xf0] }
  0x7c   : > { %905 = vmatmul.bf16.gmra.mxu0 %v1586_v36 }
  0x7d   : > { %994 = vmatmul.bf16.gmra.mxu1 %v1590_v37 }
  0x7e   : > { %1083 = vmatmul.bf16.gmra.mxu2 %v1594_v38  ;;  %v1650_v38 = vor.u32 %v1928_v25, %v1649_v24 }
  0x7f   : > { %1172 = vmatmul.bf16.gmra.mxu3 %v1598_v39  ;;  %v1654_v39 = vor.u32 %v1926_v26, %v1651_v27 }
  0x8c   : > { %910 = vmatmul.bf16.gmra.mxu0 %v1602_v48 }
  0x8d   : > { %999 = vmatmul.bf16.gmra.mxu1 %v1606_v49 }
  0x8e   : > { %1088 = vmatmul.bf16.gmra.mxu2 %v1610_v50 }
  0x8f   : > { %1177 = vmatmul.bf16.gmra.mxu3 %v1614_v51 }
  0x9c   : > { %915 = vmatmul.bf16.gmra.mxu0 %v1618_v60  ;;  %v1930_v60 = vld [vmem:[%s2161_s12 + $0x144] sm:$0xf] }
  0x9d   : > { %1004 = vmatmul.bf16.gmra.mxu1 %v1622_v61  ;;  %v1667_v61 = vld [vmem:[%s2161_s12 + $0x150] sm:$0xf0] }
  0x9e   : > { %1093 = vmatmul.bf16.gmra.mxu2 %v1626_v62 }
  0x9f   : > { %1182 = vmatmul.bf16.gmra.mxu3 %v1630_v63  ;;  %v1673_v63 = vld [vmem:[%s2161_s12 + $0x148] sm:$0xf] }
  0xa9   : > { %v881_v11 = vpop.f32.mrf.mxu0 }
  0xaa   : > { %v970_v12 = vpop.f32.mrf.mxu1  ;;  %v882_v15 = vadd.f32 %v2248_v0, %v881_v11 }
  0xac   : > { %920 = vmatmul.bf16.gmra.mxu0 %v1634_v9  ;;  %v971_v16 = vadd.f32 %v970_v12, %v882_v15  ;;  %v1666_v9 = vor.u32 %v1932_v59, %v1665_v58  ;;  %v1678_v15 = vor.u32 %v1931_v2, %v1675_v3  ;;  %v1938_v2 = vld [vmem:[%s2161_s12 + $0x184] sm:$0xf]  ;;  %v1699_v3 = vld [vmem:[%s2161_s12 + $0x190] sm:$0xf0] }
  0xad   : > { %1009 = vmatmul.bf16.gmra.mxu1 %v1638_v10  ;;  %v1670_v10 = vor.u32 %v1930_v60, %v1667_v61 }
  0xae   : > { %1098 = vmatmul.bf16.gmra.mxu2 %v1642_v13 }
  0xaf   : > { %1187 = vmatmul.bf16.gmra.mxu3 %v1646_v14  ;;  %v1674_v14 = vor.u32 %v1933_v1, %v1673_v63  ;;  %v1697_v63 = vld [vmem:[%s2161_s12 + $0x180] sm:$0xf]  ;;  %v1940_v1 = vld [vmem:[%s2161_s12 + $0x18c] sm:$0xf0] }
  0xb1   : > { %v1059_v17 = vpop.f32.mrf.mxu2  ;;  %v883_v20 = vpop.f32.mrf.mxu0 }
  0xb2   : > { %v1148_v18 = vpop.f32.mrf.mxu3  ;;  %v1060_v19 = vadd.f32 %v1059_v17, %v971_v16  ;;  %v972_v21 = vpop.f32.mrf.mxu1  ;;  %v884_v23 = vadd.f32 %v2248_v0, %v883_v20 }
  0xb4   : > { %v1149_v22 = vadd.f32 %v1148_v18, %v1060_v19  ;;  %v973_v34 = vadd.f32 %v972_v21, %v884_v23 }
  0xb6   : > { %vm1228_vm0 = vcmp.gt.f32.partialorder %v1149_v22, 0.0  ;;  %v1260_v28 = vmul.f32 0.2, %v1149_v22 }
  0xb8   : > { %v1292_v33 = vsel %vm1228_vm0, %v1149_v22, %v1260_v28 }
  0xb9   : > { %v1324_v35 = vpack.c.bf16 %v1292_v33, %v1292_v33  ;;  %v1061_v36 = vpop.f32.mrf.mxu2  ;;  %v886_v41 = vpop.f32.mrf.mxu0 }
  0xba   : > { %v1150_v37 = vpop.f32.mrf.mxu3  ;;  %v1062_v40 = vadd.f32 %v1061_v36, %v973_v34  ;;  %v975_v42 = vpop.f32.mrf.mxu1  ;;  %v887_v45 = vadd.f32 %v2248_v0, %v886_v41  ;;  %v1689_v34 = vld [vmem:[%s2161_s12 + $0x168] sm:$0xf]  ;;  %v1935_v36 = vld [vmem:[%s2161_s12 + $0x16c] sm:$0xf] }
  0xbb   : > { %1357 = vst.msk [vmem:[%s2272_s21] sm:$0xf] %vm1356_vm1, %v1324_v35  ;;  %v1937_v35 = vld [vmem:[%s2161_s12 + $0x174] sm:$0xf0] }
  0xbc   : > { %v1151_v46 = vadd.f32 %v1150_v37, %v1062_v40  ;;  %925 = vmatmul.bf16.gmra.mxu0 %v1650_v38  ;;  %v976_v48 = vadd.f32 %v975_v42, %v887_v45  ;;  %v1691_v37 = vld [vmem:[%s2161_s12 + $0x178] sm:$0xf0] }
  0xbd   : > { %1014 = vmatmul.bf16.gmra.mxu1 %v1654_v39 }
  0xbe   : > { %vm1229_vm2 = vcmp.gt.f32.partialorder %v1151_v46, 0.0  ;;  %v1261_v47 = vmul.f32 0.2, %v1151_v46  ;;  %1103 = vmatmul.bf16.gmra.mxu2 %v1658_v43  ;;  %v1682_v43 = vor.u32 %v1936_v30, %v1681_v29 }
  0xbf   : > { %1192 = vmatmul.bf16.gmra.mxu3 %v1662_v44  ;;  %v1686_v44 = vor.u32 %v1934_v31, %v1683_v32 }
  0xc0   : > { %v1293_v49 = vsel %vm1229_vm2, %v1151_v46, %v1261_v47 }
  0xc1   : > { %v1325_v50 = vpack.c.bf16 %v1293_v49, %v1293_v49  ;;  %v1064_v51 = vpop.f32.mrf.mxu2  ;;  %v888_v54 = vpop.f32.mrf.mxu0  ;;  %v1694_v49 = vor.u32 %v1935_v36, %v1691_v37  ;;  %v1942_v36 = vld [vmem:[%s2161_s12 + $0x1a4] sm:$0xf]  ;;  %v1715_v37 = vld [vmem:[%s2161_s12 + $0x1b0] sm:$0xf0] }
  0xc2   : > { %v1153_v52 = vpop.f32.mrf.mxu3  ;;  %v1065_v53 = vadd.f32 %v1064_v51, %v976_v48  ;;  %v977_v55 = vpop.f32.mrf.mxu1  ;;  %v889_v57 = vadd.f32 %v2248_v0, %v888_v54  ;;  %v1690_v48 = vor.u32 %v1937_v35, %v1689_v34  ;;  %v1713_v34 = vld [vmem:[%s2161_s12 + $0x1a0] sm:$0xf]  ;;  %v1944_v35 = vld [vmem:[%s2161_s12 + $0x1ac] sm:$0xf0] }
  0xc3   : > { %1358 = vst.msk [vmem:[%s2272_s21 + $0x4] sm:$0xf] %vm1356_vm1, %v1325_v50 }
  0xc4   : > { %v1154_v56 = vadd.f32 %v1153_v52, %v1065_v53  ;;  %v978_v5 = vadd.f32 %v977_v55, %v889_v57 }
  0xc6   : > { %vm1230_vm3 = vcmp.gt.f32.partialorder %v1154_v56, 0.0  ;;  %v1262_v62 = vmul.f32 0.2, %v1154_v56 }
  0xc8   : > { %v1294_v4 = vsel %vm1230_vm3, %v1154_v56, %v1262_v62 }
  0xc9   : > { %v1326_v6 = vpack.c.bf16 %v1294_v4, %v1294_v4  ;;  %v1066_v7 = vpop.f32.mrf.mxu2  ;;  %v891_v12 = vpop.f32.mrf.mxu0 }
  0xca   : > { %v1155_v8 = vpop.f32.mrf.mxu3  ;;  %v1067_v11 = vadd.f32 %v1066_v7, %v978_v5  ;;  %v980_v13 = vpop.f32.mrf.mxu1  ;;  %v892_v16 = vadd.f32 %v2248_v0, %v891_v12  ;;  %v1705_v5 = vld [vmem:[%s2161_s12 + $0x188] sm:$0xf]  ;;  %v1939_v7 = vld [vmem:[%s2161_s12 + $0x18c] sm:$0xf] }
  0xcb   : > { %1359 = vst.msk [vmem:[%s2272_s21 + $0x8] sm:$0xf] %vm1356_vm1, %v1326_v6  ;;  %v1941_v6 = vld [vmem:[%s2161_s12 + $0x194] sm:$0xf0] }
  0xcc   : > { %v1156_v17 = vadd.f32 %v1155_v8, %v1067_v11  ;;  %930 = vmatmul.bf16.gmra.mxu0 %v1666_v9  ;;  %v981_v19 = vadd.f32 %v980_v13, %v892_v16  ;;  %v1707_v8 = vld [vmem:[%s2161_s12 + $0x198] sm:$0xf0] }
  0xcd   : > { %1019 = vmatmul.bf16.gmra.mxu1 %v1670_v10 }
  0xce   : > { %vm1231_vm4 = vcmp.gt.f32.partialorder %v1156_v17, 0.0  ;;  %v1263_v18 = vmul.f32 0.2, %v1156_v17  ;;  %1108 = vmatmul.bf16.gmra.mxu2 %v1674_v14  ;;  %v1698_v14 = vor.u32 %v1940_v1, %v1697_v63 }
  0xcf   : > { %1197 = vmatmul.bf16.gmra.mxu3 %v1678_v15  ;;  %v1702_v15 = vor.u32 %v1938_v2, %v1699_v3 }
  0xd0   : > { %v1295_v20 = vsel %vm1231_vm4, %v1156_v17, %v1263_v18 }
  0xd1   : > { %v1327_v21 = vpack.c.bf16 %v1295_v20, %v1295_v20  ;;  %v1069_v22 = vpop.f32.mrf.mxu2  ;;  %v893_v25 = vpop.f32.mrf.mxu0  ;;  %v1710_v20 = vor.u32 %v1939_v7, %v1707_v8  ;;  %v1946_v7 = vld [vmem:[%s2161_s12 + $0x1c4] sm:$0xf]  ;;  %v1731_v8 = vld [vmem:[%s2161_s12 + $0x1d0] sm:$0xf0] }
  0xd2   : > { %v1158_v23 = vpop.f32.mrf.mxu3  ;;  %v1070_v24 = vadd.f32 %v1069_v22, %v981_v19  ;;  %v982_v26 = vpop.f32.mrf.mxu1  ;;  %v894_v28 = vadd.f32 %v2248_v0, %v893_v25  ;;  %v1706_v19 = vor.u32 %v1941_v6, %v1705_v5  ;;  %v1729_v5 = vld [vmem:[%s2161_s12 + $0x1c0] sm:$0xf]  ;;  %v1948_v6 = vld [vmem:[%s2161_s12 + $0x1cc] sm:$0xf0] }
  0xd3   : > { %1360 = vst.msk [vmem:[%s2272_s21 + $0xc] sm:$0xf] %vm1356_vm1, %v1327_v21 }
  0xd4   : > { %v1159_v27 = vadd.f32 %v1158_v23, %v1070_v24  ;;  %v983_v39 = vadd.f32 %v982_v26, %v894_v28 }
  0xd6   : > { %vm1232_vm5 = vcmp.gt.f32.partialorder %v1159_v27, 0.0  ;;  %v1264_v33 = vmul.f32 0.2, %v1159_v27 }
  0xd8   : > { %v1296_v38 = vsel %vm1232_vm5, %v1159_v27, %v1264_v33 }
  0xd9   : > { %v1328_v40 = vpack.c.bf16 %v1296_v38, %v1296_v38  ;;  %v1071_v41 = vpop.f32.mrf.mxu2  ;;  %v896_v46 = vpop.f32.mrf.mxu0 }
  0xda   : > { %v1160_v42 = vpop.f32.mrf.mxu3  ;;  %v1072_v45 = vadd.f32 %v1071_v41, %v983_v39  ;;  %v985_v47 = vpop.f32.mrf.mxu1  ;;  %v897_v50 = vadd.f32 %v2248_v0, %v896_v46  ;;  %v1721_v39 = vld [vmem:[%s2161_s12 + $0x1a8] sm:$0xf]  ;;  %v1943_v41 = vld [vmem:[%s2161_s12 + $0x1ac] sm:$0xf] }
  0xdb   : > { %1361 = vst.msk [vmem:[%s2272_s21 + $0x10] sm:$0xf] %vm1356_vm1, %v1328_v40  ;;  %v1945_v40 = vld [vmem:[%s2161_s12 + $0x1b4] sm:$0xf0] }
  0xdc   : > { %v1161_v51 = vadd.f32 %v1160_v42, %v1072_v45  ;;  %935 = vmatmul.bf16.gmra.mxu0 %v1682_v43  ;;  %v986_v53 = vadd.f32 %v985_v47, %v897_v50  ;;  %v1723_v42 = vld [vmem:[%s2161_s12 + $0x1b8] sm:$0xf0] }
  0xdd   : > { %1024 = vmatmul.bf16.gmra.mxu1 %v1686_v44 }
  0xde   : > { %vm1233_vm6 = vcmp.gt.f32.partialorder %v1161_v51, 0.0  ;;  %v1265_v52 = vmul.f32 0.2, %v1161_v51  ;;  %1113 = vmatmul.bf16.gmra.mxu2 %v1690_v48  ;;  %v1714_v48 = vor.u32 %v1944_v35, %v1713_v34 }
  0xdf   : > { %1202 = vmatmul.bf16.gmra.mxu3 %v1694_v49  ;;  %v1718_v49 = vor.u32 %v1942_v36, %v1715_v37 }
  0xe0   : > { %v1297_v54 = vsel %vm1233_vm6, %v1161_v51, %v1265_v52 }
  0xe1   : > { %v1329_v55 = vpack.c.bf16 %v1297_v54, %v1297_v54  ;;  %v1074_v56 = vpop.f32.mrf.mxu2  ;;  %v898_v59 = vpop.f32.mrf.mxu0  ;;  %v1726_v54 = vor.u32 %v1943_v41, %v1723_v42  ;;  %v1950_v41 = vld [vmem:[%s2161_s12 + $0x1e4] sm:$0xf]  ;;  %v1747_v42 = vld [vmem:[%s2161_s12 + $0x1f0] sm:$0xf0] }
  0xe2   : > { %v1163_v57 = vpop.f32.mrf.mxu3  ;;  %v1075_v58 = vadd.f32 %v1074_v56, %v986_v53  ;;  %v987_v60 = vpop.f32.mrf.mxu1  ;;  %v899_v62 = vadd.f32 %v2248_v0, %v898_v59  ;;  %v1722_v53 = vor.u32 %v1945_v40, %v1721_v39  ;;  %v1745_v39 = vld [vmem:[%s2161_s12 + $0x1e0] sm:$0xf]  ;;  %v1952_v40 = vld [vmem:[%s2161_s12 + $0x1ec] sm:$0xf0] }
  0xe3   : > { %1362 = vst.msk [vmem:[%s2272_s21 + $0x14] sm:$0xf] %vm1356_vm1, %v1329_v55 }
  0xe4   : > { %v1164_v61 = vadd.f32 %v1163_v57, %v1075_v58  ;;  %v988_v10 = vadd.f32 %v987_v60, %v899_v62 }
  0xe6   : > { %vm1234_vm7 = vcmp.gt.f32.partialorder %v1164_v61, 0.0  ;;  %v1266_v4 = vmul.f32 0.2, %v1164_v61 }
  0xe8   : > { %v1298_v9 = vsel %vm1234_vm7, %v1164_v61, %v1266_v4 }
  0xe9   : > { %v1330_v11 = vpack.c.bf16 %v1298_v9, %v1298_v9  ;;  %v1076_v12 = vpop.f32.mrf.mxu2  ;;  %v901_v17 = vpop.f32.mrf.mxu0 }
  0xea   : > { %v1165_v13 = vpop.f32.mrf.mxu3  ;;  %v1077_v16 = vadd.f32 %v1076_v12, %v988_v10  ;;  %v990_v18 = vpop.f32.mrf.mxu1  ;;  %v902_v21 = vadd.f32 %v2248_v0, %v901_v17  ;;  %v1737_v10 = vld [vmem:[%s2161_s12 + $0x1c8] sm:$0xf]  ;;  %v1947_v12 = vld [vmem:[%s2161_s12 + $0x1cc] sm:$0xf] }
  0xeb   : > { %1363 = vst.msk [vmem:[%s2272_s21 + $0x18] sm:$0xf] %vm1356_vm1, %v1330_v11  ;;  %v1949_v11 = vld [vmem:[%s2161_s12 + $0x1d4] sm:$0xf0] }
  0xec   : > { %v1166_v22 = vadd.f32 %v1165_v13, %v1077_v16  ;;  %940 = vmatmul.bf16.gmra.mxu0 %v1698_v14  ;;  %v991_v24 = vadd.f32 %v990_v18, %v902_v21  ;;  %v1739_v13 = vld [vmem:[%s2161_s12 + $0x1d8] sm:$0xf0] }
  0xed   : > { %1029 = vmatmul.bf16.gmra.mxu1 %v1702_v15 }
  0xee   : > { %vm1235_vm8 = vcmp.gt.f32.partialorder %v1166_v22, 0.0  ;;  %v1267_v23 = vmul.f32 0.2, %v1166_v22  ;;  %1118 = vmatmul.bf16.gmra.mxu2 %v1706_v19  ;;  %v1730_v19 = vor.u32 %v1948_v6, %v1729_v5 }
  0xef   : > { %1207 = vmatmul.bf16.gmra.mxu3 %v1710_v20  ;;  %v1734_v20 = vor.u32 %v1946_v7, %v1731_v8 }
  0xf0   : > { %v1299_v25 = vsel %vm1235_vm8, %v1166_v22, %v1267_v23 }
  0xf1   : > { %v1331_v26 = vpack.c.bf16 %v1299_v25, %v1299_v25  ;;  %v1079_v27 = vpop.f32.mrf.mxu2  ;;  %v903_v30 = vpop.f32.mrf.mxu0  ;;  %v1742_v25 = vor.u32 %v1947_v12, %v1739_v13 }
  0xf2   : > { %v1168_v28 = vpop.f32.mrf.mxu3  ;;  %v1080_v29 = vadd.f32 %v1079_v27, %v991_v24  ;;  %v992_v31 = vpop.f32.mrf.mxu1  ;;  %v904_v33 = vadd.f32 %v2248_v0, %v903_v30  ;;  %v1738_v24 = vor.u32 %v1949_v11, %v1737_v10 }
  0xf3   : > { %1364 = vst.msk [vmem:[%s2272_s21 + $0x1c] sm:$0xf] %vm1356_vm1, %v1331_v26 }
  0xf4   : > { %v1169_v32 = vadd.f32 %v1168_v28, %v1080_v29  ;;  %v993_v44 = vadd.f32 %v992_v31, %v904_v33 }
  0xf6   : > { %vm1236_vm9 = vcmp.gt.f32.partialorder %v1169_v32, 0.0  ;;  %v1268_v38 = vmul.f32 0.2, %v1169_v32 }
  0xf8   : > { %v1300_v43 = vsel %vm1236_vm9, %v1169_v32, %v1268_v38 }
  0xf9   : > { %v1332_v45 = vpack.c.bf16 %v1300_v43, %v1300_v43  ;;  %v1081_v46 = vpop.f32.mrf.mxu2  ;;  %v906_v51 = vpop.f32.mrf.mxu0 }
  0xfa   : > { %v1170_v47 = vpop.f32.mrf.mxu3  ;;  %v1082_v50 = vadd.f32 %v1081_v46, %v993_v44  ;;  %v995_v52 = vpop.f32.mrf.mxu1  ;;  %v907_v55 = vadd.f32 %v2248_v0, %v906_v51  ;;  %v1753_v44 = vld [vmem:[%s2161_s12 + $0x1e8] sm:$0xf]  ;;  %v1951_v46 = vld [vmem:[%s2161_s12 + $0x1ec] sm:$0xf] }
  0xfb   : > { %1365 = vst.msk [vmem:[%s2272_s21 + $0x20] sm:$0xf] %vm1356_vm1, %v1332_v45  ;;  %v1953_v45 = vld [vmem:[%s2161_s12 + $0x1f4] sm:$0xf0] }
  0xfc   : > { %v1171_v56 = vadd.f32 %v1170_v47, %v1082_v50  ;;  %945 = vmatmul.bf16.gmra.mxu0 %v1714_v48  ;;  %v996_v58 = vadd.f32 %v995_v52, %v907_v55  ;;  %v1755_v47 = vld [vmem:[%s2161_s12 + $0x1f8] sm:$0xf0] }
  0xfd   : > { %1034 = vmatmul.bf16.gmra.mxu1 %v1718_v49 }
  0xfe   : > { %vm1237_vm10 = vcmp.gt.f32.partialorder %v1171_v56, 0.0  ;;  %v1269_v57 = vmul.f32 0.2, %v1171_v56  ;;  %1123 = vmatmul.bf16.gmra.mxu2 %v1722_v53  ;;  %v1746_v53 = vor.u32 %v1952_v40, %v1745_v39 }
  0xff   : > { %1212 = vmatmul.bf16.gmra.mxu3 %v1726_v54  ;;  %v1750_v54 = vor.u32 %v1950_v41, %v1747_v42 }
 0x100   : > { %v1301_v59 = vsel %vm1237_vm10, %v1171_v56, %v1269_v57 }
 0x101   : > { %v1333_v60 = vpack.c.bf16 %v1301_v59, %v1301_v59  ;;  %v1084_v61 = vpop.f32.mrf.mxu2  ;;  %v908_v1 = vpop.f32.mrf.mxu0  ;;  %v1758_v59 = vor.u32 %v1951_v46, %v1755_v47 }
 0x102   : > { %v1173_v62 = vpop.f32.mrf.mxu3  ;;  %v1085_v63 = vadd.f32 %v1084_v61, %v996_v58  ;;  %v997_v2 = vpop.f32.mrf.mxu1  ;;  %v909_v4 = vadd.f32 %v2248_v0, %v908_v1  ;;  %v1754_v58 = vor.u32 %v1953_v45, %v1753_v44 }
 0x103   : > { %1366 = vst.msk [vmem:[%s2272_s21 + $0x24] sm:$0xf] %vm1356_vm1, %v1333_v60 }
 0x104   : > { %v1174_v3 = vadd.f32 %v1173_v62, %v1085_v63  ;;  %v998_v15 = vadd.f32 %v997_v2, %v909_v4 }
 0x106   : > { %vm1238_vm11 = vcmp.gt.f32.partialorder %v1174_v3, 0.0  ;;  %v1270_v9 = vmul.f32 0.2, %v1174_v3 }
 0x108   : > { %v1302_v14 = vsel %vm1238_vm11, %v1174_v3, %v1270_v9 }
 0x109   : > { %v1334_v16 = vpack.c.bf16 %v1302_v14, %v1302_v14  ;;  %v1086_v17 = vpop.f32.mrf.mxu2  ;;  %v911_v22 = vpop.f32.mrf.mxu0 }
 0x10a   : > { %v1175_v18 = vpop.f32.mrf.mxu3  ;;  %v1087_v21 = vadd.f32 %v1086_v17, %v998_v15  ;;  %v1000_v23 = vpop.f32.mrf.mxu1  ;;  %v912_v26 = vadd.f32 %v2248_v0, %v911_v22 }
 0x10b   : > { %1367 = vst.msk [vmem:[%s2272_s21 + $0x28] sm:$0xf] %vm1356_vm1, %v1334_v16 }
 0x10c   : > { %v1176_v27 = vadd.f32 %v1175_v18, %v1087_v21  ;;  %950 = vmatmul.bf16.gmra.mxu0 %v1730_v19  ;;  %v1001_v29 = vadd.f32 %v1000_v23, %v912_v26 }
 0x10d   : > { %1039 = vmatmul.bf16.gmra.mxu1 %v1734_v20 }
 0x10e   : > { %vm1239_vm12 = vcmp.gt.f32.partialorder %v1176_v27, 0.0  ;;  %v1271_v28 = vmul.f32 0.2, %v1176_v27  ;;  %1128 = vmatmul.bf16.gmra.mxu2 %v1738_v24 }
 0x10f   : > { %1217 = vmatmul.bf16.gmra.mxu3 %v1742_v25 }
 0x110   : > { %v1303_v30 = vsel %vm1239_vm12, %v1176_v27, %v1271_v28 }
 0x111   : > { %v1335_v31 = vpack.c.bf16 %v1303_v30, %v1303_v30  ;;  %v1089_v32 = vpop.f32.mrf.mxu2  ;;  %v913_v35 = vpop.f32.mrf.mxu0 }
 0x112   : > { %v1178_v33 = vpop.f32.mrf.mxu3  ;;  %v1090_v34 = vadd.f32 %v1089_v32, %v1001_v29  ;;  %v1002_v36 = vpop.f32.mrf.mxu1  ;;  %v914_v38 = vadd.f32 %v2248_v0, %v913_v35 }
 0x113   : > { %1368 = vst.msk [vmem:[%s2272_s21 + $0x2c] sm:$0xf] %vm1356_vm1, %v1335_v31 }
 0x114   : > { %v1179_v37 = vadd.f32 %v1178_v33, %v1090_v34  ;;  %v1003_v49 = vadd.f32 %v1002_v36, %v914_v38 }
 0x116   : > { %vm1240_vm13 = vcmp.gt.f32.partialorder %v1179_v37, 0.0  ;;  %v1272_v43 = vmul.f32 0.2, %v1179_v37 }
 0x118   : > { %v1304_v48 = vsel %vm1240_vm13, %v1179_v37, %v1272_v43 }
 0x119   : > { %v1336_v50 = vpack.c.bf16 %v1304_v48, %v1304_v48  ;;  %v1091_v51 = vpop.f32.mrf.mxu2  ;;  %v916_v56 = vpop.f32.mrf.mxu0 }
 0x11a   : > { %v1180_v52 = vpop.f32.mrf.mxu3  ;;  %v1092_v55 = vadd.f32 %v1091_v51, %v1003_v49  ;;  %v1005_v57 = vpop.f32.mrf.mxu1  ;;  %v917_v60 = vadd.f32 %v2248_v0, %v916_v56 }
 0x11b   : > { %1369 = vst.msk [vmem:[%s2272_s21 + $0x30] sm:$0xf] %vm1356_vm1, %v1336_v50 }
 0x11c   : > { %v1181_v61 = vadd.f32 %v1180_v52, %v1092_v55  ;;  %955 = vmatmul.bf16.gmra.mxu0 %v1746_v53  ;;  %v1006_v63 = vadd.f32 %v1005_v57, %v917_v60 }
 0x11d   : > { %1044 = vmatmul.bf16.gmra.mxu1 %v1750_v54 }
 0x11e   : > { %vm1241_vm14 = vcmp.gt.f32.partialorder %v1181_v61, 0.0  ;;  %v1273_v62 = vmul.f32 0.2, %v1181_v61  ;;  %1133 = vmatmul.bf16.gmra.mxu2 %v1754_v58 }
 0x11f   : > { %1222 = vmatmul.bf16.gmra.mxu3 %v1758_v59 }
 0x120   : > { %v1305_v1 = vsel %vm1241_vm14, %v1181_v61, %v1273_v62 }
 0x121   : > { %v1337_v2 = vpack.c.bf16 %v1305_v1, %v1305_v1  ;;  %v1094_v3 = vpop.f32.mrf.mxu2  ;;  %v918_v6 = vpop.f32.mrf.mxu0 }
 0x122   : > { %v1183_v4 = vpop.f32.mrf.mxu3  ;;  %v1095_v5 = vadd.f32 %v1094_v3, %v1006_v63  ;;  %v1007_v7 = vpop.f32.mrf.mxu1  ;;  %v919_v9 = vadd.f32 %v2248_v0, %v918_v6 }
 0x123   : > { %1370 = vst.msk [vmem:[%s2272_s21 + $0x34] sm:$0xf] %vm1356_vm1, %v1337_v2 }
 0x124   : > { %v1184_v8 = vadd.f32 %v1183_v4, %v1095_v5  ;;  %v1008_v12 = vadd.f32 %v1007_v7, %v919_v9 }
 0x126   : > { %vm1242_vm15 = vcmp.gt.f32.partialorder %v1184_v8, 0.0  ;;  %v1274_v10 = vmul.f32 0.2, %v1184_v8 }
 0x128   : > { %v1306_v11 = vsel %vm1242_vm15, %v1184_v8, %v1274_v10 }
 0x129   : > { %v1338_v13 = vpack.c.bf16 %v1306_v11, %v1306_v11  ;;  %v1096_v14 = vpop.f32.mrf.mxu2  ;;  %v921_v17 = vpop.f32.mrf.mxu0 }
 0x12a   : > { %v1185_v15 = vpop.f32.mrf.mxu3  ;;  %v1097_v16 = vadd.f32 %v1096_v14, %v1008_v12  ;;  %v1010_v18 = vpop.f32.mrf.mxu1  ;;  %v922_v19 = vadd.f32 %v2248_v0, %v921_v17 }
 0x12b   : > { %1371 = vst.msk [vmem:[%s2272_s21 + $0x38] sm:$0xf] %vm1356_vm1, %v1338_v13 }
 0x12c   : > { %v1186_v20 = vadd.f32 %v1185_v15, %v1097_v16  ;;  %v1011_v22 = vadd.f32 %v1010_v18, %v922_v19 }
 0x12e   : > { %vm1243_vm0 = vcmp.gt.f32.partialorder %v1186_v20, 0.0  ;;  %v1275_v21 = vmul.f32 0.2, %v1186_v20 }
 0x130   : > { %v1307_v23 = vsel %vm1243_vm0, %v1186_v20, %v1275_v21 }
 0x131   : > { %v1339_v24 = vpack.c.bf16 %v1307_v23, %v1307_v23  ;;  %v1099_v25 = vpop.f32.mrf.mxu2  ;;  %v923_v28 = vpop.f32.mrf.mxu0 }
 0x132   : > { %v1188_v26 = vpop.f32.mrf.mxu3  ;;  %v1100_v27 = vadd.f32 %v1099_v25, %v1011_v22  ;;  %v1012_v29 = vpop.f32.mrf.mxu1  ;;  %v924_v31 = vadd.f32 %v2248_v0, %v923_v28 }
 0x133   : > { %1372 = vst.msk [vmem:[%s2272_s21 + $0x3c] sm:$0xf] %vm1356_vm1, %v1339_v24 }
 0x134   : > { %v1189_v30 = vadd.f32 %v1188_v26, %v1100_v27  ;;  %v1013_v34 = vadd.f32 %v1012_v29, %v924_v31 }
 0x136   : > { %vm1244_vm2 = vcmp.gt.f32.partialorder %v1189_v30, 0.0  ;;  %v1276_v32 = vmul.f32 0.2, %v1189_v30 }
 0x138   : > { %v1308_v33 = vsel %vm1244_vm2, %v1189_v30, %v1276_v32 }
 0x139   : > { %v1340_v35 = vpack.c.bf16 %v1308_v33, %v1308_v33  ;;  %v1101_v36 = vpop.f32.mrf.mxu2  ;;  %v926_v39 = vpop.f32.mrf.mxu0 }
 0x13a   : > { %v1190_v37 = vpop.f32.mrf.mxu3  ;;  %v1102_v38 = vadd.f32 %v1101_v36, %v1013_v34  ;;  %v1015_v40 = vpop.f32.mrf.mxu1  ;;  %v927_v41 = vadd.f32 %v2248_v0, %v926_v39 }
 0x13b   : > { %1373 = vst.msk [vmem:[%s2272_s21 + $0x40] sm:$0xf] %vm1356_vm1, %v1340_v35 }
 0x13c   : > { %v1191_v42 = vadd.f32 %v1190_v37, %v1102_v38  ;;  %v1016_v44 = vadd.f32 %v1015_v40, %v927_v41 }
 0x13e   : > { %vm1245_vm3 = vcmp.gt.f32.partialorder %v1191_v42, 0.0  ;;  %v1277_v43 = vmul.f32 0.2, %v1191_v42 }
 0x140   : > { %v1309_v45 = vsel %vm1245_vm3, %v1191_v42, %v1277_v43 }
 0x141   : > { %v1341_v46 = vpack.c.bf16 %v1309_v45, %v1309_v45  ;;  %v1104_v47 = vpop.f32.mrf.mxu2  ;;  %v928_v50 = vpop.f32.mrf.mxu0 }
 0x142   : > { %v1193_v48 = vpop.f32.mrf.mxu3  ;;  %v1105_v49 = vadd.f32 %v1104_v47, %v1016_v44  ;;  %v1017_v51 = vpop.f32.mrf.mxu1  ;;  %v929_v53 = vadd.f32 %v2248_v0, %v928_v50 }
 0x143   : > { %1374 = vst.msk [vmem:[%s2272_s21 + $0x44] sm:$0xf] %vm1356_vm1, %v1341_v46 }
 0x144   : > { %v1194_v52 = vadd.f32 %v1193_v48, %v1105_v49  ;;  %v1018_v56 = vadd.f32 %v1017_v51, %v929_v53 }
 0x146   : > { %vm1246_vm4 = vcmp.gt.f32.partialorder %v1194_v52, 0.0  ;;  %v1278_v54 = vmul.f32 0.2, %v1194_v52 }
 0x148   : > { %v1310_v55 = vsel %vm1246_vm4, %v1194_v52, %v1278_v54 }
 0x149   : > { %v1342_v57 = vpack.c.bf16 %v1310_v55, %v1310_v55  ;;  %v1106_v58 = vpop.f32.mrf.mxu2  ;;  %v931_v61 = vpop.f32.mrf.mxu0 }
 0x14a   : > { %v1195_v59 = vpop.f32.mrf.mxu3  ;;  %v1107_v60 = vadd.f32 %v1106_v58, %v1018_v56  ;;  %v1020_v62 = vpop.f32.mrf.mxu1  ;;  %v932_v63 = vadd.f32 %v2248_v0, %v931_v61 }
 0x14b   : > { %1375 = vst.msk [vmem:[%s2272_s21 + $0x48] sm:$0xf] %vm1356_vm1, %v1342_v57 }
 0x14c   : > { %v1196_v1 = vadd.f32 %v1195_v59, %v1107_v60  ;;  %v1021_v3 = vadd.f32 %v1020_v62, %v932_v63 }
 0x14e   : > { %vm1247_vm5 = vcmp.gt.f32.partialorder %v1196_v1, 0.0  ;;  %v1279_v2 = vmul.f32 0.2, %v1196_v1 }
 0x150   : > { %v1311_v4 = vsel %vm1247_vm5, %v1196_v1, %v1279_v2 }
 0x151   : > { %v1343_v5 = vpack.c.bf16 %v1311_v4, %v1311_v4  ;;  %v1109_v6 = vpop.f32.mrf.mxu2  ;;  %v933_v9 = vpop.f32.mrf.mxu0 }
 0x152   : > { %v1198_v7 = vpop.f32.mrf.mxu3  ;;  %v1110_v8 = vadd.f32 %v1109_v6, %v1021_v3  ;;  %v1022_v10 = vpop.f32.mrf.mxu1  ;;  %v934_v12 = vadd.f32 %v2248_v0, %v933_v9 }
 0x153   : > { %1376 = vst.msk [vmem:[%s2272_s21 + $0x4c] sm:$0xf] %vm1356_vm1, %v1343_v5 }
 0x154   : > { %v1199_v11 = vadd.f32 %v1198_v7, %v1110_v8  ;;  %v1023_v15 = vadd.f32 %v1022_v10, %v934_v12 }
 0x156   : > { %vm1248_vm6 = vcmp.gt.f32.partialorder %v1199_v11, 0.0  ;;  %v1280_v13 = vmul.f32 0.2, %v1199_v11 }
 0x158   : > { %v1312_v14 = vsel %vm1248_vm6, %v1199_v11, %v1280_v13 }
 0x159   : > { %v1344_v16 = vpack.c.bf16 %v1312_v14, %v1312_v14  ;;  %v1111_v17 = vpop.f32.mrf.mxu2  ;;  %v936_v20 = vpop.f32.mrf.mxu0 }
 0x15a   : > { %v1200_v18 = vpop.f32.mrf.mxu3  ;;  %v1112_v19 = vadd.f32 %v1111_v17, %v1023_v15  ;;  %v1025_v21 = vpop.f32.mrf.mxu1  ;;  %v937_v22 = vadd.f32 %v2248_v0, %v936_v20 }
 0x15b   : > { %1377 = vst.msk [vmem:[%s2272_s21 + $0x50] sm:$0xf] %vm1356_vm1, %v1344_v16 }
 0x15c   : > { %v1201_v23 = vadd.f32 %v1200_v18, %v1112_v19  ;;  %v1026_v25 = vadd.f32 %v1025_v21, %v937_v22 }
 0x15e   : > { %vm1249_vm7 = vcmp.gt.f32.partialorder %v1201_v23, 0.0  ;;  %v1281_v24 = vmul.f32 0.2, %v1201_v23 }
 0x160   : > { %v1313_v26 = vsel %vm1249_vm7, %v1201_v23, %v1281_v24 }
 0x161   : > { %v1345_v27 = vpack.c.bf16 %v1313_v26, %v1313_v26  ;;  %v1114_v28 = vpop.f32.mrf.mxu2  ;;  %v938_v31 = vpop.f32.mrf.mxu0 }
 0x162   : > { %v1203_v29 = vpop.f32.mrf.mxu3  ;;  %v1115_v30 = vadd.f32 %v1114_v28, %v1026_v25  ;;  %v1027_v32 = vpop.f32.mrf.mxu1  ;;  %v939_v34 = vadd.f32 %v2248_v0, %v938_v31 }
 0x163   : > { %1378 = vst.msk [vmem:[%s2272_s21 + $0x54] sm:$0xf] %vm1356_vm1, %v1345_v27 }
 0x164   : > { %v1204_v33 = vadd.f32 %v1203_v29, %v1115_v30  ;;  %v1028_v37 = vadd.f32 %v1027_v32, %v939_v34 }
 0x166   : > { %vm1250_vm8 = vcmp.gt.f32.partialorder %v1204_v33, 0.0  ;;  %v1282_v35 = vmul.f32 0.2, %v1204_v33 }
 0x168   : > { %v1314_v36 = vsel %vm1250_vm8, %v1204_v33, %v1282_v35 }
 0x169   : > { %v1346_v38 = vpack.c.bf16 %v1314_v36, %v1314_v36  ;;  %v1116_v39 = vpop.f32.mrf.mxu2  ;;  %v941_v42 = vpop.f32.mrf.mxu0 }
 0x16a   : > { %v1205_v40 = vpop.f32.mrf.mxu3  ;;  %v1117_v41 = vadd.f32 %v1116_v39, %v1028_v37  ;;  %v1030_v43 = vpop.f32.mrf.mxu1  ;;  %v942_v44 = vadd.f32 %v2248_v0, %v941_v42 }
 0x16b   : > { %1379 = vst.msk [vmem:[%s2272_s21 + $0x58] sm:$0xf] %vm1356_vm1, %v1346_v38 }
 0x16c   : > { %v1206_v45 = vadd.f32 %v1205_v40, %v1117_v41  ;;  %v1031_v47 = vadd.f32 %v1030_v43, %v942_v44 }
 0x16e   : > { %vm1251_vm9 = vcmp.gt.f32.partialorder %v1206_v45, 0.0  ;;  %v1283_v46 = vmul.f32 0.2, %v1206_v45 }
 0x170   : > { %v1315_v48 = vsel %vm1251_vm9, %v1206_v45, %v1283_v46  ;;  %v2011_v46 = vld [vmem:[%s2428_s2] ss:$0 sm:$0xff] }
 0x171   : > { %v1347_v49 = vpack.c.bf16 %v1315_v48, %v1315_v48  ;;  %v1119_v50 = vpop.f32.mrf.mxu2  ;;  %v943_v53 = vpop.f32.mrf.mxu0 }
 0x172   : > { %v1208_v51 = vpop.f32.mrf.mxu3  ;;  %v1120_v52 = vadd.f32 %v1119_v50, %v1031_v47  ;;  %v1032_v54 = vpop.f32.mrf.mxu1  ;;  %v944_v56 = vadd.f32 %v2248_v0, %v943_v53 }
 0x173   : > { %1380 = vst.msk [vmem:[%s2272_s21 + $0x5c] sm:$0xf] %vm1356_vm1, %v1347_v49 }
 0x174   : > { %v1209_v55 = vadd.f32 %v1208_v51, %v1120_v52  ;;  %v1033_v59 = vadd.f32 %v1032_v54, %v944_v56 }
 0x176   : > { %vm1252_vm10 = vcmp.gt.f32.partialorder %v1209_v55, 0.0  ;;  %v1284_v57 = vmul.f32 0.2, %v1209_v55 }
 0x178   : > { %v1316_v58 = vsel %vm1252_vm10, %v1209_v55, %v1284_v57 }
 0x179   : > { %v1348_v60 = vpack.c.bf16 %v1316_v58, %v1316_v58  ;;  %v1121_v61 = vpop.f32.mrf.mxu2  ;;  %v946_v1 = vpop.f32.mrf.mxu0 }
 0x17a   : > { %v1210_v62 = vpop.f32.mrf.mxu3  ;;  %v1122_v63 = vadd.f32 %v1121_v61, %v1033_v59  ;;  %v1035_v2 = vpop.f32.mrf.mxu1  ;;  %v947_v3 = vadd.f32 %v2248_v0, %v946_v1 }
 0x17b   : > { %1381 = vst.msk [vmem:[%s2272_s21 + $0x60] sm:$0xf] %vm1356_vm1, %v1348_v60 }
 0x17c   : > { %v1211_v4 = vadd.f32 %v1210_v62, %v1122_v63  ;;  %v1036_v6 = vadd.f32 %v1035_v2, %v947_v3 }
 0x17e   : > { %vm1253_vm11 = vcmp.gt.f32.partialorder %v1211_v4, 0.0  ;;  %v1285_v5 = vmul.f32 0.2, %v1211_v4 }
 0x180   : > { %v1317_v7 = vsel %vm1253_vm11, %v1211_v4, %v1285_v5 }
 0x181   : > { %v1349_v8 = vpack.c.bf16 %v1317_v7, %v1317_v7  ;;  %v1124_v9 = vpop.f32.mrf.mxu2  ;;  %v948_v12 = vpop.f32.mrf.mxu0 }
 0x182   : > { %v1213_v10 = vpop.f32.mrf.mxu3  ;;  %v1125_v11 = vadd.f32 %v1124_v9, %v1036_v6  ;;  %v1037_v13 = vpop.f32.mrf.mxu1  ;;  %v949_v15 = vadd.f32 %v2248_v0, %v948_v12 }
 0x183   : > { %1382 = vst.msk [vmem:[%s2272_s21 + $0x64] sm:$0xf] %vm1356_vm1, %v1349_v8 }
 0x184   : > { %v1214_v14 = vadd.f32 %v1213_v10, %v1125_v11  ;;  %v1038_v18 = vadd.f32 %v1037_v13, %v949_v15 }
 0x186   : > { %vm1254_vm12 = vcmp.gt.f32.partialorder %v1214_v14, 0.0  ;;  %v1286_v16 = vmul.f32 0.2, %v1214_v14 }
 0x188   : > { %v1318_v17 = vsel %vm1254_vm12, %v1214_v14, %v1286_v16 }
 0x189   : > { %v1350_v19 = vpack.c.bf16 %v1318_v17, %v1318_v17  ;;  %v1126_v20 = vpop.f32.mrf.mxu2  ;;  %v951_v23 = vpop.f32.mrf.mxu0 }
 0x18a   : > { %v1215_v21 = vpop.f32.mrf.mxu3  ;;  %v1127_v22 = vadd.f32 %v1126_v20, %v1038_v18  ;;  %v1040_v24 = vpop.f32.mrf.mxu1  ;;  %v952_v25 = vadd.f32 %v2248_v0, %v951_v23 }
 0x18b   : > { %1383 = vst.msk [vmem:[%s2272_s21 + $0x68] sm:$0xf] %vm1356_vm1, %v1350_v19 }
 0x18c   : > { %v1216_v26 = vadd.f32 %v1215_v21, %v1127_v22  ;;  %v1041_v28 = vadd.f32 %v1040_v24, %v952_v25 }
 0x18e   : > { %vm1255_vm13 = vcmp.gt.f32.partialorder %v1216_v26, 0.0  ;;  %v1287_v27 = vmul.f32 0.2, %v1216_v26 }
 0x190   : > { %v1319_v29 = vsel %vm1255_vm13, %v1216_v26, %v1287_v27 }
 0x191   : > { %v1351_v30 = vpack.c.bf16 %v1319_v29, %v1319_v29  ;;  %v1129_v31 = vpop.f32.mrf.mxu2  ;;  %v953_v34 = vpop.f32.mrf.mxu0 }
 0x192   : > { %v1218_v32 = vpop.f32.mrf.mxu3  ;;  %v1130_v33 = vadd.f32 %v1129_v31, %v1041_v28  ;;  %v1042_v35 = vpop.f32.mrf.mxu1  ;;  %v954_v37 = vadd.f32 %v2248_v0, %v953_v34 }
 0x193   : > { %1384 = vst.msk [vmem:[%s2272_s21 + $0x6c] sm:$0xf] %vm1356_vm1, %v1351_v30 }
 0x194   : > { %v1219_v36 = vadd.f32 %v1218_v32, %v1130_v33  ;;  %v1043_v40 = vadd.f32 %v1042_v35, %v954_v37 }
 0x196   : > { %vm1256_vm14 = vcmp.gt.f32.partialorder %v1219_v36, 0.0  ;;  %v1288_v38 = vmul.f32 0.2, %v1219_v36 }
 0x198   : > { %v1320_v39 = vsel %vm1256_vm14, %v1219_v36, %v1288_v38 }
 0x199   : > { %v1352_v41 = vpack.c.bf16 %v1320_v39, %v1320_v39  ;;  %v1131_v42 = vpop.f32.mrf.mxu2  ;;  %v956_v45 = vpop.f32.mrf.mxu0 }
 0x19a   : > { %v1220_v43 = vpop.f32.mrf.mxu3  ;;  %v1132_v44 = vadd.f32 %v1131_v42, %v1043_v40  ;;  %v957_v47 = vadd.f32 %v2011_v46, %v956_v45  ;;  %v1045_v49 = vpop.f32.mrf.mxu1 }
 0x19b   : > { %1385 = vst.msk [vmem:[%s2272_s21 + $0x70] sm:$0xf] %vm1356_vm1, %v1352_v41 }
 0x19c   : > { %v1221_v48 = vadd.f32 %v1220_v43, %v1132_v44  ;;  %v1046_v50 = vadd.f32 %v1045_v49, %v957_v47 }
 0x19e   : > { %vm1257_vm15 = vcmp.gt.f32.partialorder %v1221_v48, 0.0  ;;  %v1289_v0 = vmul.f32 0.2, %v1221_v48 }
 0x1a0   : > { %v1321_v51 = vsel %vm1257_vm15, %v1221_v48, %v1289_v0 }
 0x1a1   : > { %v1353_v52 = vpack.c.bf16 %v1321_v51, %v1321_v51  ;;  %v1134_v53 = vpop.f32.mrf.mxu2  ;;  %v958_v56 = vpop.f32.mrf.mxu0 }
 0x1a2   : > { %v1223_v54 = vpop.f32.mrf.mxu3  ;;  %v1135_v55 = vadd.f32 %v1134_v53, %v1046_v50  ;;  %v959_v58 = vadd.f32 %v2011_v46, %v958_v56  ;;  %v1047_v60 = vpop.f32.mrf.mxu1 }
 0x1a3   : > { %1386 = vst.msk [vmem:[%s2272_s21 + $0x74] sm:$0xf] %vm1356_vm1, %v1353_v52 }
 0x1a4   : > { %v1224_v57 = vadd.f32 %v1223_v54, %v1135_v55  ;;  %v1048_v62 = vadd.f32 %v1047_v60, %v959_v58 }
 0x1a6   : > { %vm1258_vm0 = vcmp.gt.f32.partialorder %v1224_v57, 0.0  ;;  %v1290_v59 = vmul.f32 0.2, %v1224_v57 }
 0x1a8   : > { %v1322_v61 = vsel %vm1258_vm0, %v1224_v57, %v1290_v59 }
 0x1a9   : > { %v1354_v63 = vpack.c.bf16 %v1322_v61, %v1322_v61  ;;  %v1136_v1 = vpop.f32.mrf.mxu2 }
 0x1aa   : > { %v1137_v2 = vadd.f32 %v1136_v1, %v1048_v62  ;;  %v1225_v3 = vpop.f32.mrf.mxu3 }
 0x1ab   : > { %1387 = vst.msk [vmem:[%s2272_s21 + $0x78] sm:$0xf] %vm1356_vm1, %v1354_v63 }
 0x1ac   : > { %v1226_v4 = vadd.f32 %v1225_v3, %v1137_v2 }
 0x1ae   : > { %vm1259_vm2 = vcmp.gt.f32.partialorder %v1226_v4, 0.0  ;;  %v1291_v5 = vmul.f32 0.2, %v1226_v4 }
 0x1b0   : > { %v1323_v6 = vsel %vm1259_vm2, %v1226_v4, %v1291_v5 }
 0x1b1   : > { %v1355_v7 = vpack.c.bf16 %v1323_v6, %v1323_v6 }
 0x1b3   : > { %1388 = vst.msk [vmem:[%s2272_s21 + $0x7c] sm:$0xf] %vm1356_vm1, %v1355_v7 }
 0x1b4 PF: > { %s13_s14 = sadd.s32 1, %s2034_s14   ;;  %s2430_s12 = smov %s2030_s13 }
 0x1b5   : > { %p10_p5 = scmp.ge.s32.totalorder %s13_s14, 4   ;;  %s2431_s13 = smov %s2433_s15 }
 0x1b7   :  { %12 = sbr.rel (!%p10_p5) target bundleno = 2 (0x2), region = 68 }

// kernel: discriminator_forward.8
= control target key start
LH: loop header
LB: loop body
LE: loop exit
PB: predicated region body
PF: predicated region fallthrough
CT: control target
= control target key end

     0   :  { %s1897_s12 = smov 0   ;;  %s1899_s13 = smov 0   ;;  %s2241_s0 = inlined_call_operand.vmem [shape: bf16[128,1024], index: 0, kind: input, shape index: {}]   ;;  %s2242_s1 = inlined_call_operand.vmem [shape: bf16[1024,128], index: 1, kind: input, shape index: {}]   ;;  %s2243_s2 = inlined_call_operand.vmem [shape: f32[1,128], index: 2, kind: input, shape index: {}]   ;;  %s2244_s3 = inlined_call_operand.vmem [shape: bf16[128,128], index: 3, kind: output, shape index: {}]  }
   0x1   :  { %s1901_s14 = smov 0  }
   0x2 LB: > { %s25_s15 = sadd.s32 1, %s1871_s13  ;;  %p1316_p0 = scmp.ge.s32.totalorder %s1875_s14, 1  ;;  %s1875_s14 = sphi %s1901_s14, %s13_s14   ;;  %s1871_s13 = sphi %s1899_s13, %s2246_s13   ;;  %s1867_s12 = sphi %s1897_s12, %s2245_s12  }
   0x3   : > { %p27_p1 = scmp.ge.s32.totalorder %s25_s15, 2  ;;  %p170_p2 = scmp.lt.s32.totalorder %s1875_s14, 3 }
   0x5   : > { %s2248_s15 = smov (%p27_p1, %s25_s15), 0  ;;  %p171_p3 = pnand %p1316_p0, %p170_p2 }
   0x6   : > { %s1317_s17 = sshll.u32 (!%p171_p3), %s1867_s12, 3 }
   0x7   : > { %174 = sbr.rel (%p171_p3) target bundleno = 308 (0x134), region = 32  ;;  %p206_p4 = scmp.lt.s32.totalorder (!%p171_p3), %s1317_s17, 15 }
   0xc   : > { %v1748_v0 = vld [vmem:[%s2242_s1 + $0x38] sm:$0xff]  ;;  %v1747_v4 = vld [vmem:[%s2242_s1 + $0x30] sm:$0xff]  ;;  %v1746_v8 = vld [vmem:[%s2242_s1 + $0x28] sm:$0xff]  ;;  %s2250_s17 = smov (!%p206_p4, %s1317_s17), 15 }
   0xd   : > { %v1756_v1 = vld [vmem:[%s2242_s1 + $0x78] sm:$0xff]  ;;  %936 = vmatpush.bf16.msra.mxu0 %v1748_v0  ;;  %v1755_v5 = vld [vmem:[%s2242_s1 + $0x70] sm:$0xff]  ;;  %v1754_v9 = vld [vmem:[%s2242_s1 + $0x68] sm:$0xff]  ;;  %s1708_s19 = sshll.u32 %s2250_s17, 5 }
   0xe   : > { %v1764_v2 = vld [vmem:[%s2242_s1 + $0xb8] sm:$0xff]  ;;  %965 = vmatpush.bf16.msra.mxu1 %v1756_v1  ;;  %v1763_v6 = vld [vmem:[%s2242_s1 + $0xb0] sm:$0xff]  ;;  %v1762_v10 = vld [vmem:[%s2242_s1 + $0xa8] sm:$0xff]  ;;  %s2002_s12 = scalar_lea.vmem %s2241_s0, %s1708_s19 }
   0xf   : > { %v1772_v3 = vld [vmem:[%s2242_s1 + $0xf8] sm:$0xff]  ;;  %994 = vmatpush.bf16.msra.mxu2 %v1764_v2  ;;  %v1771_v7 = vld [vmem:[%s2242_s1 + $0xf0] sm:$0xff]  ;;  %v1770_v11 = vld [vmem:[%s2242_s1 + $0xe8] sm:$0xff] }
  0x10   : > { %1023 = vmatpush.bf16.msra.mxu3 %v1772_v3  ;;  %v1745_v12 = vld [vmem:[%s2242_s1 + $0x20] sm:$0xff]  ;;  %v1744_v16 = vld [vmem:[%s2242_s1 + $0x18] sm:$0xff]  ;;  %v1743_v20 = vld [vmem:[%s2242_s1 + $0x10] sm:$0xff] }
  0x11   : > { %937 = vmatpush.bf16.msra.mxu0 %v1747_v4  ;;  %v1753_v13 = vld [vmem:[%s2242_s1 + $0x60] sm:$0xff]  ;;  %v1752_v17 = vld [vmem:[%s2242_s1 + $0x58] sm:$0xff]  ;;  %v1751_v21 = vld [vmem:[%s2242_s1 + $0x50] sm:$0xff] }
  0x12   : > { %966 = vmatpush.bf16.msra.mxu1 %v1755_v5  ;;  %v1761_v14 = vld [vmem:[%s2242_s1 + $0xa0] sm:$0xff]  ;;  %v1760_v18 = vld [vmem:[%s2242_s1 + $0x98] sm:$0xff]  ;;  %v1759_v22 = vld [vmem:[%s2242_s1 + $0x90] sm:$0xff] }
  0x13   : > { %995 = vmatpush.bf16.msra.mxu2 %v1763_v6  ;;  %v1769_v15 = vld [vmem:[%s2242_s1 + $0xe0] sm:$0xff]  ;;  %v1768_v19 = vld [vmem:[%s2242_s1 + $0xd8] sm:$0xff]  ;;  %v1767_v23 = vld [vmem:[%s2242_s1 + $0xd0] sm:$0xff] }
  0x14   : > { %1024 = vmatpush.bf16.msra.mxu3 %v1771_v7  ;;  %v1742_v24 = vld [vmem:[%s2242_s1 + $0x8] sm:$0xff]  ;;  %v1741_v28 = vld [vmem:[%s2242_s1] sm:$0xff]  ;;  %v1796_v40 = vld [vmem:[%s2242_s1 + $0x1b8] sm:$0xff] }
  0x15   : > { %938 = vmatpush.bf16.msra.mxu0 %v1746_v8  ;;  %v1750_v25 = vld [vmem:[%s2242_s1 + $0x48] sm:$0xff]  ;;  %v1749_v29 = vld [vmem:[%s2242_s1 + $0x40] sm:$0xff]  ;;  %v1780_v41 = vld [vmem:[%s2242_s1 + $0x138] sm:$0xff] }
  0x16   : > { %967 = vmatpush.bf16.msra.mxu1 %v1754_v9  ;;  %v1758_v26 = vld [vmem:[%s2242_s1 + $0x88] sm:$0xff]  ;;  %v1757_v30 = vld [vmem:[%s2242_s1 + $0x80] sm:$0xff]  ;;  %v1804_v46 = vld [vmem:[%s2242_s1 + $0x1f8] sm:$0xff] }
  0x17   : > { %996 = vmatpush.bf16.msra.mxu2 %v1762_v10  ;;  %v1766_v27 = vld [vmem:[%s2242_s1 + $0xc8] sm:$0xff]  ;;  %v1765_v31 = vld [vmem:[%s2242_s1 + $0xc0] sm:$0xff]  ;;  %v1788_v47 = vld [vmem:[%s2242_s1 + $0x178] sm:$0xff] }
  0x18   : > { %1025 = vmatpush.bf16.msra.mxu3 %v1770_v11  ;;  %v1324_v32 = vld [vmem:[%s2002_s12] sm:$0xf]  ;;  %v1709_v34 = vld [vmem:[%s2002_s12 + $0x4] sm:$0xf]  ;;  %v1332_v36 = vld [vmem:[%s2002_s12 + $0x8] sm:$0xf] }
  0x19   : > { %939 = vmatpush.bf16.msra.mxu0 %v1745_v12  ;;  %v1713_v33 = vld [vmem:[%s2002_s12 + $0x1c] sm:$0xf0]  ;;  %v1326_v35 = vld [vmem:[%s2002_s12 + $0x20] sm:$0xf0]  ;;  %v1714_v37 = vld [vmem:[%s2002_s12 + $0x24] sm:$0xf0] }
  0x1a   : > { %968 = vmatpush.bf16.msra.mxu1 %v1753_v13  ;;  %v1710_v38 = vld [vmem:[%s2002_s12 + $0xc] sm:$0xf]  ;;  %v1325_v42 = vor.u32 %v1713_v33, %v1324_v32  ;;  %v1329_v43 = vor.u32 %v1709_v34, %v1326_v35  ;;  %v1333_v44 = vor.u32 %v1714_v37, %v1332_v36  ;;  %v1795_v48 = vld [vmem:[%s2242_s1 + $0x1b0] sm:$0xff]  ;;  %v1356_v56 = vld [vmem:[%s2002_s12 + $0x40] sm:$0xf] }
  0x1b   : > { %997 = vmatpush.bf16.msra.mxu2 %v1761_v14  ;;  %v1334_v39 = vld [vmem:[%s2002_s12 + $0x28] sm:$0xf0]  ;;  %v1779_v49 = vld [vmem:[%s2242_s1 + $0x130] sm:$0xff]  ;;  %v1793_v57 = vld [vmem:[%s2242_s1 + $0x1a0] sm:$0xff] }
  0x1c   : > { %1026 = vmatpush.bf16.msra.mxu3 %v1769_v15  ;;  %v1337_v45 = vor.u32 %v1710_v38, %v1334_v39  ;;  %v1803_v50 = vld [vmem:[%s2242_s1 + $0x1f0] sm:$0xff]  ;;  %v1794_v52 = vld [vmem:[%s2242_s1 + $0x1a8] sm:$0xff]  ;;  %v1777_v58 = vld [vmem:[%s2242_s1 + $0x120] sm:$0xff] }
  0x1d   : > { %940 = vmatpush.bf16.msra.mxu0 %v1744_v16  ;;  %v1787_v51 = vld [vmem:[%s2242_s1 + $0x170] sm:$0xff]  ;;  %v1778_v53 = vld [vmem:[%s2242_s1 + $0x128] sm:$0xff]  ;;  %v1721_v59 = vld [vmem:[%s2002_s12 + $0x5c] sm:$0xf0] }
  0x1e   : > { %969 = vmatpush.bf16.msra.mxu1 %v1752_v17  ;;  %v1802_v54 = vld [vmem:[%s2242_s1 + $0x1e8] sm:$0xff]  ;;  %v1717_v60 = vld [vmem:[%s2002_s12 + $0x44] sm:$0xf]  ;;  %v1792_v4 = vld [vmem:[%s2242_s1 + $0x198] sm:$0xff]  ;;  %v1357_v6 = vor.u32 %v1721_v59, %v1356_v56 }
  0x1f   : > { %998 = vmatpush.bf16.msra.mxu2 %v1760_v18  ;;  %v1786_v55 = vld [vmem:[%s2242_s1 + $0x168] sm:$0xff]  ;;  %v1358_v61 = vld [vmem:[%s2002_s12 + $0x60] sm:$0xf0]  ;;  %v1776_v5 = vld [vmem:[%s2242_s1 + $0x118] sm:$0xff] }
  0x20   : > { %1027 = vmatpush.bf16.msra.mxu3 %v1768_v19  ;;  %v1364_v62 = vld [vmem:[%s2002_s12 + $0x48] sm:$0xf]  ;;  %v1718_v0 = vld [vmem:[%s2002_s12 + $0x4c] sm:$0xf]  ;;  %v1801_v2 = vld [vmem:[%s2242_s1 + $0x1e0] sm:$0xff]  ;;  %v1361_v7 = vor.u32 %v1717_v60, %v1358_v61 }
  0x21   : > { %941 = vmatpush.bf16.msra.mxu0 %v1743_v20  ;;  %v1722_v63 = vld [vmem:[%s2002_s12 + $0x64] sm:$0xf0]  ;;  %v1366_v1 = vld [vmem:[%s2002_s12 + $0x68] sm:$0xf0]  ;;  %v1785_v3 = vld [vmem:[%s2242_s1 + $0x160] sm:$0xff] }
  0x22   : > { %970 = vmatpush.bf16.msra.mxu1 %v1751_v21  ;;  %v1365_v8 = vor.u32 %v1722_v63, %v1364_v62  ;;  %v1369_v9 = vor.u32 %v1718_v0, %v1366_v1  ;;  %v1800_v10 = vld [vmem:[%s2242_s1 + $0x1d8] sm:$0xff]  ;;  %v1791_v12 = vld [vmem:[%s2242_s1 + $0x190] sm:$0xff]  ;;  %v1790_v16 = vld [vmem:[%s2242_s1 + $0x188] sm:$0xff] }
  0x23   : > { %999 = vmatpush.bf16.msra.mxu2 %v1759_v22  ;;  %v1784_v11 = vld [vmem:[%s2242_s1 + $0x158] sm:$0xff]  ;;  %v1775_v13 = vld [vmem:[%s2242_s1 + $0x110] sm:$0xff]  ;;  %v1774_v17 = vld [vmem:[%s2242_s1 + $0x108] sm:$0xff] }
  0x24   : > { %1028 = vmatpush.bf16.msra.mxu3 %v1767_v23  ;;  %v1799_v14 = vld [vmem:[%s2242_s1 + $0x1d0] sm:$0xff]  ;;  %v1798_v18 = vld [vmem:[%s2242_s1 + $0x1c8] sm:$0xff]  ;;  %v1388_v20 = vld [vmem:[%s2002_s12 + $0x80] sm:$0xf] }
  0x25   : > { %942 = vmatpush.bf16.msra.mxu0 %v1742_v24  ;;  %v1783_v15 = vld [vmem:[%s2242_s1 + $0x150] sm:$0xff]  ;;  %v1782_v19 = vld [vmem:[%s2242_s1 + $0x148] sm:$0xff]  ;;  %v1789_v21 = vld [vmem:[%s2242_s1 + $0x180] sm:$0xff] }
  0x26   : > { %971 = vmatpush.bf16.msra.mxu1 %v1750_v25  ;;  %v1773_v22 = vld [vmem:[%s2242_s1 + $0x100] sm:$0xff]  ;;  %v1372_v60 = vld [vmem:[%s2002_s12 + $0x50] sm:$0xf]  ;;  %v1719_v62 = vld [vmem:[%s2002_s12 + $0x54] sm:$0xf] }
  0x27   : > { %1000 = vmatpush.bf16.msra.mxu2 %v1758_v26  ;;  %v1729_v23 = vld [vmem:[%s2002_s12 + $0x9c] sm:$0xf0]  ;;  %v1725_v24 = vld [vmem:[%s2002_s12 + $0x84] sm:$0xf]  ;;  %v1396_v26 = vld [vmem:[%s2002_s12 + $0x88] sm:$0xf] }
  0x28   : > { %1029 = vmatpush.bf16.msra.mxu3 %v1766_v27  ;;  %v1390_v25 = vld [vmem:[%s2002_s12 + $0xa0] sm:$0xf0]  ;;  %v1730_v27 = vld [vmem:[%s2002_s12 + $0xa4] sm:$0xf0]  ;;  %v1389_v32 = vor.u32 %v1729_v23, %v1388_v20  ;;  %v1420_v36 = vld [vmem:[%s2002_s12 + $0xc0] sm:$0xf] }
  0x29   : > { %943 = vmatpush.bf16.msra.mxu0 %v1741_v28  ;;  %v1726_v28 = vld [vmem:[%s2002_s12 + $0x8c] sm:$0xf]  ;;  %v1393_v33 = vor.u32 %v1725_v24, %v1390_v25  ;;  %v1397_v34 = vor.u32 %v1730_v27, %v1396_v26  ;;  %v1737_v37 = vld [vmem:[%s2002_s12 + $0xdc] sm:$0xf0]  ;;  %v1733_v38 = vld [vmem:[%s2002_s12 + $0xc4] sm:$0xf] }
  0x2a   : > { %972 = vmatpush.bf16.msra.mxu1 %v1749_v29  ;;  %v1398_v29 = vld [vmem:[%s2002_s12 + $0xa8] sm:$0xf0]  ;;  %v1422_v39 = vld [vmem:[%s2002_s12 + $0xe0] sm:$0xf0]  ;;  %v1723_v61 = vld [vmem:[%s2002_s12 + $0x6c] sm:$0xf0] }
  0x2b   : > { %1001 = vmatpush.bf16.msra.mxu2 %v1757_v30  ;;  %v1797_v30 = vld [vmem:[%s2242_s1 + $0x1c0] sm:$0xff]  ;;  %v1401_v35 = vor.u32 %v1726_v28, %v1398_v29  ;;  %v1374_v63 = vld [vmem:[%s2002_s12 + $0x70] sm:$0xf0]  ;;  %v1380_v0 = vld [vmem:[%s2002_s12 + $0x58] sm:$0xf] }
  0x2c   : > { %1030 = vmatpush.bf16.msra.mxu3 %v1765_v31  ;;  %944 = vmatmul.bf16.vlgmr.msra.gmra.mxu0 %v1325_v42  ;;  %v1781_v31 = vld [vmem:[%s2242_s1 + $0x140] sm:$0xff]  ;;  %v1734_v42 = vld [vmem:[%s2002_s12 + $0xcc] sm:$0xf]  ;;  %v1724_v1 = vld [vmem:[%s2002_s12 + $0x74] sm:$0xf0] }
  0x2d   : > { %1052 = vmatpush.bf16.msrb.mxu0 %v1780_v41  ;;  %973 = vmatmul.bf16.vlgmr.msra.gmra.mxu1 %v1329_v43  ;;  %v1738_v41 = vld [vmem:[%s2002_s12 + $0xe4] sm:$0xf0]  ;;  %v1430_v43 = vld [vmem:[%s2002_s12 + $0xe8] sm:$0xf0]  ;;  %v1436_v20 = vld [vmem:[%s2002_s12 + $0xd0] sm:$0xf] }
  0x2e   : > { %1002 = vmatmul.bf16.vlgmr.msra.gmra.mxu2 %v1333_v44  ;;  %1081 = vmatpush.bf16.msrb.mxu1 %v1788_v47  ;;  %v1421_v44 = vor.u32 %v1737_v37, %v1420_v36  ;;  %v1433_v47 = vor.u32 %v1734_v42, %v1430_v43  ;;  %v1438_v23 = vld [vmem:[%s2002_s12 + $0xf0] sm:$0xf0]  ;;  %v1444_v24 = vld [vmem:[%s2002_s12 + $0xd8] sm:$0xf]  ;;  %v1736_v26 = vld [vmem:[%s2002_s12 + $0xdc] sm:$0xf] }
  0x2f   : > { %1110 = vmatpush.bf16.msrb.mxu2 %v1796_v40  ;;  %1031 = vmatmul.bf16.vlgmr.msra.gmra.mxu3 %v1337_v45  ;;  %v1428_v40 = vld [vmem:[%s2002_s12 + $0xc8] sm:$0xf]  ;;  %v1425_v45 = vor.u32 %v1733_v38, %v1422_v39  ;;  %v1740_v25 = vld [vmem:[%s2002_s12 + $0xf4] sm:$0xf0]  ;;  %v1446_v27 = vld [vmem:[%s2002_s12 + $0xf8] sm:$0xf0] }
  0x30   : > { %1139 = vmatpush.bf16.msrb.mxu3 %v1804_v46  ;;  %v1429_v46 = vor.u32 %v1738_v41, %v1428_v40 }
  0x31   : > { %1053 = vmatpush.bf16.msrb.mxu0 %v1779_v49  ;;  %v1715_v49 = vld [vmem:[%s2002_s12 + $0x2c] sm:$0xf0] }
  0x32   : > { %1082 = vmatpush.bf16.msrb.mxu1 %v1787_v51  ;;  %v1342_v51 = vld [vmem:[%s2002_s12 + $0x30] sm:$0xf0] }
  0x33   : > { %1111 = vmatpush.bf16.msrb.mxu2 %v1795_v48  ;;  %v1340_v48 = vld [vmem:[%s2002_s12 + $0x10] sm:$0xf] }
  0x34   : > { %1140 = vmatpush.bf16.msrb.mxu3 %v1803_v50  ;;  %v1711_v50 = vld [vmem:[%s2002_s12 + $0x14] sm:$0xf]  ;;  %v1341_v56 = vor.u32 %v1715_v49, %v1340_v48 }
  0x35   : > { %1054 = vmatpush.bf16.msrb.mxu0 %v1778_v53  ;;  %v1716_v53 = vld [vmem:[%s2002_s12 + $0x34] sm:$0xf0] }
  0x36   : > { %1083 = vmatpush.bf16.msrb.mxu1 %v1786_v55  ;;  %v1350_v55 = vld [vmem:[%s2002_s12 + $0x38] sm:$0xf0] }
  0x37   : > { %1112 = vmatpush.bf16.msrb.mxu2 %v1794_v52  ;;  %v1348_v52 = vld [vmem:[%s2002_s12 + $0x18] sm:$0xf] }
  0x38   : > { %1141 = vmatpush.bf16.msrb.mxu3 %v1802_v54  ;;  %v1712_v54 = vld [vmem:[%s2002_s12 + $0x1c] sm:$0xf] }
  0x39   : > { %1055 = vmatpush.bf16.msrb.mxu0 %v1777_v58  ;;  %v1349_v58 = vor.u32 %v1716_v53, %v1348_v52  ;;  %v1353_v59 = vor.u32 %v1712_v54, %v1350_v55 }
  0x3a   : > { %1084 = vmatpush.bf16.msrb.mxu1 %v1785_v3  ;;  %v1382_v3 = vld [vmem:[%s2002_s12 + $0x78] sm:$0xf0] }
  0x3b   : > { %1113 = vmatpush.bf16.msrb.mxu2 %v1793_v57  ;;  %v1345_v57 = vor.u32 %v1711_v50, %v1342_v51 }
  0x3c   : > { %1142 = vmatpush.bf16.msrb.mxu3 %v1801_v2  ;;  %949 = vmatmul.bf16.gmra.mxu0 %v1357_v6  ;;  %v1720_v2 = vld [vmem:[%s2002_s12 + $0x5c] sm:$0xf]  ;;  %v1381_v6 = vor.u32 %v1724_v1, %v1380_v0 }
  0x3d   : > { %1056 = vmatpush.bf16.msrb.mxu0 %v1776_v5  ;;  %978 = vmatmul.bf16.gmra.mxu1 %v1361_v7  ;;  %v1377_v5 = vor.u32 %v1719_v62, %v1374_v63  ;;  %v1385_v7 = vor.u32 %v1720_v2, %v1382_v3 }
  0x3e   : > { %1007 = vmatmul.bf16.gmra.mxu2 %v1365_v8  ;;  %1085 = vmatpush.bf16.msrb.mxu1 %v1784_v11  ;;  %v1404_v8 = vld [vmem:[%s2002_s12 + $0x90] sm:$0xf]  ;;  %v1406_v11 = vld [vmem:[%s2002_s12 + $0xb0] sm:$0xf0] }
  0x3f   : > { %1114 = vmatpush.bf16.msrb.mxu2 %v1792_v4  ;;  %1036 = vmatmul.bf16.gmra.mxu3 %v1369_v9  ;;  %v1373_v4 = vor.u32 %v1723_v61, %v1372_v60  ;;  %v1731_v9 = vld [vmem:[%s2002_s12 + $0xac] sm:$0xf0] }
  0x40   : > { %1143 = vmatpush.bf16.msrb.mxu3 %v1800_v10  ;;  %v1727_v10 = vld [vmem:[%s2002_s12 + $0x94] sm:$0xf] }
  0x41   : > { %1057 = vmatpush.bf16.msrb.mxu0 %v1775_v13  ;;  %v1732_v13 = vld [vmem:[%s2002_s12 + $0xb4] sm:$0xf0] }
  0x42   : > { %1086 = vmatpush.bf16.msrb.mxu1 %v1783_v15  ;;  %v1414_v15 = vld [vmem:[%s2002_s12 + $0xb8] sm:$0xf0] }
  0x43   : > { %1115 = vmatpush.bf16.msrb.mxu2 %v1791_v12  ;;  %v1412_v12 = vld [vmem:[%s2002_s12 + $0x98] sm:$0xf] }
  0x44   : > { %1144 = vmatpush.bf16.msrb.mxu3 %v1799_v14  ;;  %v1728_v14 = vld [vmem:[%s2002_s12 + $0x9c] sm:$0xf] }
  0x45   : > { %1058 = vmatpush.bf16.msrb.mxu0 %v1774_v17  ;;  %v1409_v17 = vor.u32 %v1727_v10, %v1406_v11 }
  0x46   : > { %1087 = vmatpush.bf16.msrb.mxu1 %v1782_v19  ;;  %v1417_v19 = vor.u32 %v1728_v14, %v1414_v15 }
  0x47   : > { %1116 = vmatpush.bf16.msrb.mxu2 %v1790_v16  ;;  %v1405_v16 = vor.u32 %v1731_v9, %v1404_v8 }
  0x48   : > { %1145 = vmatpush.bf16.msrb.mxu3 %v1798_v18  ;;  %v1413_v18 = vor.u32 %v1732_v13, %v1412_v12 }
  0x49   : > { %1059 = vmatpush.bf16.msrb.mxu0 %v1773_v22  ;;  %v1735_v22 = vld [vmem:[%s2002_s12 + $0xd4] sm:$0xf] }
  0x4a   : > { %1088 = vmatpush.bf16.msrb.mxu1 %v1781_v31  ;;  %v1441_v29 = vor.u32 %v1735_v22, %v1438_v23  ;;  %v1449_v31 = vor.u32 %v1736_v26, %v1446_v27 }
  0x4b   : > { %1117 = vmatpush.bf16.msrb.mxu2 %v1789_v21  ;;  %v1739_v21 = vld [vmem:[%s2002_s12 + $0xec] sm:$0xf0]  ;;  %s1321_s12 = sshll.u32 %s2250_s17, 2 }
  0x4c   : > { %1146 = vmatpush.bf16.msrb.mxu3 %v1797_v30  ;;  %954 = vmatmul.bf16.gmra.mxu0 %v1389_v32  ;;  %v1437_v28 = vor.u32 %v1739_v21, %v1436_v20  ;;  %v1445_v30 = vor.u32 %v1740_v25, %v1444_v24  ;;  %v2185_v32 = vld [vmem:[%s2243_s2] ss:$0 sm:$0xff]  ;;  %s2215_s18 = scalar_lea.vmem %s2244_s3, %s1321_s12 }
  0x4d   : > { %983 = vmatmul.bf16.gmra.mxu1 %v1393_v33 }
  0x4e   : > { %1012 = vmatmul.bf16.gmra.mxu2 %v1397_v34 }
  0x4f   : > { %1041 = vmatmul.bf16.gmra.mxu3 %v1401_v35 }
  0x5c   : > { %959 = vmatmul.bf16.gmra.mxu0 %v1421_v44 }
  0x5d   : > { %988 = vmatmul.bf16.gmra.mxu1 %v1425_v45 }
  0x5e   : > { %1017 = vmatmul.bf16.gmra.mxu2 %v1429_v46 }
  0x5f   : > { %1046 = vmatmul.bf16.gmra.mxu3 %v1433_v47 }
  0x6c   : > { %1060 = vmatmul.bf16.vlgmr.msrb.gmra.mxu0 %v1341_v56 }
  0x6d   : > { %1089 = vmatmul.bf16.vlgmr.msrb.gmra.mxu1 %v1345_v57 }
  0x6e   : > { %1118 = vmatmul.bf16.vlgmr.msrb.gmra.mxu2 %v1349_v58 }
  0x6f   : > { %1147 = vmatmul.bf16.vlgmr.msrb.gmra.mxu3 %v1353_v59 }
  0x7c   : > { %1065 = vmatmul.bf16.gmra.mxu0 %v1373_v4 }
  0x7d   : > { %1094 = vmatmul.bf16.gmra.mxu1 %v1377_v5 }
  0x7e   : > { %1123 = vmatmul.bf16.gmra.mxu2 %v1381_v6 }
  0x7f   : > { %1152 = vmatmul.bf16.gmra.mxu3 %v1385_v7 }
  0x8c   : > { %1070 = vmatmul.bf16.gmra.mxu0 %v1405_v16 }
  0x8d   : > { %1099 = vmatmul.bf16.gmra.mxu1 %v1409_v17 }
  0x8e   : > { %1128 = vmatmul.bf16.gmra.mxu2 %v1413_v18 }
  0x8f   : > { %1157 = vmatmul.bf16.gmra.mxu3 %v1417_v19 }
  0x9c   : > { %1075 = vmatmul.bf16.gmra.mxu0 %v1437_v28 }
  0x9d   : > { %1104 = vmatmul.bf16.gmra.mxu1 %v1441_v29 }
  0x9e   : > { %1133 = vmatmul.bf16.gmra.mxu2 %v1445_v30 }
  0x9f   : > { %1162 = vmatmul.bf16.gmra.mxu3 %v1449_v31 }
  0xa9   : > { %v945_v33 = vpop.f32.mrf.mxu0 }
  0xaa   : > { %v974_v34 = vpop.f32.mrf.mxu1  ;;  %v946_v35 = vadd.f32 %v2185_v32, %v945_v33 }
  0xac   : > { %v975_v36 = vadd.f32 %v974_v34, %v946_v35 }
  0xb1   : > { %v1003_v37 = vpop.f32.mrf.mxu2  ;;  %v947_v40 = vpop.f32.mrf.mxu0 }
  0xb2   : > { %v1032_v38 = vpop.f32.mrf.mxu3  ;;  %v1004_v39 = vadd.f32 %v1003_v37, %v975_v36  ;;  %v976_v41 = vpop.f32.mrf.mxu1  ;;  %v948_v15 = vadd.f32 %v2185_v32, %v947_v40 }
  0xb4   : > { %v1033_v42 = vadd.f32 %v1032_v38, %v1004_v39  ;;  %v977_v20 = vadd.f32 %v976_v41, %v948_v15 }
  0xb9   : > { %v1005_v43 = vpop.f32.mrf.mxu2  ;;  %v950_v45 = vpop.f32.mrf.mxu0 }
  0xba   : > { %v1034_v44 = vpop.f32.mrf.mxu3  ;;  %v979_v46 = vpop.f32.mrf.mxu1  ;;  %v951_v47 = vadd.f32 %v2185_v32, %v950_v45  ;;  %v1006_v21 = vadd.f32 %v1005_v43, %v977_v20 }
  0xbc   : > { %v980_v48 = vadd.f32 %v979_v46, %v951_v47  ;;  %v1035_v25 = vadd.f32 %v1034_v44, %v1006_v21 }
  0xc1   : > { %v1008_v49 = vpop.f32.mrf.mxu2  ;;  %v952_v52 = vpop.f32.mrf.mxu0 }
  0xc2   : > { %v1037_v50 = vpop.f32.mrf.mxu3  ;;  %v1009_v51 = vadd.f32 %v1008_v49, %v980_v48  ;;  %v981_v53 = vpop.f32.mrf.mxu1  ;;  %v953_v31 = vadd.f32 %v2185_v32, %v952_v52 }
  0xc4   : > { %v1038_v54 = vadd.f32 %v1037_v50, %v1009_v51  ;;  %v982_v40 = vadd.f32 %v981_v53, %v953_v31 }
  0xc9   : > { %v1010_v55 = vpop.f32.mrf.mxu2  ;;  %v955_v57 = vpop.f32.mrf.mxu0 }
  0xca   : > { %v1039_v56 = vpop.f32.mrf.mxu3  ;;  %v984_v58 = vpop.f32.mrf.mxu1  ;;  %v956_v59 = vadd.f32 %v2185_v32, %v955_v57  ;;  %v1011_v43 = vadd.f32 %v1010_v55, %v982_v40 }
  0xcc   : > { %v985_v60 = vadd.f32 %v984_v58, %v956_v59  ;;  %v1040_v51 = vadd.f32 %v1039_v56, %v1011_v43 }
  0xd1   : > { %v1013_v61 = vpop.f32.mrf.mxu2  ;;  %v957_v0 = vpop.f32.mrf.mxu0 }
  0xd2   : > { %v1042_v62 = vpop.f32.mrf.mxu3  ;;  %v1014_v63 = vadd.f32 %v1013_v61, %v985_v60  ;;  %v2190_v1 = vpop.f32.mrf.mxu1 }
  0xd4   : > { %v2192_v2 = vadd.f32 %v1042_v62, %v1014_v63 }
  0xd9   : > { %v2194_v3 = vpop.f32.mrf.mxu2  ;;  %v960_v5 = vpop.f32.mrf.mxu0 }
  0xda   : > { %v2196_v4 = vpop.f32.mrf.mxu3  ;;  %v989_v6 = vpop.f32.mrf.mxu1  ;;  %v961_v7 = vadd.f32 %v2185_v32, %v960_v5 }
  0xdc   : > { %v990_v8 = vadd.f32 %v989_v6, %v961_v7 }
  0xe1   : > { %v1018_v9 = vpop.f32.mrf.mxu2  ;;  %v2199_v12 = vpop.f32.mrf.mxu0 }
  0xe2   : > { %v1047_v10 = vpop.f32.mrf.mxu3  ;;  %v1019_v11 = vadd.f32 %v1018_v9, %v990_v8  ;;  %v2201_v13 = vpop.f32.mrf.mxu1 }
  0xe4   : > { %v2203_v14 = vadd.f32 %v1047_v10, %v1019_v11 }
  0xe9   : > { %v2206_v16 = vpop.f32.mrf.mxu2  ;;  %v1061_v18 = vpop.f32.mrf.mxu0 }
  0xea   : > { %v2208_v17 = vpop.f32.mrf.mxu3  ;;  %v1090_v19 = vpop.f32.mrf.mxu1  ;;  %v1062_v22 = vadd.f32 %v1061_v18, %v1033_v42 }
  0xec   : > { %v1091_v26 = vadd.f32 %v1090_v19, %v1062_v22 }
  0xf1   : > { %v1119_v23 = vpop.f32.mrf.mxu2  ;;  %v1063_v27 = vpop.f32.mrf.mxu0 }
  0xf2   : > { %v1148_v24 = vpop.f32.mrf.mxu3  ;;  %v1092_v28 = vpop.f32.mrf.mxu1  ;;  %v1120_v29 = vadd.f32 %v1119_v23, %v1091_v26  ;;  %v1064_v30 = vadd.f32 %v1063_v27, %v1035_v25 }
  0xf4   : > { %v1149_v33 = vadd.f32 %v1148_v24, %v1120_v29  ;;  %v1093_v34 = vadd.f32 %v1092_v28, %v1064_v30 }
  0xf6   : > { %v1176_v41 = vmul.f32 0.2, %v1149_v33  ;;  %vm1168_vm0 = vcmp.gt.f32.partialorder %v1149_v33, 0.0 }
  0xf8   : > { %v1184_v46 = vsel %vm1168_vm0, %v1149_v33, %v1176_v41 }
  0xf9   : > { %v1121_v35 = vpop.f32.mrf.mxu2  ;;  %v1066_v38 = vpop.f32.mrf.mxu0 }
  0xfa   : > { %v1150_v36 = vpop.f32.mrf.mxu3  ;;  %v1122_v37 = vadd.f32 %v1121_v35, %v1093_v34  ;;  %v1095_v39 = vpop.f32.mrf.mxu1  ;;  %v1067_v45 = vadd.f32 %v1066_v38, %v1038_v54  ;;  %v958_v54 = vadd.f32 %v2185_v32, %v957_v0 }
  0xfc   : > { %v1151_v42 = vadd.f32 %v1150_v36, %v1122_v37  ;;  %v1096_v52 = vadd.f32 %v1095_v39, %v1067_v45  ;;  %v987_v7 = vadd.f32 %v2190_v1, %v958_v54 }
  0xfe   : > { %vm1169_vm1 = vcmp.gt.f32.partialorder %v1151_v42, 0.0  ;;  %v1177_v44 = vmul.f32 0.2, %v1151_v42  ;;  %v1016_v9 = vadd.f32 %v2194_v3, %v987_v7  ;;  %v963_v3 = vadd.f32 %v2185_v32, %v2199_v12 }
 0x100   : > { %v1185_v47 = vsel %vm1169_vm1, %v1151_v42, %v1177_v44  ;;  %v1045_v21 = vadd.f32 %v2196_v4, %v1016_v9  ;;  %v992_v31 = vadd.f32 %v2201_v13, %v963_v3 }
 0x101   : > { %v1808_v48 = vpack.c.bf16 %v1185_v47, %v1184_v46  ;;  %v1124_v49 = vpop.f32.mrf.mxu2  ;;  %v1068_v53 = vpop.f32.mrf.mxu0 }
 0x102   : > { %v1153_v50 = vpop.f32.mrf.mxu3  ;;  %v1097_v57 = vpop.f32.mrf.mxu1  ;;  %v1125_v55 = vadd.f32 %v1124_v49, %v1096_v52  ;;  %v1069_v58 = vadd.f32 %v1068_v53, %v1040_v51  ;;  %v1021_v35 = vadd.f32 %v2206_v16, %v992_v31 }
 0x103   : > { %1809 = vst [vmem:[%s2215_s18] sm:$0xff] %v1808_v48  }
 0x104   : > { %v1154_v59 = vadd.f32 %v1153_v50, %v1125_v55  ;;  %v1098_v60 = vadd.f32 %v1097_v57, %v1069_v58  ;;  %v1050_v41 = vadd.f32 %v2208_v17, %v1021_v35 }
 0x106   : > { %v1178_v8 = vmul.f32 0.2, %v1154_v59  ;;  %vm1170_vm2 = vcmp.gt.f32.partialorder %v1154_v59, 0.0 }
 0x108   : > { %v1186_v0 = vsel %vm1170_vm2, %v1154_v59, %v1178_v8 }
 0x109   : > { %v1126_v61 = vpop.f32.mrf.mxu2  ;;  %v1071_v5 = vpop.f32.mrf.mxu0 }
 0x10a   : > { %v1155_v62 = vpop.f32.mrf.mxu3  ;;  %v1127_v63 = vadd.f32 %v1126_v61, %v1098_v60  ;;  %v1100_v6 = vpop.f32.mrf.mxu1  ;;  %v1072_v11 = vadd.f32 %v1071_v5, %v2192_v2 }
 0x10c   : > { %v1156_v56 = vadd.f32 %v1155_v62, %v1127_v63  ;;  %v1101_v22 = vadd.f32 %v1100_v6, %v1072_v11 }
 0x10e   : > { %vm1171_vm3 = vcmp.gt.f32.partialorder %v1156_v56, 0.0  ;;  %v1179_v10 = vmul.f32 0.2, %v1156_v56 }
 0x110   : > { %v1187_v15 = vsel %vm1171_vm3, %v1156_v56, %v1179_v10 }
 0x111   : > { %v1813_v18 = vpack.c.bf16 %v1187_v15, %v1186_v0  ;;  %v1129_v19 = vpop.f32.mrf.mxu2  ;;  %v1073_v23 = vpop.f32.mrf.mxu0 }
 0x112   : > { %v1158_v20 = vpop.f32.mrf.mxu3  ;;  %v1102_v1 = vpop.f32.mrf.mxu1  ;;  %v1130_v24 = vadd.f32 %v1129_v19, %v1101_v22  ;;  %v1074_v25 = vadd.f32 %v1073_v23, %v1045_v21 }
 0x113   : > { %1825 = vst [vmem:[%s2215_s18 + $0x8] sm:$0xff] %v1813_v18  }
 0x114   : > { %v1159_v26 = vadd.f32 %v1158_v20, %v1130_v24  ;;  %v1103_v27 = vadd.f32 %v1102_v1, %v1074_v25 }
 0x116   : > { %v1180_v33 = vmul.f32 0.2, %v1159_v26  ;;  %vm1172_vm4 = vcmp.gt.f32.partialorder %v1159_v26, 0.0 }
 0x118   : > { %v1188_v32 = vsel %vm1172_vm4, %v1159_v26, %v1180_v33 }
 0x119   : > { %v1131_v28 = vpop.f32.mrf.mxu2  ;;  %v1076_v30 = vpop.f32.mrf.mxu0 }
 0x11a   : > { %v1160_v2 = vpop.f32.mrf.mxu3  ;;  %v1132_v29 = vadd.f32 %v1131_v28, %v1103_v27  ;;  %v1105_v34 = vpop.f32.mrf.mxu1  ;;  %v1077_v37 = vadd.f32 %v1076_v30, %v2203_v14 }
 0x11c   : > { %v1161_v4 = vadd.f32 %v1160_v2, %v1132_v29  ;;  %v1106_v42 = vadd.f32 %v1105_v34, %v1077_v37 }
 0x11e   : > { %vm1173_vm5 = vcmp.gt.f32.partialorder %v1161_v4, 0.0  ;;  %v1181_v36 = vmul.f32 0.2, %v1161_v4 }
 0x120   : > { %v1189_v12 = vsel %vm1173_vm5, %v1161_v4, %v1181_v36 }
 0x121   : > { %v1818_v38 = vpack.c.bf16 %v1189_v12, %v1188_v32  ;;  %v1134_v39 = vpop.f32.mrf.mxu2  ;;  %v1078_v13 = vpop.f32.mrf.mxu0 }
 0x122   : > { %v1163_v40 = vpop.f32.mrf.mxu3  ;;  %v1135_v43 = vadd.f32 %v1134_v39, %v1106_v42  ;;  %v1079_v44 = vadd.f32 %v1078_v13, %v1050_v41  ;;  %v1107_v45 = vpop.f32.mrf.mxu1 }
 0x123   : > { %1826 = vst [vmem:[%s2215_s18 + $0x10] sm:$0xff] %v1818_v38  }
 0x124   : > { %v1164_v46 = vadd.f32 %v1163_v40, %v1135_v43  ;;  %v1108_v16 = vadd.f32 %v1107_v45, %v1079_v44 }
 0x126   : > { %v1182_v14 = vmul.f32 0.2, %v1164_v46  ;;  %vm1174_vm6 = vcmp.gt.f32.partialorder %v1164_v46, 0.0 }
 0x128   : > { %v1190_v52 = vsel %vm1174_vm6, %v1164_v46, %v1182_v14 }
 0x129   : > { %v1136_v47 = vpop.f32.mrf.mxu2 }
 0x12a   : > { %v1137_v48 = vadd.f32 %v1136_v47, %v1108_v16  ;;  %v1165_v49 = vpop.f32.mrf.mxu3 }
 0x12c   : > { %v1166_v50 = vadd.f32 %v1165_v49, %v1137_v48 }
 0x12e   : > { %vm1175_vm7 = vcmp.gt.f32.partialorder %v1166_v50, 0.0  ;;  %v1183_v51 = vmul.f32 0.2, %v1166_v50 }
 0x130   : > { %v1191_v53 = vsel %vm1175_vm7, %v1166_v50, %v1183_v51 }
 0x131   : > { %v1823_v17 = vpack.c.bf16 %v1191_v53, %v1190_v52 }
 0x133   : > { %1827 = vst [vmem:[%s2215_s18 + $0x18] sm:$0xff] %v1823_v17  }
 0x134 PF: > { %s13_s14 = sadd.s32 1, %s1875_s14   ;;  %s2245_s12 = smov %s1871_s13 }
 0x135   : > { %p10_p5 = scmp.ge.s32.totalorder %s13_s14, 4   ;;  %s2246_s13 = smov %s2248_s15 }
 0x137   :  { %12 = sbr.rel (!%p10_p5) target bundleno = 2 (0x2), region = 68 }

// kernel: discriminator_forward.9
= control target key start
LH: loop header
LB: loop body
LE: loop exit
PB: predicated region body
PF: predicated region fallthrough
CT: control target
= control target key end

     0   :  { %s4966_s12 = smov 0   ;;  %s4968_s13 = smov 0   ;;  %s5893_s0 = inlined_call_operand.vmem [shape: bf16[32,2048], index: 0, kind: input, shape index: {}]   ;;  %s5894_s1 = inlined_call_operand.vmem [shape: bf16[2048,256], index: 1, kind: input, shape index: {}]   ;;  %s5895_s2 = inlined_call_operand.vmem [shape: f32[1,256], index: 2, kind: input, shape index: {}]   ;;  %s5896_s3 = inlined_call_operand.vmem [shape: bf16[32,256], index: 3, kind: output, shape index: {}]  }
   0x1   :  { %s4970_s14 = smov 0   ;;  %s4972_s15 = smov 0  }
   0x2   :  { %s4974_s16 = smov 0  }
   0x3 LB: > { %s22_s17 = sadd.s32 1, %s4940_s15  ;;  %s4040_s18 = sadd.s32 4294967295, %s4944_s16   ;;  %s4944_s16 = sphi %s4974_s16, %s13_s16   ;;  %s4940_s15 = sphi %s4972_s15, %s5901_s15   ;;  %s4936_s14 = sphi %s4970_s14, %s5900_s14   ;;  %s4932_s13 = sphi %s4968_s13, %s5899_s13   ;;  %s4928_s12 = sphi %s4966_s12, %s5898_s12  }
   0x4   : > { %p23_p0 = scmp.ge.s32.totalorder %s22_s17, 2  ;;  %p65_p1 = scmp.ne.s32.totalorder %s4932_s13, %s4928_s12 }
   0x5   : > { %p66_p2 = scmp.eq.s32.totalorder %s4944_s16, 0  ;;  %p123_p4 = scmp.eq.s32.totalorder %s4040_s18, 1 }
   0x6   : > { %s5903_s17 = smov (%p23_p0, %s22_s17), 0  ;;  %s58_s20 = sadd.s32 1, %s4932_s13 }
   0x7   : > { %p67_p3 = por %p66_p2, %p65_p1  ;;  %s55_s19 = ssub.s32 %s4940_s15, %s5903_s17 }
   0x8   : > { %p56_p5 = scmp.eq.s32.totalorder %s55_s19, 0  ;;  %p5001_p6 = por %p123_p4, %p65_p1 }
   0x9   : > { %p4044_p7 = scmp.ge.s32.totalorder %s4944_s16, 2 }
   0xa   : > { %s5006_s22 = scalar_select %p56_p5, %s4932_s13, %s58_s20  }
   0xb   : > { %155 = sbr.rel (%p4044_p7) target bundleno = 276 (0x114), region = 20 }
  0x10   : > { %158 = sbr.rel (!%p67_p3) target bundleno = 276 (0x114), region = 24  ;;  %s160_s23 = sand.u32 (%p67_p3), 1, %s4932_s13  }
  0x11   : > { %s4046_s24 = sshll.u32 (%p67_p3), %s4940_s15, 2  ;;  %s4045_s25 = sshll.u32 (%p67_p3), %s160_s23, 10 }
  0x12   : > { %s5014_s28 = scalar_lea.vmem (%p67_p3), %s5894_s1, %s4046_s24  ;;  %s5018_s29 = scalar_lea.vmem (%p67_p3), [#allocation2], %s4045_s25 }
  0x13   : > { %v181_v0 = vld [vmem:[%s5014_s28] sm:$0xf] (%p67_p3)  ;;  %v183_v1 = vld [vmem:[%s5014_s28 + $0x8] sm:$0xf] (%p67_p3)  ;;  %v185_v2 = vld [vmem:[%s5014_s28 + $0x10] sm:$0xf] (%p67_p3) }
  0x14   : > { %182 = vst [vmem:[%s5018_s29] sm:$0xf] (%p67_p3), %v181_v0  ;;  %v187_v3 = vld [vmem:[%s5014_s28 + $0x18] sm:$0xf] (%p67_p3)  ;;  %v189_v4 = vld [vmem:[%s5014_s28 + $0x20] sm:$0xf] (%p67_p3) }
  0x15   : > { %184 = vst [vmem:[%s5018_s29 + $0x4] sm:$0xf] %v183_v1  ;;  %v191_v5 = vld [vmem:[%s5014_s28 + $0x28] sm:$0xf]  ;;  %v193_v6 = vld [vmem:[%s5014_s28 + $0x30] sm:$0xf] }
  0x16   : > { %186 = vst [vmem:[%s5018_s29 + $0x8] sm:$0xf] %v185_v2  ;;  %v195_v7 = vld [vmem:[%s5014_s28 + $0x38] sm:$0xf]  ;;  %v197_v8 = vld [vmem:[%s5014_s28 + $0x40] sm:$0xf] }
  0x17   : > { %188 = vst [vmem:[%s5018_s29 + $0xc] sm:$0xf] %v187_v3  ;;  %v199_v9 = vld [vmem:[%s5014_s28 + $0x48] sm:$0xf]  ;;  %v201_v10 = vld [vmem:[%s5014_s28 + $0x50] sm:$0xf] }
  0x18   : > { %190 = vst [vmem:[%s5018_s29 + $0x10] sm:$0xf] %v189_v4  ;;  %v203_v11 = vld [vmem:[%s5014_s28 + $0x58] sm:$0xf]  ;;  %v205_v12 = vld [vmem:[%s5014_s28 + $0x60] sm:$0xf] }
  0x19   : > { %192 = vst [vmem:[%s5018_s29 + $0x14] sm:$0xf] %v191_v5  ;;  %v207_v13 = vld [vmem:[%s5014_s28 + $0x68] sm:$0xf]  ;;  %v209_v14 = vld [vmem:[%s5014_s28 + $0x70] sm:$0xf] }
  0x1a   : > { %194 = vst [vmem:[%s5018_s29 + $0x18] sm:$0xf] %v193_v6  ;;  %v211_v15 = vld [vmem:[%s5014_s28 + $0x78] sm:$0xf]  ;;  %v213_v16 = vld [vmem:[%s5014_s28 + $0x80] sm:$0xf] }
  0x1b   : > { %196 = vst [vmem:[%s5018_s29 + $0x1c] sm:$0xf] %v195_v7  ;;  %v215_v17 = vld [vmem:[%s5014_s28 + $0x88] sm:$0xf]  ;;  %v217_v18 = vld [vmem:[%s5014_s28 + $0x90] sm:$0xf] }
  0x1c   : > { %198 = vst [vmem:[%s5018_s29 + $0x20] sm:$0xf] %v197_v8  ;;  %v219_v19 = vld [vmem:[%s5014_s28 + $0x98] sm:$0xf]  ;;  %v221_v20 = vld [vmem:[%s5014_s28 + $0xa0] sm:$0xf] }
  0x1d   : > { %200 = vst [vmem:[%s5018_s29 + $0x24] sm:$0xf] %v199_v9  ;;  %v223_v21 = vld [vmem:[%s5014_s28 + $0xa8] sm:$0xf]  ;;  %v225_v22 = vld [vmem:[%s5014_s28 + $0xb0] sm:$0xf] }
  0x1e   : > { %202 = vst [vmem:[%s5018_s29 + $0x28] sm:$0xf] %v201_v10  ;;  %v227_v23 = vld [vmem:[%s5014_s28 + $0xb8] sm:$0xf]  ;;  %v229_v24 = vld [vmem:[%s5014_s28 + $0xc0] sm:$0xf] }
  0x1f   : > { %204 = vst [vmem:[%s5018_s29 + $0x2c] sm:$0xf] %v203_v11  ;;  %v231_v25 = vld [vmem:[%s5014_s28 + $0xc8] sm:$0xf]  ;;  %v233_v26 = vld [vmem:[%s5014_s28 + $0xd0] sm:$0xf] }
  0x20   : > { %206 = vst [vmem:[%s5018_s29 + $0x30] sm:$0xf] %v205_v12  ;;  %v235_v27 = vld [vmem:[%s5014_s28 + $0xd8] sm:$0xf]  ;;  %v237_v28 = vld [vmem:[%s5014_s28 + $0xe0] sm:$0xf] }
  0x21   : > { %208 = vst [vmem:[%s5018_s29 + $0x34] sm:$0xf] %v207_v13  ;;  %v239_v29 = vld [vmem:[%s5014_s28 + $0xe8] sm:$0xf]  ;;  %v241_v30 = vld [vmem:[%s5014_s28 + $0xf0] sm:$0xf] }
  0x22   : > { %210 = vst [vmem:[%s5018_s29 + $0x38] sm:$0xf] %v209_v14  ;;  %v243_v31 = vld [vmem:[%s5014_s28 + $0xf8] sm:$0xf]  ;;  %v245_v32 = vld [vmem:[%s5014_s28 + $0x100] sm:$0xf] }
  0x23   : > { %212 = vst [vmem:[%s5018_s29 + $0x3c] sm:$0xf] %v211_v15  ;;  %v247_v33 = vld [vmem:[%s5014_s28 + $0x108] sm:$0xf]  ;;  %v249_v34 = vld [vmem:[%s5014_s28 + $0x110] sm:$0xf] }
  0x24   : > { %214 = vst [vmem:[%s5018_s29 + $0x40] sm:$0xf] %v213_v16  ;;  %v251_v35 = vld [vmem:[%s5014_s28 + $0x118] sm:$0xf]  ;;  %v253_v36 = vld [vmem:[%s5014_s28 + $0x120] sm:$0xf] }
  0x25   : > { %216 = vst [vmem:[%s5018_s29 + $0x44] sm:$0xf] %v215_v17  ;;  %v255_v37 = vld [vmem:[%s5014_s28 + $0x128] sm:$0xf]  ;;  %v257_v38 = vld [vmem:[%s5014_s28 + $0x130] sm:$0xf] }
  0x26   : > { %218 = vst [vmem:[%s5018_s29 + $0x48] sm:$0xf] %v217_v18  ;;  %v259_v39 = vld [vmem:[%s5014_s28 + $0x138] sm:$0xf]  ;;  %v261_v40 = vld [vmem:[%s5014_s28 + $0x140] sm:$0xf] }
  0x27   : > { %220 = vst [vmem:[%s5018_s29 + $0x4c] sm:$0xf] %v219_v19  ;;  %v263_v41 = vld [vmem:[%s5014_s28 + $0x148] sm:$0xf]  ;;  %v265_v42 = vld [vmem:[%s5014_s28 + $0x150] sm:$0xf] }
  0x28   : > { %222 = vst [vmem:[%s5018_s29 + $0x50] sm:$0xf] %v221_v20  ;;  %v267_v43 = vld [vmem:[%s5014_s28 + $0x158] sm:$0xf]  ;;  %v269_v44 = vld [vmem:[%s5014_s28 + $0x160] sm:$0xf] }
  0x29   : > { %224 = vst [vmem:[%s5018_s29 + $0x54] sm:$0xf] %v223_v21  ;;  %v271_v45 = vld [vmem:[%s5014_s28 + $0x168] sm:$0xf]  ;;  %v273_v46 = vld [vmem:[%s5014_s28 + $0x170] sm:$0xf] }
  0x2a   : > { %226 = vst [vmem:[%s5018_s29 + $0x58] sm:$0xf] %v225_v22  ;;  %v275_v47 = vld [vmem:[%s5014_s28 + $0x178] sm:$0xf]  ;;  %v277_v48 = vld [vmem:[%s5014_s28 + $0x180] sm:$0xf] }
  0x2b   : > { %228 = vst [vmem:[%s5018_s29 + $0x5c] sm:$0xf] %v227_v23  ;;  %v279_v49 = vld [vmem:[%s5014_s28 + $0x188] sm:$0xf]  ;;  %v281_v50 = vld [vmem:[%s5014_s28 + $0x190] sm:$0xf] }
  0x2c   : > { %230 = vst [vmem:[%s5018_s29 + $0x60] sm:$0xf] %v229_v24  ;;  %v283_v51 = vld [vmem:[%s5014_s28 + $0x198] sm:$0xf]  ;;  %v285_v52 = vld [vmem:[%s5014_s28 + $0x1a0] sm:$0xf] }
  0x2d   : > { %232 = vst [vmem:[%s5018_s29 + $0x64] sm:$0xf] %v231_v25  ;;  %v287_v53 = vld [vmem:[%s5014_s28 + $0x1a8] sm:$0xf]  ;;  %v289_v54 = vld [vmem:[%s5014_s28 + $0x1b0] sm:$0xf] }
  0x2e   : > { %234 = vst [vmem:[%s5018_s29 + $0x68] sm:$0xf] %v233_v26  ;;  %v291_v55 = vld [vmem:[%s5014_s28 + $0x1b8] sm:$0xf]  ;;  %v293_v56 = vld [vmem:[%s5014_s28 + $0x1c0] sm:$0xf] }
  0x2f   : > { %236 = vst [vmem:[%s5018_s29 + $0x6c] sm:$0xf] %v235_v27  ;;  %v295_v57 = vld [vmem:[%s5014_s28 + $0x1c8] sm:$0xf]  ;;  %v297_v58 = vld [vmem:[%s5014_s28 + $0x1d0] sm:$0xf] }
  0x30   : > { %238 = vst [vmem:[%s5018_s29 + $0x70] sm:$0xf] %v237_v28  ;;  %v299_v59 = vld [vmem:[%s5014_s28 + $0x1d8] sm:$0xf]  ;;  %v301_v60 = vld [vmem:[%s5014_s28 + $0x1e0] sm:$0xf] }
  0x31   : > { %240 = vst [vmem:[%s5018_s29 + $0x74] sm:$0xf] %v239_v29  ;;  %v303_v61 = vld [vmem:[%s5014_s28 + $0x1e8] sm:$0xf]  ;;  %v305_v62 = vld [vmem:[%s5014_s28 + $0x1f0] sm:$0xf] }
  0x32   : > { %242 = vst [vmem:[%s5018_s29 + $0x78] sm:$0xf] %v241_v30  ;;  %v307_v63 = vld [vmem:[%s5014_s28 + $0x1f8] sm:$0xf]  ;;  %v309_v0 = vld [vmem:[%s5014_s28 + $0x200] sm:$0xf] }
  0x33   : > { %244 = vst [vmem:[%s5018_s29 + $0x7c] sm:$0xf] %v243_v31  ;;  %v311_v1 = vld [vmem:[%s5014_s28 + $0x208] sm:$0xf]  ;;  %v313_v2 = vld [vmem:[%s5014_s28 + $0x210] sm:$0xf] }
  0x34   : > { %246 = vst [vmem:[%s5018_s29 + $0x80] sm:$0xf] %v245_v32  ;;  %v315_v3 = vld [vmem:[%s5014_s28 + $0x218] sm:$0xf]  ;;  %v317_v4 = vld [vmem:[%s5014_s28 + $0x220] sm:$0xf] }
  0x35   : > { %248 = vst [vmem:[%s5018_s29 + $0x84] sm:$0xf] %v247_v33  ;;  %v319_v5 = vld [vmem:[%s5014_s28 + $0x228] sm:$0xf]  ;;  %v321_v6 = vld [vmem:[%s5014_s28 + $0x230] sm:$0xf] }
  0x36   : > { %250 = vst [vmem:[%s5018_s29 + $0x88] sm:$0xf] %v249_v34  ;;  %v323_v7 = vld [vmem:[%s5014_s28 + $0x238] sm:$0xf]  ;;  %v325_v8 = vld [vmem:[%s5014_s28 + $0x240] sm:$0xf] }
  0x37   : > { %252 = vst [vmem:[%s5018_s29 + $0x8c] sm:$0xf] %v251_v35  ;;  %v327_v9 = vld [vmem:[%s5014_s28 + $0x248] sm:$0xf]  ;;  %v329_v10 = vld [vmem:[%s5014_s28 + $0x250] sm:$0xf] }
  0x38   : > { %254 = vst [vmem:[%s5018_s29 + $0x90] sm:$0xf] %v253_v36  ;;  %v331_v11 = vld [vmem:[%s5014_s28 + $0x258] sm:$0xf]  ;;  %v333_v12 = vld [vmem:[%s5014_s28 + $0x260] sm:$0xf] }
  0x39   : > { %256 = vst [vmem:[%s5018_s29 + $0x94] sm:$0xf] %v255_v37  ;;  %v335_v13 = vld [vmem:[%s5014_s28 + $0x268] sm:$0xf]  ;;  %v337_v14 = vld [vmem:[%s5014_s28 + $0x270] sm:$0xf] }
  0x3a   : > { %258 = vst [vmem:[%s5018_s29 + $0x98] sm:$0xf] %v257_v38  ;;  %v339_v15 = vld [vmem:[%s5014_s28 + $0x278] sm:$0xf]  ;;  %v341_v16 = vld [vmem:[%s5014_s28 + $0x280] sm:$0xf] }
  0x3b   : > { %260 = vst [vmem:[%s5018_s29 + $0x9c] sm:$0xf] %v259_v39  ;;  %v343_v17 = vld [vmem:[%s5014_s28 + $0x288] sm:$0xf]  ;;  %v345_v18 = vld [vmem:[%s5014_s28 + $0x290] sm:$0xf] }
  0x3c   : > { %262 = vst [vmem:[%s5018_s29 + $0xa0] sm:$0xf] %v261_v40  ;;  %v347_v19 = vld [vmem:[%s5014_s28 + $0x298] sm:$0xf]  ;;  %v349_v20 = vld [vmem:[%s5014_s28 + $0x2a0] sm:$0xf] }
  0x3d   : > { %264 = vst [vmem:[%s5018_s29 + $0xa4] sm:$0xf] %v263_v41  ;;  %v351_v21 = vld [vmem:[%s5014_s28 + $0x2a8] sm:$0xf]  ;;  %v353_v22 = vld [vmem:[%s5014_s28 + $0x2b0] sm:$0xf] }
  0x3e   : > { %266 = vst [vmem:[%s5018_s29 + $0xa8] sm:$0xf] %v265_v42  ;;  %v355_v23 = vld [vmem:[%s5014_s28 + $0x2b8] sm:$0xf]  ;;  %v357_v24 = vld [vmem:[%s5014_s28 + $0x2c0] sm:$0xf] }
  0x3f   : > { %268 = vst [vmem:[%s5018_s29 + $0xac] sm:$0xf] %v267_v43  ;;  %v359_v25 = vld [vmem:[%s5014_s28 + $0x2c8] sm:$0xf]  ;;  %v361_v26 = vld [vmem:[%s5014_s28 + $0x2d0] sm:$0xf] }
  0x40   : > { %270 = vst [vmem:[%s5018_s29 + $0xb0] sm:$0xf] %v269_v44  ;;  %v363_v27 = vld [vmem:[%s5014_s28 + $0x2d8] sm:$0xf]  ;;  %v365_v28 = vld [vmem:[%s5014_s28 + $0x2e0] sm:$0xf] }
  0x41   : > { %272 = vst [vmem:[%s5018_s29 + $0xb4] sm:$0xf] %v271_v45  ;;  %v367_v29 = vld [vmem:[%s5014_s28 + $0x2e8] sm:$0xf]  ;;  %v369_v30 = vld [vmem:[%s5014_s28 + $0x2f0] sm:$0xf] }
  0x42   : > { %274 = vst [vmem:[%s5018_s29 + $0xb8] sm:$0xf] %v273_v46  ;;  %v371_v31 = vld [vmem:[%s5014_s28 + $0x2f8] sm:$0xf]  ;;  %v373_v32 = vld [vmem:[%s5014_s28 + $0x300] sm:$0xf] }
  0x43   : > { %276 = vst [vmem:[%s5018_s29 + $0xbc] sm:$0xf] %v275_v47  ;;  %v375_v33 = vld [vmem:[%s5014_s28 + $0x308] sm:$0xf]  ;;  %v377_v34 = vld [vmem:[%s5014_s28 + $0x310] sm:$0xf] }
  0x44   : > { %278 = vst [vmem:[%s5018_s29 + $0xc0] sm:$0xf] %v277_v48  ;;  %v379_v35 = vld [vmem:[%s5014_s28 + $0x318] sm:$0xf]  ;;  %v381_v36 = vld [vmem:[%s5014_s28 + $0x320] sm:$0xf] }
  0x45   : > { %280 = vst [vmem:[%s5018_s29 + $0xc4] sm:$0xf] %v279_v49  ;;  %v383_v37 = vld [vmem:[%s5014_s28 + $0x328] sm:$0xf]  ;;  %v385_v38 = vld [vmem:[%s5014_s28 + $0x330] sm:$0xf] }
  0x46   : > { %282 = vst [vmem:[%s5018_s29 + $0xc8] sm:$0xf] %v281_v50  ;;  %v387_v39 = vld [vmem:[%s5014_s28 + $0x338] sm:$0xf]  ;;  %v389_v40 = vld [vmem:[%s5014_s28 + $0x340] sm:$0xf] }
  0x47   : > { %284 = vst [vmem:[%s5018_s29 + $0xcc] sm:$0xf] %v283_v51  ;;  %v391_v41 = vld [vmem:[%s5014_s28 + $0x348] sm:$0xf]  ;;  %v393_v42 = vld [vmem:[%s5014_s28 + $0x350] sm:$0xf] }
  0x48   : > { %286 = vst [vmem:[%s5018_s29 + $0xd0] sm:$0xf] %v285_v52  ;;  %v395_v43 = vld [vmem:[%s5014_s28 + $0x358] sm:$0xf]  ;;  %v397_v44 = vld [vmem:[%s5014_s28 + $0x360] sm:$0xf] }
  0x49   : > { %288 = vst [vmem:[%s5018_s29 + $0xd4] sm:$0xf] %v287_v53  ;;  %v399_v45 = vld [vmem:[%s5014_s28 + $0x368] sm:$0xf]  ;;  %v401_v46 = vld [vmem:[%s5014_s28 + $0x370] sm:$0xf] }
  0x4a   : > { %290 = vst [vmem:[%s5018_s29 + $0xd8] sm:$0xf] %v289_v54  ;;  %v403_v47 = vld [vmem:[%s5014_s28 + $0x378] sm:$0xf]  ;;  %v405_v48 = vld [vmem:[%s5014_s28 + $0x380] sm:$0xf] }
  0x4b   : > { %292 = vst [vmem:[%s5018_s29 + $0xdc] sm:$0xf] %v291_v55  ;;  %v407_v49 = vld [vmem:[%s5014_s28 + $0x388] sm:$0xf]  ;;  %v409_v50 = vld [vmem:[%s5014_s28 + $0x390] sm:$0xf] }
  0x4c   : > { %294 = vst [vmem:[%s5018_s29 + $0xe0] sm:$0xf] %v293_v56  ;;  %v411_v51 = vld [vmem:[%s5014_s28 + $0x398] sm:$0xf]  ;;  %v413_v52 = vld [vmem:[%s5014_s28 + $0x3a0] sm:$0xf] }
  0x4d   : > { %296 = vst [vmem:[%s5018_s29 + $0xe4] sm:$0xf] %v295_v57  ;;  %v415_v53 = vld [vmem:[%s5014_s28 + $0x3a8] sm:$0xf]  ;;  %v417_v54 = vld [vmem:[%s5014_s28 + $0x3b0] sm:$0xf] }
  0x4e   : > { %298 = vst [vmem:[%s5018_s29 + $0xe8] sm:$0xf] %v297_v58  ;;  %v419_v55 = vld [vmem:[%s5014_s28 + $0x3b8] sm:$0xf]  ;;  %v421_v56 = vld [vmem:[%s5014_s28 + $0x3c0] sm:$0xf] }
  0x4f   : > { %300 = vst [vmem:[%s5018_s29 + $0xec] sm:$0xf] %v299_v59  ;;  %v423_v57 = vld [vmem:[%s5014_s28 + $0x3c8] sm:$0xf]  ;;  %v425_v58 = vld [vmem:[%s5014_s28 + $0x3d0] sm:$0xf] }
  0x50   : > { %302 = vst [vmem:[%s5018_s29 + $0xf0] sm:$0xf] %v301_v60  ;;  %v427_v59 = vld [vmem:[%s5014_s28 + $0x3d8] sm:$0xf]  ;;  %v429_v60 = vld [vmem:[%s5014_s28 + $0x3e0] sm:$0xf] }
  0x51   : > { %304 = vst [vmem:[%s5018_s29 + $0xf4] sm:$0xf] %v303_v61  ;;  %v431_v61 = vld [vmem:[%s5014_s28 + $0x3e8] sm:$0xf] }
  0x52   : > { %306 = vst [vmem:[%s5018_s29 + $0xf8] sm:$0xf] %v305_v62  ;;  %v433_v62 = vld [vmem:[%s5014_s28 + $0x3f0] sm:$0xf] }
  0x53   : > { %308 = vst [vmem:[%s5018_s29 + $0xfc] sm:$0xf] %v307_v63  ;;  %v435_v63 = vld [vmem:[%s5014_s28 + $0x3f8] sm:$0xf] }
  0x54   : > { %310 = vst [vmem:[%s5018_s29 + $0x100] sm:$0xf] %v309_v0  ;;  %v437_v0 = vld [vmem:[%s5014_s28 + $0x400] sm:$0xf] }
  0x55   : > { %312 = vst [vmem:[%s5018_s29 + $0x104] sm:$0xf] %v311_v1  ;;  %v439_v1 = vld [vmem:[%s5014_s28 + $0x408] sm:$0xf] }
  0x56   : > { %314 = vst [vmem:[%s5018_s29 + $0x108] sm:$0xf] %v313_v2  ;;  %v441_v2 = vld [vmem:[%s5014_s28 + $0x410] sm:$0xf] }
  0x57   : > { %316 = vst [vmem:[%s5018_s29 + $0x10c] sm:$0xf] %v315_v3  ;;  %v443_v3 = vld [vmem:[%s5014_s28 + $0x418] sm:$0xf] }
  0x58   : > { %318 = vst [vmem:[%s5018_s29 + $0x110] sm:$0xf] %v317_v4  ;;  %v445_v4 = vld [vmem:[%s5014_s28 + $0x420] sm:$0xf] }
  0x59   : > { %320 = vst [vmem:[%s5018_s29 + $0x114] sm:$0xf] %v319_v5  ;;  %v447_v5 = vld [vmem:[%s5014_s28 + $0x428] sm:$0xf] }
  0x5a   : > { %322 = vst [vmem:[%s5018_s29 + $0x118] sm:$0xf] %v321_v6  ;;  %v449_v6 = vld [vmem:[%s5014_s28 + $0x430] sm:$0xf] }
  0x5b   : > { %324 = vst [vmem:[%s5018_s29 + $0x11c] sm:$0xf] %v323_v7  ;;  %v451_v7 = vld [vmem:[%s5014_s28 + $0x438] sm:$0xf] }
  0x5c   : > { %326 = vst [vmem:[%s5018_s29 + $0x120] sm:$0xf] %v325_v8  ;;  %v453_v8 = vld [vmem:[%s5014_s28 + $0x440] sm:$0xf] }
  0x5d   : > { %328 = vst [vmem:[%s5018_s29 + $0x124] sm:$0xf] %v327_v9  ;;  %v455_v9 = vld [vmem:[%s5014_s28 + $0x448] sm:$0xf] }
  0x5e   : > { %330 = vst [vmem:[%s5018_s29 + $0x128] sm:$0xf] %v329_v10  ;;  %v457_v10 = vld [vmem:[%s5014_s28 + $0x450] sm:$0xf] }
  0x5f   : > { %332 = vst [vmem:[%s5018_s29 + $0x12c] sm:$0xf] %v331_v11  ;;  %v459_v11 = vld [vmem:[%s5014_s28 + $0x458] sm:$0xf] }
  0x60   : > { %334 = vst [vmem:[%s5018_s29 + $0x130] sm:$0xf] %v333_v12  ;;  %v461_v12 = vld [vmem:[%s5014_s28 + $0x460] sm:$0xf] }
  0x61   : > { %336 = vst [vmem:[%s5018_s29 + $0x134] sm:$0xf] %v335_v13  ;;  %v463_v13 = vld [vmem:[%s5014_s28 + $0x468] sm:$0xf] }
  0x62   : > { %338 = vst [vmem:[%s5018_s29 + $0x138] sm:$0xf] %v337_v14  ;;  %v465_v14 = vld [vmem:[%s5014_s28 + $0x470] sm:$0xf] }
  0x63   : > { %340 = vst [vmem:[%s5018_s29 + $0x13c] sm:$0xf] %v339_v15  ;;  %v467_v15 = vld [vmem:[%s5014_s28 + $0x478] sm:$0xf] }
  0x64   : > { %342 = vst [vmem:[%s5018_s29 + $0x140] sm:$0xf] %v341_v16  ;;  %v469_v16 = vld [vmem:[%s5014_s28 + $0x480] sm:$0xf] }
  0x65   : > { %344 = vst [vmem:[%s5018_s29 + $0x144] sm:$0xf] %v343_v17  ;;  %v471_v17 = vld [vmem:[%s5014_s28 + $0x488] sm:$0xf] }
  0x66   : > { %346 = vst [vmem:[%s5018_s29 + $0x148] sm:$0xf] %v345_v18  ;;  %v473_v18 = vld [vmem:[%s5014_s28 + $0x490] sm:$0xf] }
  0x67   : > { %348 = vst [vmem:[%s5018_s29 + $0x14c] sm:$0xf] %v347_v19  ;;  %v475_v19 = vld [vmem:[%s5014_s28 + $0x498] sm:$0xf] }
  0x68   : > { %350 = vst [vmem:[%s5018_s29 + $0x150] sm:$0xf] %v349_v20  ;;  %v477_v20 = vld [vmem:[%s5014_s28 + $0x4a0] sm:$0xf] }
  0x69   : > { %352 = vst [vmem:[%s5018_s29 + $0x154] sm:$0xf] %v351_v21  ;;  %v479_v21 = vld [vmem:[%s5014_s28 + $0x4a8] sm:$0xf] }
  0x6a   : > { %354 = vst [vmem:[%s5018_s29 + $0x158] sm:$0xf] %v353_v22  ;;  %v481_v22 = vld [vmem:[%s5014_s28 + $0x4b0] sm:$0xf] }
  0x6b   : > { %356 = vst [vmem:[%s5018_s29 + $0x15c] sm:$0xf] %v355_v23  ;;  %v483_v23 = vld [vmem:[%s5014_s28 + $0x4b8] sm:$0xf] }
  0x6c   : > { %358 = vst [vmem:[%s5018_s29 + $0x160] sm:$0xf] %v357_v24  ;;  %v485_v24 = vld [vmem:[%s5014_s28 + $0x4c0] sm:$0xf] }
  0x6d   : > { %360 = vst [vmem:[%s5018_s29 + $0x164] sm:$0xf] %v359_v25  ;;  %v487_v25 = vld [vmem:[%s5014_s28 + $0x4c8] sm:$0xf] }
  0x6e   : > { %362 = vst [vmem:[%s5018_s29 + $0x168] sm:$0xf] %v361_v26  ;;  %v489_v26 = vld [vmem:[%s5014_s28 + $0x4d0] sm:$0xf] }
  0x6f   : > { %364 = vst [vmem:[%s5018_s29 + $0x16c] sm:$0xf] %v363_v27  ;;  %v491_v27 = vld [vmem:[%s5014_s28 + $0x4d8] sm:$0xf] }
  0x70   : > { %366 = vst [vmem:[%s5018_s29 + $0x170] sm:$0xf] %v365_v28  ;;  %v493_v28 = vld [vmem:[%s5014_s28 + $0x4e0] sm:$0xf] }
  0x71   : > { %368 = vst [vmem:[%s5018_s29 + $0x174] sm:$0xf] %v367_v29  ;;  %v495_v29 = vld [vmem:[%s5014_s28 + $0x4e8] sm:$0xf] }
  0x72   : > { %370 = vst [vmem:[%s5018_s29 + $0x178] sm:$0xf] %v369_v30  ;;  %v497_v30 = vld [vmem:[%s5014_s28 + $0x4f0] sm:$0xf] }
  0x73   : > { %372 = vst [vmem:[%s5018_s29 + $0x17c] sm:$0xf] %v371_v31  ;;  %v499_v31 = vld [vmem:[%s5014_s28 + $0x4f8] sm:$0xf] }
  0x74   : > { %374 = vst [vmem:[%s5018_s29 + $0x180] sm:$0xf] %v373_v32  ;;  %v501_v32 = vld [vmem:[%s5014_s28 + $0x500] sm:$0xf] }
  0x75   : > { %376 = vst [vmem:[%s5018_s29 + $0x184] sm:$0xf] %v375_v33  ;;  %v503_v33 = vld [vmem:[%s5014_s28 + $0x508] sm:$0xf] }
  0x76   : > { %378 = vst [vmem:[%s5018_s29 + $0x188] sm:$0xf] %v377_v34  ;;  %v505_v34 = vld [vmem:[%s5014_s28 + $0x510] sm:$0xf] }
  0x77   : > { %380 = vst [vmem:[%s5018_s29 + $0x18c] sm:$0xf] %v379_v35  ;;  %v507_v35 = vld [vmem:[%s5014_s28 + $0x518] sm:$0xf] }
  0x78   : > { %382 = vst [vmem:[%s5018_s29 + $0x190] sm:$0xf] %v381_v36  ;;  %v509_v36 = vld [vmem:[%s5014_s28 + $0x520] sm:$0xf] }
  0x79   : > { %384 = vst [vmem:[%s5018_s29 + $0x194] sm:$0xf] %v383_v37  ;;  %v511_v37 = vld [vmem:[%s5014_s28 + $0x528] sm:$0xf] }
  0x7a   : > { %386 = vst [vmem:[%s5018_s29 + $0x198] sm:$0xf] %v385_v38  ;;  %v513_v38 = vld [vmem:[%s5014_s28 + $0x530] sm:$0xf] }
  0x7b   : > { %388 = vst [vmem:[%s5018_s29 + $0x19c] sm:$0xf] %v387_v39  ;;  %v515_v39 = vld [vmem:[%s5014_s28 + $0x538] sm:$0xf] }
  0x7c   : > { %390 = vst [vmem:[%s5018_s29 + $0x1a0] sm:$0xf] %v389_v40  ;;  %v517_v40 = vld [vmem:[%s5014_s28 + $0x540] sm:$0xf] }
  0x7d   : > { %392 = vst [vmem:[%s5018_s29 + $0x1a4] sm:$0xf] %v391_v41  ;;  %v519_v41 = vld [vmem:[%s5014_s28 + $0x548] sm:$0xf] }
  0x7e   : > { %394 = vst [vmem:[%s5018_s29 + $0x1a8] sm:$0xf] %v393_v42  ;;  %v521_v42 = vld [vmem:[%s5014_s28 + $0x550] sm:$0xf] }
  0x7f   : > { %396 = vst [vmem:[%s5018_s29 + $0x1ac] sm:$0xf] %v395_v43  ;;  %v523_v43 = vld [vmem:[%s5014_s28 + $0x558] sm:$0xf] }
  0x80   : > { %398 = vst [vmem:[%s5018_s29 + $0x1b0] sm:$0xf] %v397_v44  ;;  %v525_v44 = vld [vmem:[%s5014_s28 + $0x560] sm:$0xf] }
  0x81   : > { %400 = vst [vmem:[%s5018_s29 + $0x1b4] sm:$0xf] %v399_v45  ;;  %v527_v45 = vld [vmem:[%s5014_s28 + $0x568] sm:$0xf] }
  0x82   : > { %402 = vst [vmem:[%s5018_s29 + $0x1b8] sm:$0xf] %v401_v46  ;;  %v529_v46 = vld [vmem:[%s5014_s28 + $0x570] sm:$0xf] }
  0x83   : > { %404 = vst [vmem:[%s5018_s29 + $0x1bc] sm:$0xf] %v403_v47  ;;  %v531_v47 = vld [vmem:[%s5014_s28 + $0x578] sm:$0xf] }
  0x84   : > { %406 = vst [vmem:[%s5018_s29 + $0x1c0] sm:$0xf] %v405_v48  ;;  %v533_v48 = vld [vmem:[%s5014_s28 + $0x580] sm:$0xf] }
  0x85   : > { %408 = vst [vmem:[%s5018_s29 + $0x1c4] sm:$0xf] %v407_v49  ;;  %v535_v49 = vld [vmem:[%s5014_s28 + $0x588] sm:$0xf] }
  0x86   : > { %410 = vst [vmem:[%s5018_s29 + $0x1c8] sm:$0xf] %v409_v50  ;;  %v537_v50 = vld [vmem:[%s5014_s28 + $0x590] sm:$0xf] }
  0x87   : > { %412 = vst [vmem:[%s5018_s29 + $0x1cc] sm:$0xf] %v411_v51  ;;  %v539_v51 = vld [vmem:[%s5014_s28 + $0x598] sm:$0xf] }
  0x88   : > { %414 = vst [vmem:[%s5018_s29 + $0x1d0] sm:$0xf] %v413_v52  ;;  %v541_v52 = vld [vmem:[%s5014_s28 + $0x5a0] sm:$0xf] }
  0x89   : > { %416 = vst [vmem:[%s5018_s29 + $0x1d4] sm:$0xf] %v415_v53  ;;  %v543_v53 = vld [vmem:[%s5014_s28 + $0x5a8] sm:$0xf] }
  0x8a   : > { %418 = vst [vmem:[%s5018_s29 + $0x1d8] sm:$0xf] %v417_v54  ;;  %v545_v54 = vld [vmem:[%s5014_s28 + $0x5b0] sm:$0xf] }
  0x8b   : > { %420 = vst [vmem:[%s5018_s29 + $0x1dc] sm:$0xf] %v419_v55  ;;  %v547_v55 = vld [vmem:[%s5014_s28 + $0x5b8] sm:$0xf] }
  0x8c   : > { %422 = vst [vmem:[%s5018_s29 + $0x1e0] sm:$0xf] %v421_v56  ;;  %v549_v56 = vld [vmem:[%s5014_s28 + $0x5c0] sm:$0xf] }
  0x8d   : > { %424 = vst [vmem:[%s5018_s29 + $0x1e4] sm:$0xf] %v423_v57  ;;  %v551_v57 = vld [vmem:[%s5014_s28 + $0x5c8] sm:$0xf] }
  0x8e   : > { %426 = vst [vmem:[%s5018_s29 + $0x1e8] sm:$0xf] %v425_v58  ;;  %v553_v58 = vld [vmem:[%s5014_s28 + $0x5d0] sm:$0xf] }
  0x8f   : > { %428 = vst [vmem:[%s5018_s29 + $0x1ec] sm:$0xf] %v427_v59  ;;  %v555_v59 = vld [vmem:[%s5014_s28 + $0x5d8] sm:$0xf] }
  0x90   : > { %430 = vst [vmem:[%s5018_s29 + $0x1f0] sm:$0xf] %v429_v60  ;;  %v557_v60 = vld [vmem:[%s5014_s28 + $0x5e0] sm:$0xf] }
  0x91   : > { %432 = vst [vmem:[%s5018_s29 + $0x1f4] sm:$0xf] %v431_v61  ;;  %v559_v61 = vld [vmem:[%s5014_s28 + $0x5e8] sm:$0xf] }
  0x92   : > { %434 = vst [vmem:[%s5018_s29 + $0x1f8] sm:$0xf] %v433_v62  ;;  %v561_v62 = vld [vmem:[%s5014_s28 + $0x5f0] sm:$0xf] }
  0x93   : > { %436 = vst [vmem:[%s5018_s29 + $0x1fc] sm:$0xf] %v435_v63  ;;  %v563_v63 = vld [vmem:[%s5014_s28 + $0x5f8] sm:$0xf] }
  0x94   : > { %438 = vst [vmem:[%s5018_s29 + $0x200] sm:$0xf] %v437_v0  ;;  %v565_v0 = vld [vmem:[%s5014_s28 + $0x600] sm:$0xf] }
  0x95   : > { %440 = vst [vmem:[%s5018_s29 + $0x204] sm:$0xf] %v439_v1  ;;  %v567_v1 = vld [vmem:[%s5014_s28 + $0x608] sm:$0xf] }
  0x96   : > { %442 = vst [vmem:[%s5018_s29 + $0x208] sm:$0xf] %v441_v2  ;;  %v569_v2 = vld [vmem:[%s5014_s28 + $0x610] sm:$0xf] }
  0x97   : > { %444 = vst [vmem:[%s5018_s29 + $0x20c] sm:$0xf] %v443_v3  ;;  %v571_v3 = vld [vmem:[%s5014_s28 + $0x618] sm:$0xf] }
  0x98   : > { %446 = vst [vmem:[%s5018_s29 + $0x210] sm:$0xf] %v445_v4  ;;  %v573_v4 = vld [vmem:[%s5014_s28 + $0x620] sm:$0xf] }
  0x99   : > { %448 = vst [vmem:[%s5018_s29 + $0x214] sm:$0xf] %v447_v5  ;;  %v575_v5 = vld [vmem:[%s5014_s28 + $0x628] sm:$0xf] }
  0x9a   : > { %450 = vst [vmem:[%s5018_s29 + $0x218] sm:$0xf] %v449_v6  ;;  %v577_v6 = vld [vmem:[%s5014_s28 + $0x630] sm:$0xf] }
  0x9b   : > { %452 = vst [vmem:[%s5018_s29 + $0x21c] sm:$0xf] %v451_v7  ;;  %v579_v7 = vld [vmem:[%s5014_s28 + $0x638] sm:$0xf] }
  0x9c   : > { %454 = vst [vmem:[%s5018_s29 + $0x220] sm:$0xf] %v453_v8  ;;  %v581_v8 = vld [vmem:[%s5014_s28 + $0x640] sm:$0xf] }
  0x9d   : > { %456 = vst [vmem:[%s5018_s29 + $0x224] sm:$0xf] %v455_v9  ;;  %v583_v9 = vld [vmem:[%s5014_s28 + $0x648] sm:$0xf] }
  0x9e   : > { %458 = vst [vmem:[%s5018_s29 + $0x228] sm:$0xf] %v457_v10  ;;  %v585_v10 = vld [vmem:[%s5014_s28 + $0x650] sm:$0xf] }
  0x9f   : > { %460 = vst [vmem:[%s5018_s29 + $0x22c] sm:$0xf] %v459_v11  ;;  %v587_v11 = vld [vmem:[%s5014_s28 + $0x658] sm:$0xf] }
  0xa0   : > { %462 = vst [vmem:[%s5018_s29 + $0x230] sm:$0xf] %v461_v12  ;;  %v589_v12 = vld [vmem:[%s5014_s28 + $0x660] sm:$0xf] }
  0xa1   : > { %464 = vst [vmem:[%s5018_s29 + $0x234] sm:$0xf] %v463_v13  ;;  %v591_v13 = vld [vmem:[%s5014_s28 + $0x668] sm:$0xf] }
  0xa2   : > { %466 = vst [vmem:[%s5018_s29 + $0x238] sm:$0xf] %v465_v14  ;;  %v593_v14 = vld [vmem:[%s5014_s28 + $0x670] sm:$0xf] }
  0xa3   : > { %468 = vst [vmem:[%s5018_s29 + $0x23c] sm:$0xf] %v467_v15  ;;  %v595_v15 = vld [vmem:[%s5014_s28 + $0x678] sm:$0xf] }
  0xa4   : > { %470 = vst [vmem:[%s5018_s29 + $0x240] sm:$0xf] %v469_v16  ;;  %v597_v16 = vld [vmem:[%s5014_s28 + $0x680] sm:$0xf] }
  0xa5   : > { %472 = vst [vmem:[%s5018_s29 + $0x244] sm:$0xf] %v471_v17  ;;  %v599_v17 = vld [vmem:[%s5014_s28 + $0x688] sm:$0xf] }
  0xa6   : > { %474 = vst [vmem:[%s5018_s29 + $0x248] sm:$0xf] %v473_v18  ;;  %v601_v18 = vld [vmem:[%s5014_s28 + $0x690] sm:$0xf] }
  0xa7   : > { %476 = vst [vmem:[%s5018_s29 + $0x24c] sm:$0xf] %v475_v19  ;;  %v603_v19 = vld [vmem:[%s5014_s28 + $0x698] sm:$0xf] }
  0xa8   : > { %478 = vst [vmem:[%s5018_s29 + $0x250] sm:$0xf] %v477_v20  ;;  %v605_v20 = vld [vmem:[%s5014_s28 + $0x6a0] sm:$0xf] }
  0xa9   : > { %480 = vst [vmem:[%s5018_s29 + $0x254] sm:$0xf] %v479_v21  ;;  %v607_v21 = vld [vmem:[%s5014_s28 + $0x6a8] sm:$0xf] }
  0xaa   : > { %482 = vst [vmem:[%s5018_s29 + $0x258] sm:$0xf] %v481_v22  ;;  %v609_v22 = vld [vmem:[%s5014_s28 + $0x6b0] sm:$0xf] }
  0xab   : > { %484 = vst [vmem:[%s5018_s29 + $0x25c] sm:$0xf] %v483_v23  ;;  %v611_v23 = vld [vmem:[%s5014_s28 + $0x6b8] sm:$0xf] }
  0xac   : > { %486 = vst [vmem:[%s5018_s29 + $0x260] sm:$0xf] %v485_v24  ;;  %v613_v24 = vld [vmem:[%s5014_s28 + $0x6c0] sm:$0xf] }
  0xad   : > { %488 = vst [vmem:[%s5018_s29 + $0x264] sm:$0xf] %v487_v25  ;;  %v615_v25 = vld [vmem:[%s5014_s28 + $0x6c8] sm:$0xf] }
  0xae   : > { %490 = vst [vmem:[%s5018_s29 + $0x268] sm:$0xf] %v489_v26  ;;  %v617_v26 = vld [vmem:[%s5014_s28 + $0x6d0] sm:$0xf] }
  0xaf   : > { %492 = vst [vmem:[%s5018_s29 + $0x26c] sm:$0xf] %v491_v27  ;;  %v619_v27 = vld [vmem:[%s5014_s28 + $0x6d8] sm:$0xf] }
  0xb0   : > { %494 = vst [vmem:[%s5018_s29 + $0x270] sm:$0xf] %v493_v28  ;;  %v621_v28 = vld [vmem:[%s5014_s28 + $0x6e0] sm:$0xf] }
  0xb1   : > { %496 = vst [vmem:[%s5018_s29 + $0x274] sm:$0xf] %v495_v29  ;;  %v623_v29 = vld [vmem:[%s5014_s28 + $0x6e8] sm:$0xf] }
  0xb2   : > { %498 = vst [vmem:[%s5018_s29 + $0x278] sm:$0xf] %v497_v30  ;;  %v625_v30 = vld [vmem:[%s5014_s28 + $0x6f0] sm:$0xf] }
  0xb3   : > { %500 = vst [vmem:[%s5018_s29 + $0x27c] sm:$0xf] %v499_v31  ;;  %v627_v31 = vld [vmem:[%s5014_s28 + $0x6f8] sm:$0xf] }
  0xb4   : > { %502 = vst [vmem:[%s5018_s29 + $0x280] sm:$0xf] %v501_v32  ;;  %v629_v32 = vld [vmem:[%s5014_s28 + $0x700] sm:$0xf] }
  0xb5   : > { %504 = vst [vmem:[%s5018_s29 + $0x284] sm:$0xf] %v503_v33  ;;  %v631_v33 = vld [vmem:[%s5014_s28 + $0x708] sm:$0xf] }
  0xb6   : > { %506 = vst [vmem:[%s5018_s29 + $0x288] sm:$0xf] %v505_v34  ;;  %v633_v34 = vld [vmem:[%s5014_s28 + $0x710] sm:$0xf] }
  0xb7   : > { %508 = vst [vmem:[%s5018_s29 + $0x28c] sm:$0xf] %v507_v35  ;;  %v635_v35 = vld [vmem:[%s5014_s28 + $0x718] sm:$0xf] }
  0xb8   : > { %510 = vst [vmem:[%s5018_s29 + $0x290] sm:$0xf] %v509_v36  ;;  %v637_v36 = vld [vmem:[%s5014_s28 + $0x720] sm:$0xf] }
  0xb9   : > { %512 = vst [vmem:[%s5018_s29 + $0x294] sm:$0xf] %v511_v37  ;;  %v639_v37 = vld [vmem:[%s5014_s28 + $0x728] sm:$0xf] }
  0xba   : > { %514 = vst [vmem:[%s5018_s29 + $0x298] sm:$0xf] %v513_v38  ;;  %v641_v38 = vld [vmem:[%s5014_s28 + $0x730] sm:$0xf] }
  0xbb   : > { %516 = vst [vmem:[%s5018_s29 + $0x29c] sm:$0xf] %v515_v39  ;;  %v643_v39 = vld [vmem:[%s5014_s28 + $0x738] sm:$0xf] }
  0xbc   : > { %518 = vst [vmem:[%s5018_s29 + $0x2a0] sm:$0xf] %v517_v40  ;;  %v645_v40 = vld [vmem:[%s5014_s28 + $0x740] sm:$0xf] }
  0xbd   : > { %520 = vst [vmem:[%s5018_s29 + $0x2a4] sm:$0xf] %v519_v41  ;;  %v647_v41 = vld [vmem:[%s5014_s28 + $0x748] sm:$0xf] }
  0xbe   : > { %522 = vst [vmem:[%s5018_s29 + $0x2a8] sm:$0xf] %v521_v42  ;;  %v649_v42 = vld [vmem:[%s5014_s28 + $0x750] sm:$0xf] }
  0xbf   : > { %524 = vst [vmem:[%s5018_s29 + $0x2ac] sm:$0xf] %v523_v43  ;;  %v651_v43 = vld [vmem:[%s5014_s28 + $0x758] sm:$0xf] }
  0xc0   : > { %526 = vst [vmem:[%s5018_s29 + $0x2b0] sm:$0xf] %v525_v44  ;;  %v653_v44 = vld [vmem:[%s5014_s28 + $0x760] sm:$0xf] }
  0xc1   : > { %528 = vst [vmem:[%s5018_s29 + $0x2b4] sm:$0xf] %v527_v45  ;;  %v655_v45 = vld [vmem:[%s5014_s28 + $0x768] sm:$0xf] }
  0xc2   : > { %530 = vst [vmem:[%s5018_s29 + $0x2b8] sm:$0xf] %v529_v46  ;;  %v657_v46 = vld [vmem:[%s5014_s28 + $0x770] sm:$0xf] }
  0xc3   : > { %532 = vst [vmem:[%s5018_s29 + $0x2bc] sm:$0xf] %v531_v47  ;;  %v659_v47 = vld [vmem:[%s5014_s28 + $0x778] sm:$0xf] }
  0xc4   : > { %534 = vst [vmem:[%s5018_s29 + $0x2c0] sm:$0xf] %v533_v48  ;;  %v661_v48 = vld [vmem:[%s5014_s28 + $0x780] sm:$0xf] }
  0xc5   : > { %536 = vst [vmem:[%s5018_s29 + $0x2c4] sm:$0xf] %v535_v49  ;;  %v663_v49 = vld [vmem:[%s5014_s28 + $0x788] sm:$0xf] }
  0xc6   : > { %538 = vst [vmem:[%s5018_s29 + $0x2c8] sm:$0xf] %v537_v50  ;;  %v665_v50 = vld [vmem:[%s5014_s28 + $0x790] sm:$0xf] }
  0xc7   : > { %540 = vst [vmem:[%s5018_s29 + $0x2cc] sm:$0xf] %v539_v51  ;;  %v667_v51 = vld [vmem:[%s5014_s28 + $0x798] sm:$0xf] }
  0xc8   : > { %542 = vst [vmem:[%s5018_s29 + $0x2d0] sm:$0xf] %v541_v52  ;;  %v669_v52 = vld [vmem:[%s5014_s28 + $0x7a0] sm:$0xf] }
  0xc9   : > { %544 = vst [vmem:[%s5018_s29 + $0x2d4] sm:$0xf] %v543_v53  ;;  %v671_v53 = vld [vmem:[%s5014_s28 + $0x7a8] sm:$0xf] }
  0xca   : > { %546 = vst [vmem:[%s5018_s29 + $0x2d8] sm:$0xf] %v545_v54  ;;  %v673_v54 = vld [vmem:[%s5014_s28 + $0x7b0] sm:$0xf] }
  0xcb   : > { %548 = vst [vmem:[%s5018_s29 + $0x2dc] sm:$0xf] %v547_v55  ;;  %v675_v55 = vld [vmem:[%s5014_s28 + $0x7b8] sm:$0xf] }
  0xcc   : > { %550 = vst [vmem:[%s5018_s29 + $0x2e0] sm:$0xf] %v549_v56  ;;  %v677_v56 = vld [vmem:[%s5014_s28 + $0x7c0] sm:$0xf] }
  0xcd   : > { %552 = vst [vmem:[%s5018_s29 + $0x2e4] sm:$0xf] %v551_v57  ;;  %v679_v57 = vld [vmem:[%s5014_s28 + $0x7c8] sm:$0xf] }
  0xce   : > { %554 = vst [vmem:[%s5018_s29 + $0x2e8] sm:$0xf] %v553_v58  ;;  %v681_v58 = vld [vmem:[%s5014_s28 + $0x7d0] sm:$0xf] }
  0xcf   : > { %556 = vst [vmem:[%s5018_s29 + $0x2ec] sm:$0xf] %v555_v59  ;;  %v683_v59 = vld [vmem:[%s5014_s28 + $0x7d8] sm:$0xf] }
  0xd0   : > { %558 = vst [vmem:[%s5018_s29 + $0x2f0] sm:$0xf] %v557_v60  ;;  %v685_v60 = vld [vmem:[%s5014_s28 + $0x7e0] sm:$0xf] }
  0xd1   : > { %560 = vst [vmem:[%s5018_s29 + $0x2f4] sm:$0xf] %v559_v61  ;;  %v687_v61 = vld [vmem:[%s5014_s28 + $0x7e8] sm:$0xf] }
  0xd2   : > { %562 = vst [vmem:[%s5018_s29 + $0x2f8] sm:$0xf] %v561_v62  ;;  %v689_v62 = vld [vmem:[%s5014_s28 + $0x7f0] sm:$0xf] }
  0xd3   : > { %564 = vst [vmem:[%s5018_s29 + $0x2fc] sm:$0xf] %v563_v63  ;;  %v691_v63 = vld [vmem:[%s5014_s28 + $0x7f8] sm:$0xf] }
  0xd4   : > { %566 = vst [vmem:[%s5018_s29 + $0x300] sm:$0xf] %v565_v0 }
  0xd5   : > { %568 = vst [vmem:[%s5018_s29 + $0x304] sm:$0xf] %v567_v1 }
  0xd6   : > { %570 = vst [vmem:[%s5018_s29 + $0x308] sm:$0xf] %v569_v2 }
  0xd7   : > { %572 = vst [vmem:[%s5018_s29 + $0x30c] sm:$0xf] %v571_v3 }
  0xd8   : > { %574 = vst [vmem:[%s5018_s29 + $0x310] sm:$0xf] %v573_v4 }
  0xd9   : > { %576 = vst [vmem:[%s5018_s29 + $0x314] sm:$0xf] %v575_v5 }
  0xda   : > { %578 = vst [vmem:[%s5018_s29 + $0x318] sm:$0xf] %v577_v6 }
  0xdb   : > { %580 = vst [vmem:[%s5018_s29 + $0x31c] sm:$0xf] %v579_v7 }
  0xdc   : > { %582 = vst [vmem:[%s5018_s29 + $0x320] sm:$0xf] %v581_v8 }
  0xdd   : > { %584 = vst [vmem:[%s5018_s29 + $0x324] sm:$0xf] %v583_v9 }
  0xde   : > { %586 = vst [vmem:[%s5018_s29 + $0x328] sm:$0xf] %v585_v10 }
  0xdf   : > { %588 = vst [vmem:[%s5018_s29 + $0x32c] sm:$0xf] %v587_v11 }
  0xe0   : > { %590 = vst [vmem:[%s5018_s29 + $0x330] sm:$0xf] %v589_v12 }
  0xe1   : > { %592 = vst [vmem:[%s5018_s29 + $0x334] sm:$0xf] %v591_v13 }
  0xe2   : > { %594 = vst [vmem:[%s5018_s29 + $0x338] sm:$0xf] %v593_v14 }
  0xe3   : > { %596 = vst [vmem:[%s5018_s29 + $0x33c] sm:$0xf] %v595_v15 }
  0xe4   : > { %598 = vst [vmem:[%s5018_s29 + $0x340] sm:$0xf] %v597_v16 }
  0xe5   : > { %600 = vst [vmem:[%s5018_s29 + $0x344] sm:$0xf] %v599_v17 }
  0xe6   : > { %602 = vst [vmem:[%s5018_s29 + $0x348] sm:$0xf] %v601_v18 }
  0xe7   : > { %604 = vst [vmem:[%s5018_s29 + $0x34c] sm:$0xf] %v603_v19 }
  0xe8   : > { %606 = vst [vmem:[%s5018_s29 + $0x350] sm:$0xf] %v605_v20 }
  0xe9   : > { %608 = vst [vmem:[%s5018_s29 + $0x354] sm:$0xf] %v607_v21 }
  0xea   : > { %610 = vst [vmem:[%s5018_s29 + $0x358] sm:$0xf] %v609_v22 }
  0xeb   : > { %612 = vst [vmem:[%s5018_s29 + $0x35c] sm:$0xf] %v611_v23 }
  0xec   : > { %614 = vst [vmem:[%s5018_s29 + $0x360] sm:$0xf] %v613_v24 }
  0xed   : > { %616 = vst [vmem:[%s5018_s29 + $0x364] sm:$0xf] %v615_v25 }
  0xee   : > { %618 = vst [vmem:[%s5018_s29 + $0x368] sm:$0xf] %v617_v26 }
  0xef   : > { %620 = vst [vmem:[%s5018_s29 + $0x36c] sm:$0xf] %v619_v27 }
  0xf0   : > { %622 = vst [vmem:[%s5018_s29 + $0x370] sm:$0xf] %v621_v28 }
  0xf1   : > { %624 = vst [vmem:[%s5018_s29 + $0x374] sm:$0xf] %v623_v29 }
  0xf2   : > { %626 = vst [vmem:[%s5018_s29 + $0x378] sm:$0xf] %v625_v30 }
  0xf3   : > { %628 = vst [vmem:[%s5018_s29 + $0x37c] sm:$0xf] %v627_v31 }
  0xf4   : > { %630 = vst [vmem:[%s5018_s29 + $0x380] sm:$0xf] %v629_v32 }
  0xf5   : > { %632 = vst [vmem:[%s5018_s29 + $0x384] sm:$0xf] %v631_v33 }
  0xf6   : > { %634 = vst [vmem:[%s5018_s29 + $0x388] sm:$0xf] %v633_v34 }
  0xf7   : > { %636 = vst [vmem:[%s5018_s29 + $0x38c] sm:$0xf] %v635_v35 }
  0xf8   : > { %638 = vst [vmem:[%s5018_s29 + $0x390] sm:$0xf] %v637_v36 }
  0xf9   : > { %640 = vst [vmem:[%s5018_s29 + $0x394] sm:$0xf] %v639_v37 }
  0xfa   : > { %642 = vst [vmem:[%s5018_s29 + $0x398] sm:$0xf] %v641_v38 }
  0xfb   : > { %644 = vst [vmem:[%s5018_s29 + $0x39c] sm:$0xf] %v643_v39 }
  0xfc   : > { %646 = vst [vmem:[%s5018_s29 + $0x3a0] sm:$0xf] %v645_v40 }
  0xfd   : > { %648 = vst [vmem:[%s5018_s29 + $0x3a4] sm:$0xf] %v647_v41 }
  0xfe   : > { %650 = vst [vmem:[%s5018_s29 + $0x3a8] sm:$0xf] %v649_v42 }
  0xff   : > { %652 = vst [vmem:[%s5018_s29 + $0x3ac] sm:$0xf] %v651_v43 }
 0x100   : > { %654 = vst [vmem:[%s5018_s29 + $0x3b0] sm:$0xf] %v653_v44 }
 0x101   : > { %656 = vst [vmem:[%s5018_s29 + $0x3b4] sm:$0xf] %v655_v45 }
 0x102   : > { %658 = vst [vmem:[%s5018_s29 + $0x3b8] sm:$0xf] %v657_v46 }
 0x103   : > { %660 = vst [vmem:[%s5018_s29 + $0x3bc] sm:$0xf] %v659_v47 }
 0x104   : > { %662 = vst [vmem:[%s5018_s29 + $0x3c0] sm:$0xf] %v661_v48 }
 0x105   : > { %664 = vst [vmem:[%s5018_s29 + $0x3c4] sm:$0xf] %v663_v49 }
 0x106   : > { %666 = vst [vmem:[%s5018_s29 + $0x3c8] sm:$0xf] %v665_v50 }
 0x107   : > { %668 = vst [vmem:[%s5018_s29 + $0x3cc] sm:$0xf] %v667_v51 }
 0x108   : > { %670 = vst [vmem:[%s5018_s29 + $0x3d0] sm:$0xf] %v669_v52 }
 0x109   : > { %672 = vst [vmem:[%s5018_s29 + $0x3d4] sm:$0xf] %v671_v53 }
 0x10a   : > { %674 = vst [vmem:[%s5018_s29 + $0x3d8] sm:$0xf] %v673_v54 }
 0x10b   : > { %676 = vst [vmem:[%s5018_s29 + $0x3dc] sm:$0xf] %v675_v55 }
 0x10c   : > { %678 = vst [vmem:[%s5018_s29 + $0x3e0] sm:$0xf] %v677_v56 }
 0x10d   : > { %680 = vst [vmem:[%s5018_s29 + $0x3e4] sm:$0xf] %v679_v57 }
 0x10e   : > { %682 = vst [vmem:[%s5018_s29 + $0x3e8] sm:$0xf] %v681_v58 }
 0x10f   : > { %684 = vst [vmem:[%s5018_s29 + $0x3ec] sm:$0xf] %v683_v59 }
 0x110   : > { %686 = vst [vmem:[%s5018_s29 + $0x3f0] sm:$0xf] %v685_v60 }
 0x111   : > { %688 = vst [vmem:[%s5018_s29 + $0x3f4] sm:$0xf] %v687_v61 }
 0x112   : > { %690 = vst [vmem:[%s5018_s29 + $0x3f8] sm:$0xf] %v689_v62 }
 0x113   : > { %692 = vst [vmem:[%s5018_s29 + $0x3fc] sm:$0xf] %v691_v63 }
 0x114 PF: > { %p4047_p8 = scmp.ge.s32.totalorder %s4944_s16, 1  ;;  %p2283_p9 = scmp.lt.s32.totalorder %s4944_s16, 3 }
 0x116   : > { %p2284_p10 = pnand %p4047_p8, %p2283_p9 }
 0x117   : > { %s2290_s30 = sand.u32 (!%p2284_p10), 1, %s4928_s12   ;;  %p2328_p11 = scmp.lt.s32.totalorder (!%p2284_p10), %s4936_s14, 1 }
 0x118   : > { %2287 = sbr.rel (%p2284_p10) target bundleno = 590 (0x24e), region = 80  ;;  %s4048_s4 = sshll.u32 (!%p2284_p10), %s2290_s30, 10 }
 0x119   : > { %s5535_s5 = scalar_lea.vmem (!%p2284_p10), [#allocation2], %s4048_s4 }
 0x11d   : > { %v4733_v0 = vld [vmem:[%s5535_s5 + $0x38] sm:$0xff]  ;;  %v4732_v4 = vld [vmem:[%s5535_s5 + $0x30] sm:$0xff]  ;;  %v4731_v8 = vld [vmem:[%s5535_s5 + $0x28] sm:$0xff]  ;;  %s5565_s6 = scalar_select %p2328_p11, %s4936_s14, 1 }
 0x11e   : > { %v4741_v1 = vld [vmem:[%s5535_s5 + $0x78] sm:$0xff]  ;;  %3552 = vmatpush.bf16.msra.mxu0 %v4733_v0  ;;  %v4740_v5 = vld [vmem:[%s5535_s5 + $0x70] sm:$0xff]  ;;  %v4739_v9 = vld [vmem:[%s5535_s5 + $0x68] sm:$0xff]  ;;  %s4691_s12 = sshll.u32 (%p5001_p6), %s4936_s14, 2 }
 0x11f   : > { %v4749_v2 = vld [vmem:[%s5535_s5 + $0xb8] sm:$0xff]  ;;  %3571 = vmatpush.bf16.msra.mxu1 %v4741_v1  ;;  %v4748_v6 = vld [vmem:[%s5535_s5 + $0xb0] sm:$0xff]  ;;  %v4747_v10 = vld [vmem:[%s5535_s5 + $0xa8] sm:$0xff]  ;;  %s2330_s19 = scalar_lea.vmem %s5895_s2, %s5565_s6  ;;  %s4049_s6 = sshll.u32 %s2290_s30, 4 }
 0x120   : > { %v4757_v3 = vld [vmem:[%s5535_s5 + $0xf8] sm:$0xff]  ;;  %3590 = vmatpush.bf16.msra.mxu2 %v4749_v2  ;;  %v4756_v7 = vld [vmem:[%s5535_s5 + $0xf0] sm:$0xff]  ;;  %v4755_v11 = vld [vmem:[%s5535_s5 + $0xe8] sm:$0xff]  ;;  %s3887_s27 = scalar_lea.vmem (%p5001_p6), %s5896_s3, %s4691_s12 }
 0x121   : > { %3609 = vmatpush.bf16.msra.mxu3 %v4757_v3  ;;  %v4730_v12 = vld [vmem:[%s5535_s5 + $0x20] sm:$0xff]  ;;  %v4729_v16 = vld [vmem:[%s5535_s5 + $0x18] sm:$0xff]  ;;  %v4728_v20 = vld [vmem:[%s5535_s5 + $0x10] sm:$0xff] }
 0x122   : > { %3553 = vmatpush.bf16.msra.mxu0 %v4732_v4  ;;  %v4738_v13 = vld [vmem:[%s5535_s5 + $0x60] sm:$0xff]  ;;  %v4737_v17 = vld [vmem:[%s5535_s5 + $0x58] sm:$0xff]  ;;  %v4736_v21 = vld [vmem:[%s5535_s5 + $0x50] sm:$0xff] }
 0x123   : > { %3572 = vmatpush.bf16.msra.mxu1 %v4740_v5  ;;  %v4746_v14 = vld [vmem:[%s5535_s5 + $0xa0] sm:$0xff]  ;;  %v4745_v18 = vld [vmem:[%s5535_s5 + $0x98] sm:$0xff]  ;;  %v4744_v22 = vld [vmem:[%s5535_s5 + $0x90] sm:$0xff] }
 0x124   : > { %3591 = vmatpush.bf16.msra.mxu2 %v4748_v6  ;;  %v4754_v15 = vld [vmem:[%s5535_s5 + $0xe0] sm:$0xff]  ;;  %v4753_v19 = vld [vmem:[%s5535_s5 + $0xd8] sm:$0xff]  ;;  %v4752_v23 = vld [vmem:[%s5535_s5 + $0xd0] sm:$0xff] }
 0x125   : > { %3610 = vmatpush.bf16.msra.mxu3 %v4756_v7  ;;  %v4727_v24 = vld [vmem:[%s5535_s5 + $0x8] sm:$0xff]  ;;  %v4726_v28 = vld [vmem:[%s5535_s5] sm:$0xff]  ;;  %v4781_v40 = vld [vmem:[%s5535_s5 + $0x1b8] sm:$0xff] }
 0x126   : > { %3554 = vmatpush.bf16.msra.mxu0 %v4731_v8  ;;  %v4735_v25 = vld [vmem:[%s5535_s5 + $0x48] sm:$0xff]  ;;  %v4734_v29 = vld [vmem:[%s5535_s5 + $0x40] sm:$0xff]  ;;  %v4765_v41 = vld [vmem:[%s5535_s5 + $0x138] sm:$0xff] }
 0x127   : > { %3573 = vmatpush.bf16.msra.mxu1 %v4739_v9  ;;  %v4743_v26 = vld [vmem:[%s5535_s5 + $0x88] sm:$0xff]  ;;  %v4052_v30 = vld [vmem:[%s5893_s0] sm:$0xf]  ;;  %v4694_v34 = vld [vmem:[%s5893_s0 + $0x4] sm:$0xf] }
 0x128   : > { %3592 = vmatpush.bf16.msra.mxu2 %v4747_v10  ;;  %v4751_v27 = vld [vmem:[%s5535_s5 + $0xc8] sm:$0xff]  ;;  %v4702_v31 = vld [vmem:[%s5893_s0 + $0x3c] sm:$0xf0]  ;;  %v4054_v35 = vld [vmem:[%s5893_s0 + $0x40] sm:$0xf0] }
 0x129   : > { %3611 = vmatpush.bf16.msra.mxu3 %v4755_v11  ;;  %v4742_v32 = vld [vmem:[%s5535_s5 + $0x80] sm:$0xff]  ;;  %v4060_v36 = vld [vmem:[%s5893_s0 + $0x8] sm:$0xf]  ;;  %v4695_v38 = vld [vmem:[%s5893_s0 + $0xc] sm:$0xf]  ;;  %v4053_v42 = vor.u32 %v4702_v31, %v4052_v30  ;;  %v4057_v43 = vor.u32 %v4694_v34, %v4054_v35 }
 0x12a   : > { %3555 = vmatpush.bf16.msra.mxu0 %v4730_v12  ;;  %v4750_v33 = vld [vmem:[%s5535_s5 + $0xc0] sm:$0xff]  ;;  %v4703_v37 = vld [vmem:[%s5893_s0 + $0x44] sm:$0xf0]  ;;  %v4062_v39 = vld [vmem:[%s5893_s0 + $0x48] sm:$0xf0] }
 0x12b   : > { %3574 = vmatpush.bf16.msra.mxu1 %v4738_v13  ;;  %v4061_v44 = vor.u32 %v4703_v37, %v4060_v36  ;;  %v4065_v45 = vor.u32 %v4695_v38, %v4062_v39  ;;  %v4773_v46 = vld [vmem:[%s5535_s5 + $0x178] sm:$0xff]  ;;  %v4780_v48 = vld [vmem:[%s5535_s5 + $0x1b0] sm:$0xff]  ;;  %v4779_v52 = vld [vmem:[%s5535_s5 + $0x1a8] sm:$0xff] }
 0x12c   : > { %3593 = vmatpush.bf16.msra.mxu2 %v4746_v14  ;;  %v4789_v47 = vld [vmem:[%s5535_s5 + $0x1f8] sm:$0xff]  ;;  %v4764_v49 = vld [vmem:[%s5535_s5 + $0x130] sm:$0xff]  ;;  %v4763_v53 = vld [vmem:[%s5535_s5 + $0x128] sm:$0xff] }
 0x12d   : > { %3612 = vmatpush.bf16.msra.mxu3 %v4754_v15  ;;  %v4772_v50 = vld [vmem:[%s5535_s5 + $0x170] sm:$0xff]  ;;  %v4771_v54 = vld [vmem:[%s5535_s5 + $0x168] sm:$0xff]  ;;  %v4778_v56 = vld [vmem:[%s5535_s5 + $0x1a0] sm:$0xff] }
 0x12e   : > { %3556 = vmatpush.bf16.msra.mxu0 %v4729_v16  ;;  %v4788_v51 = vld [vmem:[%s5535_s5 + $0x1f0] sm:$0xff]  ;;  %v4787_v55 = vld [vmem:[%s5535_s5 + $0x1e8] sm:$0xff]  ;;  %v4762_v57 = vld [vmem:[%s5535_s5 + $0x120] sm:$0xff] }
 0x12f   : > { %3575 = vmatpush.bf16.msra.mxu1 %v4737_v17  ;;  %v4770_v58 = vld [vmem:[%s5535_s5 + $0x160] sm:$0xff]  ;;  %v4124_v0 = vld [vmem:[%s5893_s0 + $0x88] sm:$0xf]  ;;  %v4711_v2 = vld [vmem:[%s5893_s0 + $0x8c] sm:$0xf] }
 0x130   : > { %3594 = vmatpush.bf16.msra.mxu2 %v4745_v18  ;;  %v4786_v59 = vld [vmem:[%s5535_s5 + $0x1e0] sm:$0xff]  ;;  %v4719_v1 = vld [vmem:[%s5893_s0 + $0xc4] sm:$0xf0]  ;;  %v4126_v3 = vld [vmem:[%s5893_s0 + $0xc8] sm:$0xf0] }
 0x131   : > { %3613 = vmatpush.bf16.msra.mxu3 %v4753_v19  ;;  %v4116_v60 = vld [vmem:[%s5893_s0 + $0x80] sm:$0xf]  ;;  %v4710_v62 = vld [vmem:[%s5893_s0 + $0x84] sm:$0xf]  ;;  %v4777_v4 = vld [vmem:[%s5535_s5 + $0x198] sm:$0xff]  ;;  %v4125_v8 = vor.u32 %v4719_v1, %v4124_v0  ;;  %v4129_v9 = vor.u32 %v4711_v2, %v4126_v3 }
 0x132   : > { %3557 = vmatpush.bf16.msra.mxu0 %v4728_v20  ;;  %v4718_v61 = vld [vmem:[%s5893_s0 + $0xbc] sm:$0xf0]  ;;  %v4118_v63 = vld [vmem:[%s5893_s0 + $0xc0] sm:$0xf0]  ;;  %v4761_v5 = vld [vmem:[%s5535_s5 + $0x118] sm:$0xff] }
 0x133   : > { %3576 = vmatpush.bf16.msra.mxu1 %v4736_v21  ;;  %v4117_v6 = vor.u32 %v4718_v61, %v4116_v60  ;;  %v4121_v7 = vor.u32 %v4710_v62, %v4118_v63  ;;  %v4769_v10 = vld [vmem:[%s5535_s5 + $0x158] sm:$0xff]  ;;  %v4776_v12 = vld [vmem:[%s5535_s5 + $0x190] sm:$0xff]  ;;  %v4775_v16 = vld [vmem:[%s5535_s5 + $0x188] sm:$0xff] }
 0x134   : > { %3595 = vmatpush.bf16.msra.mxu2 %v4744_v22  ;;  %v4785_v11 = vld [vmem:[%s5535_s5 + $0x1d8] sm:$0xff]  ;;  %v4760_v13 = vld [vmem:[%s5535_s5 + $0x110] sm:$0xff]  ;;  %v4759_v17 = vld [vmem:[%s5535_s5 + $0x108] sm:$0xff] }
 0x135   : > { %3614 = vmatpush.bf16.msra.mxu3 %v4752_v23  ;;  %v4768_v14 = vld [vmem:[%s5535_s5 + $0x150] sm:$0xff]  ;;  %v4767_v18 = vld [vmem:[%s5535_s5 + $0x148] sm:$0xff]  ;;  %v4774_v20 = vld [vmem:[%s5535_s5 + $0x180] sm:$0xff] }
 0x136   : > { %3558 = vmatpush.bf16.msra.mxu0 %v4727_v24  ;;  %v4784_v15 = vld [vmem:[%s5535_s5 + $0x1d0] sm:$0xff]  ;;  %v4783_v19 = vld [vmem:[%s5535_s5 + $0x1c8] sm:$0xff]  ;;  %v4758_v21 = vld [vmem:[%s5535_s5 + $0x100] sm:$0xff] }
 0x137   : > { %3577 = vmatpush.bf16.msra.mxu1 %v4735_v25  ;;  %v4766_v22 = vld [vmem:[%s5535_s5 + $0x140] sm:$0xff]  ;;  %v4068_v24 = vld [vmem:[%s5893_s0 + $0x10] sm:$0xf]  ;;  %v4813_v25 = vld [vmem:[%s5535_s5 + $0x2b8] sm:$0xff] }
 0x138   : > { %3596 = vmatpush.bf16.msra.mxu2 %v4743_v26  ;;  %v4782_v23 = vld [vmem:[%s5535_s5 + $0x1c0] sm:$0xff]  ;;  %v4797_v26 = vld [vmem:[%s5535_s5 + $0x238] sm:$0xff]  ;;  %v4812_v37 = vld [vmem:[%s5535_s5 + $0x2b0] sm:$0xff] }
 0x139   : > { %3615 = vmatpush.bf16.msra.mxu3 %v4751_v27  ;;  %v4704_v27 = vld [vmem:[%s5893_s0 + $0x4c] sm:$0xf0]  ;;  %v4076_v30 = vld [vmem:[%s5893_s0 + $0x18] sm:$0xf]  ;;  %v4142_v61 = vld [vmem:[%s5893_s0 + $0xd8] sm:$0xf0] }
 0x13a   : > { %3559 = vmatpush.bf16.msra.mxu0 %v4726_v28  ;;  %v4696_v28 = vld [vmem:[%s5893_s0 + $0x14] sm:$0xf]  ;;  %v4705_v31 = vld [vmem:[%s5893_s0 + $0x54] sm:$0xf0]  ;;  %v4069_v36 = vor.u32 %v4704_v27, %v4068_v24  ;;  %v4086_v24 = vld [vmem:[%s5893_s0 + $0x60] sm:$0xf0] }
 0x13b   : > { %3578 = vmatpush.bf16.msra.mxu1 %v4734_v29  ;;  %v4070_v29 = vld [vmem:[%s5893_s0 + $0x50] sm:$0xf0]  ;;  %v4805_v34 = vld [vmem:[%s5535_s5 + $0x278] sm:$0xff]  ;;  %v4077_v39 = vor.u32 %v4705_v31, %v4076_v30  ;;  %v4699_v27 = vld [vmem:[%s5893_s0 + $0x2c] sm:$0xf] }
 0x13c   : > { %3597 = vmatpush.bf16.msra.mxu2 %v4742_v32  ;;  %v4697_v32 = vld [vmem:[%s5893_s0 + $0x1c] sm:$0xf]  ;;  %v4073_v38 = vor.u32 %v4696_v28, %v4070_v29  ;;  %v4808_v1 = vld [vmem:[%s5535_s5 + $0x290] sm:$0xff]  ;;  %v4094_v28 = vld [vmem:[%s5893_s0 + $0x68] sm:$0xf0] }
 0x13d   : > { %3616 = vmatpush.bf16.msra.mxu3 %v4750_v33  ;;  %3560 = vmatmul.bf16.vlgmr.msra.gmra.mxu0 %v4053_v42  ;;  %v4078_v33 = vld [vmem:[%s5893_s0 + $0x58] sm:$0xf0]  ;;  %v4804_v42 = vld [vmem:[%s5535_s5 + $0x270] sm:$0xff] }
 0x13e   : > { %3628 = vmatpush.bf16.msrb.mxu0 %v4765_v41  ;;  %3579 = vmatmul.bf16.vlgmr.msra.gmra.mxu1 %v4057_v43  ;;  %v4821_v35 = vld [vmem:[%s5535_s5 + $0x2f8] sm:$0xff]  ;;  %v4796_v41 = vld [vmem:[%s5535_s5 + $0x230] sm:$0xff] }
 0x13f   : > { %3598 = vmatmul.bf16.vlgmr.msra.gmra.mxu2 %v4061_v44  ;;  %3647 = vmatpush.bf16.msrb.mxu1 %v4773_v46  ;;  %v4820_v43 = vld [vmem:[%s5535_s5 + $0x2f0] sm:$0xff]  ;;  %v4811_v44 = vld [vmem:[%s5535_s5 + $0x2a8] sm:$0xff]  ;;  %v4793_v60 = vld [vmem:[%s5535_s5 + $0x218] sm:$0xff] }
 0x140   : > { %3666 = vmatpush.bf16.msrb.mxu2 %v4781_v40  ;;  %3617 = vmatmul.bf16.vlgmr.msra.gmra.mxu3 %v4065_v45  ;;  %v4081_v40 = vor.u32 %v4697_v32, %v4078_v33  ;;  %v4795_v45 = vld [vmem:[%s5535_s5 + $0x228] sm:$0xff]  ;;  %v4801_v62 = vld [vmem:[%s5535_s5 + $0x258] sm:$0xff]  ;;  %v4836_v30 = vld [vmem:[%s5535_s5 + $0x370] sm:$0xff]  ;;  %v4097_v33 = vor.u32 %v4699_v27, %v4094_v28 }
 0x141   : > { %3685 = vmatpush.bf16.msrb.mxu3 %v4789_v47  ;;  %v4803_v46 = vld [vmem:[%s5535_s5 + $0x268] sm:$0xff]  ;;  %v4817_v63 = vld [vmem:[%s5535_s5 + $0x2d8] sm:$0xff] }
 0x142   : > { %3629 = vmatpush.bf16.msrb.mxu0 %v4764_v49  ;;  %v4819_v47 = vld [vmem:[%s5535_s5 + $0x2e8] sm:$0xff]  ;;  %v4794_v49 = vld [vmem:[%s5535_s5 + $0x220] sm:$0xff]  ;;  %v4174_v27 = vld [vmem:[%s5893_s0 + $0xf8] sm:$0xf0] }
 0x143   : > { %3648 = vmatpush.bf16.msrb.mxu1 %v4772_v50  ;;  %v4802_v50 = vld [vmem:[%s5535_s5 + $0x260] sm:$0xff] }
 0x144   : > { %3667 = vmatpush.bf16.msrb.mxu2 %v4780_v48  ;;  %v4810_v48 = vld [vmem:[%s5535_s5 + $0x2a0] sm:$0xff] }
 0x145   : > { %3686 = vmatpush.bf16.msrb.mxu3 %v4788_v51  ;;  %v4818_v51 = vld [vmem:[%s5535_s5 + $0x2e0] sm:$0xff] }
 0x146   : > { %3630 = vmatpush.bf16.msrb.mxu0 %v4763_v53  ;;  %v4720_v53 = vld [vmem:[%s5893_s0 + $0xcc] sm:$0xf0] }
 0x147   : > { %3649 = vmatpush.bf16.msrb.mxu1 %v4771_v54  ;;  %v4809_v54 = vld [vmem:[%s5535_s5 + $0x298] sm:$0xff] }
 0x148   : > { %3668 = vmatpush.bf16.msrb.mxu2 %v4779_v52  ;;  %v4132_v52 = vld [vmem:[%s5893_s0 + $0x90] sm:$0xf] }
 0x149   : > { %3687 = vmatpush.bf16.msrb.mxu3 %v4787_v55  ;;  %v4712_v55 = vld [vmem:[%s5893_s0 + $0x94] sm:$0xf]  ;;  %v4133_v0 = vor.u32 %v4720_v53, %v4132_v52  ;;  %v4715_v52 = vld [vmem:[%s5893_s0 + $0xac] sm:$0xf]  ;;  %v4825_v53 = vld [vmem:[%s5535_s5 + $0x318] sm:$0xff] }
 0x14a   : > { %3631 = vmatpush.bf16.msrb.mxu0 %v4762_v57  ;;  %v4140_v57 = vld [vmem:[%s5893_s0 + $0x98] sm:$0xf] }
 0x14b   : > { %3650 = vmatpush.bf16.msrb.mxu1 %v4770_v58  ;;  %v4721_v58 = vld [vmem:[%s5893_s0 + $0xd4] sm:$0xf0] }
 0x14c   : > { %3669 = vmatpush.bf16.msrb.mxu2 %v4778_v56  ;;  %v4134_v56 = vld [vmem:[%s5893_s0 + $0xd0] sm:$0xf0]  ;;  %v4141_v3 = vor.u32 %v4721_v58, %v4140_v57 }
 0x14d   : > { %3688 = vmatpush.bf16.msrb.mxu3 %v4786_v59  ;;  %3565 = vmatmul.bf16.gmra.mxu0 %v4117_v6  ;;  %v4713_v59 = vld [vmem:[%s5893_s0 + $0x9c] sm:$0xf]  ;;  %v4137_v2 = vor.u32 %v4712_v55, %v4134_v56  ;;  %v4800_v6 = vld [vmem:[%s5535_s5 + $0x250] sm:$0xff] }
 0x14e   : > { %3632 = vmatpush.bf16.msrb.mxu0 %v4761_v5  ;;  %3584 = vmatmul.bf16.gmra.mxu1 %v4121_v7  ;;  %v4792_v5 = vld [vmem:[%s5535_s5 + $0x210] sm:$0xff]  ;;  %v4849_v55 = vld [vmem:[%s5535_s5 + $0x3d8] sm:$0xff] }
 0x14f   : > { %3603 = vmatmul.bf16.gmra.mxu2 %v4125_v8  ;;  %3651 = vmatpush.bf16.msrb.mxu1 %v4769_v10  ;;  %v4816_v7 = vld [vmem:[%s5535_s5 + $0x2d0] sm:$0xff]  ;;  %v4807_v8 = vld [vmem:[%s5535_s5 + $0x288] sm:$0xff] }
 0x150   : > { %3670 = vmatpush.bf16.msrb.mxu2 %v4777_v4  ;;  %3622 = vmatmul.bf16.gmra.mxu3 %v4129_v9  ;;  %v4145_v4 = vor.u32 %v4713_v59, %v4142_v61  ;;  %v4791_v9 = vld [vmem:[%s5535_s5 + $0x208] sm:$0xff]  ;;  %v4840_v56 = vld [vmem:[%s5535_s5 + $0x390] sm:$0xff] }
 0x151   : > { %3689 = vmatpush.bf16.msrb.mxu3 %v4785_v11  ;;  %v4799_v10 = vld [vmem:[%s5535_s5 + $0x248] sm:$0xff]  ;;  %v4832_v58 = vld [vmem:[%s5535_s5 + $0x350] sm:$0xff] }
 0x152   : > { %3633 = vmatpush.bf16.msrb.mxu0 %v4760_v13  ;;  %v4815_v11 = vld [vmem:[%s5535_s5 + $0x2c8] sm:$0xff]  ;;  %v4845_v13 = vld [vmem:[%s5535_s5 + $0x3b8] sm:$0xff] }
 0x153   : > { %3652 = vmatpush.bf16.msrb.mxu1 %v4768_v14  ;;  %v4790_v14 = vld [vmem:[%s5535_s5 + $0x200] sm:$0xff] }
 0x154   : > { %3671 = vmatpush.bf16.msrb.mxu2 %v4776_v12  ;;  %v4806_v12 = vld [vmem:[%s5535_s5 + $0x280] sm:$0xff] }
 0x155   : > { %3690 = vmatpush.bf16.msrb.mxu3 %v4784_v15  ;;  %v4798_v15 = vld [vmem:[%s5535_s5 + $0x240] sm:$0xff] }
 0x156   : > { %3634 = vmatpush.bf16.msrb.mxu0 %v4759_v17  ;;  %v4084_v17 = vld [vmem:[%s5893_s0 + $0x20] sm:$0xf] }
 0x157   : > { %3653 = vmatpush.bf16.msrb.mxu1 %v4767_v18  ;;  %v4706_v18 = vld [vmem:[%s5893_s0 + $0x5c] sm:$0xf0] }
 0x158   : > { %3672 = vmatpush.bf16.msrb.mxu2 %v4775_v16  ;;  %v4814_v16 = vld [vmem:[%s5535_s5 + $0x2c0] sm:$0xff]  ;;  %v4085_v29 = vor.u32 %v4706_v18, %v4084_v17 }
 0x159   : > { %3691 = vmatpush.bf16.msrb.mxu3 %v4783_v19  ;;  %v4829_v19 = vld [vmem:[%s5535_s5 + $0x338] sm:$0xff] }
 0x15a   : > { %3635 = vmatpush.bf16.msrb.mxu0 %v4758_v21  ;;  %v4698_v21 = vld [vmem:[%s5893_s0 + $0x24] sm:$0xf] }
 0x15b   : > { %3654 = vmatpush.bf16.msrb.mxu1 %v4766_v22  ;;  %v4853_v22 = vld [vmem:[%s5535_s5 + $0x3f8] sm:$0xff]  ;;  %v4089_v31 = vor.u32 %v4698_v21, %v4086_v24  ;;  %v4724_v21 = vld [vmem:[%s5893_s0 + $0xec] sm:$0xf0] }
 0x15c   : > { %3673 = vmatpush.bf16.msrb.mxu2 %v4774_v20  ;;  %v4837_v20 = vld [vmem:[%s5535_s5 + $0x378] sm:$0xff] }
 0x15d   : > { %3692 = vmatpush.bf16.msrb.mxu3 %v4782_v23  ;;  %3636 = vmatmul.bf16.vlgmr.msrb.gmra.mxu0 %v4069_v36  ;;  %v4844_v23 = vld [vmem:[%s5535_s5 + $0x3b0] sm:$0xff]  ;;  %v4843_v36 = vld [vmem:[%s5535_s5 + $0x3a8] sm:$0xff]  ;;  %v4172_v24 = vld [vmem:[%s5893_s0 + $0xb8] sm:$0xf] }
 0x15e   : > { %3704 = vmatpush.bf16.msra.mxu0 %v4797_v26  ;;  %3655 = vmatmul.bf16.vlgmr.msrb.gmra.mxu1 %v4073_v38  ;;  %v4707_v26 = vld [vmem:[%s5893_s0 + $0x64] sm:$0xf0] }
 0x15f   : > { %3723 = vmatpush.bf16.msra.mxu1 %v4805_v34  ;;  %3674 = vmatmul.bf16.vlgmr.msrb.gmra.mxu2 %v4077_v39  ;;  %v4828_v34 = vld [vmem:[%s5535_s5 + $0x330] sm:$0xff]  ;;  %v4827_v38 = vld [vmem:[%s5535_s5 + $0x328] sm:$0xff] }
 0x160   : > { %3742 = vmatpush.bf16.msra.mxu2 %v4813_v25  ;;  %3693 = vmatmul.bf16.vlgmr.msrb.gmra.mxu3 %v4081_v40  ;;  %v4092_v25 = vld [vmem:[%s5893_s0 + $0x28] sm:$0xf]  ;;  %v4842_v40 = vld [vmem:[%s5535_s5 + $0x3a0] sm:$0xff] }
 0x161   : > { %3761 = vmatpush.bf16.msra.mxu3 %v4821_v35  ;;  %v4093_v32 = vor.u32 %v4707_v26, %v4092_v25  ;;  %v4852_v35 = vld [vmem:[%s5535_s5 + $0x3f0] sm:$0xff]  ;;  %v4851_v39 = vld [vmem:[%s5535_s5 + $0x3e8] sm:$0xff]  ;;  %v4725_v25 = vld [vmem:[%s5893_s0 + $0xf4] sm:$0xf0] }
 0x162   : > { %3705 = vmatpush.bf16.msra.mxu0 %v4796_v41  ;;  %v4834_v41 = vld [vmem:[%s5535_s5 + $0x360] sm:$0xff]  ;;  %v4717_v26 = vld [vmem:[%s5893_s0 + $0xbc] sm:$0xf] }
 0x163   : > { %3724 = vmatpush.bf16.msra.mxu1 %v4804_v42  ;;  %v4826_v42 = vld [vmem:[%s5535_s5 + $0x320] sm:$0xff] }
 0x164   : > { %3743 = vmatpush.bf16.msra.mxu2 %v4812_v37  ;;  %v4835_v37 = vld [vmem:[%s5535_s5 + $0x368] sm:$0xff] }
 0x165   : > { %3762 = vmatpush.bf16.msra.mxu3 %v4820_v43  ;;  %v4850_v43 = vld [vmem:[%s5535_s5 + $0x3e0] sm:$0xff] }
 0x166   : > { %3706 = vmatpush.bf16.msra.mxu0 %v4795_v45  ;;  %v4148_v45 = vld [vmem:[%s5893_s0 + $0xa0] sm:$0xf] }
 0x167   : > { %3725 = vmatpush.bf16.msra.mxu1 %v4803_v46  ;;  %v4722_v46 = vld [vmem:[%s5893_s0 + $0xdc] sm:$0xf0] }
 0x168   : > { %3744 = vmatpush.bf16.msra.mxu2 %v4811_v44  ;;  %v4841_v44 = vld [vmem:[%s5535_s5 + $0x398] sm:$0xff]  ;;  %v4149_v57 = vor.u32 %v4722_v46, %v4148_v45 }
 0x169   : > { %3763 = vmatpush.bf16.msra.mxu3 %v4819_v47  ;;  %v4833_v47 = vld [vmem:[%s5535_s5 + $0x358] sm:$0xff] }
 0x16a   : > { %3707 = vmatpush.bf16.msra.mxu0 %v4794_v49  ;;  %v4150_v49 = vld [vmem:[%s5893_s0 + $0xe0] sm:$0xf0] }
 0x16b   : > { %3726 = vmatpush.bf16.msra.mxu1 %v4802_v50  ;;  %v4156_v50 = vld [vmem:[%s5893_s0 + $0xa8] sm:$0xf] }
 0x16c   : > { %3745 = vmatpush.bf16.msra.mxu2 %v4810_v48  ;;  %v4714_v48 = vld [vmem:[%s5893_s0 + $0xa4] sm:$0xf] }
 0x16d   : > { %3764 = vmatpush.bf16.msra.mxu3 %v4818_v51  ;;  %3641 = vmatmul.bf16.gmra.mxu0 %v4133_v0  ;;  %v4723_v51 = vld [vmem:[%s5893_s0 + $0xe4] sm:$0xf0]  ;;  %v4153_v59 = vor.u32 %v4714_v48, %v4150_v49 }
 0x16e   : > { %3708 = vmatpush.bf16.msra.mxu0 %v4793_v60  ;;  %3660 = vmatmul.bf16.gmra.mxu1 %v4137_v2  ;;  %v4157_v60 = vor.u32 %v4723_v51, %v4156_v50  ;;  %v4839_v0 = vld [vmem:[%s5535_s5 + $0x388] sm:$0xff] }
 0x16f   : > { %3727 = vmatpush.bf16.msra.mxu1 %v4801_v62  ;;  %3679 = vmatmul.bf16.gmra.mxu2 %v4141_v3  ;;  %v4824_v62 = vld [vmem:[%s5535_s5 + $0x310] sm:$0xff]  ;;  %v4823_v2 = vld [vmem:[%s5535_s5 + $0x308] sm:$0xff] }
 0x170   : > { %3746 = vmatpush.bf16.msra.mxu2 %v4809_v54  ;;  %3698 = vmatmul.bf16.gmra.mxu3 %v4145_v4  ;;  %v4158_v54 = vld [vmem:[%s5893_s0 + $0xe8] sm:$0xf0]  ;;  %v4838_v4 = vld [vmem:[%s5535_s5 + $0x380] sm:$0xff] }
 0x171   : > { %3765 = vmatpush.bf16.msra.mxu3 %v4817_v63  ;;  %v4161_v61 = vor.u32 %v4715_v52, %v4158_v54  ;;  %v4848_v63 = vld [vmem:[%s5535_s5 + $0x3d0] sm:$0xff]  ;;  %v4847_v3 = vld [vmem:[%s5535_s5 + $0x3c8] sm:$0xff] }
 0x172   : > { %3709 = vmatpush.bf16.msra.mxu0 %v4792_v5  ;;  %v4830_v5 = vld [vmem:[%s5535_s5 + $0x340] sm:$0xff] }
 0x173   : > { %3728 = vmatpush.bf16.msra.mxu1 %v4800_v6  ;;  %v4822_v6 = vld [vmem:[%s5535_s5 + $0x300] sm:$0xff] }
 0x174   : > { %3747 = vmatpush.bf16.msra.mxu2 %v4808_v1  ;;  %v4831_v1 = vld [vmem:[%s5535_s5 + $0x348] sm:$0xff] }
 0x175   : > { %3766 = vmatpush.bf16.msra.mxu3 %v4816_v7  ;;  %v4846_v7 = vld [vmem:[%s5535_s5 + $0x3c0] sm:$0xff] }
 0x176   : > { %3710 = vmatpush.bf16.msra.mxu0 %v4791_v9  ;;  %v4708_v9 = vld [vmem:[%s5893_s0 + $0x6c] sm:$0xf0] }
 0x177   : > { %3729 = vmatpush.bf16.msra.mxu1 %v4799_v10  ;;  %v4700_v10 = vld [vmem:[%s5893_s0 + $0x34] sm:$0xf] }
 0x178   : > { %3748 = vmatpush.bf16.msra.mxu2 %v4807_v8  ;;  %v4100_v8 = vld [vmem:[%s5893_s0 + $0x30] sm:$0xf] }
 0x179   : > { %3767 = vmatpush.bf16.msra.mxu3 %v4815_v11  ;;  %v4102_v11 = vld [vmem:[%s5893_s0 + $0x70] sm:$0xf0] }
 0x17a   : > { %3711 = vmatpush.bf16.msra.mxu0 %v4790_v14  ;;  %v4701_v14 = vld [vmem:[%s5893_s0 + $0x3c] sm:$0xf]  ;;  %v4105_v17 = vor.u32 %v4700_v10, %v4102_v11 }
 0x17b   : > { %3730 = vmatpush.bf16.msra.mxu1 %v4798_v15  ;;  %v4110_v15 = vld [vmem:[%s5893_s0 + $0x78] sm:$0xf0] }
 0x17c   : > { %3749 = vmatpush.bf16.msra.mxu2 %v4806_v12  ;;  %v4108_v12 = vld [vmem:[%s5893_s0 + $0x38] sm:$0xf] }
 0x17d   : > { %3768 = vmatpush.bf16.msra.mxu3 %v4814_v16  ;;  %3712 = vmatmul.bf16.vlgmr.msra.gmra.mxu0 %v4085_v29  ;;  %v4101_v16 = vor.u32 %v4708_v9, %v4100_v8 }
 0x17e   : > { %3780 = vmatpush.bf16.msrb.mxu0 %v4829_v19  ;;  %3731 = vmatmul.bf16.vlgmr.msra.gmra.mxu1 %v4089_v31  ;;  %v4113_v19 = vor.u32 %v4701_v14, %v4110_v15  ;;  %v4177_v31 = vor.u32 %v4717_v26, %v4174_v27 }
 0x17f   : > { %3799 = vmatpush.bf16.msrb.mxu1 %v4837_v20  ;;  %3750 = vmatmul.bf16.vlgmr.msra.gmra.mxu2 %v4093_v32  ;;  %v4164_v20 = vld [vmem:[%s5893_s0 + $0xb0] sm:$0xf]  ;;  %v4905_v32 = vld [vmem:[%s2330_s19] ss:$0 sm:$0xff]  ;;  %s2320_s19 = scalar_lea.vmem [#allocation3], %s4049_s6 }
 0x180   : > { %3818 = vmatpush.bf16.msrb.mxu2 %v4845_v13  ;;  %3769 = vmatmul.bf16.vlgmr.msra.gmra.mxu3 %v4097_v33  ;;  %v4709_v13 = vld [vmem:[%s5893_s0 + $0x74] sm:$0xf0]  ;;  %v4165_v28 = vor.u32 %v4724_v21, %v4164_v20 }
 0x181   : > { %3837 = vmatpush.bf16.msrb.mxu3 %v4853_v22  ;;  %v4109_v18 = vor.u32 %v4709_v13, %v4108_v12  ;;  %v4716_v22 = vld [vmem:[%s5893_s0 + $0xb4] sm:$0xf] }
 0x182   : > { %3781 = vmatpush.bf16.msrb.mxu0 %v4828_v34 }
 0x183   : > { %3800 = vmatpush.bf16.msrb.mxu1 %v4836_v30  ;;  %v4173_v30 = vor.u32 %v4725_v25, %v4172_v24 }
 0x184   : > { %3819 = vmatpush.bf16.msrb.mxu2 %v4844_v23  ;;  %v4166_v23 = vld [vmem:[%s5893_s0 + $0xf0] sm:$0xf0] }
 0x185   : > { %3838 = vmatpush.bf16.msrb.mxu3 %v4852_v35  ;;  %v4169_v29 = vor.u32 %v4716_v22, %v4166_v23 }
 0x186   : > { %3782 = vmatpush.bf16.msrb.mxu0 %v4827_v38 }
 0x187   : > { %3801 = vmatpush.bf16.msrb.mxu1 %v4835_v37 }
 0x188   : > { %3820 = vmatpush.bf16.msrb.mxu2 %v4843_v36 }
 0x189   : > { %3839 = vmatpush.bf16.msrb.mxu3 %v4851_v39 }
 0x18a   : > { %3783 = vmatpush.bf16.msrb.mxu0 %v4826_v42 }
 0x18b   : > { %3802 = vmatpush.bf16.msrb.mxu1 %v4834_v41 }
 0x18c   : > { %3821 = vmatpush.bf16.msrb.mxu2 %v4842_v40 }
 0x18d   : > { %3840 = vmatpush.bf16.msrb.mxu3 %v4850_v43  ;;  %3717 = vmatmul.bf16.gmra.mxu0 %v4149_v57 }
 0x18e   : > { %3784 = vmatpush.bf16.msrb.mxu0 %v4825_v53  ;;  %3736 = vmatmul.bf16.gmra.mxu1 %v4153_v59 }
 0x18f   : > { %3803 = vmatpush.bf16.msrb.mxu1 %v4833_v47  ;;  %3755 = vmatmul.bf16.gmra.mxu2 %v4157_v60 }
 0x190   : > { %3822 = vmatpush.bf16.msrb.mxu2 %v4841_v44  ;;  %3774 = vmatmul.bf16.gmra.mxu3 %v4161_v61 }
 0x191   : > { %3841 = vmatpush.bf16.msrb.mxu3 %v4849_v55 }
 0x192   : > { %3785 = vmatpush.bf16.msrb.mxu0 %v4824_v62 }
 0x193   : > { %3804 = vmatpush.bf16.msrb.mxu1 %v4832_v58 }
 0x194   : > { %3823 = vmatpush.bf16.msrb.mxu2 %v4840_v56 }
 0x195   : > { %3842 = vmatpush.bf16.msrb.mxu3 %v4848_v63 }
 0x196   : > { %3786 = vmatpush.bf16.msrb.mxu0 %v4823_v2 }
 0x197   : > { %3805 = vmatpush.bf16.msrb.mxu1 %v4831_v1 }
 0x198   : > { %3824 = vmatpush.bf16.msrb.mxu2 %v4839_v0 }
 0x199   : > { %3843 = vmatpush.bf16.msrb.mxu3 %v4847_v3 }
 0x19a   : > { %3787 = vmatpush.bf16.msrb.mxu0 %v4822_v6 }
 0x19b   : > { %3806 = vmatpush.bf16.msrb.mxu1 %v4830_v5 }
 0x19c   : > { %3825 = vmatpush.bf16.msrb.mxu2 %v4838_v4 }
 0x19d   : > { %3844 = vmatpush.bf16.msrb.mxu3 %v4846_v7  ;;  %3788 = vmatmul.bf16.vlgmr.msrb.gmra.mxu0 %v4101_v16 }
 0x19e   : > { %3807 = vmatmul.bf16.vlgmr.msrb.gmra.mxu1 %v4105_v17 }
 0x19f   : > { %3826 = vmatmul.bf16.vlgmr.msrb.gmra.mxu2 %v4109_v18 }
 0x1a0   : > { %3845 = vmatmul.bf16.vlgmr.msrb.gmra.mxu3 %v4113_v19 }
 0x1ad   : > { %3793 = vmatmul.bf16.gmra.mxu0 %v4165_v28 }
 0x1ae   : > { %3812 = vmatmul.bf16.gmra.mxu1 %v4169_v29 }
 0x1af   : > { %3831 = vmatmul.bf16.gmra.mxu2 %v4173_v30 }
 0x1b0   : > { %3850 = vmatmul.bf16.gmra.mxu3 %v4177_v31 }
 0x1ba   : > { %v3561_v33 = vpop.f32.mrf.mxu0 }
 0x1bb   : > { %v3580_v34 = vpop.f32.mrf.mxu1  ;;  %v3562_v35 = vadd.f32 %v4905_v32, %v3561_v33 }
 0x1bd   : > { %v3581_v36 = vadd.f32 %v3580_v34, %v3562_v35 }
 0x1c2   : > { %v3599_v37 = vpop.f32.mrf.mxu2  ;;  %v3563_v40 = vpop.f32.mrf.mxu0 }
 0x1c3   : > { %v3618_v38 = vpop.f32.mrf.mxu3  ;;  %v3600_v39 = vadd.f32 %v3599_v37, %v3581_v36  ;;  %v3582_v41 = vpop.f32.mrf.mxu1  ;;  %v3564_v42 = vadd.f32 %v4905_v32, %v3563_v40 }
 0x1c5   : > { %v3619_v43 = vadd.f32 %v3618_v38, %v3600_v39  ;;  %v3583_v44 = vadd.f32 %v3582_v41, %v3564_v42 }
 0x1ca   : > { %v3601_v45 = vpop.f32.mrf.mxu2  ;;  %v3566_v48 = vpop.f32.mrf.mxu0 }
 0x1cb   : > { %v3620_v46 = vpop.f32.mrf.mxu3  ;;  %v3602_v47 = vadd.f32 %v3601_v45, %v3583_v44  ;;  %v3585_v49 = vpop.f32.mrf.mxu1  ;;  %v3567_v50 = vadd.f32 %v4905_v32, %v3566_v48 }
 0x1cd   : > { %v3621_v51 = vadd.f32 %v3620_v46, %v3602_v47  ;;  %v3586_v52 = vadd.f32 %v3585_v49, %v3567_v50 }
 0x1d2   : > { %v3604_v53 = vpop.f32.mrf.mxu2  ;;  %v3568_v56 = vpop.f32.mrf.mxu0 }
 0x1d3   : > { %v3623_v54 = vpop.f32.mrf.mxu3  ;;  %v3605_v55 = vadd.f32 %v3604_v53, %v3586_v52  ;;  %v3587_v57 = vpop.f32.mrf.mxu1  ;;  %v3569_v58 = vadd.f32 %v4905_v32, %v3568_v56 }
 0x1d5   : > { %v3624_v59 = vadd.f32 %v3623_v54, %v3605_v55  ;;  %v3588_v60 = vadd.f32 %v3587_v57, %v3569_v58 }
 0x1da   : > { %v3606_v61 = vpop.f32.mrf.mxu2  ;;  %v3637_v0 = vpop.f32.mrf.mxu0 }
 0x1db   : > { %v3625_v62 = vpop.f32.mrf.mxu3  ;;  %v3607_v63 = vadd.f32 %v3606_v61, %v3588_v60  ;;  %v3656_v1 = vpop.f32.mrf.mxu1  ;;  %v3638_v23 = vadd.f32 %v3637_v0, %v3619_v43 }
 0x1dd   : > { %v3626_v2 = vadd.f32 %v3625_v62, %v3607_v63  ;;  %v3657_v25 = vadd.f32 %v3656_v1, %v3638_v23 }
 0x1e2   : > { %v3675_v3 = vpop.f32.mrf.mxu2  ;;  %v3639_v5 = vpop.f32.mrf.mxu0 }
 0x1e3   : > { %v3694_v4 = vpop.f32.mrf.mxu3  ;;  %v3658_v6 = vpop.f32.mrf.mxu1  ;;  %v3676_v29 = vadd.f32 %v3675_v3, %v3657_v25  ;;  %v3640_v30 = vadd.f32 %v3639_v5, %v3621_v51 }
 0x1e5   : > { %v3695_v31 = vadd.f32 %v3694_v4, %v3676_v29  ;;  %v3659_v32 = vadd.f32 %v3658_v6, %v3640_v30 }
 0x1ea   : > { %v3677_v7 = vpop.f32.mrf.mxu2  ;;  %v3642_v9 = vpop.f32.mrf.mxu0 }
 0x1eb   : > { %v3696_v8 = vpop.f32.mrf.mxu3  ;;  %v3661_v10 = vpop.f32.mrf.mxu1  ;;  %v3678_v34 = vadd.f32 %v3677_v7, %v3659_v32  ;;  %v3643_v40 = vadd.f32 %v3642_v9, %v3624_v59 }
 0x1ed   : > { %v3697_v39 = vadd.f32 %v3696_v8, %v3678_v34  ;;  %v3662_v45 = vadd.f32 %v3661_v10, %v3643_v40 }
 0x1f2   : > { %v3680_v11 = vpop.f32.mrf.mxu2  ;;  %v3644_v13 = vpop.f32.mrf.mxu0 }
 0x1f3   : > { %v3699_v12 = vpop.f32.mrf.mxu3  ;;  %v3663_v14 = vpop.f32.mrf.mxu1  ;;  %v3681_v49 = vadd.f32 %v3680_v11, %v3662_v45  ;;  %v3645_v50 = vadd.f32 %v3644_v13, %v3626_v2 }
 0x1f5   : > { %v3700_v55 = vadd.f32 %v3699_v12, %v3681_v49  ;;  %v3664_v56 = vadd.f32 %v3663_v14, %v3645_v50 }
 0x1fa   : > { %v3682_v15 = vpop.f32.mrf.mxu2  ;;  %v3713_v17 = vpop.f32.mrf.mxu0 }
 0x1fb   : > { %v3701_v16 = vpop.f32.mrf.mxu3  ;;  %v3732_v18 = vpop.f32.mrf.mxu1  ;;  %v3714_v35 = vadd.f32 %v3713_v17, %v3695_v31  ;;  %v3683_v58 = vadd.f32 %v3682_v15, %v3664_v56 }
 0x1fd   : > { %v3733_v41 = vadd.f32 %v3732_v18, %v3714_v35  ;;  %v3702_v4 = vadd.f32 %v3701_v16, %v3683_v58 }
 0x202   : > { %v3751_v19 = vpop.f32.mrf.mxu2  ;;  %v3715_v21 = vpop.f32.mrf.mxu0 }
 0x203   : > { %v3770_v20 = vpop.f32.mrf.mxu3  ;;  %v3734_v22 = vpop.f32.mrf.mxu1  ;;  %v3752_v42 = vadd.f32 %v3751_v19, %v3733_v41  ;;  %v3716_v43 = vadd.f32 %v3715_v21, %v3697_v39 }
 0x205   : > { %v3771_v51 = vadd.f32 %v3770_v20, %v3752_v42  ;;  %v3735_v52 = vadd.f32 %v3734_v22, %v3716_v43 }
 0x20a   : > { %v3753_v24 = vpop.f32.mrf.mxu2  ;;  %v3718_v27 = vpop.f32.mrf.mxu0 }
 0x20b   : > { %v3772_v26 = vpop.f32.mrf.mxu3  ;;  %v3737_v28 = vpop.f32.mrf.mxu1  ;;  %v3754_v53 = vadd.f32 %v3753_v24, %v3735_v52  ;;  %v3719_v59 = vadd.f32 %v3718_v27, %v3700_v55 }
 0x20d   : > { %v3773_v60 = vadd.f32 %v3772_v26, %v3754_v53  ;;  %v3738_v5 = vadd.f32 %v3737_v28, %v3719_v59 }
 0x212   : > { %v3756_v33 = vpop.f32.mrf.mxu2  ;;  %v3720_v37 = vpop.f32.mrf.mxu0 }
 0x213   : > { %v3775_v36 = vpop.f32.mrf.mxu3  ;;  %v3739_v38 = vpop.f32.mrf.mxu1  ;;  %v3757_v2 = vadd.f32 %v3756_v33, %v3738_v5  ;;  %v3721_v6 = vadd.f32 %v3720_v37, %v3702_v4 }
 0x215   : > { %v3776_v13 = vadd.f32 %v3775_v36, %v3757_v2  ;;  %v3740_v14 = vadd.f32 %v3739_v38, %v3721_v6 }
 0x21a   : > { %v3758_v44 = vpop.f32.mrf.mxu2  ;;  %v3789_v47 = vpop.f32.mrf.mxu0 }
 0x21b   : > { %v3777_v46 = vpop.f32.mrf.mxu3  ;;  %v3808_v48 = vpop.f32.mrf.mxu1  ;;  %v3790_v54 = vadd.f32 %v3789_v47, %v3771_v51  ;;  %v3759_v19 = vadd.f32 %v3758_v44, %v3740_v14 }
 0x21d   : > { %v3809_v61 = vadd.f32 %v3808_v48, %v3790_v54  ;;  %v3778_v25 = vadd.f32 %v3777_v46, %v3759_v19 }
 0x222   : > { %v3827_v57 = vpop.f32.mrf.mxu2  ;;  %v3791_v63 = vpop.f32.mrf.mxu0 }
 0x223   : > { %v3846_v62 = vpop.f32.mrf.mxu3  ;;  %v3810_v0 = vpop.f32.mrf.mxu1  ;;  %v3828_v1 = vadd.f32 %v3827_v57, %v3809_v61  ;;  %v3792_v3 = vadd.f32 %v3791_v63, %v3773_v60 }
 0x225   : > { %v3847_v7 = vadd.f32 %v3846_v62, %v3828_v1  ;;  %v3811_v8 = vadd.f32 %v3810_v0, %v3792_v3 }
 0x227   : > { %v3860_v15 = vmul.f32 0.2, %v3847_v7  ;;  %vm3856_vm0 = vcmp.gt.f32.partialorder %v3847_v7, 0.0 }
 0x229   : > { %v3864_v21 = vsel %vm3856_vm0, %v3847_v7, %v3860_v15 }
 0x22a   : > { %v3829_v9 = vpop.f32.mrf.mxu2  ;;  %v3794_v12 = vpop.f32.mrf.mxu0 }
 0x22b   : > { %v3830_v10 = vadd.f32 %v3829_v9, %v3811_v8  ;;  %v3848_v11 = vpop.f32.mrf.mxu3  ;;  %v3813_v18 = vpop.f32.mrf.mxu1  ;;  %v3795_v20 = vadd.f32 %v3794_v12, %v3776_v13 }
 0x22d   : > { %v3849_v17 = vadd.f32 %v3848_v11, %v3830_v10  ;;  %v3814_v26 = vadd.f32 %v3813_v18, %v3795_v20 }
 0x22f   : > { %vm3857_vm1 = vcmp.gt.f32.partialorder %v3849_v17, 0.0  ;;  %v3861_v16 = vmul.f32 0.2, %v3849_v17 }
 0x231   : > { %v3865_v22 = vsel %vm3857_vm1, %v3849_v17, %v3861_v16 }
 0x232   : > { %v4857_v23 = vpack.c.bf16 %v3865_v22, %v3864_v21  ;;  %v3832_v24 = vpop.f32.mrf.mxu2  ;;  %v3796_v28 = vpop.f32.mrf.mxu0 }
 0x233   : > { %v3851_v27 = vpop.f32.mrf.mxu3  ;;  %v3833_v29 = vadd.f32 %v3832_v24, %v3814_v26  ;;  %v3797_v30 = vadd.f32 %v3796_v28, %v3778_v25  ;;  %v3815_v31 = vpop.f32.mrf.mxu1 }
 0x234   : > { %4858 = vst [vmem:[%s2320_s19] sm:$0xff] %v4857_v23  }
 0x235   : > { %v3852_v32 = vadd.f32 %v3851_v27, %v3833_v29  ;;  %v3816_v33 = vadd.f32 %v3815_v31, %v3797_v30 }
 0x237   : > { %v3862_v37 = vmul.f32 0.2, %v3852_v32  ;;  %vm3858_vm2 = vcmp.gt.f32.partialorder %v3852_v32, 0.0 }
 0x239   : > { %v3866_v40 = vsel %vm3858_vm2, %v3852_v32, %v3862_v37 }
 0x23a   : > { %v3834_v34 = vpop.f32.mrf.mxu2 }
 0x23b   : > { %v3835_v35 = vadd.f32 %v3834_v34, %v3816_v33  ;;  %v3853_v36 = vpop.f32.mrf.mxu3  ;;  %v3904_v43 = vld [vmem:[%s2320_s19] sm:$0xf] (%p5001_p6)  ;;  %v3906_v44 = vld [vmem:[%s2320_s19 + $0x4] sm:$0xf] (%p5001_p6) }
 0x23c   : > { %3905 = vst [vmem:[%s3887_s27] sm:$0xf] (%p5001_p6), %v3904_v43 }
 0x23d   : > { %v3854_v38 = vadd.f32 %v3853_v36, %v3835_v35  ;;  %3907 = vst [vmem:[%s3887_s27 + $0x8] sm:$0xf] (%p5001_p6), %v3906_v44 }
 0x23f   : > { %vm3859_vm3 = vcmp.gt.f32.partialorder %v3854_v38, 0.0  ;;  %v3863_v39 = vmul.f32 0.2, %v3854_v38 }
 0x240   : > { %3882 = sbr.rel (!%p5001_p6) target bundleno = 590 (0x24e), region = 88 }
 0x241   : > { %v3867_v41 = vsel %vm3859_vm3, %v3854_v38, %v3863_v39 }
 0x242   : > { %v4862_v42 = vpack.c.bf16 %v3867_v41, %v3866_v40 }
 0x244   : > { %4864 = vst [vmem:[%s2320_s19 + $0x8] sm:$0xff] %v4862_v42  }
 0x24b   : > { %v3908_v45 = vld [vmem:[%s2320_s19 + $0x8] sm:$0xf]  ;;  %v3910_v46 = vld [vmem:[%s2320_s19 + $0xc] sm:$0xf] }
 0x24c   : > { %3909 = vst [vmem:[%s3887_s27 + $0x10] sm:$0xf] %v3908_v45 }
 0x24d   : > { %3911 = vst [vmem:[%s3887_s27 + $0x18] sm:$0xf] %v3910_v46 }
 0x24e PF: > { %s13_s16 = sadd.s32 1, %s4944_s16   ;;  %s5898_s12 = smov %s4932_s13 }
 0x24f   : > { %p10_p12 = scmp.ge.s32.totalorder %s13_s16, 4   ;;  %s5899_s13 = smov %s5006_s22 }
 0x250   : > { %s5900_s14 = smov %s4940_s15  ;;  %s5901_s15 = smov %s5903_s17 }
 0x251   :  { %12 = sbr.rel (!%p10_p12) target bundleno = 3 (0x3), region = 170 }

</bundles_post_ra>
